<compile_context>
chip_gen: v6e
topology: v6e:2x2x1
jax: 0.10.0
libtpu: 0.0.40
codegen_flags: <defaults>
</compile_context>

<pallas_src>
import functools
import math

import jax
import jax.numpy as jnp
from jax.experimental import pallas as pl
from jax.experimental.pallas import tpu as pltpu


def _round_up(x, m):
    return (x + m - 1) // m * m


# ----------------------------------------------------------------------------
# Kernel 1: tiled GEMM + folded-BN affine (+ReLU), bf16 in / f32 accumulate
# ----------------------------------------------------------------------------
def _gemm_kernel(relu, x_ref, w_ref, s_ref, t_ref, o_ref, acc_ref):
    @pl.when(pl.program_id(2) == 0)
    def _():
        acc_ref[...] = jnp.zeros_like(acc_ref)

    acc_ref[...] += jnp.dot(x_ref[...], w_ref[...],
                            preferred_element_type=jnp.float32)

    @pl.when(pl.program_id(2) == pl.num_programs(2) - 1)
    def _():
        y = acc_ref[...] * s_ref[...] + t_ref[...]   # bias already folded in shift
        if relu:
            y = jnp.maximum(y, 0.0)
        o_ref[...] = y.astype(o_ref.dtype)


def fused_matmul_bn_act(x, w, scale, shift, *, relu, out_dtype=jnp.bfloat16,
                        tm=256, tn=256, tk=512):
    """(M,K) @ (K,N), then per-column scale/shift (+ReLU).  MXU runs in bf16.

    For skinny GEMMs (single M and N tile) the K grid is collapsed so the
    whole reduction is one grid step (e.g. tk=2048 for the f5 1x1 conv:
    ~1 MiB bf16 weight tile + 128 KiB activation — fits all generations).
    TODO(synk): on v7x (2 TensorCores) a single-step grid leaves one core
    idle; shrinking tm to 16 would give a 2-way parallel M axis there.
    """
    M, K = x.shape
    N = w.shape[1]
    tm = min(tm, _round_up(M, 16))        # bf16 sublane packing
    tn = min(tn, _round_up(N, 128))
    Mp, Np = _round_up(M, tm), _round_up(N, tn)
    if Mp == tm and Np == tn:
        tk = min(_round_up(K, 128), 4096)   # collapse K grid for skinny GEMMs
    else:
        tk = min(tk, _round_up(K, 128))
    Kp = _round_up(K, tk)

    xp = jnp.pad(x, ((0, Mp - M), (0, Kp - K))).astype(jnp.bfloat16)
    wp = jnp.pad(w, ((0, Kp - K), (0, Np - N))).astype(jnp.bfloat16)
    sp = jnp.pad(scale.reshape(1, -1).astype(jnp.float32), ((0, 0), (0, Np - N)))
    tp = jnp.pad(shift.reshape(1, -1).astype(jnp.float32), ((0, 0), (0, Np - N)))

    out_bytes = Mp * Np * jnp.dtype(out_dtype).itemsize
    cost = pl.CostEstimate(flops=2 * M * K * N, transcendentals=0,
                           bytes_accessed=(Mp * Kp + Kp * Np) * 2 + out_bytes
                           + 2 * Np * 4)

    out = pl.pallas_call(
        functools.partial(_gemm_kernel, relu),
        out_shape=jax.ShapeDtypeStruct((Mp, Np), out_dtype),
        grid_spec=pltpu.PrefetchScalarGridSpec(
            num_scalar_prefetch=0,
            grid=(Mp // tm, Np // tn, Kp // tk),
            in_specs=[
                pl.BlockSpec((tm, tk), lambda i, j, k: (i, k)),
                pl.BlockSpec((tk, tn), lambda i, j, k: (k, j)),
                pl.BlockSpec((1, tn), lambda i, j, k: (0, j)),
                pl.BlockSpec((1, tn), lambda i, j, k: (0, j)),
            ],
            out_specs=pl.BlockSpec((tm, tn), lambda i, j, k: (i, j)),
            scratch_shapes=[pltpu.VMEM((tm, tn), jnp.float32)],
        ),
        compiler_params=pltpu.CompilerParams(
            dimension_semantics=("parallel", "parallel", "arbitrary")),
        cost_estimate=cost,
    )(xp, wp, sp, tp)
    return out[:M, :N]


# ----------------------------------------------------------------------------
# Kernel 2: fused 3x3 conv (multi-stream => fused concat) + BN + ReLU,
#           optional fused final 1x1 (Cout=1) projection as a VPU epilogue.
# Whole padded plane per (tile, batch) grid step; 9 taps as (H*W, C) GEMMs
# accumulated in a VMEM f32 scratch.  No im2col tensor in HBM.
# ----------------------------------------------------------------------------
def _conv3x3_kernel(c_list, H, W, final, *refs):
    acc_ref = refs[-1]                       # (H*W, Np) f32 VMEM scratch
    o_ref = refs[-2]
    in_refs = refs[:-2]
    idx = 0
    first = True
    for C in c_list:
        x_ref, w_ref = in_refs[idx], in_refs[idx + 1]
        idx += 2
        for dy in range(3):
            rows = x_ref[0, dy:dy + H]       # (H, W+2, C) bf16
            for dx in range(3):
                patch = rows[:, dx:dx + W, :].reshape(H * W, C)
                tap = 3 * dy + dx
                wk = w_ref[tap * C:(tap + 1) * C, :]
                contrib = jnp.dot(patch, wk, preferred_element_type=jnp.float32)
                if first:
                    acc_ref[...] = contrib
                    first = False
                else:
                    acc_ref[...] += contrib
    s_ref, t_ref = in_refs[idx], in_refs[idx + 1]
    y = jnp.maximum(acc_ref[...] * s_ref[...] + t_ref[...], 0.0)   # BN + ReLU
    if final:
        # Fused Conv2d(Cout->1, k=1): VPU channel reduction; output is a
        # lane-dense (H, W) plane (W in the lane dim), never a (.,1) store.
        w3_ref, b3_ref = in_refs[idx + 2], in_refs[idx + 3]
        y3 = y.reshape(H, W, y.shape[-1])
        z = jnp.sum(y3 * w3_ref[...], axis=-1) + b3_ref[:, :1]
        o_ref[0] = z.astype(o_ref.dtype)
    else:
        o_ref[0] = y.astype(o_ref.dtype)     # (H*W, tn) — fully lane-dense


def conv3x3_wmat(w_oihw):
    """(Cout, Cin, 3, 3) -> (9*Cin, Cout) with (ky, kx, cin) row ordering."""
    cout = w_oihw.shape[0]
    return jnp.transpose(w_oihw, (2, 3, 1, 0)).reshape(-1, cout)


def conv3x3_bn_relu_fused(streams, scale, shift, *, final_w=None, final_b=None,
                          out_dtype=jnp.bfloat16):
    """3x3 conv (stride 1, pad 1, no bias) + BN + ReLU.

    streams: list of (x_nhwc, w_mat) pairs whose contributions are summed —
    i.e. a channel-concat fused into the conv.  If final_w/final_b are given,
    a 1x1 conv to a single channel is fused as the epilogue and the kernel
    emits a (B, H, W) float32 plane instead of the Cout-channel activation.
    """
    B, H, W, _ = streams[0][0].shape
    Cout = streams[0][1].shape[1]
    tn = min(256, _round_up(Cout, 128))
    Np = _round_up(Cout, tn)
    n_tiles = Np // tn
    final = final_w is not None
    if final:
        assert n_tiles == 1, "fused 1x1 epilogue needs the full Cout tile resident"
    Hp, Wp = H + 2, W + 2

    operands, in_specs, c_list = [], [], []
    flops = 0
    bytes_acc = 0
    for x, wmat in streams:
        C = x.shape[-1]
        c_list.append(C)
        # TODO(synk): the jnp.pad below is an extra HBM round-trip of the
        # activation; producers could write into a pre-padded buffer instead.
        xpad = jnp.pad(x.astype(jnp.bfloat16), ((0, 0), (1, 1), (1, 1), (0, 0)))
        operands.append(xpad)
        in_specs.append(pl.BlockSpec((1, Hp, Wp, C), lambda n, b: (b, 0, 0, 0)))
        wp = jnp.pad(wmat.astype(jnp.bfloat16), ((0, 0), (0, Np - Cout)))
        operands.append(wp)
        in_specs.append(pl.BlockSpec((9 * C, tn), lambda n, b: (0, n)))
        flops += 2 * B * H * W * 9 * C * Np
        bytes_acc += xpad.size * 2 + wp.size * 2

    sp = jnp.pad(scale.reshape(1, -1).astype(jnp.float32), ((0, 0), (0, Np - Cout)))
    tp = jnp.pad(shift.reshape(1, -1).astype(jnp.float32), ((0, 0), (0, Np - Cout)))
    operands += [sp, tp]
    in_specs += [pl.BlockSpec((1, tn), lambda n, b: (0, n)),
                 pl.BlockSpec((1, tn), lambda n, b: (0, n))]

    if final:
        w3 = jnp.pad(final_w.reshape(1, -1).astype(jnp.float32),
                     ((0, 0), (0, Np - Cout)))
        b3 = jnp.broadcast_to(final_b.reshape(1, 1).astype(jnp.float32), (1, Np))
        operands += [w3, b3]
        in_specs += [pl.BlockSpec((1, tn), lambda n, b: (0, n)),
                     pl.BlockSpec((1, tn), lambda n, b: (0, n))]
        out_shape = jax.ShapeDtypeStruct((B, H, W), jnp.float32)
        out_spec = pl.BlockSpec((1, H, W), lambda n, b: (b, 0, 0))
        bytes_acc += B * H * W * 4
    else:
        # Lane-dense intermediate: (B, H*W, Np); reshaped to NHWC by caller.
        out_shape = jax.ShapeDtypeStruct((B, H * W, Np), out_dtype)
        out_spec = pl.BlockSpec((1, H * W, tn), lambda n, b: (b, 0, n))
        bytes_acc += B * H * W * Np * 2

    out = pl.pallas_call(
        functools.partial(_conv3x3_kernel, tuple(c_list), H, W, final),
        out_shape=out_shape,
        grid_spec=pltpu.PrefetchScalarGridSpec(
            num_scalar_prefetch=0,
            grid=(n_tiles, B),
            in_specs=in_specs,
            out_specs=out_spec,
            scratch_shapes=[pltpu.VMEM((H * W, tn), jnp.float32)],
        ),
        compiler_params=pltpu.CompilerParams(
            dimension_semantics=("parallel", "parallel"),
            # Explicit budget: safe on v5e/v6e (128 MiB) and v7x (64 MiB).
            vmem_limit_bytes=32 * 1024 * 1024),
        cost_estimate=pl.CostEstimate(flops=flops, transcendentals=0,
                                      bytes_accessed=bytes_acc),
    )(*operands)

    if final:
        return out                                   # (B, H, W) f32
    x1 = out.reshape(B, H, W, Np)
    if Np > Cout:
        x1 = x1[..., :Cout]
    return x1


# ----------------------------------------------------------------------------
# Bilinear resize (align_corners=False) — pure data-movement glue (plain JAX)
# ----------------------------------------------------------------------------
def bilinear_resize_nhwc(x, out_h, out_w):
    B, H, W, C = x.shape

    def coords(osz, isz):
        i = jnp.arange(osz, dtype=jnp.float32)
        src = (i + 0.5) * (isz / osz) - 0.5
        src = jnp.clip(src, 0.0, isz - 1.0)
        i0 = jnp.floor(src).astype(jnp.int32)
        i1 = jnp.minimum(i0 + 1, isz - 1)
        w1 = src - i0.astype(jnp.float32)
        return i0, i1, 1.0 - w1, w1

    y0, y1, wy0, wy1 = coords(out_h, H)
    x0, x1, wx0, wx1 = coords(out_w, W)
    top = x[:, y0, :, :]
    bot = x[:, y1, :, :]

    def horiz(r):
        return (r[:, :, x0, :] * wx0[None, None, :, None]
                + r[:, :, x1, :] * wx1[None, None, :, None])

    return (horiz(top) * wy0[None, :, None, None]
            + horiz(bot) * wy1[None, :, None, None])


# ----------------------------------------------------------------------------
# Parameters (deterministic, synthetic) and EAM forward
# ----------------------------------------------------------------------------
def init_params(key):
    ks = jax.random.split(key, 16)

    def conv_w(k, cout, cin, kk):
        std = 1.0 / math.sqrt(cin * kk * kk)
        return jax.random.normal(k, (cout, cin, kk, kk), jnp.float32) * std

    def bn_fold(kg, kb, c, eps=1e-5):
        gamma = 1.0 + 0.1 * jax.random.normal(kg, (c,), jnp.float32)
        beta = 0.1 * jax.random.normal(kb, (c,), jnp.float32)
        running_mean = jnp.zeros((c,), jnp.float32)
        running_var = jnp.ones((c,), jnp.float32)
        scale = gamma * jax.lax.rsqrt(running_var + eps)
        shift = beta - running_mean * scale
        return scale, shift

    p = {}
    # f2_cnn: Conv2d(256->64, k=1, bias=True) + BN + ReLU
    p['f2_w'] = conv_w(ks[0], 64, 256, 1)[:, :, 0, 0]
    p['f2_b'] = 0.1 * jax.random.normal(ks[1], (64,), jnp.float32)
    p['f2_scale'], p['f2_shift'] = bn_fold(ks[2], ks[3], 64)
    # f5_cnn: Conv2d(2048->256, k=1, bias=True) + BN + ReLU
    p['f5_w'] = conv_w(ks[4], 256, 2048, 1)[:, :, 0, 0]
    p['f5_b'] = 0.1 * jax.random.normal(ks[5], (256,), jnp.float32)
    p['f5_scale'], p['f5_shift'] = bn_fold(ks[6], ks[7], 256)
    # concat_block[0]: Conv2d(320->256, k=3, pad=1, bias=False) + BN + ReLU
    p['c1_w'] = conv_w(ks[8], 256, 320, 3)
    p['c1_scale'], p['c1_shift'] = bn_fold(ks[9], ks[10], 256)
    # concat_block[1]: Conv2d(256->256, k=3, pad=1, bias=False) + BN + ReLU
    p['c2_w'] = conv_w(ks[11], 256, 256, 3)
    p['c2_scale'], p['c2_shift'] = bn_fold(ks[12], ks[13], 256)
    # concat_block[2]: Conv2d(256->1, k=1, bias=True)
    p['c3_w'] = conv_w(ks[14], 1, 256, 1)[:, :, 0, 0]
    p['c3_b'] = 0.1 * jax.random.normal(ks[15], (1,), jnp.float32)
    return p


def eam_forward(params, f2_nchw, f5_nchw):
    # Fuse the f32->bf16 cast with the NCHW->NHWC transpose (halves transpose
    # HBM traffic for the 2048-channel f5 tensor).
    f2 = jnp.transpose(f2_nchw.astype(jnp.bfloat16), (0, 2, 3, 1))
    f5 = jnp.transpose(f5_nchw.astype(jnp.bfloat16), (0, 2, 3, 1))
    B, H2, W2, _ = f2.shape

    # 1x1 convs as fused GEMMs; conv bias folded into the BN shift.
    def conv1x1(x, w_oc_ic, bias, scale, shift):
        Bx, Hx, Wx, C = x.shape
        shift_f = bias * scale + shift
        y = fused_matmul_bn_act(x.reshape(-1, C), w_oc_ic.T, scale, shift_f,
                                relu=True, out_dtype=jnp.bfloat16)
        return y.reshape(Bx, Hx, Wx, -1)

    f2o = conv1x1(f2, params['f2_w'], params['f2_b'],
                  params['f2_scale'], params['f2_shift'])          # (B,H,W,64) bf16
    f5o = conv1x1(f5, params['f5_w'], params['f5_b'],
                  params['f5_scale'], params['f5_shift'])          # (B,h,w,256) bf16
    f5u = bilinear_resize_nhwc(f5o, H2, W2).astype(jnp.bfloat16)   # (B,H,W,256)

    # concat fused into the first 3x3 conv: weight split along input channels
    # (torch.cat order: f2 channels first, then f5 channels).
    w1a = conv3x3_wmat(params['c1_w'][:, :64])
    w1b = conv3x3_wmat(params['c1_w'][:, 64:])
    x1 = conv3x3_bn_relu_fused([(f2o, w1a), (f5u, w1b)],
                               params['c1_scale'], params['c1_shift'])  # (B,H,W,256)

    # second 3x3 conv with the final Conv2d(256->1, k=1) fused as epilogue.
    w2 = conv3x3_wmat(params['c2_w'])
    out = conv3x3_bn_relu_fused([(x1, w2)],
                                params['c2_scale'], params['c2_shift'],
                                final_w=params['c3_w'], final_b=params['c3_b'])
    return out[:, None, :, :]                                       # (B,1,H,W)


if __name__ == "__main__":
    key = jax.random.PRNGKey(0)
    kp, k2, k5 = jax.random.split(key, 3)
    params = init_params(kp)

    # Small shapes consistent with EAM: f2 has 256 channels, f5 has 2048
    # channels at a coarser resolution (upsampled to f2's spatial size).
    f2 = jax.random.normal(k2, (2, 256, 8, 8), jnp.float32)
    f5 = jax.random.normal(k5, (2, 2048, 4, 4), jnp.float32)

    fwd = jax.jit(functools.partial(eam_forward, params))
    out = jax.block_until_ready(fwd(f2, f5))
    assert out.shape == (2, 1, 8, 8), out.shape
    assert jnp.all(jnp.isfinite(out))
    print("KERNEL_OK")
</pallas_src>

<mosaic_0001>
module attributes {stable_mosaic.version = 11 : i64} {
  func.func @_gemm_kernel(%arg0: i32, %arg1: i32, %arg2: i32, %arg3: memref<32x2048xbf16, #tpu.memory_space<vmem>>, %arg4: memref<2048x256xbf16, #tpu.memory_space<vmem>>, %arg5: memref<1x256xf32, #tpu.memory_space<vmem>>, %arg6: memref<1x256xf32, #tpu.memory_space<vmem>>, %arg7: memref<32x256xbf16, #tpu.memory_space<vmem>>, %arg8: memref<32x256xf32, #tpu.memory_space<vmem>>) attributes {dimension_semantics = [#tpu.dimension_semantics<parallel>, #tpu.dimension_semantics<parallel>, #tpu.dimension_semantics<arbitrary>], iteration_bounds = array<i64: 1, 1, 1>, scalar_prefetch = 0 : i64, scratch_operands = 1 : i64, tpu.core_type = #tpu.core_type<tc>, window_params = [{transform_indices = @transform_0, window_bounds = array<i64: 32, 2048>}, {transform_indices = @transform_1, window_bounds = array<i64: 2048, 256>}, {transform_indices = @transform_2, window_bounds = array<i64: 1, 256>}, {transform_indices = @transform_3, window_bounds = array<i64: 1, 256>}, {transform_indices = @transform_4, window_bounds = array<i64: 32, 256>}]} {
    %c0_i32 = arith.constant 0 : i32
    %0 = arith.cmpi eq, %arg2, %c0_i32 : i32
    %1 = arith.extui %0 : i1 to i32
    %c0_i32_0 = arith.constant 0 : i32
    %2 = arith.cmpi ne, %1, %c0_i32_0 : i32
    scf.if %2 {
      %cst_10 = arith.constant 0.000000e+00 : f32
      %12 = vector.broadcast %cst_10 : f32 to vector<32x256xf32>
      %c0_11 = arith.constant 0 : index
      %c0_12 = arith.constant 0 : index
      %13 = vector.load %arg8[%c0_11, %c0_12] : memref<32x256xf32, #tpu.memory_space<vmem>>, vector<32x256xf32>
      tpu.vector_store %arg8[%c0_11, %c0_12], %12 {strides = array<i32>} : memref<32x256xf32, #tpu.memory_space<vmem>>, vector<32x256xf32>,
    } else {
    }
    %c0 = arith.constant 0 : index
    %c0_1 = arith.constant 0 : index
    %3 = vector.load %arg8[%c0, %c0_1] : memref<32x256xf32, #tpu.memory_space<vmem>>, vector<32x256xf32>
    %c0_2 = arith.constant 0 : index
    %c0_3 = arith.constant 0 : index
    %4 = vector.load %arg3[%c0_2, %c0_3] : memref<32x2048xbf16, #tpu.memory_space<vmem>>, vector<32x2048xbf16>
    %c0_4 = arith.constant 0 : index
    %c0_5 = arith.constant 0 : index
    %5 = vector.load %arg4[%c0_4, %c0_5] : memref<2048x256xbf16, #tpu.memory_space<vmem>>, vector<2048x256xbf16>
    %cst = arith.constant dense<0.000000e+00> : vector<32x256xf32>
    %6 = tpu.matmul %4, %5, %cst {dimension_numbers = #tpu.dot_dimension_numbers<[1], [0], [0], [1], [0, 0, 1, 1], [], []>} : vector<32x2048xbf16>, vector<2048x256xbf16>, vector<32x256xf32> -> vector<32x256xf32>
    %7 = arith.addf %3, %6 : vector<32x256xf32>
    %c0_6 = arith.constant 0 : index
    %c0_7 = arith.constant 0 : index
    %8 = vector.load %arg8[%c0_6, %c0_7] : memref<32x256xf32, #tpu.memory_space<vmem>>, vector<32x256xf32>
    tpu.vector_store %arg8[%c0_6, %c0_7], %7 {strides = array<i32>} : memref<32x256xf32, #tpu.memory_space<vmem>>, vector<32x256xf32>,
    %c0_i32_8 = arith.constant 0 : i32
    %9 = arith.cmpi eq, %arg2, %c0_i32_8 : i32
    %10 = arith.extui %9 : i1 to i32
    %c0_i32_9 = arith.constant 0 : i32
    %11 = arith.cmpi ne, %10, %c0_i32_9 : i32
    scf.if %11 {
      %c0_10 = arith.constant 0 : index
      %c0_11 = arith.constant 0 : index
      %12 = vector.load %arg8[%c0_10, %c0_11] : memref<32x256xf32, #tpu.memory_space<vmem>>, vector<32x256xf32>
      %c0_12 = arith.constant 0 : index
      %c0_13 = arith.constant 0 : index
      %13 = vector.load %arg5[%c0_12, %c0_13] : memref<1x256xf32, #tpu.memory_space<vmem>>, vector<1x256xf32>
      %14 = vector.broadcast %13 : vector<1x256xf32> to vector<32x256xf32>
      %15 = arith.mulf %12, %14 : vector<32x256xf32>
      %c0_14 = arith.constant 0 : index
      %c0_15 = arith.constant 0 : index
      %16 = vector.load %arg6[%c0_14, %c0_15] : memref<1x256xf32, #tpu.memory_space<vmem>>, vector<1x256xf32>
      %17 = vector.broadcast %16 : vector<1x256xf32> to vector<32x256xf32>
      %18 = arith.addf %15, %17 : vector<32x256xf32>
      %cst_16 = arith.constant 0.000000e+00 : f32
      %19 = vector.broadcast %cst_16 : f32 to vector<32x256xf32>
      %20 = arith.maximumf %18, %19 : vector<32x256xf32>
      %21 = arith.truncf %20 : vector<32x256xf32> to vector<32x256xbf16>
      %c0_17 = arith.constant 0 : index
      %c0_18 = arith.constant 0 : index
      %22 = vector.load %arg7[%c0_17, %c0_18] : memref<32x256xbf16, #tpu.memory_space<vmem>>, vector<32x256xbf16>
      tpu.vector_store %arg7[%c0_17, %c0_18], %21 {strides = array<i32>} : memref<32x256xbf16, #tpu.memory_space<vmem>>, vector<32x256xbf16>,
    } else {
    }
    return
  }
  func.func @transform_0(%arg0: i32, %arg1: i32, %arg2: i32) -> (i32, i32) {
    %c0_i32 = arith.constant 0 : i32
    return %arg0, %arg2 : i32, i32
  }
  func.func @transform_1(%arg0: i32, %arg1: i32, %arg2: i32) -> (i32, i32) {
    %c0_i32 = arith.constant 0 : i32
    return %arg2, %arg1 : i32, i32
  }
  func.func @transform_2(%arg0: i32, %arg1: i32, %arg2: i32) -> (i32, i32) {
    %c0_i32 = arith.constant 0 : i32
    %c0_i32_0 = arith.constant 0 : i32
    return %c0_i32, %arg1 : i32, i32
  }
  func.func @transform_3(%arg0: i32, %arg1: i32, %arg2: i32) -> (i32, i32) {
    %c0_i32 = arith.constant 0 : i32
    %c0_i32_0 = arith.constant 0 : i32
    return %c0_i32, %arg1 : i32, i32
  }
  func.func @transform_4(%arg0: i32, %arg1: i32, %arg2: i32) -> (i32, i32) {
    %c0_i32 = arith.constant 0 : i32
    return %arg0, %arg1 : i32, i32
  }
}

module attributes {stable_mosaic.version = 11 : i64} {
  func.func @_gemm_kernel(%arg0: i32, %arg1: i32, %arg2: i32, %arg3: memref<128x256xbf16, #tpu.memory_space<vmem>>, %arg4: memref<256x128xbf16, #tpu.memory_space<vmem>>, %arg5: memref<1x128xf32, #tpu.memory_space<vmem>>, %arg6: memref<1x128xf32, #tpu.memory_space<vmem>>, %arg7: memref<128x128xbf16, #tpu.memory_space<vmem>>, %arg8: memref<128x128xf32, #tpu.memory_space<vmem>>) attributes {dimension_semantics = [#tpu.dimension_semantics<parallel>, #tpu.dimension_semantics<parallel>, #tpu.dimension_semantics<arbitrary>], iteration_bounds = array<i64: 1, 1, 1>, scalar_prefetch = 0 : i64, scratch_operands = 1 : i64, tpu.core_type = #tpu.core_type<tc>, window_params = [{transform_indices = @transform_0, window_bounds = array<i64: 128, 256>}, {transform_indices = @transform_1, window_bounds = array<i64: 256, 128>}, {transform_indices = @transform_2, window_bounds = array<i64: 1, 128>}, {transform_indices = @transform_3, window_bounds = array<i64: 1, 128>}, {transform_indices = @transform_4, window_bounds = array<i64: 128, 128>}]} {
    %c0_i32 = arith.constant 0 : i32
    %0 = arith.cmpi eq, %arg2, %c0_i32 : i32
    %1 = arith.extui %0 : i1 to i32
    %c0_i32_0 = arith.constant 0 : i32
    %2 = arith.cmpi ne, %1, %c0_i32_0 : i32
    scf.if %2 {
      %cst_10 = arith.constant 0.000000e+00 : f32
      %12 = vector.broadcast %cst_10 : f32 to vector<128x128xf32>
      %c0_11 = arith.constant 0 : index
      %c0_12 = arith.constant 0 : index
      %13 = vector.load %arg8[%c0_11, %c0_12] : memref<128x128xf32, #tpu.memory_space<vmem>>, vector<128x128xf32>
      tpu.vector_store %arg8[%c0_11, %c0_12], %12 {strides = array<i32>} : memref<128x128xf32, #tpu.memory_space<vmem>>, vector<128x128xf32>,
    } else {
    }
    %c0 = arith.constant 0 : index
    %c0_1 = arith.constant 0 : index
    %3 = vector.load %arg8[%c0, %c0_1] : memref<128x128xf32, #tpu.memory_space<vmem>>, vector<128x128xf32>
    %c0_2 = arith.constant 0 : index
    %c0_3 = arith.constant 0 : index
    %4 = vector.load %arg3[%c0_2, %c0_3] : memref<128x256xbf16, #tpu.memory_space<vmem>>, vector<128x256xbf16>
    %c0_4 = arith.constant 0 : index
    %c0_5 = arith.constant 0 : index
    %5 = vector.load %arg4[%c0_4, %c0_5] : memref<256x128xbf16, #tpu.memory_space<vmem>>, vector<256x128xbf16>
    %cst = arith.constant dense<0.000000e+00> : vector<128x128xf32>
    %6 = tpu.matmul %4, %5, %cst {dimension_numbers = #tpu.dot_dimension_numbers<[1], [0], [0], [1], [0, 0, 1, 1], [], []>} : vector<128x256xbf16>, vector<256x128xbf16>, vector<128x128xf32> -> vector<128x128xf32>
    %7 = arith.addf %3, %6 : vector<128x128xf32>
    %c0_6 = arith.constant 0 : index
    %c0_7 = arith.constant 0 : index
    %8 = vector.load %arg8[%c0_6, %c0_7] : memref<128x128xf32, #tpu.memory_space<vmem>>, vector<128x128xf32>
    tpu.vector_store %arg8[%c0_6, %c0_7], %7 {strides = array<i32>} : memref<128x128xf32, #tpu.memory_space<vmem>>, vector<128x128xf32>,
    %c0_i32_8 = arith.constant 0 : i32
    %9 = arith.cmpi eq, %arg2, %c0_i32_8 : i32
    %10 = arith.extui %9 : i1 to i32
    %c0_i32_9 = arith.constant 0 : i32
    %11 = arith.cmpi ne, %10, %c0_i32_9 : i32
    scf.if %11 {
      %c0_10 = arith.constant 0 : index
      %c0_11 = arith.constant 0 : index
      %12 = vector.load %arg8[%c0_10, %c0_11] : memref<128x128xf32, #tpu.memory_space<vmem>>, vector<128x128xf32>
      %c0_12 = arith.constant 0 : index
      %c0_13 = arith.constant 0 : index
      %13 = vector.load %arg5[%c0_12, %c0_13] : memref<1x128xf32, #tpu.memory_space<vmem>>, vector<1x128xf32>
      %14 = vector.broadcast %13 : vector<1x128xf32> to vector<128x128xf32>
      %15 = arith.mulf %12, %14 : vector<128x128xf32>
      %c0_14 = arith.constant 0 : index
      %c0_15 = arith.constant 0 : index
      %16 = vector.load %arg6[%c0_14, %c0_15] : memref<1x128xf32, #tpu.memory_space<vmem>>, vector<1x128xf32>
      %17 = vector.broadcast %16 : vector<1x128xf32> to vector<128x128xf32>
      %18 = arith.addf %15, %17 : vector<128x128xf32>
      %cst_16 = arith.constant 0.000000e+00 : f32
      %19 = vector.broadcast %cst_16 : f32 to vector<128x128xf32>
      %20 = arith.maximumf %18, %19 : vector<128x128xf32>
      %21 = arith.truncf %20 : vector<128x128xf32> to vector<128x128xbf16>
      %c0_17 = arith.constant 0 : index
      %c0_18 = arith.constant 0 : index
      %22 = vector.load %arg7[%c0_17, %c0_18] : memref<128x128xbf16, #tpu.memory_space<vmem>>, vector<128x128xbf16>
      tpu.vector_store %arg7[%c0_17, %c0_18], %21 {strides = array<i32>} : memref<128x128xbf16, #tpu.memory_space<vmem>>, vector<128x128xbf16>,
    } else {
    }
    return
  }
  func.func @transform_0(%arg0: i32, %arg1: i32, %arg2: i32) -> (i32, i32) {
    %c0_i32 = arith.constant 0 : i32
    return %arg0, %arg2 : i32, i32
  }
  func.func @transform_1(%arg0: i32, %arg1: i32, %arg2: i32) -> (i32, i32) {
    %c0_i32 = arith.constant 0 : i32
    return %arg2, %arg1 : i32, i32
  }
  func.func @transform_2(%arg0: i32, %arg1: i32, %arg2: i32) -> (i32, i32) {
    %c0_i32 = arith.constant 0 : i32
    %c0_i32_0 = arith.constant 0 : i32
    return %c0_i32, %arg1 : i32, i32
  }
  func.func @transform_3(%arg0: i32, %arg1: i32, %arg2: i32) -> (i32, i32) {
    %c0_i32 = arith.constant 0 : i32
    %c0_i32_0 = arith.constant 0 : i32
    return %c0_i32, %arg1 : i32, i32
  }
  func.func @transform_4(%arg0: i32, %arg1: i32, %arg2: i32) -> (i32, i32) {
    %c0_i32 = arith.constant 0 : i32
    return %arg0, %arg1 : i32, i32
  }
}

module attributes {stable_mosaic.version = 11 : i64} {
  func.func @_conv3x3_kernel(%arg0: i32, %arg1: i32, %arg2: memref<1x10x10x64xbf16, #tpu.memory_space<vmem>>, %arg3: memref<576x256xbf16, #tpu.memory_space<vmem>>, %arg4: memref<1x10x10x256xbf16, #tpu.memory_space<vmem>>, %arg5: memref<2304x256xbf16, #tpu.memory_space<vmem>>, %arg6: memref<1x256xf32, #tpu.memory_space<vmem>>, %arg7: memref<1x256xf32, #tpu.memory_space<vmem>>, %arg8: memref<1x64x256xbf16, #tpu.memory_space<vmem>>, %arg9: memref<64x256xf32, #tpu.memory_space<vmem>>) attributes {dimension_semantics = [#tpu.dimension_semantics<parallel>, #tpu.dimension_semantics<parallel>], iteration_bounds = array<i64: 1, 2>, scalar_prefetch = 0 : i64, scratch_operands = 1 : i64, tpu.core_type = #tpu.core_type<tc>, window_params = [{transform_indices = @transform_0, window_bounds = array<i64: 1, 10, 10, 64>}, {transform_indices = @transform_1, window_bounds = array<i64: 576, 256>}, {transform_indices = @transform_2, window_bounds = array<i64: 1, 10, 10, 256>}, {transform_indices = @transform_3, window_bounds = array<i64: 2304, 256>}, {transform_indices = @transform_4, window_bounds = array<i64: 1, 256>}, {transform_indices = @transform_5, window_bounds = array<i64: 1, 256>}, {transform_indices = @transform_6, window_bounds = array<i64: 1, 64, 256>}]} {
    %c0 = arith.constant 0 : index
    %c0_0 = arith.constant 0 : index
    %c0_1 = arith.constant 0 : index
    %c0_2 = arith.constant 0 : index
    %0 = vector.load %arg2[%c0, %c0_0, %c0_1, %c0_2] : memref<1x10x10x64xbf16, #tpu.memory_space<vmem>>, vector<1x8x10x64xbf16>
    %1 = vector.shape_cast %0 : vector<1x8x10x64xbf16> to vector<8x10x64xbf16>
    %2 = vector.extract_strided_slice %1 {offsets = [0, 0, 0], sizes = [8, 8, 64], strides = [1, 1, 1]} : vector<8x10x64xbf16> to vector<8x8x64xbf16>
    %3 = vector.shape_cast %2 : vector<8x8x64xbf16> to vector<64x64xbf16>
    %c0_3 = arith.constant 0 : index
    %c0_4 = arith.constant 0 : index
    %4 = vector.load %arg3[%c0_3, %c0_4] : memref<576x256xbf16, #tpu.memory_space<vmem>>, vector<64x256xbf16>
    %cst = arith.constant dense<0.000000e+00> : vector<64x256xf32>
    %5 = tpu.matmul %3, %4, %cst {dimension_numbers = #tpu.dot_dimension_numbers<[1], [0], [0], [1], [0, 0, 1, 1], [], []>} : vector<64x64xbf16>, vector<64x256xbf16>, vector<64x256xf32> -> vector<64x256xf32>
    %c0_5 = arith.constant 0 : index
    %c0_6 = arith.constant 0 : index
    %6 = vector.load %arg9[%c0_5, %c0_6] : memref<64x256xf32, #tpu.memory_space<vmem>>, vector<64x256xf32>
    tpu.vector_store %arg9[%c0_5, %c0_6], %5 {strides = array<i32>} : memref<64x256xf32, #tpu.memory_space<vmem>>, vector<64x256xf32>,
    %7 = vector.extract_strided_slice %1 {offsets = [0, 1, 0], sizes = [8, 8, 64], strides = [1, 1, 1]} : vector<8x10x64xbf16> to vector<8x8x64xbf16>
    %8 = vector.shape_cast %7 : vector<8x8x64xbf16> to vector<64x64xbf16>
    %c64 = arith.constant 64 : index
    %c0_7 = arith.constant 0 : index
    %9 = vector.load %arg3[%c64, %c0_7] : memref<576x256xbf16, #tpu.memory_space<vmem>>, vector<64x256xbf16>
    %cst_8 = arith.constant dense<0.000000e+00> : vector<64x256xf32>
    %10 = tpu.matmul %8, %9, %cst_8 {dimension_numbers = #tpu.dot_dimension_numbers<[1], [0], [0], [1], [0, 0, 1, 1], [], []>} : vector<64x64xbf16>, vector<64x256xbf16>, vector<64x256xf32> -> vector<64x256xf32>
    %c0_9 = arith.constant 0 : index
    %c0_10 = arith.constant 0 : index
    %11 = vector.load %arg9[%c0_9, %c0_10] : memref<64x256xf32, #tpu.memory_space<vmem>>, vector<64x256xf32>
    %12 = arith.addf %11, %10 : vector<64x256xf32>
    %c0_11 = arith.constant 0 : index
    %c0_12 = arith.constant 0 : index
    %13 = vector.load %arg9[%c0_11, %c0_12] : memref<64x256xf32, #tpu.memory_space<vmem>>, vector<64x256xf32>
    tpu.vector_store %arg9[%c0_11, %c0_12], %12 {strides = array<i32>} : memref<64x256xf32, #tpu.memory_space<vmem>>, vector<64x256xf32>,
    %14 = vector.extract_strided_slice %1 {offsets = [0, 2, 0], sizes = [8, 8, 64], strides = [1, 1, 1]} : vector<8x10x64xbf16> to vector<8x8x64xbf16>
    %15 = vector.shape_cast %14 : vector<8x8x64xbf16> to vector<64x64xbf16>
    %c128 = arith.constant 128 : index
    %c0_13 = arith.constant 0 : index
    %16 = vector.load %arg3[%c128, %c0_13] : memref<576x256xbf16, #tpu.memory_space<vmem>>, vector<64x256xbf16>
    %cst_14 = arith.constant dense<0.000000e+00> : vector<64x256xf32>
    %17 = tpu.matmul %15, %16, %cst_14 {dimension_numbers = #tpu.dot_dimension_numbers<[1], [0], [0], [1], [0, 0, 1, 1], [], []>} : vector<64x64xbf16>, vector<64x256xbf16>, vector<64x256xf32> -> vector<64x256xf32>
    %c0_15 = arith.constant 0 : index
    %c0_16 = arith.constant 0 : index
    %18 = vector.load %arg9[%c0_15, %c0_16] : memref<64x256xf32, #tpu.memory_space<vmem>>, vector<64x256xf32>
    %19 = arith.addf %18, %17 : vector<64x256xf32>
    %c0_17 = arith.constant 0 : index
    %c0_18 = arith.constant 0 : index
    %20 = vector.load %arg9[%c0_17, %c0_18] : memref<64x256xf32, #tpu.memory_space<vmem>>, vector<64x256xf32>
    tpu.vector_store %arg9[%c0_17, %c0_18], %19 {strides = array<i32>} : memref<64x256xf32, #tpu.memory_space<vmem>>, vector<64x256xf32>,
    %c0_19 = arith.constant 0 : index
    %c1 = arith.constant 1 : index
    %c0_20 = arith.constant 0 : index
    %c0_21 = arith.constant 0 : index
    %21 = vector.load %arg2[%c0_19, %c1, %c0_20, %c0_21] : memref<1x10x10x64xbf16, #tpu.memory_space<vmem>>, vector<1x8x10x64xbf16>
    %22 = vector.shape_cast %21 : vector<1x8x10x64xbf16> to vector<8x10x64xbf16>
    %23 = vector.extract_strided_slice %22 {offsets = [0, 0, 0], sizes = [8, 8, 64], strides = [1, 1, 1]} : vector<8x10x64xbf16> to vector<8x8x64xbf16>
    %24 = vector.shape_cast %23 : vector<8x8x64xbf16> to vector<64x64xbf16>
    %c192 = arith.constant 192 : index
    %c0_22 = arith.constant 0 : index
    %25 = vector.load %arg3[%c192, %c0_22] : memref<576x256xbf16, #tpu.memory_space<vmem>>, vector<64x256xbf16>
    %cst_23 = arith.constant dense<0.000000e+00> : vector<64x256xf32>
    %26 = tpu.matmul %24, %25, %cst_23 {dimension_numbers = #tpu.dot_dimension_numbers<[1], [0], [0], [1], [0, 0, 1, 1], [], []>} : vector<64x64xbf16>, vector<64x256xbf16>, vector<64x256xf32> -> vector<64x256xf32>
    %c0_24 = arith.constant 0 : index
    %c0_25 = arith.constant 0 : index
    %27 = vector.load %arg9[%c0_24, %c0_25] : memref<64x256xf32, #tpu.memory_space<vmem>>, vector<64x256xf32>
    %28 = arith.addf %27, %26 : vector<64x256xf32>
    %c0_26 = arith.constant 0 : index
    %c0_27 = arith.constant 0 : index
    %29 = vector.load %arg9[%c0_26, %c0_27] : memref<64x256xf32, #tpu.memory_space<vmem>>, vector<64x256xf32>
    tpu.vector_store %arg9[%c0_26, %c0_27], %28 {strides = array<i32>} : memref<64x256xf32, #tpu.memory_space<vmem>>, vector<64x256xf32>,
    %30 = vector.extract_strided_slice %22 {offsets = [0, 1, 0], sizes = [8, 8, 64], strides = [1, 1, 1]} : vector<8x10x64xbf16> to vector<8x8x64xbf16>
    %31 = vector.shape_cast %30 : vector<8x8x64xbf16> to vector<64x64xbf16>
    %c256 = arith.constant 256 : index
    %c0_28 = arith.constant 0 : index
    %32 = vector.load %arg3[%c256, %c0_28] : memref<576x256xbf16, #tpu.memory_space<vmem>>, vector<64x256xbf16>
    %cst_29 = arith.constant dense<0.000000e+00> : vector<64x256xf32>
    %33 = tpu.matmul %31, %32, %cst_29 {dimension_numbers = #tpu.dot_dimension_numbers<[1], [0], [0], [1], [0, 0, 1, 1], [], []>} : vector<64x64xbf16>, vector<64x256xbf16>, vector<64x256xf32> -> vector<64x256xf32>
    %c0_30 = arith.constant 0 : index
    %c0_31 = arith.constant 0 : index
    %34 = vector.load %arg9[%c0_30, %c0_31] : memref<64x256xf32, #tpu.memory_space<vmem>>, vector<64x256xf32>
    %35 = arith.addf %34, %33 : vector<64x256xf32>
    %c0_32 = arith.constant 0 : index
    %c0_33 = arith.constant 0 : index
    %36 = vector.load %arg9[%c0_32, %c0_33] : memref<64x256xf32, #tpu.memory_space<vmem>>, vector<64x256xf32>
    tpu.vector_store %arg9[%c0_32, %c0_33], %35 {strides = array<i32>} : memref<64x256xf32, #tpu.memory_space<vmem>>, vector<64x256xf32>,
    %37 = vector.extract_strided_slice %22 {offsets = [0, 2, 0], sizes = [8, 8, 64], strides = [1, 1, 1]} : vector<8x10x64xbf16> to vector<8x8x64xbf16>
    %38 = vector.shape_cast %37 : vector<8x8x64xbf16> to vector<64x64xbf16>
    %c320 = arith.constant 320 : index
    %c0_34 = arith.constant 0 : index
    %39 = vector.load %arg3[%c320, %c0_34] : memref<576x256xbf16, #tpu.memory_space<vmem>>, vector<64x256xbf16>
    %cst_35 = arith.constant dense<0.000000e+00> : vector<64x256xf32>
    %40 = tpu.matmul %38, %39, %cst_35 {dimension_numbers = #tpu.dot_dimension_numbers<[1], [0], [0], [1], [0, 0, 1, 1], [], []>} : vector<64x64xbf16>, vector<64x256xbf16>, vector<64x256xf32> -> vector<64x256xf32>
    %c0_36 = arith.constant 0 : index
    %c0_37 = arith.constant 0 : index
    %41 = vector.load %arg9[%c0_36, %c0_37] : memref<64x256xf32, #tpu.memory_space<vmem>>, vector<64x256xf32>
    %42 = arith.addf %41, %40 : vector<64x256xf32>
    %c0_38 = arith.constant 0 : index
    %c0_39 = arith.constant 0 : index
    %43 = vector.load %arg9[%c0_38, %c0_39] : memref<64x256xf32, #tpu.memory_space<vmem>>, vector<64x256xf32>
    tpu.vector_store %arg9[%c0_38, %c0_39], %42 {strides = array<i32>} : memref<64x256xf32, #tpu.memory_space<vmem>>, vector<64x256xf32>,
    %c0_40 = arith.constant 0 : index
    %c2 = arith.constant 2 : index
    %c0_41 = arith.constant 0 : index
    %c0_42 = arith.constant 0 : index
    %44 = vector.load %arg2[%c0_40, %c2, %c0_41, %c0_42] : memref<1x10x10x64xbf16, #tpu.memory_space<vmem>>, vector<1x8x10x64xbf16>
    %45 = vector.shape_cast %44 : vector<1x8x10x64xbf16> to vector<8x10x64xbf16>
    %46 = vector.extract_strided_slice %45 {offsets = [0, 0, 0], sizes = [8, 8, 64], strides = [1, 1, 1]} : vector<8x10x64xbf16> to vector<8x8x64xbf16>
    %47 = vector.shape_cast %46 : vector<8x8x64xbf16> to vector<64x64xbf16>
    %c384 = arith.constant 384 : index
    %c0_43 = arith.constant 0 : index
    %48 = vector.load %arg3[%c384, %c0_43] : memref<576x256xbf16, #tpu.memory_space<vmem>>, vector<64x256xbf16>
    %cst_44 = arith.constant dense<0.000000e+00> : vector<64x256xf32>
    %49 = tpu.matmul %47, %48, %cst_44 {dimension_numbers = #tpu.dot_dimension_numbers<[1], [0], [0], [1], [0, 0, 1, 1], [], []>} : vector<64x64xbf16>, vector<64x256xbf16>, vector<64x256xf32> -> vector<64x256xf32>
    %c0_45 = arith.constant 0 : index
    %c0_46 = arith.constant 0 : index
    %50 = vector.load %arg9[%c0_45, %c0_46] : memref<64x256xf32, #tpu.memory_space<vmem>>, vector<64x256xf32>
    %51 = arith.addf %50, %49 : vector<64x256xf32>
    %c0_47 = arith.constant 0 : index
    %c0_48 = arith.constant 0 : index
    %52 = vector.load %arg9[%c0_47, %c0_48] : memref<64x256xf32, #tpu.memory_space<vmem>>, vector<64x256xf32>
    tpu.vector_store %arg9[%c0_47, %c0_48], %51 {strides = array<i32>} : memref<64x256xf32, #tpu.memory_space<vmem>>, vector<64x256xf32>,
    %53 = vector.extract_strided_slice %45 {offsets = [0, 1, 0], sizes = [8, 8, 64], strides = [1, 1, 1]} : vector<8x10x64xbf16> to vector<8x8x64xbf16>
    %54 = vector.shape_cast %53 : vector<8x8x64xbf16> to vector<64x64xbf16>
    %c448 = arith.constant 448 : index
    %c0_49 = arith.constant 0 : index
    %55 = vector.load %arg3[%c448, %c0_49] : memref<576x256xbf16, #tpu.memory_space<vmem>>, vector<64x256xbf16>
    %cst_50 = arith.constant dense<0.000000e+00> : vector<64x256xf32>
    %56 = tpu.matmul %54, %55, %cst_50 {dimension_numbers = #tpu.dot_dimension_numbers<[1], [0], [0], [1], [0, 0, 1, 1], [], []>} : vector<64x64xbf16>, vector<64x256xbf16>, vector<64x256xf32> -> vector<64x256xf32>
    %c0_51 = arith.constant 0 : index
    %c0_52 = arith.constant 0 : index
    %57 = vector.load %arg9[%c0_51, %c0_52] : memref<64x256xf32, #tpu.memory_space<vmem>>, vector<64x256xf32>
    %58 = arith.addf %57, %56 : vector<64x256xf32>
    %c0_53 = arith.constant 0 : index
    %c0_54 = arith.constant 0 : index
    %59 = vector.load %arg9[%c0_53, %c0_54] : memref<64x256xf32, #tpu.memory_space<vmem>>, vector<64x256xf32>
    tpu.vector_store %arg9[%c0_53, %c0_54], %58 {strides = array<i32>} : memref<64x256xf32, #tpu.memory_space<vmem>>, vector<64x256xf32>,
    %60 = vector.extract_strided_slice %45 {offsets = [0, 2, 0], sizes = [8, 8, 64], strides = [1, 1, 1]} : vector<8x10x64xbf16> to vector<8x8x64xbf16>
    %61 = vector.shape_cast %60 : vector<8x8x64xbf16> to vector<64x64xbf16>
    %c512 = arith.constant 512 : index
    %c0_55 = arith.constant 0 : index
    %62 = vector.load %arg3[%c512, %c0_55] : memref<576x256xbf16, #tpu.memory_space<vmem>>, vector<64x256xbf16>
    %cst_56 = arith.constant dense<0.000000e+00> : vector<64x256xf32>
    %63 = tpu.matmul %61, %62, %cst_56 {dimension_numbers = #tpu.dot_dimension_numbers<[1], [0], [0], [1], [0, 0, 1, 1], [], []>} : vector<64x64xbf16>, vector<64x256xbf16>, vector<64x256xf32> -> vector<64x256xf32>
    %c0_57 = arith.constant 0 : index
    %c0_58 = arith.constant 0 : index
    %64 = vector.load %arg9[%c0_57, %c0_58] : memref<64x256xf32, #tpu.memory_space<vmem>>, vector<64x256xf32>
    %65 = arith.addf %64, %63 : vector<64x256xf32>
    %c0_59 = arith.constant 0 : index
    %c0_60 = arith.constant 0 : index
    %66 = vector.load %arg9[%c0_59, %c0_60] : memref<64x256xf32, #tpu.memory_space<vmem>>, vector<64x256xf32>
    tpu.vector_store %arg9[%c0_59, %c0_60], %65 {strides = array<i32>} : memref<64x256xf32, #tpu.memory_space<vmem>>, vector<64x256xf32>,
    %c0_61 = arith.constant 0 : index
    %c0_62 = arith.constant 0 : index
    %c0_63 = arith.constant 0 : index
    %c0_64 = arith.constant 0 : index
    %67 = vector.load %arg4[%c0_61, %c0_62, %c0_63, %c0_64] : memref<1x10x10x256xbf16, #tpu.memory_space<vmem>>, vector<1x8x10x256xbf16>
    %68 = vector.shape_cast %67 : vector<1x8x10x256xbf16> to vector<8x10x256xbf16>
    %69 = vector.extract_strided_slice %68 {offsets = [0, 0, 0], sizes = [8, 8, 256], strides = [1, 1, 1]} : vector<8x10x256xbf16> to vector<8x8x256xbf16>
    %70 = vector.shape_cast %69 : vector<8x8x256xbf16> to vector<64x256xbf16>
    %c0_65 = arith.constant 0 : index
    %c0_66 = arith.constant 0 : index
    %71 = vector.load %arg5[%c0_65, %c0_66] : memref<2304x256xbf16, #tpu.memory_space<vmem>>, vector<256x256xbf16>
    %cst_67 = arith.constant dense<0.000000e+00> : vector<64x256xf32>
    %72 = tpu.matmul %70, %71, %cst_67 {dimension_numbers = #tpu.dot_dimension_numbers<[1], [0], [0], [1], [0, 0, 1, 1], [], []>} : vector<64x256xbf16>, vector<256x256xbf16>, vector<64x256xf32> -> vector<64x256xf32>
    %c0_68 = arith.constant 0 : index
    %c0_69 = arith.constant 0 : index
    %73 = vector.load %arg9[%c0_68, %c0_69] : memref<64x256xf32, #tpu.memory_space<vmem>>, vector<64x256xf32>
    %74 = arith.addf %73, %72 : vector<64x256xf32>
    %c0_70 = arith.constant 0 : index
    %c0_71 = arith.constant 0 : index
    %75 = vector.load %arg9[%c0_70, %c0_71] : memref<64x256xf32, #tpu.memory_space<vmem>>, vector<64x256xf32>
    tpu.vector_store %arg9[%c0_70, %c0_71], %74 {strides = array<i32>} : memref<64x256xf32, #tpu.memory_space<vmem>>, vector<64x256xf32>,
    %76 = vector.extract_strided_slice %68 {offsets = [0, 1, 0], sizes = [8, 8, 256], strides = [1, 1, 1]} : vector<8x10x256xbf16> to vector<8x8x256xbf16>
    %77 = vector.shape_cast %76 : vector<8x8x256xbf16> to vector<64x256xbf16>
    %c256_72 = arith.constant 256 : index
    %c0_73 = arith.constant 0 : index
    %78 = vector.load %arg5[%c256_72, %c0_73] : memref<2304x256xbf16, #tpu.memory_space<vmem>>, vector<256x256xbf16>
    %cst_74 = arith.constant dense<0.000000e+00> : vector<64x256xf32>
    %79 = tpu.matmul %77, %78, %cst_74 {dimension_numbers = #tpu.dot_dimension_numbers<[1], [0], [0], [1], [0, 0, 1, 1], [], []>} : vector<64x256xbf16>, vector<256x256xbf16>, vector<64x256xf32> -> vector<64x256xf32>
    %c0_75 = arith.constant 0 : index
    %c0_76 = arith.constant 0 : index
    %80 = vector.load %arg9[%c0_75, %c0_76] : memref<64x256xf32, #tpu.memory_space<vmem>>, vector<64x256xf32>
    %81 = arith.addf %80, %79 : vector<64x256xf32>
    %c0_77 = arith.constant 0 : index
    %c0_78 = arith.constant 0 : index
    %82 = vector.load %arg9[%c0_77, %c0_78] : memref<64x256xf32, #tpu.memory_space<vmem>>, vector<64x256xf32>
    tpu.vector_store %arg9[%c0_77, %c0_78], %81 {strides = array<i32>} : memref<64x256xf32, #tpu.memory_space<vmem>>, vector<64x256xf32>,
    %83 = vector.extract_strided_slice %68 {offsets = [0, 2, 0], sizes = [8, 8, 256], strides = [1, 1, 1]} : vector<8x10x256xbf16> to vector<8x8x256xbf16>
    %84 = vector.shape_cast %83 : vector<8x8x256xbf16> to vector<64x256xbf16>
    %c512_79 = arith.constant 512 : index
    %c0_80 = arith.constant 0 : index
    %85 = vector.load %arg5[%c512_79, %c0_80] : memref<2304x256xbf16, #tpu.memory_space<vmem>>, vector<256x256xbf16>
    %cst_81 = arith.constant dense<0.000000e+00> : vector<64x256xf32>
    %86 = tpu.matmul %84, %85, %cst_81 {dimension_numbers = #tpu.dot_dimension_numbers<[1], [0], [0], [1], [0, 0, 1, 1], [], []>} : vector<64x256xbf16>, vector<256x256xbf16>, vector<64x256xf32> -> vector<64x256xf32>
    %c0_82 = arith.constant 0 : index
    %c0_83 = arith.constant 0 : index
    %87 = vector.load %arg9[%c0_82, %c0_83] : memref<64x256xf32, #tpu.memory_space<vmem>>, vector<64x256xf32>
    %88 = arith.addf %87, %86 : vector<64x256xf32>
    %c0_84 = arith.constant 0 : index
    %c0_85 = arith.constant 0 : index
    %89 = vector.load %arg9[%c0_84, %c0_85] : memref<64x256xf32, #tpu.memory_space<vmem>>, vector<64x256xf32>
    tpu.vector_store %arg9[%c0_84, %c0_85], %88 {strides = array<i32>} : memref<64x256xf32, #tpu.memory_space<vmem>>, vector<64x256xf32>,
    %c0_86 = arith.constant 0 : index
    %c1_87 = arith.constant 1 : index
    %c0_88 = arith.constant 0 : index
    %c0_89 = arith.constant 0 : index
    %90 = vector.load %arg4[%c0_86, %c1_87, %c0_88, %c0_89] : memref<1x10x10x256xbf16, #tpu.memory_space<vmem>>, vector<1x8x10x256xbf16>
    %91 = vector.shape_cast %90 : vector<1x8x10x256xbf16> to vector<8x10x256xbf16>
    %92 = vector.extract_strided_slice %91 {offsets = [0, 0, 0], sizes = [8, 8, 256], strides = [1, 1, 1]} : vector<8x10x256xbf16> to vector<8x8x256xbf16>
    %93 = vector.shape_cast %92 : vector<8x8x256xbf16> to vector<64x256xbf16>
    %c768 = arith.constant 768 : index
    %c0_90 = arith.constant 0 : index
    %94 = vector.load %arg5[%c768, %c0_90] : memref<2304x256xbf16, #tpu.memory_space<vmem>>, vector<256x256xbf16>
    %cst_91 = arith.constant dense<0.000000e+00> : vector<64x256xf32>
    %95 = tpu.matmul %93, %94, %cst_91 {dimension_numbers = #tpu.dot_dimension_numbers<[1], [0], [0], [1], [0, 0, 1, 1], [], []>} : vector<64x256xbf16>, vector<256x256xbf16>, vector<64x256xf32> -> vector<64x256xf32>
    %c0_92 = arith.constant 0 : index
    %c0_93 = arith.constant 0 : index
    %96 = vector.load %arg9[%c0_92, %c0_93] : memref<64x256xf32, #tpu.memory_space<vmem>>, vector<64x256xf32>
    %97 = arith.addf %96, %95 : vector<64x256xf32>
    %c0_94 = arith.constant 0 : index
    %c0_95 = arith.constant 0 : index
    %98 = vector.load %arg9[%c0_94, %c0_95] : memref<64x256xf32, #tpu.memory_space<vmem>>, vector<64x256xf32>
    tpu.vector_store %arg9[%c0_94, %c0_95], %97 {strides = array<i32>} : memref<64x256xf32, #tpu.memory_space<vmem>>, vector<64x256xf32>,
    %99 = vector.extract_strided_slice %91 {offsets = [0, 1, 0], sizes = [8, 8, 256], strides = [1, 1, 1]} : vector<8x10x256xbf16> to vector<8x8x256xbf16>
    %100 = vector.shape_cast %99 : vector<8x8x256xbf16> to vector<64x256xbf16>
    %c1024 = arith.constant 1024 : index
    %c0_96 = arith.constant 0 : index
    %101 = vector.load %arg5[%c1024, %c0_96] : memref<2304x256xbf16, #tpu.memory_space<vmem>>, vector<256x256xbf16>
    %cst_97 = arith.constant dense<0.000000e+00> : vector<64x256xf32>
    %102 = tpu.matmul %100, %101, %cst_97 {dimension_numbers = #tpu.dot_dimension_numbers<[1], [0], [0], [1], [0, 0, 1, 1], [], []>} : vector<64x256xbf16>, vector<256x256xbf16>, vector<64x256xf32> -> vector<64x256xf32>
    %c0_98 = arith.constant 0 : index
    %c0_99 = arith.constant 0 : index
    %103 = vector.load %arg9[%c0_98, %c0_99] : memref<64x256xf32, #tpu.memory_space<vmem>>, vector<64x256xf32>
    %104 = arith.addf %103, %102 : vector<64x256xf32>
    %c0_100 = arith.constant 0 : index
    %c0_101 = arith.constant 0 : index
    %105 = vector.load %arg9[%c0_100, %c0_101] : memref<64x256xf32, #tpu.memory_space<vmem>>, vector<64x256xf32>
    tpu.vector_store %arg9[%c0_100, %c0_101], %104 {strides = array<i32>} : memref<64x256xf32, #tpu.memory_space<vmem>>, vector<64x256xf32>,
    %106 = vector.extract_strided_slice %91 {offsets = [0, 2, 0], sizes = [8, 8, 256], strides = [1, 1, 1]} : vector<8x10x256xbf16> to vector<8x8x256xbf16>
    %107 = vector.shape_cast %106 : vector<8x8x256xbf16> to vector<64x256xbf16>
    %c1280 = arith.constant 1280 : index
    %c0_102 = arith.constant 0 : index
    %108 = vector.load %arg5[%c1280, %c0_102] : memref<2304x256xbf16, #tpu.memory_space<vmem>>, vector<256x256xbf16>
    %cst_103 = arith.constant dense<0.000000e+00> : vector<64x256xf32>
    %109 = tpu.matmul %107, %108, %cst_103 {dimension_numbers = #tpu.dot_dimension_numbers<[1], [0], [0], [1], [0, 0, 1, 1], [], []>} : vector<64x256xbf16>, vector<256x256xbf16>, vector<64x256xf32> -> vector<64x256xf32>
    %c0_104 = arith.constant 0 : index
    %c0_105 = arith.constant 0 : index
    %110 = vector.load %arg9[%c0_104, %c0_105] : memref<64x256xf32, #tpu.memory_space<vmem>>, vector<64x256xf32>
    %111 = arith.addf %110, %109 : vector<64x256xf32>
    %c0_106 = arith.constant 0 : index
    %c0_107 = arith.constant 0 : index
    %112 = vector.load %arg9[%c0_106, %c0_107] : memref<64x256xf32, #tpu.memory_space<vmem>>, vector<64x256xf32>
    tpu.vector_store %arg9[%c0_106, %c0_107], %111 {strides = array<i32>} : memref<64x256xf32, #tpu.memory_space<vmem>>, vector<64x256xf32>,
    %c0_108 = arith.constant 0 : index
    %c2_109 = arith.constant 2 : index
    %c0_110 = arith.constant 0 : index
    %c0_111 = arith.constant 0 : index
    %113 = vector.load %arg4[%c0_108, %c2_109, %c0_110, %c0_111] : memref<1x10x10x256xbf16, #tpu.memory_space<vmem>>, vector<1x8x10x256xbf16>
    %114 = vector.shape_cast %113 : vector<1x8x10x256xbf16> to vector<8x10x256xbf16>
    %115 = vector.extract_strided_slice %114 {offsets = [0, 0, 0], sizes = [8, 8, 256], strides = [1, 1, 1]} : vector<8x10x256xbf16> to vector<8x8x256xbf16>
    %116 = vector.shape_cast %115 : vector<8x8x256xbf16> to vector<64x256xbf16>
    %c1536 = arith.constant 1536 : index
    %c0_112 = arith.constant 0 : index
    %117 = vector.load %arg5[%c1536, %c0_112] : memref<2304x256xbf16, #tpu.memory_space<vmem>>, vector<256x256xbf16>
    %cst_113 = arith.constant dense<0.000000e+00> : vector<64x256xf32>
    %118 = tpu.matmul %116, %117, %cst_113 {dimension_numbers = #tpu.dot_dimension_numbers<[1], [0], [0], [1], [0, 0, 1, 1], [], []>} : vector<64x256xbf16>, vector<256x256xbf16>, vector<64x256xf32> -> vector<64x256xf32>
    %c0_114 = arith.constant 0 : index
    %c0_115 = arith.constant 0 : index
    %119 = vector.load %arg9[%c0_114, %c0_115] : memref<64x256xf32, #tpu.memory_space<vmem>>, vector<64x256xf32>
    %120 = arith.addf %119, %118 : vector<64x256xf32>
    %c0_116 = arith.constant 0 : index
    %c0_117 = arith.constant 0 : index
    %121 = vector.load %arg9[%c0_116, %c0_117] : memref<64x256xf32, #tpu.memory_space<vmem>>, vector<64x256xf32>
    tpu.vector_store %arg9[%c0_116, %c0_117], %120 {strides = array<i32>} : memref<64x256xf32, #tpu.memory_space<vmem>>, vector<64x256xf32>,
    %122 = vector.extract_strided_slice %114 {offsets = [0, 1, 0], sizes = [8, 8, 256], strides = [1, 1, 1]} : vector<8x10x256xbf16> to vector<8x8x256xbf16>
    %123 = vector.shape_cast %122 : vector<8x8x256xbf16> to vector<64x256xbf16>
    %c1792 = arith.constant 1792 : index
    %c0_118 = arith.constant 0 : index
    %124 = vector.load %arg5[%c1792, %c0_118] : memref<2304x256xbf16, #tpu.memory_space<vmem>>, vector<256x256xbf16>
    %cst_119 = arith.constant dense<0.000000e+00> : vector<64x256xf32>
    %125 = tpu.matmul %123, %124, %cst_119 {dimension_numbers = #tpu.dot_dimension_numbers<[1], [0], [0], [1], [0, 0, 1, 1], [], []>} : vector<64x256xbf16>, vector<256x256xbf16>, vector<64x256xf32> -> vector<64x256xf32>
    %c0_120 = arith.constant 0 : index
    %c0_121 = arith.constant 0 : index
    %126 = vector.load %arg9[%c0_120, %c0_121] : memref<64x256xf32, #tpu.memory_space<vmem>>, vector<64x256xf32>
    %127 = arith.addf %126, %125 : vector<64x256xf32>
    %c0_122 = arith.constant 0 : index
    %c0_123 = arith.constant 0 : index
    %128 = vector.load %arg9[%c0_122, %c0_123] : memref<64x256xf32, #tpu.memory_space<vmem>>, vector<64x256xf32>
    tpu.vector_store %arg9[%c0_122, %c0_123], %127 {strides = array<i32>} : memref<64x256xf32, #tpu.memory_space<vmem>>, vector<64x256xf32>,
    %129 = vector.extract_strided_slice %114 {offsets = [0, 2, 0], sizes = [8, 8, 256], strides = [1, 1, 1]} : vector<8x10x256xbf16> to vector<8x8x256xbf16>
    %130 = vector.shape_cast %129 : vector<8x8x256xbf16> to vector<64x256xbf16>
    %c2048 = arith.constant 2048 : index
    %c0_124 = arith.constant 0 : index
    %131 = vector.load %arg5[%c2048, %c0_124] : memref<2304x256xbf16, #tpu.memory_space<vmem>>, vector<256x256xbf16>
    %cst_125 = arith.constant dense<0.000000e+00> : vector<64x256xf32>
    %132 = tpu.matmul %130, %131, %cst_125 {dimension_numbers = #tpu.dot_dimension_numbers<[1], [0], [0], [1], [0, 0, 1, 1], [], []>} : vector<64x256xbf16>, vector<256x256xbf16>, vector<64x256xf32> -> vector<64x256xf32>
    %c0_126 = arith.constant 0 : index
    %c0_127 = arith.constant 0 : index
    %133 = vector.load %arg9[%c0_126, %c0_127] : memref<64x256xf32, #tpu.memory_space<vmem>>, vector<64x256xf32>
    %134 = arith.addf %133, %132 : vector<64x256xf32>
    %c0_128 = arith.constant 0 : index
    %c0_129 = arith.constant 0 : index
    %135 = vector.load %arg9[%c0_128, %c0_129] : memref<64x256xf32, #tpu.memory_space<vmem>>, vector<64x256xf32>
    tpu.vector_store %arg9[%c0_128, %c0_129], %134 {strides = array<i32>} : memref<64x256xf32, #tpu.memory_space<vmem>>, vector<64x256xf32>,
    %c0_130 = arith.constant 0 : index
    %c0_131 = arith.constant 0 : index
    %136 = vector.load %arg9[%c0_130, %c0_131] : memref<64x256xf32, #tpu.memory_space<vmem>>, vector<64x256xf32>
    %c0_132 = arith.constant 0 : index
    %c0_133 = arith.constant 0 : index
    %137 = vector.load %arg6[%c0_132, %c0_133] : memref<1x256xf32, #tpu.memory_space<vmem>>, vector<1x256xf32>
    %138 = vector.broadcast %137 : vector<1x256xf32> to vector<64x256xf32>
    %139 = arith.mulf %136, %138 : vector<64x256xf32>
    %c0_134 = arith.constant 0 : index
    %c0_135 = arith.constant 0 : index
    %140 = vector.load %arg7[%c0_134, %c0_135] : memref<1x256xf32, #tpu.memory_space<vmem>>, vector<1x256xf32>
    %141 = vector.broadcast %140 : vector<1x256xf32> to vector<64x256xf32>
    %142 = arith.addf %139, %141 : vector<64x256xf32>
    %cst_136 = arith.constant 0.000000e+00 : f32
    %143 = vector.broadcast %cst_136 : f32 to vector<64x256xf32>
    %144 = arith.maximumf %142, %143 : vector<64x256xf32>
    %145 = arith.truncf %144 : vector<64x256xf32> to vector<64x256xbf16>
    %c0_137 = arith.constant 0 : index
    %c0_138 = arith.constant 0 : index
    %c0_139 = arith.constant 0 : index
    %146 = vector.load %arg8[%c0_137, %c0_138, %c0_139] : memref<1x64x256xbf16, #tpu.memory_space<vmem>>, vector<1x64x256xbf16>
    %147 = vector.shape_cast %146 : vector<1x64x256xbf16> to vector<64x256xbf16>
    %148 = vector.shape_cast %145 : vector<64x256xbf16> to vector<1x64x256xbf16>
    tpu.vector_store %arg8[%c0_137, %c0_138, %c0_139], %148 {strides = array<i32>} : memref<1x64x256xbf16, #tpu.memory_space<vmem>>, vector<1x64x256xbf16>,
    return
  }
  func.func @transform_0(%arg0: i32, %arg1: i32) -> (i32, i32, i32, i32) {
    %c0_i32 = arith.constant 0 : i32
    %c0_i32_0 = arith.constant 0 : i32
    %c0_i32_1 = arith.constant 0 : i32
    %c0_i32_2 = arith.constant 0 : i32
    return %arg1, %c0_i32, %c0_i32_0, %c0_i32_1 : i32, i32, i32, i32
  }
  func.func @transform_1(%arg0: i32, %arg1: i32) -> (i32, i32) {
    %c0_i32 = arith.constant 0 : i32
    %c0_i32_0 = arith.constant 0 : i32
    return %c0_i32, %arg0 : i32, i32
  }
  func.func @transform_2(%arg0: i32, %arg1: i32) -> (i32, i32, i32, i32) {
    %c0_i32 = arith.constant 0 : i32
    %c0_i32_0 = arith.constant 0 : i32
    %c0_i32_1 = arith.constant 0 : i32
    %c0_i32_2 = arith.constant 0 : i32
    return %arg1, %c0_i32, %c0_i32_0, %c0_i32_1 : i32, i32, i32, i32
  }
  func.func @transform_3(%arg0: i32, %arg1: i32) -> (i32, i32) {
    %c0_i32 = arith.constant 0 : i32
    %c0_i32_0 = arith.constant 0 : i32
    return %c0_i32, %arg0 : i32, i32
  }
  func.func @transform_4(%arg0: i32, %arg1: i32) -> (i32, i32) {
    %c0_i32 = arith.constant 0 : i32
    %c0_i32_0 = arith.constant 0 : i32
    return %c0_i32, %arg0 : i32, i32
  }
  func.func @transform_5(%arg0: i32, %arg1: i32) -> (i32, i32) {
    %c0_i32 = arith.constant 0 : i32
    %c0_i32_0 = arith.constant 0 : i32
    return %c0_i32, %arg0 : i32, i32
  }
  func.func @transform_6(%arg0: i32, %arg1: i32) -> (i32, i32, i32) {
    %c0_i32 = arith.constant 0 : i32
    %c0_i32_0 = arith.constant 0 : i32
    return %arg1, %c0_i32, %arg0 : i32, i32, i32
  }
}

module attributes {stable_mosaic.version = 11 : i64} {
  func.func @_conv3x3_kernel(%arg0: i32, %arg1: i32, %arg2: memref<1x10x10x256xbf16, #tpu.memory_space<vmem>>, %arg3: memref<2304x256xbf16, #tpu.memory_space<vmem>>, %arg4: memref<1x256xf32, #tpu.memory_space<vmem>>, %arg5: memref<1x256xf32, #tpu.memory_space<vmem>>, %arg6: memref<1x256xf32, #tpu.memory_space<vmem>>, %arg7: memref<1x256xf32, #tpu.memory_space<vmem>>, %arg8: memref<1x8x8xf32, #tpu.memory_space<vmem>>, %arg9: memref<64x256xf32, #tpu.memory_space<vmem>>) attributes {dimension_semantics = [#tpu.dimension_semantics<parallel>, #tpu.dimension_semantics<parallel>], iteration_bounds = array<i64: 1, 2>, scalar_prefetch = 0 : i64, scratch_operands = 1 : i64, tpu.core_type = #tpu.core_type<tc>, window_params = [{transform_indices = @transform_0, window_bounds = array<i64: 1, 10, 10, 256>}, {transform_indices = @transform_1, window_bounds = array<i64: 2304, 256>}, {transform_indices = @transform_2, window_bounds = array<i64: 1, 256>}, {transform_indices = @transform_3, window_bounds = array<i64: 1, 256>}, {transform_indices = @transform_4, window_bounds = array<i64: 1, 256>}, {transform_indices = @transform_5, window_bounds = array<i64: 1, 256>}, {transform_indices = @transform_6, window_bounds = array<i64: 1, 8, 8>}]} {
    %c0 = arith.constant 0 : index
    %c0_0 = arith.constant 0 : index
    %c0_1 = arith.constant 0 : index
    %c0_2 = arith.constant 0 : index
    %0 = vector.load %arg2[%c0, %c0_0, %c0_1, %c0_2] : memref<1x10x10x256xbf16, #tpu.memory_space<vmem>>, vector<1x8x10x256xbf16>
    %1 = vector.shape_cast %0 : vector<1x8x10x256xbf16> to vector<8x10x256xbf16>
    %2 = vector.extract_strided_slice %1 {offsets = [0, 0, 0], sizes = [8, 8, 256], strides = [1, 1, 1]} : vector<8x10x256xbf16> to vector<8x8x256xbf16>
    %3 = vector.shape_cast %2 : vector<8x8x256xbf16> to vector<64x256xbf16>
    %c0_3 = arith.constant 0 : index
    %c0_4 = arith.constant 0 : index
    %4 = vector.load %arg3[%c0_3, %c0_4] : memref<2304x256xbf16, #tpu.memory_space<vmem>>, vector<256x256xbf16>
    %cst = arith.constant dense<0.000000e+00> : vector<64x256xf32>
    %5 = tpu.matmul %3, %4, %cst {dimension_numbers = #tpu.dot_dimension_numbers<[1], [0], [0], [1], [0, 0, 1, 1], [], []>} : vector<64x256xbf16>, vector<256x256xbf16>, vector<64x256xf32> -> vector<64x256xf32>
    %c0_5 = arith.constant 0 : index
    %c0_6 = arith.constant 0 : index
    %6 = vector.load %arg9[%c0_5, %c0_6] : memref<64x256xf32, #tpu.memory_space<vmem>>, vector<64x256xf32>
    tpu.vector_store %arg9[%c0_5, %c0_6], %5 {strides = array<i32>} : memref<64x256xf32, #tpu.memory_space<vmem>>, vector<64x256xf32>,
    %7 = vector.extract_strided_slice %1 {offsets = [0, 1, 0], sizes = [8, 8, 256], strides = [1, 1, 1]} : vector<8x10x256xbf16> to vector<8x8x256xbf16>
    %8 = vector.shape_cast %7 : vector<8x8x256xbf16> to vector<64x256xbf16>
    %c256 = arith.constant 256 : index
    %c0_7 = arith.constant 0 : index
    %9 = vector.load %arg3[%c256, %c0_7] : memref<2304x256xbf16, #tpu.memory_space<vmem>>, vector<256x256xbf16>
    %cst_8 = arith.constant dense<0.000000e+00> : vector<64x256xf32>
    %10 = tpu.matmul %8, %9, %cst_8 {dimension_numbers = #tpu.dot_dimension_numbers<[1], [0], [0], [1], [0, 0, 1, 1], [], []>} : vector<64x256xbf16>, vector<256x256xbf16>, vector<64x256xf32> -> vector<64x256xf32>
    %c0_9 = arith.constant 0 : index
    %c0_10 = arith.constant 0 : index
    %11 = vector.load %arg9[%c0_9, %c0_10] : memref<64x256xf32, #tpu.memory_space<vmem>>, vector<64x256xf32>
    %12 = arith.addf %11, %10 : vector<64x256xf32>
    %c0_11 = arith.constant 0 : index
    %c0_12 = arith.constant 0 : index
    %13 = vector.load %arg9[%c0_11, %c0_12] : memref<64x256xf32, #tpu.memory_space<vmem>>, vector<64x256xf32>
    tpu.vector_store %arg9[%c0_11, %c0_12], %12 {strides = array<i32>} : memref<64x256xf32, #tpu.memory_space<vmem>>, vector<64x256xf32>,
    %14 = vector.extract_strided_slice %1 {offsets = [0, 2, 0], sizes = [8, 8, 256], strides = [1, 1, 1]} : vector<8x10x256xbf16> to vector<8x8x256xbf16>
    %15 = vector.shape_cast %14 : vector<8x8x256xbf16> to vector<64x256xbf16>
    %c512 = arith.constant 512 : index
    %c0_13 = arith.constant 0 : index
    %16 = vector.load %arg3[%c512, %c0_13] : memref<2304x256xbf16, #tpu.memory_space<vmem>>, vector<256x256xbf16>
    %cst_14 = arith.constant dense<0.000000e+00> : vector<64x256xf32>
    %17 = tpu.matmul %15, %16, %cst_14 {dimension_numbers = #tpu.dot_dimension_numbers<[1], [0], [0], [1], [0, 0, 1, 1], [], []>} : vector<64x256xbf16>, vector<256x256xbf16>, vector<64x256xf32> -> vector<64x256xf32>
    %c0_15 = arith.constant 0 : index
    %c0_16 = arith.constant 0 : index
    %18 = vector.load %arg9[%c0_15, %c0_16] : memref<64x256xf32, #tpu.memory_space<vmem>>, vector<64x256xf32>
    %19 = arith.addf %18, %17 : vector<64x256xf32>
    %c0_17 = arith.constant 0 : index
    %c0_18 = arith.constant 0 : index
    %20 = vector.load %arg9[%c0_17, %c0_18] : memref<64x256xf32, #tpu.memory_space<vmem>>, vector<64x256xf32>
    tpu.vector_store %arg9[%c0_17, %c0_18], %19 {strides = array<i32>} : memref<64x256xf32, #tpu.memory_space<vmem>>, vector<64x256xf32>,
    %c0_19 = arith.constant 0 : index
    %c1 = arith.constant 1 : index
    %c0_20 = arith.constant 0 : index
    %c0_21 = arith.constant 0 : index
    %21 = vector.load %arg2[%c0_19, %c1, %c0_20, %c0_21] : memref<1x10x10x256xbf16, #tpu.memory_space<vmem>>, vector<1x8x10x256xbf16>
    %22 = vector.shape_cast %21 : vector<1x8x10x256xbf16> to vector<8x10x256xbf16>
    %23 = vector.extract_strided_slice %22 {offsets = [0, 0, 0], sizes = [8, 8, 256], strides = [1, 1, 1]} : vector<8x10x256xbf16> to vector<8x8x256xbf16>
    %24 = vector.shape_cast %23 : vector<8x8x256xbf16> to vector<64x256xbf16>
    %c768 = arith.constant 768 : index
    %c0_22 = arith.constant 0 : index
    %25 = vector.load %arg3[%c768, %c0_22] : memref<2304x256xbf16, #tpu.memory_space<vmem>>, vector<256x256xbf16>
    %cst_23 = arith.constant dense<0.000000e+00> : vector<64x256xf32>
    %26 = tpu.matmul %24, %25, %cst_23 {dimension_numbers = #tpu.dot_dimension_numbers<[1], [0], [0], [1], [0, 0, 1, 1], [], []>} : vector<64x256xbf16>, vector<256x256xbf16>, vector<64x256xf32> -> vector<64x256xf32>
    %c0_24 = arith.constant 0 : index
    %c0_25 = arith.constant 0 : index
    %27 = vector.load %arg9[%c0_24, %c0_25] : memref<64x256xf32, #tpu.memory_space<vmem>>, vector<64x256xf32>
    %28 = arith.addf %27, %26 : vector<64x256xf32>
    %c0_26 = arith.constant 0 : index
    %c0_27 = arith.constant 0 : index
    %29 = vector.load %arg9[%c0_26, %c0_27] : memref<64x256xf32, #tpu.memory_space<vmem>>, vector<64x256xf32>
    tpu.vector_store %arg9[%c0_26, %c0_27], %28 {strides = array<i32>} : memref<64x256xf32, #tpu.memory_space<vmem>>, vector<64x256xf32>,
    %30 = vector.extract_strided_slice %22 {offsets = [0, 1, 0], sizes = [8, 8, 256], strides = [1, 1, 1]} : vector<8x10x256xbf16> to vector<8x8x256xbf16>
    %31 = vector.shape_cast %30 : vector<8x8x256xbf16> to vector<64x256xbf16>
    %c1024 = arith.constant 1024 : index
    %c0_28 = arith.constant 0 : index
    %32 = vector.load %arg3[%c1024, %c0_28] : memref<2304x256xbf16, #tpu.memory_space<vmem>>, vector<256x256xbf16>
    %cst_29 = arith.constant dense<0.000000e+00> : vector<64x256xf32>
    %33 = tpu.matmul %31, %32, %cst_29 {dimension_numbers = #tpu.dot_dimension_numbers<[1], [0], [0], [1], [0, 0, 1, 1], [], []>} : vector<64x256xbf16>, vector<256x256xbf16>, vector<64x256xf32> -> vector<64x256xf32>
    %c0_30 = arith.constant 0 : index
    %c0_31 = arith.constant 0 : index
    %34 = vector.load %arg9[%c0_30, %c0_31] : memref<64x256xf32, #tpu.memory_space<vmem>>, vector<64x256xf32>
    %35 = arith.addf %34, %33 : vector<64x256xf32>
    %c0_32 = arith.constant 0 : index
    %c0_33 = arith.constant 0 : index
    %36 = vector.load %arg9[%c0_32, %c0_33] : memref<64x256xf32, #tpu.memory_space<vmem>>, vector<64x256xf32>
    tpu.vector_store %arg9[%c0_32, %c0_33], %35 {strides = array<i32>} : memref<64x256xf32, #tpu.memory_space<vmem>>, vector<64x256xf32>,
    %37 = vector.extract_strided_slice %22 {offsets = [0, 2, 0], sizes = [8, 8, 256], strides = [1, 1, 1]} : vector<8x10x256xbf16> to vector<8x8x256xbf16>
    %38 = vector.shape_cast %37 : vector<8x8x256xbf16> to vector<64x256xbf16>
    %c1280 = arith.constant 1280 : index
    %c0_34 = arith.constant 0 : index
    %39 = vector.load %arg3[%c1280, %c0_34] : memref<2304x256xbf16, #tpu.memory_space<vmem>>, vector<256x256xbf16>
    %cst_35 = arith.constant dense<0.000000e+00> : vector<64x256xf32>
    %40 = tpu.matmul %38, %39, %cst_35 {dimension_numbers = #tpu.dot_dimension_numbers<[1], [0], [0], [1], [0, 0, 1, 1], [], []>} : vector<64x256xbf16>, vector<256x256xbf16>, vector<64x256xf32> -> vector<64x256xf32>
    %c0_36 = arith.constant 0 : index
    %c0_37 = arith.constant 0 : index
    %41 = vector.load %arg9[%c0_36, %c0_37] : memref<64x256xf32, #tpu.memory_space<vmem>>, vector<64x256xf32>
    %42 = arith.addf %41, %40 : vector<64x256xf32>
    %c0_38 = arith.constant 0 : index
    %c0_39 = arith.constant 0 : index
    %43 = vector.load %arg9[%c0_38, %c0_39] : memref<64x256xf32, #tpu.memory_space<vmem>>, vector<64x256xf32>
    tpu.vector_store %arg9[%c0_38, %c0_39], %42 {strides = array<i32>} : memref<64x256xf32, #tpu.memory_space<vmem>>, vector<64x256xf32>,
    %c0_40 = arith.constant 0 : index
    %c2 = arith.constant 2 : index
    %c0_41 = arith.constant 0 : index
    %c0_42 = arith.constant 0 : index
    %44 = vector.load %arg2[%c0_40, %c2, %c0_41, %c0_42] : memref<1x10x10x256xbf16, #tpu.memory_space<vmem>>, vector<1x8x10x256xbf16>
    %45 = vector.shape_cast %44 : vector<1x8x10x256xbf16> to vector<8x10x256xbf16>
    %46 = vector.extract_strided_slice %45 {offsets = [0, 0, 0], sizes = [8, 8, 256], strides = [1, 1, 1]} : vector<8x10x256xbf16> to vector<8x8x256xbf16>
    %47 = vector.shape_cast %46 : vector<8x8x256xbf16> to vector<64x256xbf16>
    %c1536 = arith.constant 1536 : index
    %c0_43 = arith.constant 0 : index
    %48 = vector.load %arg3[%c1536, %c0_43] : memref<2304x256xbf16, #tpu.memory_space<vmem>>, vector<256x256xbf16>
    %cst_44 = arith.constant dense<0.000000e+00> : vector<64x256xf32>
    %49 = tpu.matmul %47, %48, %cst_44 {dimension_numbers = #tpu.dot_dimension_numbers<[1], [0], [0], [1], [0, 0, 1, 1], [], []>} : vector<64x256xbf16>, vector<256x256xbf16>, vector<64x256xf32> -> vector<64x256xf32>
    %c0_45 = arith.constant 0 : index
    %c0_46 = arith.constant 0 : index
    %50 = vector.load %arg9[%c0_45, %c0_46] : memref<64x256xf32, #tpu.memory_space<vmem>>, vector<64x256xf32>
    %51 = arith.addf %50, %49 : vector<64x256xf32>
    %c0_47 = arith.constant 0 : index
    %c0_48 = arith.constant 0 : index
    %52 = vector.load %arg9[%c0_47, %c0_48] : memref<64x256xf32, #tpu.memory_space<vmem>>, vector<64x256xf32>
    tpu.vector_store %arg9[%c0_47, %c0_48], %51 {strides = array<i32>} : memref<64x256xf32, #tpu.memory_space<vmem>>, vector<64x256xf32>,
    %53 = vector.extract_strided_slice %45 {offsets = [0, 1, 0], sizes = [8, 8, 256], strides = [1, 1, 1]} : vector<8x10x256xbf16> to vector<8x8x256xbf16>
    %54 = vector.shape_cast %53 : vector<8x8x256xbf16> to vector<64x256xbf16>
    %c1792 = arith.constant 1792 : index
    %c0_49 = arith.constant 0 : index
    %55 = vector.load %arg3[%c1792, %c0_49] : memref<2304x256xbf16, #tpu.memory_space<vmem>>, vector<256x256xbf16>
    %cst_50 = arith.constant dense<0.000000e+00> : vector<64x256xf32>
    %56 = tpu.matmul %54, %55, %cst_50 {dimension_numbers = #tpu.dot_dimension_numbers<[1], [0], [0], [1], [0, 0, 1, 1], [], []>} : vector<64x256xbf16>, vector<256x256xbf16>, vector<64x256xf32> -> vector<64x256xf32>
    %c0_51 = arith.constant 0 : index
    %c0_52 = arith.constant 0 : index
    %57 = vector.load %arg9[%c0_51, %c0_52] : memref<64x256xf32, #tpu.memory_space<vmem>>, vector<64x256xf32>
    %58 = arith.addf %57, %56 : vector<64x256xf32>
    %c0_53 = arith.constant 0 : index
    %c0_54 = arith.constant 0 : index
    %59 = vector.load %arg9[%c0_53, %c0_54] : memref<64x256xf32, #tpu.memory_space<vmem>>, vector<64x256xf32>
    tpu.vector_store %arg9[%c0_53, %c0_54], %58 {strides = array<i32>} : memref<64x256xf32, #tpu.memory_space<vmem>>, vector<64x256xf32>,
    %60 = vector.extract_strided_slice %45 {offsets = [0, 2, 0], sizes = [8, 8, 256], strides = [1, 1, 1]} : vector<8x10x256xbf16> to vector<8x8x256xbf16>
    %61 = vector.shape_cast %60 : vector<8x8x256xbf16> to vector<64x256xbf16>
    %c2048 = arith.constant 2048 : index
    %c0_55 = arith.constant 0 : index
    %62 = vector.load %arg3[%c2048, %c0_55] : memref<2304x256xbf16, #tpu.memory_space<vmem>>, vector<256x256xbf16>
    %cst_56 = arith.constant dense<0.000000e+00> : vector<64x256xf32>
    %63 = tpu.matmul %61, %62, %cst_56 {dimension_numbers = #tpu.dot_dimension_numbers<[1], [0], [0], [1], [0, 0, 1, 1], [], []>} : vector<64x256xbf16>, vector<256x256xbf16>, vector<64x256xf32> -> vector<64x256xf32>
    %c0_57 = arith.constant 0 : index
    %c0_58 = arith.constant 0 : index
    %64 = vector.load %arg9[%c0_57, %c0_58] : memref<64x256xf32, #tpu.memory_space<vmem>>, vector<64x256xf32>
    %65 = arith.addf %64, %63 : vector<64x256xf32>
    %c0_59 = arith.constant 0 : index
    %c0_60 = arith.constant 0 : index
    %66 = vector.load %arg9[%c0_59, %c0_60] : memref<64x256xf32, #tpu.memory_space<vmem>>, vector<64x256xf32>
    tpu.vector_store %arg9[%c0_59, %c0_60], %65 {strides = array<i32>} : memref<64x256xf32, #tpu.memory_space<vmem>>, vector<64x256xf32>,
    %c0_61 = arith.constant 0 : index
    %c0_62 = arith.constant 0 : index
    %67 = vector.load %arg9[%c0_61, %c0_62] : memref<64x256xf32, #tpu.memory_space<vmem>>, vector<64x256xf32>
    %c0_63 = arith.constant 0 : index
    %c0_64 = arith.constant 0 : index
    %68 = vector.load %arg4[%c0_63, %c0_64] : memref<1x256xf32, #tpu.memory_space<vmem>>, vector<1x256xf32>
    %69 = vector.broadcast %68 : vector<1x256xf32> to vector<64x256xf32>
    %70 = arith.mulf %67, %69 : vector<64x256xf32>
    %c0_65 = arith.constant 0 : index
    %c0_66 = arith.constant 0 : index
    %71 = vector.load %arg5[%c0_65, %c0_66] : memref<1x256xf32, #tpu.memory_space<vmem>>, vector<1x256xf32>
    %72 = vector.broadcast %71 : vector<1x256xf32> to vector<64x256xf32>
    %73 = arith.addf %70, %72 : vector<64x256xf32>
    %cst_67 = arith.constant 0.000000e+00 : f32
    %74 = vector.broadcast %cst_67 : f32 to vector<64x256xf32>
    %75 = arith.maximumf %73, %74 : vector<64x256xf32>
    %76 = vector.shape_cast %75 : vector<64x256xf32> to vector<8x8x256xf32>
    %c0_68 = arith.constant 0 : index
    %c0_69 = arith.constant 0 : index
    %77 = vector.load %arg6[%c0_68, %c0_69] : memref<1x256xf32, #tpu.memory_space<vmem>>, vector<1x256xf32>
    %78 = vector.shape_cast %77 : vector<1x256xf32> to vector<1x1x256xf32>
    %79 = vector.broadcast %78 : vector<1x1x256xf32> to vector<8x8x256xf32>
    %80 = arith.mulf %76, %79 : vector<8x8x256xf32>
    %cst_70 = arith.constant dense<0.000000e+00> : vector<8x8xf32>
    %81 = vector.multi_reduction <add>, %80, %cst_70 [2] : vector<8x8x256xf32> to vector<8x8xf32>
    %c0_71 = arith.constant 0 : index
    %c0_72 = arith.constant 0 : index
    %82 = vector.load %arg7[%c0_71, %c0_72] : memref<1x256xf32, #tpu.memory_space<vmem>>, vector<1x1xf32>
    %83 = vector.broadcast %82 : vector<1x1xf32> to vector<8x8xf32>
    %84 = arith.addf %81, %83 : vector<8x8xf32>
    %c0_73 = arith.constant 0 : index
    %c0_74 = arith.constant 0 : index
    %c0_75 = arith.constant 0 : index
    %85 = vector.load %arg8[%c0_73, %c0_74, %c0_75] : memref<1x8x8xf32, #tpu.memory_space<vmem>>, vector<1x8x8xf32>
    %86 = vector.shape_cast %85 : vector<1x8x8xf32> to vector<8x8xf32>
    %87 = vector.shape_cast %84 : vector<8x8xf32> to vector<1x8x8xf32>
    tpu.vector_store %arg8[%c0_73, %c0_74, %c0_75], %87 {strides = array<i32>} : memref<1x8x8xf32, #tpu.memory_space<vmem>>, vector<1x8x8xf32>,
    return
  }
  func.func @transform_0(%arg0: i32, %arg1: i32) -> (i32, i32, i32, i32) {
    %c0_i32 = arith.constant 0 : i32
    %c0_i32_0 = arith.constant 0 : i32
    %c0_i32_1 = arith.constant 0 : i32
    %c0_i32_2 = arith.constant 0 : i32
    return %arg1, %c0_i32, %c0_i32_0, %c0_i32_1 : i32, i32, i32, i32
  }
  func.func @transform_1(%arg0: i32, %arg1: i32) -> (i32, i32) {
    %c0_i32 = arith.constant 0 : i32
    %c0_i32_0 = arith.constant 0 : i32
    return %c0_i32, %arg0 : i32, i32
  }
  func.func @transform_2(%arg0: i32, %arg1: i32) -> (i32, i32) {
    %c0_i32 = arith.constant 0 : i32
    %c0_i32_0 = arith.constant 0 : i32
    return %c0_i32, %arg0 : i32, i32
  }
  func.func @transform_3(%arg0: i32, %arg1: i32) -> (i32, i32) {
    %c0_i32 = arith.constant 0 : i32
    %c0_i32_0 = arith.constant 0 : i32
    return %c0_i32, %arg0 : i32, i32
  }
  func.func @transform_4(%arg0: i32, %arg1: i32) -> (i32, i32) {
    %c0_i32 = arith.constant 0 : i32
    %c0_i32_0 = arith.constant 0 : i32
    return %c0_i32, %arg0 : i32, i32
  }
  func.func @transform_5(%arg0: i32, %arg1: i32) -> (i32, i32) {
    %c0_i32 = arith.constant 0 : i32
    %c0_i32_0 = arith.constant 0 : i32
    return %c0_i32, %arg0 : i32, i32
  }
  func.func @transform_6(%arg0: i32, %arg1: i32) -> (i32, i32, i32) {
    %c0_i32 = arith.constant 0 : i32
    %c0_i32_0 = arith.constant 0 : i32
    %c0_i32_1 = arith.constant 0 : i32
    return %arg1, %c0_i32, %c0_i32_0 : i32, i32, i32
  }
}

</mosaic_0001>

<bundles_post_ra>
// kernel: eam_forward.4
= control target key start
LH: loop header
LB: loop body
LE: loop exit
PB: predicated region body
PF: predicated region fallthrough
CT: control target
= control target key end

     0   :  { %s992_s1 = inlined_call_operand.vmem [shape: bf16[256,128], index: 1, kind: input, shape index: {}]   ;;  %s993_s0 = inlined_call_operand.vmem [shape: bf16[128,256], index: 0, kind: input, shape index: {}]   ;;  %s994_s2 = inlined_call_operand.vmem [shape: f32[1,128], index: 2, kind: input, shape index: {}]   ;;  %s995_s3 = inlined_call_operand.vmem [shape: f32[1,128], index: 3, kind: input, shape index: {}]   ;;  %s996_s4 = inlined_call_operand.vmem [shape: bf16[128,128], index: 4, kind: output, shape index: {}]  }
   0x1   :  { %v765_v0 = vld [vmem:[%s992_s1 + $0x78] sm:$0xff]   ;;  %v767_v2 = vld [vmem:[%s992_s1 + $0x70] sm:$0xff]   ;;  %v769_v4 = vld [vmem:[%s992_s1 + $0x68] sm:$0xff]  }
   0x2   :  { %v766_v1 = vld [vmem:[%s992_s1 + $0x38] sm:$0xff]   ;;  %685 = vmatprep.subr.bf16.mxu0 %v765_v0  ;;  %749 = vmatprep.subr.bf16.mxu1 %v765_v0  ;;  %v768_v3 = vld [vmem:[%s992_s1 + $0x30] sm:$0xff]   ;;  %v770_v5 = vld [vmem:[%s992_s1 + $0x28] sm:$0xff]  }
   0x3   :  { %686 = vmatpush3.bf16.msra.mxu0 %v766_v1  ;;  %757 = vmatpush3.bf16.msra.mxu1 %v766_v1  ;;  %v771_v6 = vld [vmem:[%s992_s1 + $0x60] sm:$0xff]   ;;  %v773_v8 = vld [vmem:[%s992_s1 + $0x58] sm:$0xff]   ;;  %v775_v10 = vld [vmem:[%s992_s1 + $0x50] sm:$0xff]  }
   0x4   :  { %687 = vmatprep.subr.bf16.mxu0 %v767_v2  ;;  %750 = vmatprep.subr.bf16.mxu1 %v767_v2  ;;  %v772_v7 = vld [vmem:[%s992_s1 + $0x20] sm:$0xff]   ;;  %v774_v9 = vld [vmem:[%s992_s1 + $0x18] sm:$0xff]   ;;  %v776_v13 = vld [vmem:[%s992_s1 + $0x10] sm:$0xff]  }
   0x5   :  { %v783_v11 = vld [vmem:[%s993_s0 + $0x4] ss:$8 sps:$4 sm:$0xff]   ;;  %v781_v18 = vld [vmem:[%s993_s0] ss:$8 sps:$4 sm:$0xff]   ;;  %v787_v20 = vld [vmem:[%s993_s0 + $0x14] ss:$8 sps:$4 sm:$0xff]  }
   0x6   :  { %v786_v12 = vld [vmem:[%s993_s0 + $0x44] ss:$8 sps:$4 sm:$0xff]   ;;  %310 = vmatprep.mubr.bf16.mxu0 %v783_v11  ;;  %v784_v19 = vld [vmem:[%s993_s0 + $0x40] ss:$8 sps:$4 sm:$0xff]   ;;  %v789_v21 = vld [vmem:[%s993_s0 + $0x54] ss:$8 sps:$4 sm:$0xff]  }
   0x7   :  { %688 = vmatpush3.bf16.msra.mxu0 %v768_v3  ;;  %758 = vmatpush3.bf16.msra.mxu1 %v768_v3  ;;  %v777_v14 = vld [vmem:[%s992_s1 + $0x48] sm:$0xff]   ;;  %v779_v16 = vld [vmem:[%s992_s1 + $0x40] sm:$0xff]   ;;  %v791_v22 = vld [vmem:[%s993_s0 + $0x10] ss:$8 sps:$4 sm:$0xff]  }
   0x8   :  { %689 = vmatprep.subr.bf16.mxu0 %v769_v4  ;;  %751 = vmatprep.subr.bf16.mxu1 %v769_v4  ;;  %v778_v15 = vld [vmem:[%s992_s1 + $0x8] sm:$0xff]   ;;  %v780_v17 = vld [vmem:[%s992_s1] sm:$0xff]   ;;  %v792_v23 = vld [vmem:[%s993_s0 + $0x50] ss:$8 sps:$4 sm:$0xff]  }
   0x9   :  { %342 = vmatprep.mubr.bf16.mxu1 %v786_v12  ;;  %v793_v24 = vld [vmem:[%s993_s0 + $0x24] ss:$8 sps:$4 sm:$0xff]   ;;  %v797_v26 = vld [vmem:[%s993_s0 + $0x20] ss:$8 sps:$4 sm:$0xff]   ;;  %v799_v28 = vld [vmem:[%s993_s0 + $0x34] ss:$8 sps:$4 sm:$0xff]  }
   0xa   :  { %v795_v25 = vld [vmem:[%s993_s0 + $0x64] ss:$8 sps:$4 sm:$0xff]   ;;  %v798_v27 = vld [vmem:[%s993_s0 + $0x60] ss:$8 sps:$4 sm:$0xff]   ;;  %v801_v29 = vld [vmem:[%s993_s0 + $0x74] ss:$8 sps:$4 sm:$0xff]  }
   0xb   :  { %690 = vmatpush3.bf16.msra.mxu0 %v770_v5  ;;  %759 = vmatpush3.bf16.msra.mxu1 %v770_v5  ;;  %v803_v30 = vld [vmem:[%s993_s0 + $0x30] ss:$8 sps:$4 sm:$0xff]   ;;  %v929_v35 = vld [vmem:[%s994_s2] ss:$0 sm:$0xff] }
   0xc   :  { %691 = vmatprep.subr.bf16.mxu0 %v771_v6  ;;  %752 = vmatprep.subr.bf16.mxu1 %v771_v6  ;;  %v804_v31 = vld [vmem:[%s993_s0 + $0x70] ss:$8 sps:$4 sm:$0xff]   ;;  %v936_v43 = vld [vmem:[%s995_s3] ss:$0 sm:$0xff] }
   0xf   :  { %692 = vmatpush3.bf16.msra.mxu0 %v772_v7  ;;  %760 = vmatpush3.bf16.msra.mxu1 %v772_v7 }
  0x10   :  { %693 = vmatprep.subr.bf16.mxu0 %v773_v8  ;;  %753 = vmatprep.subr.bf16.mxu1 %v773_v8 }
  0x13   :  { %694 = vmatpush3.bf16.msra.mxu0 %v774_v9  ;;  %761 = vmatpush3.bf16.msra.mxu1 %v774_v9 }
  0x14   :  { %695 = vmatprep.subr.bf16.mxu0 %v775_v10  ;;  %754 = vmatprep.subr.bf16.mxu1 %v775_v10 }
  0x17   :  { %696 = vmatpush3.bf16.msra.mxu0 %v776_v13  ;;  %762 = vmatpush3.bf16.msra.mxu1 %v776_v13 }
  0x18   :  { %697 = vmatprep.subr.bf16.mxu0 %v777_v14  ;;  %755 = vmatprep.subr.bf16.mxu1 %v777_v14 }
  0x1b   :  { %698 = vmatpush3.bf16.msra.mxu0 %v778_v15  ;;  %763 = vmatpush3.bf16.msra.mxu1 %v778_v15 }
  0x1c   :  { %699 = vmatprep.subr.bf16.mxu0 %v779_v16  ;;  %756 = vmatprep.subr.bf16.mxu1 %v779_v16 }
  0x1f   :  { %700 = vmatpush3.bf16.msra.mxu0 %v780_v17  ;;  %764 = vmatpush3.bf16.msra.mxu1 %v780_v17 }
  0x22   :  { %311 = vmatmul.mubr.bf16.vlgmr.msra.gmra.mxu0 %v781_v18  ;;  %343 = vmatmul.mubr.bf16.vlgmr.msra.gmra.mxu1 %v784_v19 }
  0x23   :  { %318 = vmatprep.mubr.bf16.mxu0 %v787_v20  ;;  %350 = vmatprep.mubr.bf16.mxu1 %v789_v21 }
  0x2a   :  { %319 = vmatmul.mubr.bf16.gmra.mxu0 %v791_v22  ;;  %351 = vmatmul.mubr.bf16.gmra.mxu1 %v792_v23 }
  0x2b   :  { %326 = vmatprep.mubr.bf16.mxu0 %v793_v24  ;;  %358 = vmatprep.mubr.bf16.mxu1 %v795_v25 }
  0x32   :  { %327 = vmatmul.mubr.bf16.gmra.mxu0 %v797_v26  ;;  %359 = vmatmul.mubr.bf16.gmra.mxu1 %v798_v27 }
  0x33   :  { %334 = vmatprep.mubr.bf16.mxu0 %v799_v28  ;;  %366 = vmatprep.mubr.bf16.mxu1 %v801_v29 }
  0x3a   :  { %335 = vmatmul.mubr.bf16.gmra.mxu0 %v803_v30  ;;  %367 = vmatmul.mubr.bf16.gmra.mxu1 %v804_v31 }
  0xe2   :  { %v701_v32 = vpop.f32.mrf.mxu0  ;;  %v725_v33 = vpop.f32.mrf.mxu1 }
  0xe4   :  { %v702_v34 = vpop.f32.mrf.mxu0  ;;  %v726_v36 = vpop.f32.mrf.mxu1 }
  0xe5   :  { %v703_v37 = vadd.f32 %v702_v34, %v701_v32  ;;  %v727_v38 = vadd.f32 %v726_v36, %v725_v33 }
  0xe6   :  { %v704_v39 = vpop.f32.mrf.mxu0  ;;  %v728_v40 = vpop.f32.mrf.mxu1 }
  0xe7   :  { %v433_v41 = vmul.f32 %v703_v37, %v929_v35  ;;  %v441_v42 = vmul.f32 %v727_v38, %v929_v35 }
  0xe8   :  { %v705_v44 = vpop.f32.mrf.mxu0  ;;  %v729_v45 = vpop.f32.mrf.mxu1 }
  0xe9   :  { %v706_v46 = vadd.f32 %v705_v44, %v704_v39  ;;  %v730_v47 = vadd.f32 %v729_v45, %v728_v40  ;;  %v456_v50 = vadd.f32 %v936_v43, %v433_v41  ;;  %v464_v51 = vadd.f32 %v936_v43, %v441_v42 }
  0xea   :  { %v707_v48 = vpop.f32.mrf.mxu0  ;;  %v731_v49 = vpop.f32.mrf.mxu1 }
  0xeb   :  { %v434_v52 = vmul.f32 %v706_v46, %v929_v35  ;;  %v442_v53 = vmul.f32 %v730_v47, %v929_v35  ;;  %v472_v62 = vmax.f32 %v456_v50, 0.0  ;;  %v480_v63 = vmax.f32 %v464_v51, 0.0 }
  0xec   :  { %v708_v54 = vpop.f32.mrf.mxu0  ;;  %v732_v55 = vpop.f32.mrf.mxu1 }
  0xed   :  { %v457_v56 = vadd.f32 %v936_v43, %v434_v52  ;;  %v465_v57 = vadd.f32 %v936_v43, %v442_v53  ;;  %v709_v58 = vadd.f32 %v708_v54, %v707_v48  ;;  %v733_v59 = vadd.f32 %v732_v55, %v731_v49 }
  0xee   :  { %v710_v60 = vpop.f32.mrf.mxu0  ;;  %v734_v61 = vpop.f32.mrf.mxu1 }
  0xef   :  { %v473_v0 = vmax.f32 %v457_v56, 0.0  ;;  %v481_v1 = vmax.f32 %v465_v57, 0.0  ;;  %v435_v2 = vmul.f32 %v709_v58, %v929_v35  ;;  %v443_v3 = vmul.f32 %v733_v59, %v929_v35 }
  0xf0   :  { %v711_v4 = vpop.f32.mrf.mxu0  ;;  %v735_v5 = vpop.f32.mrf.mxu1 }
  0xf1   :  { %v641_v6 = vpack.c.bf16 %v473_v0, %v472_v62  ;;  %v661_v7 = vpack.c.bf16 %v481_v1, %v480_v63  ;;  %v712_v8 = vadd.f32 %v711_v4, %v710_v60  ;;  %v736_v9 = vadd.f32 %v735_v5, %v734_v61 }
  0xf2   :  { %v713_v10 = vpop.f32.mrf.mxu0  ;;  %v737_v11 = vpop.f32.mrf.mxu1  ;;  %v458_v12 = vadd.f32 %v936_v43, %v435_v2  ;;  %v466_v13 = vadd.f32 %v936_v43, %v443_v3 }
  0xf3   :  { %642 = vst [vmem:[%s996_s4] sm:$0xff] %v641_v6   ;;  %681 = vst [vmem:[%s996_s4 + $0x20] sm:$0xff] %v661_v7   ;;  %v436_v14 = vmul.f32 %v712_v8, %v929_v35  ;;  %v444_v15 = vmul.f32 %v736_v9, %v929_v35 }
  0xf4   :  { %v714_v16 = vpop.f32.mrf.mxu0  ;;  %v738_v17 = vpop.f32.mrf.mxu1  ;;  %v474_v26 = vmax.f32 %v458_v12, 0.0  ;;  %v482_v27 = vmax.f32 %v466_v13, 0.0 }
  0xf5   :  { %v715_v18 = vadd.f32 %v714_v16, %v713_v10  ;;  %v739_v19 = vadd.f32 %v738_v17, %v737_v11  ;;  %v459_v20 = vadd.f32 %v936_v43, %v436_v14  ;;  %v467_v21 = vadd.f32 %v936_v43, %v444_v15 }
  0xf6   :  { %v716_v22 = vpop.f32.mrf.mxu0  ;;  %v740_v23 = vpop.f32.mrf.mxu1 }
  0xf7   :  { %v437_v24 = vmul.f32 %v715_v18, %v929_v35  ;;  %v445_v25 = vmul.f32 %v739_v19, %v929_v35  ;;  %v475_v28 = vmax.f32 %v459_v20, 0.0  ;;  %v483_v29 = vmax.f32 %v467_v21, 0.0 }
  0xf8   :  { %v717_v30 = vpop.f32.mrf.mxu0  ;;  %v741_v31 = vpop.f32.mrf.mxu1 }
  0xf9   :  { %v718_v32 = vadd.f32 %v717_v30, %v716_v22  ;;  %v742_v33 = vadd.f32 %v741_v31, %v740_v23  ;;  %v646_v34 = vpack.c.bf16 %v475_v28, %v474_v26  ;;  %v666_v36 = vpack.c.bf16 %v483_v29, %v482_v27 }
  0xfa   :  { %v719_v37 = vpop.f32.mrf.mxu0  ;;  %v743_v38 = vpop.f32.mrf.mxu1  ;;  %v460_v39 = vadd.f32 %v936_v43, %v437_v24  ;;  %v468_v40 = vadd.f32 %v936_v43, %v445_v25 }
  0xfb   :  { %v438_v41 = vmul.f32 %v718_v32, %v929_v35  ;;  %v446_v42 = vmul.f32 %v742_v33, %v929_v35  ;;  %678 = vst [vmem:[%s996_s4 + $0x8] sm:$0xff] %v646_v34   ;;  %682 = vst [vmem:[%s996_s4 + $0x28] sm:$0xff] %v666_v36  }
  0xfc   :  { %v720_v44 = vpop.f32.mrf.mxu0  ;;  %v744_v45 = vpop.f32.mrf.mxu1  ;;  %v476_v52 = vmax.f32 %v460_v39, 0.0  ;;  %v484_v53 = vmax.f32 %v468_v40, 0.0 }
  0xfd   :  { %v461_v46 = vadd.f32 %v936_v43, %v438_v41  ;;  %v469_v47 = vadd.f32 %v936_v43, %v446_v42  ;;  %v721_v48 = vadd.f32 %v720_v44, %v719_v37  ;;  %v745_v49 = vadd.f32 %v744_v45, %v743_v38 }
  0xfe   :  { %v722_v50 = vpop.f32.mrf.mxu0  ;;  %v746_v51 = vpop.f32.mrf.mxu1 }
  0xff   :  { %v477_v54 = vmax.f32 %v461_v46, 0.0  ;;  %v485_v55 = vmax.f32 %v469_v47, 0.0  ;;  %v439_v56 = vmul.f32 %v721_v48, %v929_v35  ;;  %v447_v57 = vmul.f32 %v745_v49, %v929_v35 }
 0x100   :  { %v723_v58 = vpop.f32.mrf.mxu0  ;;  %v747_v59 = vpop.f32.mrf.mxu1 }
 0x101   :  { %v651_v60 = vpack.c.bf16 %v477_v54, %v476_v52  ;;  %v671_v61 = vpack.c.bf16 %v485_v55, %v484_v53  ;;  %v724_v62 = vadd.f32 %v723_v58, %v722_v50  ;;  %v748_v63 = vadd.f32 %v747_v59, %v746_v51 }
 0x102   :  { %v462_v0 = vadd.f32 %v936_v43, %v439_v56  ;;  %v470_v1 = vadd.f32 %v936_v43, %v447_v57 }
 0x103   :  { %679 = vst [vmem:[%s996_s4 + $0x10] sm:$0xff] %v651_v60   ;;  %683 = vst [vmem:[%s996_s4 + $0x30] sm:$0xff] %v671_v61   ;;  %v440_v2 = vmul.f32 %v724_v62, %v929_v35  ;;  %v448_v3 = vmul.f32 %v748_v63, %v929_v35 }
 0x104   :  { %v478_v6 = vmax.f32 %v462_v0, 0.0  ;;  %v486_v7 = vmax.f32 %v470_v1, 0.0 }
 0x105   :  { %v463_v4 = vadd.f32 %v936_v43, %v440_v2  ;;  %v471_v5 = vadd.f32 %v936_v43, %v448_v3 }
 0x107   :  { %v479_v8 = vmax.f32 %v463_v4, 0.0  ;;  %v487_v9 = vmax.f32 %v471_v5, 0.0 }
 0x109   :  { %v656_v10 = vpack.c.bf16 %v479_v8, %v478_v6  ;;  %v676_v11 = vpack.c.bf16 %v487_v9, %v486_v7 }
 0x10b   :  { %680 = vst [vmem:[%s996_s4 + $0x18] sm:$0xff] %v656_v10   ;;  %684 = vst [vmem:[%s996_s4 + $0x38] sm:$0xff] %v676_v11  }

// kernel: eam_forward.5
= control target key start
LH: loop header
LB: loop body
LE: loop exit
PB: predicated region body
PF: predicated region fallthrough
CT: control target
= control target key end

     0   :  { %9 = vsyncpa [#allocation4], 0  ;;  %s3309_s0 = inlined_call_operand.vmem [shape: bf16[32,2048], index: 0, kind: input, shape index: {}]   ;;  %s3310_s1 = inlined_call_operand.hbm [shape: bf16[2048,256], index: 1, kind: input, shape index: {}]   ;;  %s3311_s2 = inlined_call_operand.hbm [shape: f32[1,256], index: 2, kind: input, shape index: {}]   ;;  %s3312_s3 = inlined_call_operand.hbm [shape: f32[1,256], index: 3, kind: input, shape index: {}]   ;;  %s3313_s4 = inlined_call_operand.vmem [shape: bf16[32,256], index: 4, kind: output, shape index: {}]  }
   0x1   :  { %10 = vsyncpa [#allocation6], 0  ;;  %s3084_s15 = smov [#allocation5]   ;;  %s3085_s17 = smov [#allocation3]  }
   0x2   :  { %s31_s16 = sshll.u32 %s3084_s15, 4  ;;  %s18_s18 = sshll.u32 %s3085_s17, 4  ;;  %s32_s16 = int_to_ptr.vmem [resolvable:$true] %s31_s16  ;;  %s19_s18 = int_to_ptr.vmem [resolvable:$true] %s18_s18 }
   0x3   :  { %s3028_s19 = scalar_lea.vmem %s32_s16, 32  ;;  %p3033_p1 = scmp.lt.s32.totalorder %s32_s16, %s32_s16 }
   0x4   :  { %p3029_p0 = scmp.ne.s32.totalorder %s32_s16, %s3028_s19  ;;  %p3034_p2 = scmp.lt.s32.totalorder %s3028_s19, %s3028_s19 }
   0x6   :  { %p3035_p3 = por %p3034_p2, %p3033_p1 }
   0x8   :  { %p3036_p4 = pnand %p3035_p3, %p3029_p0 }
   0xa   :  { %3039 = shalt.err (!%p3036_p4)
}
   0xb   :  { %34 = dma.hbm_to_vmem [thread:$0]  %s3311_s2, 32, %s32_s16, [#allocation6]  }
   0xc   :  { %s3048_s22 = scalar_lea.vmem %s19_s18, 32768  ;;  %p3053_p6 = scmp.lt.s32.totalorder %s19_s18, %s19_s18 }
   0xd   :  { %p3049_p5 = scmp.ne.s32.totalorder %s19_s18, %s3048_s22  ;;  %p3054_p7 = scmp.lt.s32.totalorder %s3048_s22, %s3048_s22 }
   0xf   :  { %p3055_p8 = por %p3054_p7, %p3053_p6 }
  0x11   :  { %p3056_p9 = pnand %p3055_p8, %p3049_p5 }
  0x13   :  { %3059 = shalt.err (!%p3056_p9)
}
  0x14   :  { %s3086_s23 = smov 128   ;;  %s3087_s24 = smov 8  }
  0x15   :  { %24 = dma.hbm_to_vmem [thread:$0]  %s3310_s1, 32768, %s19_s18, [#allocation4], %s3086_s23, %s3086_s23, %s3087_s24  }
  0x16   :  { %s3088_s27 = smov [#allocation7]  }
  0x17   :  { %s41_s28 = sshll.u32 %s3088_s27, 4  ;;  %s42_s28 = int_to_ptr.vmem [resolvable:$true] %s41_s28 }
  0x18   :  { %s3068_s29 = scalar_lea.vmem %s42_s28, 32  ;;  %p3073_p11 = scmp.lt.s32.totalorder %s42_s28, %s42_s28 }
  0x19   :  { %p3069_p10 = scmp.ne.s32.totalorder %s42_s28, %s3068_s29  ;;  %p3074_p12 = scmp.lt.s32.totalorder %s3068_s29, %s3068_s29 }
  0x1b   :  { %p3075_p13 = por %p3074_p12, %p3073_p11 }
  0x1d   :  { %p3076_p0 = pnand %p3075_p13, %p3069_p10 }
  0x1f   :  { %3079 = shalt.err (!%p3076_p0)
}
  0x20   :  { %44 = dma.hbm_to_vmem [thread:$0]  %s3312_s3, 32, %s42_s28, [#allocation6]  }
  0x21   :  { %3080 = dma.done.wait [#allocation4], 32768  }
  0x22   :  { %3081 = vsyncadd [#allocation4], 4294934528 }
  0x23   :  { %3082 = dma.done.wait [#allocation6], 64  }
  0x24   :  { %3083 = vsyncadd [#allocation6], 4294967232  ;;  %v2636_v0 = vld [vmem:[#allocation3 + $0x74] ss:$8 sps:$4 sm:$0xff]   ;;  %v2640_v2 = vld [vmem:[#allocation3 + $0x70] ss:$8 sps:$4 sm:$0xff]  }
  0x25   :  { %v2638_v1 = vld [vmem:[#allocation3 + $0x174] ss:$8 sps:$4 sm:$0xff]   ;;  %1802 = vmatprep.subr.bf16.mxu0 %v2636_v0  ;;  %v2641_v3 = vld [vmem:[#allocation3 + $0x170] ss:$8 sps:$4 sm:$0xff]   ;;  %v2642_v4 = vld [vmem:[#allocation3 + $0x64] ss:$8 sps:$4 sm:$0xff]  }
  0x26   :  { %1855 = vmatprep.subr.bf16.mxu1 %v2638_v1  ;;  %1803 = vmatpush1.bf16.msra.mxu0 %v2640_v2  ;;  %v2644_v5 = vld [vmem:[#allocation3 + $0x164] ss:$8 sps:$4 sm:$0xff]   ;;  %v2646_v6 = vld [vmem:[#allocation3 + $0x60] ss:$8 sps:$4 sm:$0xff]   ;;  %v2648_v8 = vld [vmem:[#allocation3 + $0x54] ss:$8 sps:$4 sm:$0xff]  }
  0x27   :  { %1856 = vmatpush1.bf16.msra.mxu1 %v2641_v3  ;;  %1804 = vmatprep.subr.bf16.mxu0 %v2642_v4  ;;  %v2647_v7 = vld [vmem:[#allocation3 + $0x160] ss:$8 sps:$4 sm:$0xff]   ;;  %v2650_v9 = vld [vmem:[#allocation3 + $0x154] ss:$8 sps:$4 sm:$0xff]   ;;  %v2652_v10 = vld [vmem:[#allocation3 + $0x50] ss:$8 sps:$4 sm:$0xff]  }
  0x28   :  { %1857 = vmatprep.subr.bf16.mxu1 %v2644_v5  ;;  %v2653_v11 = vld [vmem:[#allocation3 + $0x150] ss:$8 sps:$4 sm:$0xff]   ;;  %v2654_v12 = vld [vmem:[#allocation3 + $0x44] ss:$8 sps:$4 sm:$0xff]   ;;  %v2658_v14 = vld [vmem:[#allocation3 + $0x40] ss:$8 sps:$4 sm:$0xff]  }
  0x29   :  { %v2656_v13 = vld [vmem:[#allocation3 + $0x144] ss:$8 sps:$4 sm:$0xff]   ;;  %v2659_v15 = vld [vmem:[#allocation3 + $0x140] ss:$8 sps:$4 sm:$0xff]   ;;  %v2660_v16 = vld [vmem:[#allocation3 + $0x34] ss:$8 sps:$4 sm:$0xff]  }
  0x2a   :  { %1805 = vmatpush1.bf16.msra.mxu0 %v2646_v6  ;;  %v2662_v17 = vld [vmem:[#allocation3 + $0x134] ss:$8 sps:$4 sm:$0xff]   ;;  %v2664_v18 = vld [vmem:[#allocation3 + $0x30] ss:$8 sps:$4 sm:$0xff]   ;;  %v2666_v20 = vld [vmem:[#allocation3 + $0x24] ss:$8 sps:$4 sm:$0xff]  }
  0x2b   :  { %1858 = vmatpush1.bf16.msra.mxu1 %v2647_v7  ;;  %1806 = vmatprep.subr.bf16.mxu0 %v2648_v8  ;;  %v2665_v19 = vld [vmem:[#allocation3 + $0x130] ss:$8 sps:$4 sm:$0xff]   ;;  %v2668_v21 = vld [vmem:[#allocation3 + $0x124] ss:$8 sps:$4 sm:$0xff]   ;;  %v2670_v22 = vld [vmem:[#allocation3 + $0x20] ss:$8 sps:$4 sm:$0xff]  }
  0x2c   :  { %1859 = vmatprep.subr.bf16.mxu1 %v2650_v9  ;;  %v2671_v23 = vld [vmem:[#allocation3 + $0x120] ss:$8 sps:$4 sm:$0xff]   ;;  %v2672_v24 = vld [vmem:[#allocation3 + $0x14] ss:$8 sps:$4 sm:$0xff]   ;;  %v2676_v26 = vld [vmem:[#allocation3 + $0x10] ss:$8 sps:$4 sm:$0xff]  }
  0x2d   :  { %v2674_v25 = vld [vmem:[#allocation3 + $0x114] ss:$8 sps:$4 sm:$0xff]   ;;  %v2677_v27 = vld [vmem:[#allocation3 + $0x110] ss:$8 sps:$4 sm:$0xff]   ;;  %v2678_v28 = vld [vmem:[#allocation3 + $0x4] ss:$8 sps:$4 sm:$0xff]  }
  0x2e   :  { %1807 = vmatpush1.bf16.msra.mxu0 %v2652_v10  ;;  %v2680_v29 = vld [vmem:[#allocation3 + $0x104] ss:$8 sps:$4 sm:$0xff]   ;;  %v2682_v30 = vld [vmem:[#allocation3] ss:$8 sps:$4 sm:$0xff]   ;;  %v2684_v32 = vld [vmem:[#allocation3 + $0xf4] ss:$8 sps:$4 sm:$0xff]  }
  0x2f   :  { %1860 = vmatpush1.bf16.msra.mxu1 %v2653_v11  ;;  %1808 = vmatprep.subr.bf16.mxu0 %v2654_v12  ;;  %v2683_v31 = vld [vmem:[#allocation3 + $0x100] ss:$8 sps:$4 sm:$0xff]   ;;  %v2686_v33 = vld [vmem:[#allocation3 + $0x1f4] ss:$8 sps:$4 sm:$0xff]   ;;  %v2688_v34 = vld [vmem:[#allocation3 + $0xf0] ss:$8 sps:$4 sm:$0xff]  }
  0x30   :  { %1861 = vmatprep.subr.bf16.mxu1 %v2656_v13  ;;  %v2689_v35 = vld [vmem:[#allocation3 + $0x1f0] ss:$8 sps:$4 sm:$0xff]   ;;  %v2690_v36 = vld [vmem:[#allocation3 + $0xe4] ss:$8 sps:$4 sm:$0xff]   ;;  %v2694_v38 = vld [vmem:[#allocation3 + $0xe0] ss:$8 sps:$4 sm:$0xff]  }
  0x31   :  { %v2692_v37 = vld [vmem:[#allocation3 + $0x1e4] ss:$8 sps:$4 sm:$0xff]   ;;  %v2695_v39 = vld [vmem:[#allocation3 + $0x1e0] ss:$8 sps:$4 sm:$0xff]   ;;  %v2696_v40 = vld [vmem:[#allocation3 + $0xd4] ss:$8 sps:$4 sm:$0xff]  }
  0x32   :  { %1809 = vmatpush1.bf16.msra.mxu0 %v2658_v14  ;;  %v2698_v41 = vld [vmem:[#allocation3 + $0x1d4] ss:$8 sps:$4 sm:$0xff]   ;;  %v2700_v42 = vld [vmem:[#allocation3 + $0xd0] ss:$8 sps:$4 sm:$0xff]   ;;  %v2702_v44 = vld [vmem:[#allocation3 + $0xc4] ss:$8 sps:$4 sm:$0xff]  }
  0x33   :  { %1862 = vmatpush1.bf16.msra.mxu1 %v2659_v15  ;;  %1810 = vmatprep.subr.bf16.mxu0 %v2660_v16  ;;  %v2701_v43 = vld [vmem:[#allocation3 + $0x1d0] ss:$8 sps:$4 sm:$0xff]   ;;  %v2704_v45 = vld [vmem:[#allocation3 + $0x1c4] ss:$8 sps:$4 sm:$0xff]   ;;  %v2706_v46 = vld [vmem:[#allocation3 + $0xc0] ss:$8 sps:$4 sm:$0xff]  }
  0x34   :  { %1863 = vmatprep.subr.bf16.mxu1 %v2662_v17  ;;  %v2707_v47 = vld [vmem:[#allocation3 + $0x1c0] ss:$8 sps:$4 sm:$0xff]   ;;  %v2708_v52 = vld [vmem:[#allocation3 + $0xb4] ss:$8 sps:$4 sm:$0xff]   ;;  %v2712_v56 = vld [vmem:[#allocation3 + $0xb0] ss:$8 sps:$4 sm:$0xff]  }
  0x35   :  { %v74_v48 = vld [vmem:[%s3309_s0] sm:$0xff]  ;;  %v75_v50 = vld [vmem:[%s3309_s0 + $0x8] sm:$0xff]  ;;  %v2710_v54 = vld [vmem:[#allocation3 + $0x1b4] ss:$8 sps:$4 sm:$0xff]  }
  0x36   :  { %1811 = vmatpush1.bf16.msra.mxu0 %v2664_v18  ;;  %v82_v49 = vld [vmem:[%s3309_s0 + $0x40] sm:$0xff]  ;;  %v83_v51 = vld [vmem:[%s3309_s0 + $0x48] sm:$0xff]  ;;  %v2713_v57 = vld [vmem:[#allocation3 + $0x1b0] ss:$8 sps:$4 sm:$0xff]  }
  0x37   :  { %1864 = vmatpush1.bf16.msra.mxu1 %v2665_v19  ;;  %1812 = vmatprep.subr.bf16.mxu0 %v2666_v20  ;;  %v2336_v53 = vcombine.high %v74_v48, %v82_v49  ;;  %v2338_v55 = vcombine.high %v75_v50, %v83_v51  ;;  %v2714_v58 = vld [vmem:[#allocation3 + $0xa4] ss:$8 sps:$4 sm:$0xff]   ;;  %v2718_v60 = vld [vmem:[#allocation3 + $0xa0] ss:$8 sps:$4 sm:$0xff]   ;;  %v2720_v62 = vld [vmem:[#allocation3 + $0x94] ss:$8 sps:$4 sm:$0xff]   ;;  %v2335_v8 = vcombine.low %v74_v48, %v82_v49 }
  0x38   :  { %1865 = vmatprep.subr.bf16.mxu1 %v2668_v21  ;;  %v2716_v59 = vld [vmem:[#allocation3 + $0x1a4] ss:$8 sps:$4 sm:$0xff]   ;;  %v2719_v61 = vld [vmem:[#allocation3 + $0x1a0] ss:$8 sps:$4 sm:$0xff]   ;;  %v2722_v63 = vld [vmem:[#allocation3 + $0x194] ss:$8 sps:$4 sm:$0xff]   ;;  %v2337_v9 = vcombine.low %v75_v50, %v83_v51 }
  0x39   :  { %1834 = vmatprep.mubr.bf16.mxu0 %v2336_v53  ;;  %1887 = vmatprep.mubr.bf16.mxu1 %v2338_v55  ;;  %v2724_v0 = vld [vmem:[#allocation3 + $0x90] ss:$8 sps:$4 sm:$0xff]   ;;  %v2726_v2 = vld [vmem:[#allocation3 + $0x84] ss:$8 sps:$4 sm:$0xff]   ;;  %v2730_v4 = vld [vmem:[#allocation3 + $0x80] ss:$8 sps:$4 sm:$0xff]  }
  0x3a   :  { %1813 = vmatpush1.bf16.msra.mxu0 %v2670_v22  ;;  %v2725_v1 = vld [vmem:[#allocation3 + $0x190] ss:$8 sps:$4 sm:$0xff]   ;;  %v2728_v3 = vld [vmem:[#allocation3 + $0x184] ss:$8 sps:$4 sm:$0xff]   ;;  %v2731_v5 = vld [vmem:[#allocation3 + $0x180] ss:$8 sps:$4 sm:$0xff]  }
  0x3b   :  { %1866 = vmatpush1.bf16.msra.mxu1 %v2671_v23  ;;  %1814 = vmatprep.subr.bf16.mxu0 %v2672_v24  ;;  %v2734_v6 = vld [vmem:[#allocation3 + $0x274] ss:$8 sps:$4 sm:$0xff]   ;;  %v2732_v10 = vld [vmem:[#allocation3 + $0x270] ss:$8 sps:$4 sm:$0xff]   ;;  %v2740_v12 = vld [vmem:[#allocation3 + $0x264] ss:$8 sps:$4 sm:$0xff]  }
  0x3c   :  { %1867 = vmatprep.subr.bf16.mxu1 %v2674_v25  ;;  %v2737_v7 = vld [vmem:[#allocation3 + $0x374] ss:$8 sps:$4 sm:$0xff]   ;;  %v2735_v11 = vld [vmem:[#allocation3 + $0x370] ss:$8 sps:$4 sm:$0xff]   ;;  %v2743_v13 = vld [vmem:[#allocation3 + $0x364] ss:$8 sps:$4 sm:$0xff]  }
  0x3d   :  { %v2738_v14 = vld [vmem:[#allocation3 + $0x260] ss:$8 sps:$4 sm:$0xff]   ;;  %v2746_v16 = vld [vmem:[#allocation3 + $0x254] ss:$8 sps:$4 sm:$0xff]   ;;  %v2744_v18 = vld [vmem:[#allocation3 + $0x250] ss:$8 sps:$4 sm:$0xff]  }
  0x3e   :  { %1815 = vmatpush1.bf16.msra.mxu0 %v2676_v26  ;;  %v2741_v15 = vld [vmem:[#allocation3 + $0x360] ss:$8 sps:$4 sm:$0xff]   ;;  %v2749_v17 = vld [vmem:[#allocation3 + $0x354] ss:$8 sps:$4 sm:$0xff]   ;;  %v2747_v19 = vld [vmem:[#allocation3 + $0x350] ss:$8 sps:$4 sm:$0xff]  }
  0x3f   :  { %1868 = vmatpush1.bf16.msra.mxu1 %v2677_v27  ;;  %1816 = vmatprep.subr.bf16.mxu0 %v2678_v28  ;;  %v2752_v20 = vld [vmem:[#allocation3 + $0x244] ss:$8 sps:$4 sm:$0xff]   ;;  %v2750_v22 = vld [vmem:[#allocation3 + $0x240] ss:$8 sps:$4 sm:$0xff]   ;;  %v2758_v24 = vld [vmem:[#allocation3 + $0x234] ss:$8 sps:$4 sm:$0xff]  }
  0x40   :  { %1869 = vmatprep.subr.bf16.mxu1 %v2680_v29  ;;  %v2755_v21 = vld [vmem:[#allocation3 + $0x344] ss:$8 sps:$4 sm:$0xff]   ;;  %v2753_v23 = vld [vmem:[#allocation3 + $0x340] ss:$8 sps:$4 sm:$0xff]   ;;  %v2761_v25 = vld [vmem:[#allocation3 + $0x334] ss:$8 sps:$4 sm:$0xff]  }
  0x41   :  { %v2756_v26 = vld [vmem:[#allocation3 + $0x230] ss:$8 sps:$4 sm:$0xff]   ;;  %v90_v28 = vld [vmem:[%s3309_s0 + $0x80] sm:$0xff]  ;;  %v2785_v55 = vld [vmem:[#allocation3 + $0x3f4] ss:$8 sps:$4 sm:$0xff]  }
  0x42   :  { %1817 = vmatpush1.bf16.msra.mxu0 %v2682_v30  ;;  %v2759_v27 = vld [vmem:[#allocation3 + $0x330] ss:$8 sps:$4 sm:$0xff]   ;;  %v98_v29 = vld [vmem:[%s3309_s0 + $0xc0] sm:$0xff]  ;;  %v91_v30 = vld [vmem:[%s3309_s0 + $0x88] sm:$0xff] }
  0x43   :  { %1870 = vmatpush1.bf16.msra.mxu1 %v2683_v31  ;;  %1818 = vmatprep.subr.bf16.mxu0 %v2684_v32  ;;  %v99_v31 = vld [vmem:[%s3309_s0 + $0xc8] sm:$0xff]  ;;  %v3160_v48 = vld [vmem:[%s3309_s0 + $0x18] sm:$0xff] }
  0x44   :  { %1871 = vmatprep.subr.bf16.mxu1 %v2686_v33  ;;  %v2764_v32 = vld [vmem:[#allocation3 + $0x224] ss:$8 sps:$4 sm:$0xff]   ;;  %v2352_v33 = vcombine.high %v90_v28, %v98_v29  ;;  %v3167_v50 = vld [vmem:[%s3309_s0 + $0x58] sm:$0xff]  ;;  %v2777_v53 = vld [vmem:[#allocation3 + $0x300] ss:$8 sps:$4 sm:$0xff]  }
  0x45   :  { %v2342_v51 = vcombine.high %v3160_v48, %v3167_v50 }
  0x46   :  { %1819 = vmatpush2.bf16.msra.mxu0 %v2688_v34  ;;  %v2354_v34 = vcombine.high %v91_v30, %v99_v31 }
  0x47   :  { %1872 = vmatpush2.bf16.msra.mxu1 %v2689_v35  ;;  %1820 = vmatprep.subr.bf16.mxu0 %v2690_v36  ;;  %v2351_v35 = vcombine.low %v90_v28, %v98_v29  ;;  %v2767_v36 = vld [vmem:[#allocation3 + $0x324] ss:$8 sps:$4 sm:$0xff]   ;;  %v2341_v29 = vcombine.low %v3160_v48, %v3167_v50 }
  0x48   :  { %1873 = vmatprep.subr.bf16.mxu1 %v2692_v37  ;;  %v2353_v37 = vcombine.low %v91_v30, %v99_v31  ;;  %v93_v30 = vld [vmem:[%s3309_s0 + $0x98] sm:$0xff]  ;;  %v2848_v48 = vld [vmem:[#allocation3 + $0x444] ss:$8 sps:$4 sm:$0xff]  }
  0x49   :  { %v101_v31 = vld [vmem:[%s3309_s0 + $0xd8] sm:$0xff] }
  0x4a   :  { %1821 = vmatpush2.bf16.msra.mxu0 %v2694_v38  ;;  %v2762_v38 = vld [vmem:[#allocation3 + $0x220] ss:$8 sps:$4 sm:$0xff]  }
  0x4b   :  { %1874 = vmatpush2.bf16.msra.mxu1 %v2695_v39  ;;  %1822 = vmatprep.subr.bf16.mxu0 %v2696_v40  ;;  %v2765_v39 = vld [vmem:[#allocation3 + $0x320] ss:$8 sps:$4 sm:$0xff]   ;;  %v2770_v40 = vld [vmem:[#allocation3 + $0x214] ss:$8 sps:$4 sm:$0xff]  }
  0x4c   :  { %1875 = vmatprep.subr.bf16.mxu1 %v2698_v41  ;;  %v2773_v41 = vld [vmem:[#allocation3 + $0x314] ss:$8 sps:$4 sm:$0xff]  }
  0x4e   :  { %1823 = vmatpush2.bf16.msra.mxu0 %v2700_v42  ;;  %v2768_v42 = vld [vmem:[#allocation3 + $0x210] ss:$8 sps:$4 sm:$0xff]  }
  0x4f   :  { %1876 = vmatpush2.bf16.msra.mxu1 %v2701_v43  ;;  %1824 = vmatprep.subr.bf16.mxu0 %v2702_v44  ;;  %v2771_v43 = vld [vmem:[#allocation3 + $0x310] ss:$8 sps:$4 sm:$0xff]   ;;  %v2776_v44 = vld [vmem:[#allocation3 + $0x204] ss:$8 sps:$4 sm:$0xff]  }
  0x50   :  { %1877 = vmatprep.subr.bf16.mxu1 %v2704_v45  ;;  %v2779_v45 = vld [vmem:[#allocation3 + $0x304] ss:$8 sps:$4 sm:$0xff]  }
  0x52   :  { %1825 = vmatpush2.bf16.msra.mxu0 %v2706_v46  ;;  %v3150_v46 = vld [vmem:[%s3309_s0 + $0x10] sm:$0xff] }
  0x53   :  { %1878 = vmatpush2.bf16.msra.mxu1 %v2707_v47  ;;  %1826 = vmatprep.subr.bf16.mxu0 %v2708_v52  ;;  %v3155_v47 = vld [vmem:[%s3309_s0 + $0x50] sm:$0xff]  ;;  %v2774_v52 = vld [vmem:[#allocation3 + $0x200] ss:$8 sps:$4 sm:$0xff]  }
  0x54   :  { %1879 = vmatprep.subr.bf16.mxu1 %v2710_v54  ;;  %v2340_v49 = vcombine.high %v3150_v46, %v3155_v47  ;;  %v2782_v54 = vld [vmem:[#allocation3 + $0x2f4] ss:$8 sps:$4 sm:$0xff]   ;;  %v2339_v28 = vcombine.low %v3150_v46, %v3155_v47  ;;  %v3200_v46 = vld [vmem:[%s3309_s0 + $0x28] sm:$0xff] }
  0x55   :  { %v3205_v47 = vld [vmem:[%s3309_s0 + $0x68] sm:$0xff] }
  0x56   :  { %1827 = vmatpush2.bf16.msra.mxu0 %v2712_v56  ;;  %v2780_v56 = vld [vmem:[#allocation3 + $0x2f0] ss:$8 sps:$4 sm:$0xff]  }
  0x57   :  { %1880 = vmatpush2.bf16.msra.mxu1 %v2713_v57  ;;  %1828 = vmatprep.subr.bf16.mxu0 %v2714_v58  ;;  %v2783_v57 = vld [vmem:[#allocation3 + $0x3f0] ss:$8 sps:$4 sm:$0xff]   ;;  %v2788_v58 = vld [vmem:[#allocation3 + $0x2e4] ss:$8 sps:$4 sm:$0xff]  }
  0x58   :  { %1881 = vmatprep.subr.bf16.mxu1 %v2716_v59  ;;  %v2791_v59 = vld [vmem:[#allocation3 + $0x3e4] ss:$8 sps:$4 sm:$0xff]  }
  0x5a   :  { %1829 = vmatpush2.bf16.msra.mxu0 %v2718_v60  ;;  %v2786_v60 = vld [vmem:[#allocation3 + $0x2e0] ss:$8 sps:$4 sm:$0xff]  }
  0x5b   :  { %1882 = vmatpush2.bf16.msra.mxu1 %v2719_v61  ;;  %1830 = vmatprep.subr.bf16.mxu0 %v2720_v62  ;;  %v2789_v61 = vld [vmem:[#allocation3 + $0x3e0] ss:$8 sps:$4 sm:$0xff]   ;;  %v2794_v62 = vld [vmem:[#allocation3 + $0x2d4] ss:$8 sps:$4 sm:$0xff]  }
  0x5c   :  { %1883 = vmatprep.subr.bf16.mxu1 %v2722_v63  ;;  %v2797_v63 = vld [vmem:[#allocation3 + $0x3d4] ss:$8 sps:$4 sm:$0xff]  }
  0x5e   :  { %1831 = vmatpush2.bf16.msra.mxu0 %v2724_v0  ;;  %v2792_v0 = vld [vmem:[#allocation3 + $0x2d0] ss:$8 sps:$4 sm:$0xff]  }
  0x5f   :  { %1884 = vmatpush2.bf16.msra.mxu1 %v2725_v1  ;;  %1832 = vmatprep.subr.bf16.mxu0 %v2726_v2  ;;  %v2795_v1 = vld [vmem:[#allocation3 + $0x3d0] ss:$8 sps:$4 sm:$0xff]   ;;  %v2800_v2 = vld [vmem:[#allocation3 + $0x2c4] ss:$8 sps:$4 sm:$0xff]  }
  0x60   :  { %1885 = vmatprep.subr.bf16.mxu1 %v2728_v3  ;;  %v2803_v3 = vld [vmem:[#allocation3 + $0x3c4] ss:$8 sps:$4 sm:$0xff]  }
  0x62   :  { %1833 = vmatpush2.bf16.msra.mxu0 %v2730_v4  ;;  %v2798_v4 = vld [vmem:[#allocation3 + $0x2c0] ss:$8 sps:$4 sm:$0xff]  }
  0x63   :  { %1886 = vmatpush2.bf16.msra.mxu1 %v2731_v5  ;;  %1908 = vmatprep.subr.bf16.mxu0 %v2734_v6  ;;  %v2801_v5 = vld [vmem:[#allocation3 + $0x3c0] ss:$8 sps:$4 sm:$0xff]   ;;  %v2806_v6 = vld [vmem:[#allocation3 + $0x2b4] ss:$8 sps:$4 sm:$0xff]  }
  0x64   :  { %1961 = vmatprep.subr.bf16.mxu1 %v2737_v7  ;;  %v2809_v7 = vld [vmem:[#allocation3 + $0x3b4] ss:$8 sps:$4 sm:$0xff]  }
  0x65   :  { %1835 = vmatmul.mubr.bf16.vlgmr.msra.gmra.mxu0 %v2335_v8  ;;  %v2804_v8 = vld [vmem:[#allocation3 + $0x2b0] ss:$8 sps:$4 sm:$0xff]  }
  0x66   :  { %1888 = vmatmul.mubr.bf16.vlgmr.msra.gmra.mxu1 %v2337_v9  ;;  %1909 = vmatpush1.bf16.msra.mxu0 %v2732_v10  ;;  %v2807_v9 = vld [vmem:[#allocation3 + $0x3b0] ss:$8 sps:$4 sm:$0xff]   ;;  %v2812_v10 = vld [vmem:[#allocation3 + $0x2a4] ss:$8 sps:$4 sm:$0xff]  }
  0x67   :  { %1962 = vmatpush1.bf16.msra.mxu1 %v2735_v11  ;;  %1910 = vmatprep.subr.bf16.mxu0 %v2740_v12  ;;  %v2815_v11 = vld [vmem:[#allocation3 + $0x3a4] ss:$8 sps:$4 sm:$0xff]   ;;  %v2810_v12 = vld [vmem:[#allocation3 + $0x2a0] ss:$8 sps:$4 sm:$0xff]  }
  0x68   :  { %1963 = vmatprep.subr.bf16.mxu1 %v2743_v13  ;;  %1844 = vmatprep.mubr.bf16.mxu0 %v2352_v33  ;;  %v2813_v13 = vld [vmem:[#allocation3 + $0x3a0] ss:$8 sps:$4 sm:$0xff]   ;;  %v2839_v33 = vld [vmem:[#allocation3 + $0x564] ss:$8 sps:$4 sm:$0xff]  }
  0x69   :  { %1897 = vmatprep.mubr.bf16.mxu1 %v2354_v34 }
  0x6a   :  { %1911 = vmatpush1.bf16.msra.mxu0 %v2738_v14  ;;  %v2818_v14 = vld [vmem:[#allocation3 + $0x294] ss:$8 sps:$4 sm:$0xff]  }
  0x6b   :  { %1964 = vmatpush1.bf16.msra.mxu1 %v2741_v15  ;;  %1912 = vmatprep.subr.bf16.mxu0 %v2746_v16  ;;  %v2821_v15 = vld [vmem:[#allocation3 + $0x394] ss:$8 sps:$4 sm:$0xff]   ;;  %v2816_v16 = vld [vmem:[#allocation3 + $0x290] ss:$8 sps:$4 sm:$0xff]  }
  0x6c   :  { %1965 = vmatprep.subr.bf16.mxu1 %v2749_v17  ;;  %v2819_v17 = vld [vmem:[#allocation3 + $0x390] ss:$8 sps:$4 sm:$0xff]  }
  0x6d   :  { %1845 = vmatmul.mubr.bf16.gmra.mxu0 %v2351_v35  ;;  %v2358_v35 = vcombine.high %v93_v30, %v101_v31 }
  0x6e   :  { %1913 = vmatpush1.bf16.msra.mxu0 %v2744_v18  ;;  %1898 = vmatmul.mubr.bf16.gmra.mxu1 %v2353_v37  ;;  %v2824_v18 = vld [vmem:[#allocation3 + $0x284] ss:$8 sps:$4 sm:$0xff]   ;;  %v2837_v37 = vld [vmem:[#allocation3 + $0x560] ss:$8 sps:$4 sm:$0xff]  }
  0x6f   :  { %1966 = vmatpush1.bf16.msra.mxu1 %v2747_v19  ;;  %1914 = vmatprep.subr.bf16.mxu0 %v2752_v20  ;;  %v2827_v19 = vld [vmem:[#allocation3 + $0x384] ss:$8 sps:$4 sm:$0xff]   ;;  %v2822_v20 = vld [vmem:[#allocation3 + $0x280] ss:$8 sps:$4 sm:$0xff]  }
  0x70   :  { %1967 = vmatprep.subr.bf16.mxu1 %v2755_v21  ;;  %1940 = vmatprep.mubr.bf16.mxu0 %v2340_v49  ;;  %v2825_v21 = vld [vmem:[#allocation3 + $0x380] ss:$8 sps:$4 sm:$0xff]   ;;  %v2851_v49 = vld [vmem:[#allocation3 + $0x544] ss:$8 sps:$4 sm:$0xff]  }
  0x71   :  { %1993 = vmatprep.mubr.bf16.mxu1 %v2342_v51  ;;  %v2346_v51 = vcombine.high %v3200_v46, %v3205_v47 }
  0x72   :  { %1915 = vmatpush1.bf16.msra.mxu0 %v2750_v22  ;;  %v2830_v22 = vld [vmem:[#allocation3 + $0x474] ss:$8 sps:$4 sm:$0xff]  }
  0x73   :  { %1968 = vmatpush1.bf16.msra.mxu1 %v2753_v23  ;;  %1916 = vmatprep.subr.bf16.mxu0 %v2758_v24  ;;  %v2833_v23 = vld [vmem:[#allocation3 + $0x574] ss:$8 sps:$4 sm:$0xff]   ;;  %v2828_v24 = vld [vmem:[#allocation3 + $0x470] ss:$8 sps:$4 sm:$0xff]  }
  0x74   :  { %1969 = vmatprep.subr.bf16.mxu1 %v2761_v25  ;;  %v2831_v25 = vld [vmem:[#allocation3 + $0x570] ss:$8 sps:$4 sm:$0xff]  }
  0x76   :  { %1917 = vmatpush1.bf16.msra.mxu0 %v2756_v26  ;;  %v92_v26 = vld [vmem:[%s3309_s0 + $0x90] sm:$0xff] }
  0x77   :  { %1970 = vmatpush1.bf16.msra.mxu1 %v2759_v27  ;;  %1918 = vmatprep.subr.bf16.mxu0 %v2764_v32  ;;  %v100_v27 = vld [vmem:[%s3309_s0 + $0xd0] sm:$0xff]  ;;  %v2836_v32 = vld [vmem:[#allocation3 + $0x464] ss:$8 sps:$4 sm:$0xff]  }
  0x78   :  { %1971 = vmatprep.subr.bf16.mxu1 %v2767_v36  ;;  %v2356_v34 = vcombine.high %v92_v26, %v100_v27  ;;  %v2834_v36 = vld [vmem:[#allocation3 + $0x460] ss:$8 sps:$4 sm:$0xff]  }
  0x7a   :  { %1919 = vmatpush1.bf16.msra.mxu0 %v2762_v38  ;;  %v2842_v38 = vld [vmem:[#allocation3 + $0x454] ss:$8 sps:$4 sm:$0xff]  }
  0x7b   :  { %1972 = vmatpush1.bf16.msra.mxu1 %v2765_v39  ;;  %1920 = vmatprep.subr.bf16.mxu0 %v2770_v40  ;;  %v2845_v39 = vld [vmem:[#allocation3 + $0x554] ss:$8 sps:$4 sm:$0xff]   ;;  %v2840_v40 = vld [vmem:[#allocation3 + $0x450] ss:$8 sps:$4 sm:$0xff]  }
  0x7c   :  { %1973 = vmatprep.subr.bf16.mxu1 %v2773_v41  ;;  %v2843_v41 = vld [vmem:[#allocation3 + $0x550] ss:$8 sps:$4 sm:$0xff]  }
  0x7e   :  { %1921 = vmatpush1.bf16.msra.mxu0 %v2768_v42  ;;  %v3190_v42 = vld [vmem:[%s3309_s0 + $0x20] sm:$0xff] }
  0x7f   :  { %1974 = vmatpush1.bf16.msra.mxu1 %v2771_v43  ;;  %1922 = vmatprep.subr.bf16.mxu0 %v2776_v44  ;;  %v3195_v43 = vld [vmem:[%s3309_s0 + $0x60] sm:$0xff]  ;;  %v2355_v44 = vcombine.low %v92_v26, %v100_v27 }
  0x80   :  { %1975 = vmatprep.subr.bf16.mxu1 %v2779_v45  ;;  %v2357_v45 = vcombine.low %v93_v30, %v101_v31  ;;  %v2344_v50 = vcombine.high %v3190_v42, %v3195_v43  ;;  %v2908_v26 = vld [vmem:[#allocation3 + $0x4a4] ss:$8 sps:$4 sm:$0xff]   ;;  %v2914_v30 = vld [vmem:[#allocation3 + $0x494] ss:$8 sps:$4 sm:$0xff]  }
  0x81   :  { %v2911_v27 = vld [vmem:[#allocation3 + $0x5a4] ss:$8 sps:$4 sm:$0xff]   ;;  %v2917_v31 = vld [vmem:[#allocation3 + $0x594] ss:$8 sps:$4 sm:$0xff]  }
  0x82   :  { %1923 = vmatpush1.bf16.msra.mxu0 %v2774_v52  ;;  %v2846_v52 = vld [vmem:[#allocation3 + $0x440] ss:$8 sps:$4 sm:$0xff]  }
  0x83   :  { %1976 = vmatpush1.bf16.msra.mxu1 %v2777_v53  ;;  %1924 = vmatprep.subr.bf16.mxu0 %v2782_v54  ;;  %v2849_v53 = vld [vmem:[#allocation3 + $0x540] ss:$8 sps:$4 sm:$0xff]   ;;  %v2854_v54 = vld [vmem:[#allocation3 + $0x434] ss:$8 sps:$4 sm:$0xff]  }
  0x84   :  { %1977 = vmatprep.subr.bf16.mxu1 %v2785_v55  ;;  %v2857_v55 = vld [vmem:[#allocation3 + $0x534] ss:$8 sps:$4 sm:$0xff]  }
  0x86   :  { %1925 = vmatpush2.bf16.msra.mxu0 %v2780_v56  ;;  %v2852_v56 = vld [vmem:[#allocation3 + $0x430] ss:$8 sps:$4 sm:$0xff]  }
  0x87   :  { %1978 = vmatpush2.bf16.msra.mxu1 %v2783_v57  ;;  %1926 = vmatprep.subr.bf16.mxu0 %v2788_v58  ;;  %v2855_v57 = vld [vmem:[#allocation3 + $0x530] ss:$8 sps:$4 sm:$0xff]   ;;  %v2860_v58 = vld [vmem:[#allocation3 + $0x424] ss:$8 sps:$4 sm:$0xff]  }
  0x88   :  { %1979 = vmatprep.subr.bf16.mxu1 %v2791_v59  ;;  %v2863_v59 = vld [vmem:[#allocation3 + $0x524] ss:$8 sps:$4 sm:$0xff]  }
  0x8a   :  { %1927 = vmatpush2.bf16.msra.mxu0 %v2786_v60  ;;  %v2858_v60 = vld [vmem:[#allocation3 + $0x420] ss:$8 sps:$4 sm:$0xff]  }
  0x8b   :  { %1980 = vmatpush2.bf16.msra.mxu1 %v2789_v61  ;;  %1928 = vmatprep.subr.bf16.mxu0 %v2794_v62  ;;  %v2861_v61 = vld [vmem:[#allocation3 + $0x520] ss:$8 sps:$4 sm:$0xff]   ;;  %v2866_v62 = vld [vmem:[#allocation3 + $0x414] ss:$8 sps:$4 sm:$0xff]  }
  0x8c   :  { %1981 = vmatprep.subr.bf16.mxu1 %v2797_v63  ;;  %v2869_v63 = vld [vmem:[#allocation3 + $0x514] ss:$8 sps:$4 sm:$0xff]  }
  0x8e   :  { %1929 = vmatpush2.bf16.msra.mxu0 %v2792_v0  ;;  %v2864_v0 = vld [vmem:[#allocation3 + $0x410] ss:$8 sps:$4 sm:$0xff]  }
  0x8f   :  { %1982 = vmatpush2.bf16.msra.mxu1 %v2795_v1  ;;  %1930 = vmatprep.subr.bf16.mxu0 %v2800_v2  ;;  %v2867_v1 = vld [vmem:[#allocation3 + $0x510] ss:$8 sps:$4 sm:$0xff]   ;;  %v2872_v2 = vld [vmem:[#allocation3 + $0x404] ss:$8 sps:$4 sm:$0xff]  }
  0x90   :  { %1983 = vmatprep.subr.bf16.mxu1 %v2803_v3  ;;  %v2875_v3 = vld [vmem:[#allocation3 + $0x504] ss:$8 sps:$4 sm:$0xff]  }
  0x92   :  { %1931 = vmatpush2.bf16.msra.mxu0 %v2798_v4  ;;  %v2870_v4 = vld [vmem:[#allocation3 + $0x400] ss:$8 sps:$4 sm:$0xff]  }
  0x93   :  { %1984 = vmatpush2.bf16.msra.mxu1 %v2801_v5  ;;  %1932 = vmatprep.subr.bf16.mxu0 %v2806_v6  ;;  %v2873_v5 = vld [vmem:[#allocation3 + $0x500] ss:$8 sps:$4 sm:$0xff]   ;;  %v2878_v6 = vld [vmem:[#allocation3 + $0x4f4] ss:$8 sps:$4 sm:$0xff]  }
  0x94   :  { %1985 = vmatprep.subr.bf16.mxu1 %v2809_v7  ;;  %v2881_v7 = vld [vmem:[#allocation3 + $0x5f4] ss:$8 sps:$4 sm:$0xff]  }
  0x96   :  { %1933 = vmatpush2.bf16.msra.mxu0 %v2804_v8  ;;  %v2876_v8 = vld [vmem:[#allocation3 + $0x4f0] ss:$8 sps:$4 sm:$0xff]  }
  0x97   :  { %1986 = vmatpush2.bf16.msra.mxu1 %v2807_v9  ;;  %1934 = vmatprep.subr.bf16.mxu0 %v2812_v10  ;;  %v2879_v9 = vld [vmem:[#allocation3 + $0x5f0] ss:$8 sps:$4 sm:$0xff]   ;;  %v2884_v10 = vld [vmem:[#allocation3 + $0x4e4] ss:$8 sps:$4 sm:$0xff]  }
  0x98   :  { %1987 = vmatprep.subr.bf16.mxu1 %v2815_v11  ;;  %v2887_v11 = vld [vmem:[#allocation3 + $0x5e4] ss:$8 sps:$4 sm:$0xff]  }
  0x9a   :  { %1935 = vmatpush2.bf16.msra.mxu0 %v2810_v12  ;;  %v2882_v12 = vld [vmem:[#allocation3 + $0x4e0] ss:$8 sps:$4 sm:$0xff]  }
  0x9b   :  { %1988 = vmatpush2.bf16.msra.mxu1 %v2813_v13  ;;  %1936 = vmatprep.subr.bf16.mxu0 %v2818_v14  ;;  %v2885_v13 = vld [vmem:[#allocation3 + $0x5e0] ss:$8 sps:$4 sm:$0xff]   ;;  %v2890_v14 = vld [vmem:[#allocation3 + $0x4d4] ss:$8 sps:$4 sm:$0xff]  }
  0x9c   :  { %1989 = vmatprep.subr.bf16.mxu1 %v2821_v15  ;;  %v2893_v15 = vld [vmem:[#allocation3 + $0x5d4] ss:$8 sps:$4 sm:$0xff]  }
  0x9e   :  { %1937 = vmatpush2.bf16.msra.mxu0 %v2816_v16  ;;  %v2888_v16 = vld [vmem:[#allocation3 + $0x4d0] ss:$8 sps:$4 sm:$0xff]  }
  0x9f   :  { %1990 = vmatpush2.bf16.msra.mxu1 %v2819_v17  ;;  %1938 = vmatprep.subr.bf16.mxu0 %v2824_v18  ;;  %v2891_v17 = vld [vmem:[#allocation3 + $0x5d0] ss:$8 sps:$4 sm:$0xff]   ;;  %v2896_v18 = vld [vmem:[#allocation3 + $0x4c4] ss:$8 sps:$4 sm:$0xff]  }
  0xa0   :  { %1991 = vmatprep.subr.bf16.mxu1 %v2827_v19  ;;  %v2899_v19 = vld [vmem:[#allocation3 + $0x5c4] ss:$8 sps:$4 sm:$0xff]  }
  0xa2   :  { %1939 = vmatpush2.bf16.msra.mxu0 %v2822_v20  ;;  %v2894_v20 = vld [vmem:[#allocation3 + $0x4c0] ss:$8 sps:$4 sm:$0xff]  }
  0xa3   :  { %1992 = vmatpush2.bf16.msra.mxu1 %v2825_v21  ;;  %2014 = vmatprep.subr.bf16.mxu0 %v2830_v22  ;;  %v2897_v21 = vld [vmem:[#allocation3 + $0x5c0] ss:$8 sps:$4 sm:$0xff]   ;;  %v2902_v22 = vld [vmem:[#allocation3 + $0x4b4] ss:$8 sps:$4 sm:$0xff]  }
  0xa4   :  { %2067 = vmatprep.subr.bf16.mxu1 %v2833_v23  ;;  %v2905_v23 = vld [vmem:[#allocation3 + $0x5b4] ss:$8 sps:$4 sm:$0xff]  }
  0xa5   :  { %1941 = vmatmul.mubr.bf16.vlgmr.msra.gmra.mxu0 %v2339_v28  ;;  %v2906_v28 = vld [vmem:[#allocation3 + $0x4a0] ss:$8 sps:$4 sm:$0xff]  }
  0xa6   :  { %1994 = vmatmul.mubr.bf16.vlgmr.msra.gmra.mxu1 %v2341_v29  ;;  %2015 = vmatpush1.bf16.msra.mxu0 %v2828_v24  ;;  %v2900_v24 = vld [vmem:[#allocation3 + $0x4b0] ss:$8 sps:$4 sm:$0xff]   ;;  %v2909_v29 = vld [vmem:[#allocation3 + $0x5a0] ss:$8 sps:$4 sm:$0xff]  }
  0xa7   :  { %2068 = vmatpush1.bf16.msra.mxu1 %v2831_v25  ;;  %2016 = vmatprep.subr.bf16.mxu0 %v2836_v32  ;;  %v2903_v25 = vld [vmem:[#allocation3 + $0x5b0] ss:$8 sps:$4 sm:$0xff]  }
  0xa8   :  { %2069 = vmatprep.subr.bf16.mxu1 %v2839_v33  ;;  %1950 = vmatprep.mubr.bf16.mxu0 %v2356_v34  ;;  %v2912_v32 = vld [vmem:[#allocation3 + $0x490] ss:$8 sps:$4 sm:$0xff]   ;;  %v2920_v34 = vld [vmem:[#allocation3 + $0x484] ss:$8 sps:$4 sm:$0xff]  }
  0xa9   :  { %2003 = vmatprep.mubr.bf16.mxu1 %v2358_v35  ;;  %v2915_v33 = vld [vmem:[#allocation3 + $0x590] ss:$8 sps:$4 sm:$0xff]   ;;  %v2923_v35 = vld [vmem:[#allocation3 + $0x584] ss:$8 sps:$4 sm:$0xff]  }
  0xaa   :  { %2017 = vmatpush1.bf16.msra.mxu0 %v2834_v36  ;;  %v2918_v36 = vld [vmem:[#allocation3 + $0x480] ss:$8 sps:$4 sm:$0xff]  }
  0xab   :  { %2070 = vmatpush1.bf16.msra.mxu1 %v2837_v37  ;;  %2018 = vmatprep.subr.bf16.mxu0 %v2842_v38  ;;  %v2921_v37 = vld [vmem:[#allocation3 + $0x580] ss:$8 sps:$4 sm:$0xff]   ;;  %v2926_v38 = vld [vmem:[#allocation3 + $0x674] ss:$8 sps:$4 sm:$0xff]  }
  0xac   :  { %2071 = vmatprep.subr.bf16.mxu1 %v2845_v39  ;;  %v2929_v39 = vld [vmem:[#allocation3 + $0x774] ss:$8 sps:$4 sm:$0xff]  }
  0xad   :  { %1951 = vmatmul.mubr.bf16.gmra.mxu0 %v2355_v44  ;;  %v2345_v44 = vcombine.low %v3200_v46, %v3205_v47 }
  0xae   :  { %2004 = vmatmul.mubr.bf16.gmra.mxu1 %v2357_v45  ;;  %2019 = vmatpush1.bf16.msra.mxu0 %v2840_v40  ;;  %v94_v40 = vld [vmem:[%s3309_s0 + $0xa0] sm:$0xff] }
  0xaf   :  { %2072 = vmatpush1.bf16.msra.mxu1 %v2843_v41  ;;  %2020 = vmatprep.subr.bf16.mxu0 %v2848_v48  ;;  %v2343_v41 = vcombine.low %v3190_v42, %v3195_v43  ;;  %v102_v45 = vld [vmem:[%s3309_s0 + $0xe0] sm:$0xff]  ;;  %v95_v48 = vld [vmem:[%s3309_s0 + $0xa8] sm:$0xff] }
  0xb0   :  { %2073 = vmatprep.subr.bf16.mxu1 %v2851_v49  ;;  %2046 = vmatprep.mubr.bf16.mxu0 %v2344_v50  ;;  %v103_v49 = vld [vmem:[%s3309_s0 + $0xe8] sm:$0xff]  ;;  %v2924_v50 = vld [vmem:[#allocation3 + $0x670] ss:$8 sps:$4 sm:$0xff]   ;;  %v2360_v46 = vcombine.high %v94_v40, %v102_v45 }
  0xb1   :  { %2099 = vmatprep.mubr.bf16.mxu1 %v2346_v51  ;;  %v2927_v51 = vld [vmem:[#allocation3 + $0x770] ss:$8 sps:$4 sm:$0xff]   ;;  %v2932_v42 = vld [vmem:[#allocation3 + $0x664] ss:$8 sps:$4 sm:$0xff]   ;;  %v2362_v47 = vcombine.high %v95_v48, %v103_v49 }
  0xb2   :  { %2021 = vmatpush1.bf16.msra.mxu0 %v2846_v52  ;;  %v2935_v43 = vld [vmem:[#allocation3 + $0x764] ss:$8 sps:$4 sm:$0xff]   ;;  %v2930_v52 = vld [vmem:[#allocation3 + $0x660] ss:$8 sps:$4 sm:$0xff]  }
  0xb3   :  { %2074 = vmatpush1.bf16.msra.mxu1 %v2849_v53  ;;  %2022 = vmatprep.subr.bf16.mxu0 %v2854_v54  ;;  %v2933_v53 = vld [vmem:[#allocation3 + $0x760] ss:$8 sps:$4 sm:$0xff]   ;;  %v2938_v54 = vld [vmem:[#allocation3 + $0x654] ss:$8 sps:$4 sm:$0xff]  }
  0xb4   :  { %2075 = vmatprep.subr.bf16.mxu1 %v2857_v55  ;;  %v2941_v55 = vld [vmem:[#allocation3 + $0x754] ss:$8 sps:$4 sm:$0xff]  }
  0xb6   :  { %2023 = vmatpush1.bf16.msra.mxu0 %v2852_v56  ;;  %v3230_v56 = vld [vmem:[%s3309_s0 + $0x30] sm:$0xff] }
  0xb7   :  { %2076 = vmatpush1.bf16.msra.mxu1 %v2855_v57  ;;  %2024 = vmatprep.subr.bf16.mxu0 %v2860_v58  ;;  %v2359_v57 = vcombine.low %v94_v40, %v102_v45  ;;  %v2361_v58 = vcombine.low %v95_v48, %v103_v49  ;;  %v2996_v40 = vld [vmem:[#allocation3 + $0x6b0] ss:$8 sps:$4 sm:$0xff]   ;;  %v3007_v45 = vld [vmem:[#allocation3 + $0x7a4] ss:$8 sps:$4 sm:$0xff]   ;;  %v3002_v48 = vld [vmem:[#allocation3 + $0x6a0] ss:$8 sps:$4 sm:$0xff]  }
  0xb8   :  { %2077 = vmatprep.subr.bf16.mxu1 %v2863_v59  ;;  %v3235_v59 = vld [vmem:[%s3309_s0 + $0x70] sm:$0xff]  ;;  %v3005_v49 = vld [vmem:[#allocation3 + $0x7a0] ss:$8 sps:$4 sm:$0xff]  }
  0xba   :  { %2025 = vmatpush1.bf16.msra.mxu0 %v2858_v60  ;;  %v3240_v60 = vld [vmem:[%s3309_s0 + $0x38] sm:$0xff] }
  0xbb   :  { %2078 = vmatpush1.bf16.msra.mxu1 %v2861_v61  ;;  %2026 = vmatprep.subr.bf16.mxu0 %v2866_v62  ;;  %v3245_v61 = vld [vmem:[%s3309_s0 + $0x78] sm:$0xff] }
  0xbc   :  { %2079 = vmatprep.subr.bf16.mxu1 %v2869_v63  ;;  %v2936_v62 = vld [vmem:[#allocation3 + $0x650] ss:$8 sps:$4 sm:$0xff]  }
  0xbd   :  { %v2939_v63 = vld [vmem:[#allocation3 + $0x750] ss:$8 sps:$4 sm:$0xff]  }
  0xbe   :  { %2027 = vmatpush1.bf16.msra.mxu0 %v2864_v0  ;;  %v2944_v0 = vld [vmem:[#allocation3 + $0x644] ss:$8 sps:$4 sm:$0xff]  }
  0xbf   :  { %2080 = vmatpush1.bf16.msra.mxu1 %v2867_v1  ;;  %2028 = vmatprep.subr.bf16.mxu0 %v2872_v2  ;;  %v2947_v1 = vld [vmem:[#allocation3 + $0x744] ss:$8 sps:$4 sm:$0xff]   ;;  %v2348_v2 = vcombine.high %v3230_v56, %v3235_v59 }
  0xc0   :  { %2081 = vmatprep.subr.bf16.mxu1 %v2875_v3  ;;  %v2350_v3 = vcombine.high %v3240_v60, %v3245_v61 }
  0xc2   :  { %2029 = vmatpush1.bf16.msra.mxu0 %v2870_v4  ;;  %v2942_v4 = vld [vmem:[#allocation3 + $0x640] ss:$8 sps:$4 sm:$0xff]  }
  0xc3   :  { %2082 = vmatpush1.bf16.msra.mxu1 %v2873_v5  ;;  %2030 = vmatprep.subr.bf16.mxu0 %v2878_v6  ;;  %v2945_v5 = vld [vmem:[#allocation3 + $0x740] ss:$8 sps:$4 sm:$0xff]   ;;  %v2950_v6 = vld [vmem:[#allocation3 + $0x634] ss:$8 sps:$4 sm:$0xff]  }
  0xc4   :  { %2083 = vmatprep.subr.bf16.mxu1 %v2881_v7  ;;  %v2953_v7 = vld [vmem:[#allocation3 + $0x734] ss:$8 sps:$4 sm:$0xff]  }
  0xc6   :  { %2031 = vmatpush2.bf16.msra.mxu0 %v2876_v8  ;;  %v2948_v8 = vld [vmem:[#allocation3 + $0x630] ss:$8 sps:$4 sm:$0xff]  }
  0xc7   :  { %2084 = vmatpush2.bf16.msra.mxu1 %v2879_v9  ;;  %2032 = vmatprep.subr.bf16.mxu0 %v2884_v10  ;;  %v2951_v9 = vld [vmem:[#allocation3 + $0x730] ss:$8 sps:$4 sm:$0xff]   ;;  %v2956_v10 = vld [vmem:[#allocation3 + $0x624] ss:$8 sps:$4 sm:$0xff]  }
  0xc8   :  { %2085 = vmatprep.subr.bf16.mxu1 %v2887_v11  ;;  %v2959_v11 = vld [vmem:[#allocation3 + $0x724] ss:$8 sps:$4 sm:$0xff]  }
  0xca   :  { %2033 = vmatpush2.bf16.msra.mxu0 %v2882_v12  ;;  %v2954_v12 = vld [vmem:[#allocation3 + $0x620] ss:$8 sps:$4 sm:$0xff]  }
  0xcb   :  { %2086 = vmatpush2.bf16.msra.mxu1 %v2885_v13  ;;  %2034 = vmatprep.subr.bf16.mxu0 %v2890_v14  ;;  %v2957_v13 = vld [vmem:[#allocation3 + $0x720] ss:$8 sps:$4 sm:$0xff]   ;;  %v2962_v14 = vld [vmem:[#allocation3 + $0x614] ss:$8 sps:$4 sm:$0xff]  }
  0xcc   :  { %2087 = vmatprep.subr.bf16.mxu1 %v2893_v15  ;;  %v2965_v15 = vld [vmem:[#allocation3 + $0x714] ss:$8 sps:$4 sm:$0xff]  }
  0xce   :  { %2035 = vmatpush2.bf16.msra.mxu0 %v2888_v16  ;;  %v2960_v16 = vld [vmem:[#allocation3 + $0x610] ss:$8 sps:$4 sm:$0xff]  }
  0xcf   :  { %2088 = vmatpush2.bf16.msra.mxu1 %v2891_v17  ;;  %2036 = vmatprep.subr.bf16.mxu0 %v2896_v18  ;;  %v2963_v17 = vld [vmem:[#allocation3 + $0x710] ss:$8 sps:$4 sm:$0xff]   ;;  %v2968_v18 = vld [vmem:[#allocation3 + $0x604] ss:$8 sps:$4 sm:$0xff]  }
  0xd0   :  { %2089 = vmatprep.subr.bf16.mxu1 %v2899_v19  ;;  %v2971_v19 = vld [vmem:[#allocation3 + $0x704] ss:$8 sps:$4 sm:$0xff]  }
  0xd2   :  { %2037 = vmatpush2.bf16.msra.mxu0 %v2894_v20  ;;  %v2966_v20 = vld [vmem:[#allocation3 + $0x600] ss:$8 sps:$4 sm:$0xff]  }
  0xd3   :  { %2090 = vmatpush2.bf16.msra.mxu1 %v2897_v21  ;;  %2038 = vmatprep.subr.bf16.mxu0 %v2902_v22  ;;  %v2969_v21 = vld [vmem:[#allocation3 + $0x700] ss:$8 sps:$4 sm:$0xff]   ;;  %v2974_v22 = vld [vmem:[#allocation3 + $0x6f4] ss:$8 sps:$4 sm:$0xff]  }
  0xd4   :  { %2091 = vmatprep.subr.bf16.mxu1 %v2905_v23  ;;  %v2977_v23 = vld [vmem:[#allocation3 + $0x7f4] ss:$8 sps:$4 sm:$0xff]  }
  0xd6   :  { %2039 = vmatpush2.bf16.msra.mxu0 %v2900_v24  ;;  %v2972_v24 = vld [vmem:[#allocation3 + $0x6f0] ss:$8 sps:$4 sm:$0xff]  }
  0xd7   :  { %2092 = vmatpush2.bf16.msra.mxu1 %v2903_v25  ;;  %2040 = vmatprep.subr.bf16.mxu0 %v2908_v26  ;;  %v2975_v25 = vld [vmem:[#allocation3 + $0x7f0] ss:$8 sps:$4 sm:$0xff]   ;;  %v2980_v26 = vld [vmem:[#allocation3 + $0x6e4] ss:$8 sps:$4 sm:$0xff]  }
  0xd8   :  { %2093 = vmatprep.subr.bf16.mxu1 %v2911_v27  ;;  %v2983_v27 = vld [vmem:[#allocation3 + $0x7e4] ss:$8 sps:$4 sm:$0xff]  }
  0xda   :  { %2041 = vmatpush2.bf16.msra.mxu0 %v2906_v28  ;;  %v2978_v28 = vld [vmem:[#allocation3 + $0x6e0] ss:$8 sps:$4 sm:$0xff]  }
  0xdb   :  { %2094 = vmatpush2.bf16.msra.mxu1 %v2909_v29  ;;  %2042 = vmatprep.subr.bf16.mxu0 %v2914_v30  ;;  %v2981_v29 = vld [vmem:[#allocation3 + $0x7e0] ss:$8 sps:$4 sm:$0xff]   ;;  %v2986_v30 = vld [vmem:[#allocation3 + $0x6d4] ss:$8 sps:$4 sm:$0xff]  }
  0xdc   :  { %2095 = vmatprep.subr.bf16.mxu1 %v2917_v31  ;;  %v2989_v31 = vld [vmem:[#allocation3 + $0x7d4] ss:$8 sps:$4 sm:$0xff]  }
  0xde   :  { %2043 = vmatpush2.bf16.msra.mxu0 %v2912_v32  ;;  %v2984_v32 = vld [vmem:[#allocation3 + $0x6d0] ss:$8 sps:$4 sm:$0xff]  }
  0xdf   :  { %2096 = vmatpush2.bf16.msra.mxu1 %v2915_v33  ;;  %2044 = vmatprep.subr.bf16.mxu0 %v2920_v34  ;;  %v2987_v33 = vld [vmem:[#allocation3 + $0x7d0] ss:$8 sps:$4 sm:$0xff]   ;;  %v2992_v34 = vld [vmem:[#allocation3 + $0x6c4] ss:$8 sps:$4 sm:$0xff]  }
  0xe0   :  { %2097 = vmatprep.subr.bf16.mxu1 %v2923_v35  ;;  %v2995_v35 = vld [vmem:[#allocation3 + $0x7c4] ss:$8 sps:$4 sm:$0xff]  }
  0xe2   :  { %2045 = vmatpush2.bf16.msra.mxu0 %v2918_v36  ;;  %v2990_v36 = vld [vmem:[#allocation3 + $0x6c0] ss:$8 sps:$4 sm:$0xff]  }
  0xe3   :  { %2098 = vmatpush2.bf16.msra.mxu1 %v2921_v37  ;;  %2120 = vmatprep.subr.bf16.mxu0 %v2926_v38  ;;  %v2993_v37 = vld [vmem:[#allocation3 + $0x7c0] ss:$8 sps:$4 sm:$0xff]   ;;  %v2998_v38 = vld [vmem:[#allocation3 + $0x6b4] ss:$8 sps:$4 sm:$0xff]  }
  0xe4   :  { %2173 = vmatprep.subr.bf16.mxu1 %v2929_v39  ;;  %v3001_v39 = vld [vmem:[#allocation3 + $0x7b4] ss:$8 sps:$4 sm:$0xff]  }
  0xe5   :  { %2047 = vmatmul.mubr.bf16.vlgmr.msra.gmra.mxu0 %v2343_v41  ;;  %v2999_v41 = vld [vmem:[#allocation3 + $0x7b0] ss:$8 sps:$4 sm:$0xff]  }
  0xe6   :  { %2100 = vmatmul.mubr.bf16.vlgmr.msra.gmra.mxu1 %v2345_v44  ;;  %2121 = vmatpush1.bf16.msra.mxu0 %v2924_v50  ;;  %v3004_v44 = vld [vmem:[#allocation3 + $0x6a4] ss:$8 sps:$4 sm:$0xff]   ;;  %v3010_v50 = vld [vmem:[#allocation3 + $0x694] ss:$8 sps:$4 sm:$0xff]  }
  0xe7   :  { %2174 = vmatpush1.bf16.msra.mxu1 %v2927_v51  ;;  %2122 = vmatprep.subr.bf16.mxu0 %v2932_v42  ;;  %v3013_v51 = vld [vmem:[#allocation3 + $0x794] ss:$8 sps:$4 sm:$0xff]   ;;  %v3008_v42 = vld [vmem:[#allocation3 + $0x690] ss:$8 sps:$4 sm:$0xff]  }
  0xe8   :  { %2175 = vmatprep.subr.bf16.mxu1 %v2935_v43  ;;  %2056 = vmatprep.mubr.bf16.mxu0 %v2360_v46  ;;  %v3011_v43 = vld [vmem:[#allocation3 + $0x790] ss:$8 sps:$4 sm:$0xff]   ;;  %v3016_v46 = vld [vmem:[#allocation3 + $0x684] ss:$8 sps:$4 sm:$0xff]  }
  0xe9   :  { %2109 = vmatprep.mubr.bf16.mxu1 %v2362_v47  ;;  %v3019_v47 = vld [vmem:[#allocation3 + $0x784] ss:$8 sps:$4 sm:$0xff]  }
  0xea   :  { %2123 = vmatpush1.bf16.msra.mxu0 %v2930_v52  ;;  %v3014_v52 = vld [vmem:[#allocation3 + $0x680] ss:$8 sps:$4 sm:$0xff]  }
  0xeb   :  { %2176 = vmatpush1.bf16.msra.mxu1 %v2933_v53  ;;  %2124 = vmatprep.subr.bf16.mxu0 %v2938_v54  ;;  %v3017_v53 = vld [vmem:[#allocation3 + $0x780] ss:$8 sps:$4 sm:$0xff]   ;;  %v96_v54 = vld [vmem:[%s3309_s0 + $0xb0] sm:$0xff] }
  0xec   :  { %2177 = vmatprep.subr.bf16.mxu1 %v2941_v55  ;;  %v104_v55 = vld [vmem:[%s3309_s0 + $0xf0] sm:$0xff] }
  0xed   :  { %2057 = vmatmul.mubr.bf16.gmra.mxu0 %v2359_v57  ;;  %v97_v57 = vld [vmem:[%s3309_s0 + $0xb8] sm:$0xff] }
  0xee   :  { %2110 = vmatmul.mubr.bf16.gmra.mxu1 %v2361_v58  ;;  %2125 = vmatpush1.bf16.msra.mxu0 %v2936_v62  ;;  %v105_v58 = vld [vmem:[%s3309_s0 + $0xf8] sm:$0xff]  ;;  %v2347_v62 = vcombine.low %v3230_v56, %v3235_v59 }
  0xef   :  { %2178 = vmatpush1.bf16.msra.mxu1 %v2939_v63  ;;  %2126 = vmatprep.subr.bf16.mxu0 %v2944_v0  ;;  %v2349_v63 = vcombine.low %v3240_v60, %v3245_v61  ;;  %v2364_v0 = vcombine.high %v96_v54, %v104_v55 }
  0xf0   :  { %2179 = vmatprep.subr.bf16.mxu1 %v2947_v1  ;;  %2152 = vmatprep.mubr.bf16.mxu0 %v2348_v2  ;;  %v2366_v1 = vcombine.high %v97_v57, %v105_v58  ;;  %v2363_v2 = vcombine.low %v96_v54, %v104_v55 }
  0xf1   :  { %2205 = vmatprep.mubr.bf16.mxu1 %v2350_v3  ;;  %v2365_v3 = vcombine.low %v97_v57, %v105_v58 }
  0xf2   :  { %2127 = vmatpush1.bf16.msra.mxu0 %v2942_v4 }
  0xf3   :  { %2180 = vmatpush1.bf16.msra.mxu1 %v2945_v5  ;;  %2128 = vmatprep.subr.bf16.mxu0 %v2950_v6 }
  0xf4   :  { %2181 = vmatprep.subr.bf16.mxu1 %v2953_v7 }
  0xf6   :  { %2129 = vmatpush1.bf16.msra.mxu0 %v2948_v8 }
  0xf7   :  { %2182 = vmatpush1.bf16.msra.mxu1 %v2951_v9  ;;  %2130 = vmatprep.subr.bf16.mxu0 %v2956_v10 }
  0xf8   :  { %2183 = vmatprep.subr.bf16.mxu1 %v2959_v11 }
  0xfa   :  { %2131 = vmatpush1.bf16.msra.mxu0 %v2954_v12 }
  0xfb   :  { %2184 = vmatpush1.bf16.msra.mxu1 %v2957_v13  ;;  %2132 = vmatprep.subr.bf16.mxu0 %v2962_v14 }
  0xfc   :  { %2185 = vmatprep.subr.bf16.mxu1 %v2965_v15 }
  0xfe   :  { %2133 = vmatpush1.bf16.msra.mxu0 %v2960_v16 }
  0xff   :  { %2186 = vmatpush1.bf16.msra.mxu1 %v2963_v17  ;;  %2134 = vmatprep.subr.bf16.mxu0 %v2968_v18 }
 0x100   :  { %2187 = vmatprep.subr.bf16.mxu1 %v2971_v19 }
 0x102   :  { %2135 = vmatpush1.bf16.msra.mxu0 %v2966_v20 }
 0x103   :  { %2188 = vmatpush1.bf16.msra.mxu1 %v2969_v21  ;;  %2136 = vmatprep.subr.bf16.mxu0 %v2974_v22 }
 0x104   :  { %2189 = vmatprep.subr.bf16.mxu1 %v2977_v23 }
 0x106   :  { %2137 = vmatpush2.bf16.msra.mxu0 %v2972_v24 }
 0x107   :  { %2190 = vmatpush2.bf16.msra.mxu1 %v2975_v25  ;;  %2138 = vmatprep.subr.bf16.mxu0 %v2980_v26 }
 0x108   :  { %2191 = vmatprep.subr.bf16.mxu1 %v2983_v27 }
 0x10a   :  { %2139 = vmatpush2.bf16.msra.mxu0 %v2978_v28 }
 0x10b   :  { %2192 = vmatpush2.bf16.msra.mxu1 %v2981_v29  ;;  %2140 = vmatprep.subr.bf16.mxu0 %v2986_v30 }
 0x10c   :  { %2193 = vmatprep.subr.bf16.mxu1 %v2989_v31 }
 0x10e   :  { %2141 = vmatpush2.bf16.msra.mxu0 %v2984_v32 }
 0x10f   :  { %2194 = vmatpush2.bf16.msra.mxu1 %v2987_v33  ;;  %2142 = vmatprep.subr.bf16.mxu0 %v2992_v34 }
 0x110   :  { %2195 = vmatprep.subr.bf16.mxu1 %v2995_v35 }
 0x112   :  { %2143 = vmatpush2.bf16.msra.mxu0 %v2990_v36 }
 0x113   :  { %2196 = vmatpush2.bf16.msra.mxu1 %v2993_v37  ;;  %2144 = vmatprep.subr.bf16.mxu0 %v2998_v38 }
 0x114   :  { %2197 = vmatprep.subr.bf16.mxu1 %v3001_v39 }
 0x116   :  { %2145 = vmatpush2.bf16.msra.mxu0 %v2996_v40 }
 0x117   :  { %2198 = vmatpush2.bf16.msra.mxu1 %v2999_v41  ;;  %2146 = vmatprep.subr.bf16.mxu0 %v3004_v44 }
 0x118   :  { %2199 = vmatprep.subr.bf16.mxu1 %v3007_v45  ;;  %v2255_v45 = vlaneseq }
 0x11a   :  { %2147 = vmatpush2.bf16.msra.mxu0 %v3002_v48 }
 0x11b   :  { %2200 = vmatpush2.bf16.msra.mxu1 %v3005_v49  ;;  %2148 = vmatprep.subr.bf16.mxu0 %v3010_v50 }
 0x11c   :  { %2201 = vmatprep.subr.bf16.mxu1 %v3013_v51 }
 0x11e   :  { %2149 = vmatpush2.bf16.msra.mxu0 %v3008_v42 }
 0x11f   :  { %2202 = vmatpush2.bf16.msra.mxu1 %v3011_v43  ;;  %2150 = vmatprep.subr.bf16.mxu0 %v3016_v46  ;;  %v2256_v46 = vshrl.u32 %v2255_v45, 7 }
 0x120   :  { %2203 = vmatprep.subr.bf16.mxu1 %v3019_v47 }
 0x122   :  { %2151 = vmatpush2.bf16.msra.mxu0 %v3014_v52 }
 0x123   :  { %2204 = vmatpush2.bf16.msra.mxu1 %v3017_v53 }
 0x125   :  { %2153 = vmatmul.mubr.bf16.vlgmr.msra.gmra.mxu0 %v2347_v62  ;;  %v1836_v4 = vpop.f32.mrf.mxu0 }
 0x126   :  { %2206 = vmatmul.mubr.bf16.vlgmr.msra.gmra.mxu1 %v2349_v63  ;;  %2162 = vmatprep.mubr.bf16.mxu0 %v2364_v0  ;;  %v1889_v5 = vpop.f32.mrf.mxu1 }
 0x127   :  { %2215 = vmatprep.mubr.bf16.mxu1 %v2366_v1  ;;  %v1838_v6 = vpop.f32.mrf.mxu0  ;;  %v1890_v44 = vadd.f32 %v1889_v5, %v1836_v4  ;;  %v2257_v1 = vsub.s32 0, %v2256_v46  ;;  %v2253_v4 = vld [vmem:[#allocation5] sm:$0x3] }
 0x128   :  { %v1891_v7 = vpop.f32.mrf.mxu1 }
 0x129   :  { %v1840_v56 = vpop.f32.mrf.mxu0  ;;  %v1892_v48 = vadd.f32 %v1891_v7, %v1838_v6 }
 0x12a   :  { %v1893_v59 = vpop.f32.mrf.mxu1 }
 0x12b   :  { %v1842_v8 = vpop.f32.mrf.mxu0  ;;  %v1894_v42 = vadd.f32 %v1893_v59, %v1840_v56  ;;  %v2273_v59 = vld [vmem:[#allocation7] sm:$0x3] }
 0x12c   :  { %v1895_v61 = vpop.f32.mrf.mxu1 }
 0x12d   :  { %2163 = vmatmul.mubr.bf16.gmra.mxu0 %v2363_v2  ;;  %v1846_v60 = vpop.f32.mrf.mxu0  ;;  %v1896_v47 = vadd.f32 %v1895_v61, %v1842_v8 }
 0x12e   :  { %2216 = vmatmul.mubr.bf16.gmra.mxu1 %v2365_v3  ;;  %v1899_v9 = vpop.f32.mrf.mxu1 }
 0x12f   :  { %v1848_v10 = vpop.f32.mrf.mxu0  ;;  %v1900_v63 = vadd.f32 %v1899_v9, %v1846_v60  ;;  %v3279_v60 = vrot.slane %v2253_v4, %v2257_v1 }
 0x130   :  { %v1901_v11 = vpop.f32.mrf.mxu1 }
 0x131   :  { %v1850_v12 = vpop.f32.mrf.mxu0  ;;  %v1902_v0 = vadd.f32 %v1901_v11, %v1848_v10 }
 0x132   :  { %v1903_v13 = vpop.f32.mrf.mxu1 }
 0x133   :  { %v1852_v14 = vpop.f32.mrf.mxu0 }
 0x134   :  { %v1905_v16 = vpop.f32.mrf.mxu1 }
 0x165   :  { %v1942_v15 = vpop.f32.mrf.mxu0 }
 0x166   :  { %v1995_v17 = vpop.f32.mrf.mxu1  ;;  %v1943_v49 = vadd.f32 %v1942_v15, %v1890_v44 }
 0x167   :  { %v1944_v18 = vpop.f32.mrf.mxu0 }
 0x168   :  { %v1997_v19 = vpop.f32.mrf.mxu1  ;;  %v1945_v43 = vadd.f32 %v1944_v18, %v1892_v48  ;;  %v1996_v52 = vadd.f32 %v1995_v17, %v1943_v49  ;;  %v2261_v17 = vsub.s32 1, %v2256_v46  ;;  %v1904_v18 = vadd.f32 %v1903_v13, %v1850_v12 }
 0x169   :  { %v1946_v20 = vpop.f32.mrf.mxu0 }
 0x16a   :  { %v1999_v21 = vpop.f32.mrf.mxu1  ;;  %v1947_v53 = vadd.f32 %v1946_v20, %v1894_v42  ;;  %v1998_v57 = vadd.f32 %v1997_v19, %v1945_v43  ;;  %v1906_v19 = vadd.f32 %v1905_v16, %v1852_v14  ;;  %v2262_v12 = vrot.slane %v2253_v4, %v2261_v17 }
 0x16b   :  { %v1948_v22 = vpop.f32.mrf.mxu0  ;;  %v2282_v16 = vrot.slane %v2273_v59, %v2261_v17 }
 0x16c   :  { %v2001_v23 = vpop.f32.mrf.mxu1  ;;  %v1949_v58 = vadd.f32 %v1948_v22, %v1896_v47  ;;  %v2000_v2 = vadd.f32 %v1999_v21, %v1947_v53  ;;  %v3281_v21 = vrot.slane %v2273_v59, %v2257_v1 }
 0x16d   :  { %v1952_v24 = vpop.f32.mrf.mxu0 }
 0x16e   :  { %v2005_v25 = vpop.f32.mrf.mxu1  ;;  %v1953_v5 = vadd.f32 %v1952_v24, %v1900_v63  ;;  %v2002_v8 = vadd.f32 %v2001_v23, %v1949_v58 }
 0x16f   :  { %v1954_v26 = vpop.f32.mrf.mxu0 }
 0x170   :  { %v2007_v27 = vpop.f32.mrf.mxu1  ;;  %v1955_v6 = vadd.f32 %v1954_v26, %v1902_v0  ;;  %v2006_v24 = vadd.f32 %v2005_v25, %v1953_v5 }
 0x171   :  { %v1956_v28 = vpop.f32.mrf.mxu0 }
 0x172   :  { %v3267_v29 = vpop.f32.mrf.mxu1  ;;  %v1957_v26 = vadd.f32 %v1956_v28, %v1904_v18 }
 0x173   :  { %v1958_v30 = vpop.f32.mrf.mxu0 }
 0x174   :  { %v3269_v31 = vpop.f32.mrf.mxu1  ;;  %v2010_v25 = vadd.f32 %v3267_v29, %v1957_v26 }
 0x1a5   :  { %v2048_v32 = vpop.f32.mrf.mxu0 }
 0x1a6   :  { %v2101_v33 = vpop.f32.mrf.mxu1  ;;  %v2049_v62 = vadd.f32 %v2048_v32, %v1996_v52  ;;  %v2008_v32 = vadd.f32 %v2007_v27, %v1955_v6 }
 0x1a7   :  { %v2050_v34 = vpop.f32.mrf.mxu0 }
 0x1a8   :  { %v2103_v35 = vpop.f32.mrf.mxu1  ;;  %v2051_v3 = vadd.f32 %v2050_v34, %v1998_v57  ;;  %v2102_v61 = vadd.f32 %v2101_v33, %v2049_v62  ;;  %v1959_v34 = vadd.f32 %v1958_v30, %v1906_v19 }
 0x1a9   :  { %v2052_v36 = vpop.f32.mrf.mxu0 }
 0x1aa   :  { %v2105_v37 = vpop.f32.mrf.mxu1  ;;  %v2053_v15 = vadd.f32 %v2052_v36, %v2000_v2  ;;  %v2104_v9 = vadd.f32 %v2103_v35, %v2051_v3  ;;  %v2012_v27 = vadd.f32 %v3269_v31, %v1959_v34 }
 0x1ab   :  { %v2054_v38 = vpop.f32.mrf.mxu0 }
 0x1ac   :  { %v2107_v39 = vpop.f32.mrf.mxu1  ;;  %v2055_v10 = vadd.f32 %v2054_v38, %v2002_v8  ;;  %v2106_v33 = vadd.f32 %v2105_v37, %v2053_v15 }
 0x1ad   :  { %v2058_v40 = vpop.f32.mrf.mxu0 }
 0x1ae   :  { %v3271_v41 = vpop.f32.mrf.mxu1  ;;  %v2059_v13 = vadd.f32 %v2058_v40, %v2006_v24  ;;  %v2108_v35 = vadd.f32 %v2107_v39, %v2055_v10 }
 0x1af   :  { %v2060_v50 = vpop.f32.mrf.mxu0 }
 0x1b0   :  { %v3273_v51 = vpop.f32.mrf.mxu1  ;;  %v2061_v14 = vadd.f32 %v2060_v50, %v2008_v32  ;;  %v2112_v50 = vadd.f32 %v3271_v41, %v2059_v13 }
 0x1b1   :  { %v2062_v54 = vpop.f32.mrf.mxu0 }
 0x1b2   :  { %v3275_v55 = vpop.f32.mrf.mxu1  ;;  %v2063_v52 = vadd.f32 %v2062_v54, %v2010_v25  ;;  %v2114_v39 = vadd.f32 %v3273_v51, %v2061_v14 }
 0x1b3   :  { %v2064_v7 = vpop.f32.mrf.mxu0 }
 0x1b4   :  { %v3277_v56 = vpop.f32.mrf.mxu1  ;;  %v2065_v58 = vadd.f32 %v2064_v7, %v2012_v27  ;;  %v2116_v41 = vadd.f32 %v3275_v55, %v2063_v52 }
 0x1b6   :  { %v2118_v7 = vadd.f32 %v3277_v56, %v2065_v58 }
 0x1e5   :  { %v2154_v20 = vpop.f32.mrf.mxu0 }
 0x1e6   :  { %v2207_v22 = vpop.f32.mrf.mxu1  ;;  %v2155_v11 = vadd.f32 %v2154_v20, %v2102_v61 }
 0x1e7   :  { %v2156_v44 = vpop.f32.mrf.mxu0 }
 0x1e8   :  { %v2209_v23 = vpop.f32.mrf.mxu1  ;;  %v2208_v36 = vadd.f32 %v2207_v22, %v2155_v11  ;;  %v2157_v45 = vadd.f32 %v2156_v44, %v2104_v9 }
 0x1e9   :  { %v2158_v48 = vpop.f32.mrf.mxu0 }
 0x1ea   :  { %v2211_v49 = vpop.f32.mrf.mxu1  ;;  %v2265_v38 = vmul.f32 %v3279_v60, %v2208_v36  ;;  %v2210_v42 = vadd.f32 %v2209_v23, %v2157_v45  ;;  %v2159_v43 = vadd.f32 %v2158_v48, %v2106_v33 }
 0x1eb   :  { %v2160_v28 = vpop.f32.mrf.mxu0 }
 0x1ec   :  { %v2213_v30 = vpop.f32.mrf.mxu1  ;;  %v2285_v37 = vadd.f32 %v3281_v21, %v2265_v38  ;;  %v2266_v46 = vmul.f32 %v2262_v12, %v2210_v42  ;;  %v2212_v47 = vadd.f32 %v2211_v49, %v2159_v43  ;;  %v2161_v40 = vadd.f32 %v2160_v28, %v2108_v35 }
 0x1ed   :  { %v2164_v53 = vpop.f32.mrf.mxu0 }
 0x1ee   :  { %v2217_v57 = vpop.f32.mrf.mxu1  ;;  %v2286_v62 = vadd.f32 %v2282_v16, %v2266_v46  ;;  %v2267_v29 = vmul.f32 %v3279_v60, %v2212_v47  ;;  %v2214_v63 = vadd.f32 %v2213_v30, %v2161_v40  ;;  %v2293_v31 = vmax.f32 %v2285_v37, 0.0 }
 0x1ef   :  { %v2165_v0 = vadd.f32 %v2164_v53, %v2112_v50  ;;  %v2166_v1 = vpop.f32.mrf.mxu0 }
 0x1f0   :  { %v2219_v2 = vpop.f32.mrf.mxu1  ;;  %v2294_v3 = vmax.f32 %v2286_v62, 0.0  ;;  %v2287_v4 = vadd.f32 %v3281_v21, %v2267_v29  ;;  %v2268_v5 = vmul.f32 %v2262_v12, %v2214_v63  ;;  %v2167_v6 = vadd.f32 %v2166_v1, %v2114_v39 }
 0x1f1   :  { %v2218_v54 = vadd.f32 %v2217_v57, %v2165_v0  ;;  %v2168_v51 = vpop.f32.mrf.mxu0 }
 0x1f2   :  { %v2221_v59 = vpop.f32.mrf.mxu1  ;;  %v2627_v8 = vpack.c.bf16 %v2294_v3, %v2293_v31  ;;  %v2288_v61 = vadd.f32 %v2282_v16, %v2268_v5  ;;  %v2220_v15 = vadd.f32 %v2219_v2, %v2167_v6  ;;  %v2169_v18 = vadd.f32 %v2168_v51, %v2116_v41 }
 0x1f3   :  { %v2269_v17 = vmul.f32 %v3279_v60, %v2218_v54  ;;  %v2170_v19 = vpop.f32.mrf.mxu0  ;;  %v2295_v20 = vmax.f32 %v2287_v4, 0.0 }
 0x1f4   :  { %2325 = vst [vmem:[%s3313_s4] sm:$0xff] %v2627_v8  ;;  %v2296_v22 = vmax.f32 %v2288_v61, 0.0  ;;  %v2270_v9 = vmul.f32 %v2262_v12, %v2220_v15  ;;  %v2171_v55 = vadd.f32 %v2170_v19, %v2118_v7  ;;  %v2222_v11 = vadd.f32 %v2221_v59, %v2169_v18  ;;  %v2223_v24 = vpop.f32.mrf.mxu1 }
 0x1f5   :  { %v2289_v10 = vadd.f32 %v3281_v21, %v2269_v17 }
 0x1f6   :  { %v2628_v56 = vpack.c.bf16 %v2296_v22, %v2295_v20  ;;  %v2290_v26 = vadd.f32 %v2282_v16, %v2270_v9  ;;  %v2224_v32 = vadd.f32 %v2223_v24, %v2171_v55  ;;  %v2271_v34 = vmul.f32 %v3279_v60, %v2222_v11 }
 0x1f7   :  { %v2297_v44 = vmax.f32 %v2289_v10, 0.0 }
 0x1f8   :  { %2326 = vst [vmem:[%s3313_s4 + $0x8] sm:$0xff] %v2628_v56  ;;  %v2298_v23 = vmax.f32 %v2290_v26, 0.0  ;;  %v2272_v33 = vmul.f32 %v2262_v12, %v2224_v32  ;;  %v2291_v36 = vadd.f32 %v3281_v21, %v2271_v34 }
 0x1fa   :  { %v2629_v45 = vpack.c.bf16 %v2298_v23, %v2297_v44  ;;  %v2292_v13 = vadd.f32 %v2282_v16, %v2272_v33  ;;  %v2299_v14 = vmax.f32 %v2291_v36, 0.0 }
 0x1fc   :  { %2327 = vst [vmem:[%s3313_s4 + $0x10] sm:$0xff] %v2629_v45  ;;  %v2300_v48 = vmax.f32 %v2292_v13, 0.0 }
 0x1fe   :  { %v2630_v49 = vpack.c.bf16 %v2300_v48, %v2299_v14 }
 0x200   :  { %2328 = vst [vmem:[%s3313_s4 + $0x18] sm:$0xff] %v2630_v49 }
 0x201   :  { %2333 = vsyncpa [#allocation4], 1 }
 0x202   :  { %2334 = vsyncpa [#allocation6], 1 }

// kernel: eam_forward.7
= control target key start
LH: loop header
LB: loop body
LE: loop exit
PB: predicated region body
PF: predicated region fallthrough
CT: control target
= control target key end

     0   :  { %11 = vsyncpa [#allocation4], 0  ;;  %s7260_s0 = inlined_call_operand.vmem [shape: bf16[2,10,10,256], index: 0, kind: input, shape index: {}]   ;;  %s7261_s1 = inlined_call_operand.vmem [shape: bf16[2304,256], index: 1, kind: input, shape index: {}]   ;;  %s7262_s2 = inlined_call_operand.vmem [shape: f32[1,256], index: 2, kind: input, shape index: {}]   ;;  %s7263_s3 = inlined_call_operand.vmem [shape: f32[1,256], index: 3, kind: input, shape index: {}]   ;;  %s7264_s4 = inlined_call_operand.vmem [shape: f32[1,256], index: 4, kind: input, shape index: {}]   ;;  %s7265_s5 = inlined_call_operand.vmem [shape: f32[1,256], index: 5, kind: input, shape index: {}]   ;;  %s7266_s6 = inlined_call_operand.hbm [shape: f32[2,8,8], index: 6, kind: output, shape index: {}]  }
   0x1   :  { %13 = vsyncpa [#allocation4 + $0x1], 0  ;;  %s5424_s21 = smov 0   ;;  %s5426_s22 = smov 0  }
   0x2   :  { %s5428_s23 = smov 0   ;;  %s5430_s24 = smov 0  }
   0x3   :  { %s5432_s25 = smov 0   ;;  %s5434_s26 = smov 0  }
   0x4 LB: > { %s4330_s27 = sadd.s32 4294967295, %s5385_s26   ;;  %s4331_s28 = sadd.s32 4294967294, %s5385_s26   ;;  %s5385_s26 = sphi %s5434_s26, %s19_s26   ;;  %s5381_s25 = sphi %s5432_s25, %s7323_s25   ;;  %s5377_s24 = sphi %s5430_s24, %s7322_s24   ;;  %s5373_s23 = sphi %s5428_s23, %s7321_s23   ;;  %s5369_s22 = sphi %s5426_s22, %s7320_s22   ;;  %s5365_s21 = sphi %s5424_s21, %s7319_s21  }
   0x5   : > { %s28_s29 = sadd.s32 1, %s5381_s25  ;;  %s194_s30 = sadd.s32 1, %s5373_s23 }
   0x6   : > { %p29_p0 = scmp.ge.s32.totalorder %s28_s29, 2  ;;  %p204_p1 = scmp.ne.s32.totalorder %s5373_s23, %s5369_s22 }
   0x7   : > { %p205_p2 = scmp.eq.s32.totalorder %s4330_s27, 1  ;;  %p210_p3 = scmp.ne.s32.totalorder %s5369_s22, %s5365_s21 }
   0x8   : > { %s7325_s29 = smov (%p29_p0, %s28_s29), 0  ;;  %p211_p5 = scmp.eq.s32.totalorder %s4331_s28, 1 }
   0x9   : > { %p5464_p4 = por %p205_p2, %p204_p1  ;;  %s191_s8 = ssub.s32 %s5381_s25, %s7325_s29 }
   0xa   : > { %p4339_p6 = scmp.ge.s32.totalorder %s5385_s26, 1  ;;  %p192_p7 = scmp.eq.s32.totalorder %s191_s8, 0 }
   0xb   : > { %p5471_p8 = por %p211_p5, %p210_p3  ;;  %p278_p9 = scmp.lt.s32.totalorder %s5385_s26, 3 }
   0xc   : > { %s5477_s10 = scalar_select %p192_p7, %s5373_s23, %s194_s30  }
   0xd   : > { %p279_p10 = pnand %p4339_p6, %p278_p9 }
   0xf   : > { %282 = sbr.rel (%p279_p10) target bundleno = 735 (0x2df), region = 44 }
  0x14   : > { %v4853_v0 = vld [vmem:[%s7261_s1 + $0x74] ss:$8 sps:$4 sm:$0xff]   ;;  %v4857_v2 = vld [vmem:[%s7261_s1 + $0x70] ss:$8 sps:$4 sm:$0xff]   ;;  %v4859_v4 = vld [vmem:[%s7261_s1 + $0x64] ss:$8 sps:$4 sm:$0xff]  }
  0x15   : > { %v4855_v1 = vld [vmem:[%s7261_s1 + $0x174] ss:$8 sps:$4 sm:$0xff]   ;;  %608 = vmatprep.subr.bf16.mxu0 %v4853_v0  ;;  %v4858_v3 = vld [vmem:[%s7261_s1 + $0x170] ss:$8 sps:$4 sm:$0xff]   ;;  %v4861_v5 = vld [vmem:[%s7261_s1 + $0x164] ss:$8 sps:$4 sm:$0xff]  }
  0x16   : > { %1036 = vmatprep.subr.bf16.mxu1 %v4855_v1  ;;  %609 = vmatpush1.bf16.msra.mxu0 %v4857_v2  ;;  %v4863_v6 = vld [vmem:[%s7261_s1 + $0x60] ss:$8 sps:$4 sm:$0xff]   ;;  %v4865_v8 = vld [vmem:[%s7261_s1 + $0x54] ss:$8 sps:$4 sm:$0xff]   ;;  %v4869_v10 = vld [vmem:[%s7261_s1 + $0x50] ss:$8 sps:$4 sm:$0xff]  }
  0x17   : > { %1037 = vmatpush1.bf16.msra.mxu1 %v4858_v3  ;;  %610 = vmatprep.subr.bf16.mxu0 %v4859_v4  ;;  %v4864_v7 = vld [vmem:[%s7261_s1 + $0x160] ss:$8 sps:$4 sm:$0xff]   ;;  %v4867_v9 = vld [vmem:[%s7261_s1 + $0x154] ss:$8 sps:$4 sm:$0xff]   ;;  %v4870_v11 = vld [vmem:[%s7261_s1 + $0x150] ss:$8 sps:$4 sm:$0xff]  }
  0x18   : > { %1038 = vmatprep.subr.bf16.mxu1 %v4861_v5  ;;  %v4871_v12 = vld [vmem:[%s7261_s1 + $0x44] ss:$8 sps:$4 sm:$0xff]   ;;  %v4875_v14 = vld [vmem:[%s7261_s1 + $0x40] ss:$8 sps:$4 sm:$0xff]   ;;  %v4877_v16 = vld [vmem:[%s7261_s1 + $0x34] ss:$8 sps:$4 sm:$0xff]  }
  0x19   : > { %v4873_v13 = vld [vmem:[%s7261_s1 + $0x144] ss:$8 sps:$4 sm:$0xff]   ;;  %v4876_v15 = vld [vmem:[%s7261_s1 + $0x140] ss:$8 sps:$4 sm:$0xff]   ;;  %v4879_v17 = vld [vmem:[%s7261_s1 + $0x134] ss:$8 sps:$4 sm:$0xff]  }
  0x1a   : > { %611 = vmatpush1.bf16.msra.mxu0 %v4863_v6  ;;  %v4881_v18 = vld [vmem:[%s7261_s1 + $0x30] ss:$8 sps:$4 sm:$0xff]   ;;  %v4883_v20 = vld [vmem:[%s7261_s1 + $0x24] ss:$8 sps:$4 sm:$0xff]   ;;  %v4887_v22 = vld [vmem:[%s7261_s1 + $0x20] ss:$8 sps:$4 sm:$0xff]  }
  0x1b   : > { %1039 = vmatpush1.bf16.msra.mxu1 %v4864_v7  ;;  %612 = vmatprep.subr.bf16.mxu0 %v4865_v8  ;;  %v4882_v19 = vld [vmem:[%s7261_s1 + $0x130] ss:$8 sps:$4 sm:$0xff]   ;;  %v4885_v21 = vld [vmem:[%s7261_s1 + $0x124] ss:$8 sps:$4 sm:$0xff]   ;;  %v4888_v23 = vld [vmem:[%s7261_s1 + $0x120] ss:$8 sps:$4 sm:$0xff]  }
  0x1c   : > { %1040 = vmatprep.subr.bf16.mxu1 %v4867_v9  ;;  %v4889_v24 = vld [vmem:[%s7261_s1 + $0x14] ss:$8 sps:$4 sm:$0xff]   ;;  %v4893_v26 = vld [vmem:[%s7261_s1 + $0x10] ss:$8 sps:$4 sm:$0xff]   ;;  %v4895_v28 = vld [vmem:[%s7261_s1 + $0x4] ss:$8 sps:$4 sm:$0xff]  }
  0x1d   : > { %v4891_v25 = vld [vmem:[%s7261_s1 + $0x114] ss:$8 sps:$4 sm:$0xff]   ;;  %v4894_v27 = vld [vmem:[%s7261_s1 + $0x110] ss:$8 sps:$4 sm:$0xff]   ;;  %v4897_v29 = vld [vmem:[%s7261_s1 + $0x104] ss:$8 sps:$4 sm:$0xff]  }
  0x1e   : > { %613 = vmatpush1.bf16.msra.mxu0 %v4869_v10  ;;  %v4899_v30 = vld [vmem:[%s7261_s1] ss:$8 sps:$4 sm:$0xff]   ;;  %p329_p11 = scmp.lt.s32.totalorder %s5377_s24, 1  ;;  %v4901_v32 = vld [vmem:[%s7261_s1 + $0xf4] ss:$8 sps:$4 sm:$0xff]   ;;  %vm1165_vm3 = vcmask 1042432  }
  0x1f   : > { %1041 = vmatpush1.bf16.msra.mxu1 %v4870_v11  ;;  %614 = vmatprep.subr.bf16.mxu0 %v4871_v12  ;;  %v4900_v31 = vld [vmem:[%s7261_s1 + $0x100] ss:$8 sps:$4 sm:$0xff]   ;;  %v4903_v33 = vld [vmem:[%s7261_s1 + $0x1f4] ss:$8 sps:$4 sm:$0xff]   ;;  %v4905_v34 = vld [vmem:[%s7261_s1 + $0xf0] ss:$8 sps:$4 sm:$0xff]  }
  0x20   : > { %1042 = vmatprep.subr.bf16.mxu1 %v4873_v13  ;;  %v4906_v35 = vld [vmem:[%s7261_s1 + $0x1f0] ss:$8 sps:$4 sm:$0xff]   ;;  %s330_s13 = scalar_select %p329_p11, %s5377_s24, 1  ;;  %v4907_v36 = vld [vmem:[%s7261_s1 + $0xe4] ss:$8 sps:$4 sm:$0xff]   ;;  %vm1166_vm4 = vcmask 1046532  }
  0x21   : > { %v4909_v37 = vld [vmem:[%s7261_s1 + $0x1e4] ss:$8 sps:$4 sm:$0xff]   ;;  %v4911_v38 = vld [vmem:[%s7261_s1 + $0xe0] ss:$8 sps:$4 sm:$0xff]   ;;  %v4913_v40 = vld [vmem:[%s7261_s1 + $0xd4] ss:$8 sps:$4 sm:$0xff]  }
  0x22   : > { %615 = vmatpush1.bf16.msra.mxu0 %v4875_v14  ;;  %s4795_s20 = smul.u32 160, %s330_s13  ;;  %v4912_v39 = vld [vmem:[%s7261_s1 + $0x1e0] ss:$8 sps:$4 sm:$0xff]   ;;  %v4915_v41 = vld [vmem:[%s7261_s1 + $0x1d4] ss:$8 sps:$4 sm:$0xff]   ;;  %vm5838_vm5 = vmor %vm1165_vm3, %vm1166_vm4  ;;  %s326_s16 = sand.u32 1, %s5369_s22  }
  0x23   : > { %1043 = vmatpush1.bf16.msra.mxu1 %v4876_v15  ;;  %616 = vmatprep.subr.bf16.mxu0 %v4877_v16  ;;  %v4917_v42 = vld [vmem:[%s7261_s1 + $0xd0] ss:$8 sps:$4 sm:$0xff]   ;;  %v4919_v44 = vld [vmem:[%s7261_s1 + $0xc4] ss:$8 sps:$4 sm:$0xff]   ;;  %vm697_vm0 = vsmask.f32 3328 }
  0x24   : > { %1044 = vmatprep.subr.bf16.mxu1 %v4879_v17  ;;  %v4918_v43 = vld [vmem:[%s7261_s1 + $0x1d0] ss:$8 sps:$4 sm:$0xff]   ;;  %s5616_s19 = scalar_lea.vmem %s7260_s0, %s4795_s20  ;;  %v4921_v45 = vld [vmem:[%s7261_s1 + $0x1c4] ss:$8 sps:$4 sm:$0xff]   ;;  %v4923_v46 = vld [vmem:[%s7261_s1 + $0xc0] ss:$8 sps:$4 sm:$0xff]  }
  0x25   : > { %v4924_v47 = vld [vmem:[%s7261_s1 + $0x1c0] ss:$8 sps:$4 sm:$0xff]   ;;  %v4925_v49 = vld [vmem:[%s7261_s1 + $0xb4] ss:$8 sps:$4 sm:$0xff]   ;;  %v4929_v62 = vld [vmem:[%s7261_s1 + $0xb0] ss:$8 sps:$4 sm:$0xff]  }
  0x26   : > { %617 = vmatpush1.bf16.msra.mxu0 %v4881_v18  ;;  %v5631_v48 = vld [vmem:[%s5616_s19] sm:$0xff]  ;;  %v5637_v50 = vld [vmem:[%s5616_s19 + $0x10] sm:$0xff]  ;;  %v5640_v51 = vld [vmem:[%s5616_s19 + $0x8] sm:$0x11]  ;;  %vm698_vm1 = vsmask.f32 7440 }
  0x27   : > { %1045 = vmatpush1.bf16.msra.mxu1 %v4882_v19  ;;  %618 = vmatprep.subr.bf16.mxu0 %v4883_v20  ;;  %v5643_v52 = vld [vmem:[%s5616_s19 + $0x18] sm:$0x11]  ;;  %v701_v53 = vshrl.u32 %v5631_v48, 16  ;;  %v4343_v54 = vcombine.high %v5631_v48, %v5637_v50  ;;  %v704_v55 = vshll.u32 %v5631_v48, 16  ;;  %v710_v56 = vshll.u32 %v5640_v51, 16  ;;  %vm5669_vm2 = vmor %vm697_vm0, %vm698_vm1  ;;  %s7211_s17 = sshll.u32 %s326_s16, 3 }
  0x28   : > { %1046 = vmatprep.subr.bf16.mxu1 %v4885_v21  ;;  %v715_v57 = vshrl.u32 %v5637_v50, 16  ;;  %v4927_v58 = vld [vmem:[%s7261_s1 + $0x1b4] ss:$8 sps:$4 sm:$0xff]   ;;  %v718_v60 = vshll.u32 %v5637_v50, 16  ;;  %v724_v61 = vshll.u32 %v5643_v52, 16  ;;  %vm4169_vm6 = vcmask 1041409  }
  0x29   : > { %v703_v59 = vrot.slane %v701_v53, 4  ;;  %640 = vmatprep.mubr.bf16.mxu0 %v4343_v54  ;;  %v706_v63 = vrot.slane %v704_v55, 5  ;;  %v4930_v1 = vld [vmem:[%s7261_s1 + $0x1b0] ss:$8 sps:$4 sm:$0xff]   ;;  %v4931_v3 = vld [vmem:[%s7261_s1 + $0xa4] ss:$8 sps:$4 sm:$0xff]  }
  0x2a   : > { %619 = vmatpush1.bf16.msra.mxu0 %v4887_v22  ;;  %v717_v0 = vrot.slane %v715_v57, 4  ;;  %v720_v2 = vrot.slane %v718_v60, 5  ;;  %v712_v5 = vrot.slane %v710_v56, 5  ;;  %v4933_v6 = vld [vmem:[%s7261_s1 + $0x1a4] ss:$8 sps:$4 sm:$0xff]   ;;  %v726_v9 = vrot.slane %v724_v61, 5 }
  0x2b   : > { %1047 = vmatpush1.bf16.msra.mxu1 %v4888_v23  ;;  %620 = vmatprep.subr.bf16.mxu0 %v4889_v24  ;;  %v707_v4 = vor.u32 %v706_v63, %v703_v59  ;;  %v4935_v11 = vld [vmem:[%s7261_s1 + $0xa0] ss:$8 sps:$4 sm:$0xff]   ;;  %v4937_v15 = vld [vmem:[%s7261_s1 + $0x94] ss:$8 sps:$4 sm:$0xff]   ;;  %v4941_v19 = vld [vmem:[%s7261_s1 + $0x90] ss:$8 sps:$4 sm:$0xff]  }
  0x2c   : > { %1048 = vmatprep.subr.bf16.mxu1 %v4891_v25  ;;  %v721_v8 = vor.u32 %v720_v2, %v717_v0  ;;  %v4936_v13 = vld [vmem:[%s7261_s1 + $0x1a0] ss:$8 sps:$4 sm:$0xff]   ;;  %v4939_v16 = vld [vmem:[%s7261_s1 + $0x194] ss:$8 sps:$4 sm:$0xff]   ;;  %v4942_v20 = vld [vmem:[%s7261_s1 + $0x190] ss:$8 sps:$4 sm:$0xff]  }
  0x2d   : > { %v708_v10 = vrot.slane %v707_v4, 4  ;;  %v4943_v21 = vld [vmem:[%s7261_s1 + $0x84] ss:$8 sps:$4 sm:$0xff]   ;;  %v4947_v23 = vld [vmem:[%s7261_s1 + $0x80] ss:$8 sps:$4 sm:$0xff]   ;;  %v1170_v60 = vrot.slane %v5640_v51, 5 }
  0x2e   : > { %621 = vmatpush1.bf16.msra.mxu0 %v4893_v26  ;;  %v5676_v12 = vrot.slane %v721_v8, 4  ;;  %v4945_v22 = vld [vmem:[%s7261_s1 + $0x184] ss:$8 sps:$4 sm:$0xff]   ;;  %v4948_v24 = vld [vmem:[%s7261_s1 + $0x180] ss:$8 sps:$4 sm:$0xff]   ;;  %v1174_v2 = vrot.slane %v5643_v52, 5 }
  0x2f   : > { %1049 = vmatpush1.bf16.msra.mxu1 %v4894_v27  ;;  %622 = vmatprep.subr.bf16.mxu0 %v4895_v28  ;;  %v713_v14 = vsel %vm5669_vm2, %v708_v10, %v712_v5  ;;  %v4953_v25 = vld [vmem:[%s7261_s1 + $0x274] ss:$8 sps:$4 sm:$0xff]   ;;  %v4342_v28 = vcombine.low %v5631_v48, %v5637_v50  ;;  %v4974_v57 = vld [vmem:[%s7261_s1 + $0x344] ss:$8 sps:$4 sm:$0xff]   ;;  %v4972_v63 = vld [vmem:[%s7261_s1 + $0x340] ss:$8 sps:$4 sm:$0xff]  }
  0x30   : > { %1050 = vmatprep.subr.bf16.mxu1 %v4897_v29  ;;  %v727_v17 = vsel %vm5669_vm2, %v5676_v12, %v726_v9  ;;  %v4956_v26 = vld [vmem:[%s7261_s1 + $0x374] ss:$8 sps:$4 sm:$0xff]   ;;  %v4951_v29 = vld [vmem:[%s7261_s1 + $0x270] ss:$8 sps:$4 sm:$0xff]   ;;  %v5793_v9 = vld [vmem:[%s5616_s19 + $0x40] sm:$0xff]  ;;  %v4422_v10 = vrot.slane %v5631_v48, 9 }
  0x31   : > { %v4383_v18 = vcombine.high %v713_v14, %v727_v17  ;;  %v4382_v27 = vcombine.low %v713_v14, %v727_v17  ;;  %v5796_v52 = vld [vmem:[%s5616_s19 + $0x50] sm:$0xff]  ;;  %v757_v17 = vshrl.u32 %v5793_v9, 16  ;;  %vm4171_vm7 = vcmask 1042434   ;;  %s4760_s18 = sshll.u32 %s5377_s24, 7  ;;  %s328_s27 = scalar_lea.vmem [#allocation3], %s7211_s17 }
  0x32   : > { %623 = vmatpush1.bf16.msra.mxu0 %v4899_v30  ;;  %v4954_v30 = vld [vmem:[%s7261_s1 + $0x370] ss:$8 sps:$4 sm:$0xff]   ;;  %v4347_v14 = vcombine.high %v5793_v9, %v5796_v52  ;;  %vm4173_vm8 = vcmask 1043459   ;;  %vm4175_vm9 = vcmask 1044484   ;;  %vm4177_vm10 = vcmask 1045509   ;;  %s4200_s28 = sshll.u32 %s328_s27, 4  ;;  %s7218_s11 = scalar_lea.hbm %s7266_s6, %s4760_s18  ;;  %s4201_s28 = int_to_ptr.vmem [resolvable:$true] %s4200_s28 }
  0x33   : > { %1051 = vmatpush1.bf16.msra.mxu1 %v4900_v31  ;;  %624 = vmatprep.subr.bf16.mxu0 %v4901_v32  ;;  %v4959_v31 = vld [vmem:[%s7261_s1 + $0x264] ss:$8 sps:$4 sm:$0xff]   ;;  %vm4179_vm11 = vcmask 1046534   ;;  %vm4181_vm12 = vcmask 1047559   ;;  %vm4184_vm13 = vcmask 64512   ;;  %s4187_s24 = scalar_lea.sflag [#allocation4], %s326_s16 }
  0x34   : > { %1052 = vmatprep.subr.bf16.mxu1 %v4903_v33  ;;  %1068 = vmatprep.mubr.bf16.mxu1 %v4383_v18  ;;  %v4962_v32 = vld [vmem:[%s7261_s1 + $0x364] ss:$8 sps:$4 sm:$0xff]   ;;  %v4957_v33 = vld [vmem:[%s7261_s1 + $0x260] ss:$8 sps:$4 sm:$0xff]   ;;  %v4346_v18 = vcombine.low %v5793_v9, %v5796_v52  ;;  %s5388_s20 = smov [#allocation3]  }
  0x35   : > { %s5313_s12 = sshll.u32 %s5388_s20, 4  ;;  %s5314_s12 = int_to_ptr.vmem [resolvable:$false] %s5313_s12 }
  0x36   : > { %625 = vmatpush2.bf16.msra.mxu0 %v4905_v34  ;;  %v4960_v34 = vld [vmem:[%s7261_s1 + $0x360] ss:$8 sps:$4 sm:$0xff]   ;;  %s5315_s14 = scalar_lea.vmem %s5314_s12, 256  ;;  %p5316_p1 = scmp.lt.s32.totalorder %s4201_s28, %s5314_s12 }
  0x37   : > { %1053 = vmatpush2.bf16.msra.mxu1 %v4906_v35  ;;  %626 = vmatprep.subr.bf16.mxu0 %v4907_v36  ;;  %v4965_v35 = vld [vmem:[%s7261_s1 + $0x254] ss:$8 sps:$4 sm:$0xff]  }
  0x38   : > { %1054 = vmatprep.subr.bf16.mxu1 %v4909_v37  ;;  %v4968_v36 = vld [vmem:[%s7261_s1 + $0x354] ss:$8 sps:$4 sm:$0xff]   ;;  %v5743_v37 = vld [vmem:[%s5616_s19 + $0x20] sm:$0xff] }
  0x3a   : > { %627 = vmatpush2.bf16.msra.mxu0 %v4911_v38  ;;  %v4963_v38 = vld [vmem:[%s7261_s1 + $0x250] ss:$8 sps:$4 sm:$0xff]  }
  0x3b   : > { %1055 = vmatpush2.bf16.msra.mxu1 %v4912_v39  ;;  %628 = vmatprep.subr.bf16.mxu0 %v4913_v40  ;;  %v4966_v39 = vld [vmem:[%s7261_s1 + $0x350] ss:$8 sps:$4 sm:$0xff]  }
  0x3c   : > { %1056 = vmatprep.subr.bf16.mxu1 %v4915_v41  ;;  %v5752_v40 = vld [vmem:[%s5616_s19 + $0x30] sm:$0xff]  ;;  %v5755_v41 = vld [vmem:[%s5616_s19 + $0x28] sm:$0x11] }
  0x3d   : > { %v746_v54 = vshll.u32 %v5752_v40, 16  ;;  %v4344_v56 = vcombine.low %v5743_v37, %v5752_v40 }
  0x3e   : > { %629 = vmatpush2.bf16.msra.mxu0 %v4917_v42  ;;  %v5758_v42 = vld [vmem:[%s5616_s19 + $0x38] sm:$0x11] }
  0x3f   : > { %1057 = vmatpush2.bf16.msra.mxu1 %v4918_v43  ;;  %630 = vmatprep.subr.bf16.mxu0 %v4919_v44  ;;  %v729_v43 = vshrl.u32 %v5743_v37, 16  ;;  %v4345_v44 = vcombine.high %v5743_v37, %v5752_v40  ;;  %v752_v55 = vshll.u32 %v5758_v42, 16  ;;  %v748_v61 = vrot.slane %v746_v54, 5  ;;  %v5860_v54 = vld [vmem:[%s5616_s19 + $0x70] sm:$0xff] }
  0x40   : > { %1058 = vmatprep.subr.bf16.mxu1 %v4921_v45  ;;  %v732_v45 = vshll.u32 %v5743_v37, 16 }
  0x41   : > { %v731_v53 = vrot.slane %v729_v43, 4  ;;  %v754_v5 = vrot.slane %v752_v55, 5  ;;  %v5866_v55 = vsel %vm5838_vm5, %v4422_v10, %v1170_v60  ;;  %v5885_v60 = vld [vmem:[%s5616_s19 + $0x78] sm:$0x11] }
  0x42   : > { %631 = vmatpush2.bf16.msra.mxu0 %v4923_v46  ;;  %v738_v46 = vshll.u32 %v5755_v41, 16  ;;  %v808_v10 = vshll.u32 %v5885_v60, 16 }
  0x43   : > { %1059 = vmatpush2.bf16.msra.mxu1 %v4924_v47  ;;  %632 = vmatprep.subr.bf16.mxu0 %v4925_v49  ;;  %v743_v47 = vshrl.u32 %v5752_v40, 16  ;;  %v4971_v49 = vld [vmem:[%s7261_s1 + $0x244] ss:$8 sps:$4 sm:$0xff]  }
  0x44   : > { %1060 = vmatprep.subr.bf16.mxu1 %v4927_v58  ;;  %v734_v58 = vrot.slane %v732_v45, 5 }
  0x45   : > { %v745_v59 = vrot.slane %v743_v47, 4  ;;  %v4992_v47 = vld [vmem:[%s7261_s1 + $0x314] ss:$8 sps:$4 sm:$0xff]  }
  0x46   : > { %633 = vmatpush2.bf16.msra.mxu0 %v4929_v62  ;;  %v4969_v62 = vld [vmem:[%s7261_s1 + $0x240] ss:$8 sps:$4 sm:$0xff]   ;;  %v735_v0 = vor.u32 %v734_v58, %v731_v53 }
  0x47   : > { %1061 = vmatpush2.bf16.msra.mxu1 %v4930_v1  ;;  %634 = vmatprep.subr.bf16.mxu0 %v4931_v3  ;;  %v740_v1 = vrot.slane %v738_v46, 5  ;;  %v4977_v3 = vld [vmem:[%s7261_s1 + $0x234] ss:$8 sps:$4 sm:$0xff]   ;;  %v749_v4 = vor.u32 %v748_v61, %v745_v59  ;;  %v5857_v53 = vld [vmem:[%s5616_s19 + $0x60] sm:$0xff]  ;;  %v5882_v59 = vld [vmem:[%s5616_s19 + $0x68] sm:$0x11] }
  0x48   : > { %1062 = vmatprep.subr.bf16.mxu1 %v4933_v6  ;;  %v4980_v6 = vld [vmem:[%s7261_s1 + $0x334] ss:$8 sps:$4 sm:$0xff]   ;;  %v5790_v8 = vrot.slane %v735_v0, 4  ;;  %v4349_v51 = vcombine.high %v5857_v53, %v5860_v54  ;;  %v785_v61 = vshrl.u32 %v5857_v53, 16  ;;  %v788_v0 = vshll.u32 %v5857_v53, 16 }
  0x4a   : > { %635 = vmatpush2.bf16.msra.mxu0 %v4935_v11  ;;  %v4975_v11 = vld [vmem:[%s7261_s1 + $0x230] ss:$8 sps:$4 sm:$0xff]   ;;  %v741_v48 = vsel %vm5669_vm2, %v5790_v8, %v740_v1  ;;  %v794_v1 = vshll.u32 %v5882_v59, 16 }
  0x4b   : > { %1063 = vmatpush2.bf16.msra.mxu1 %v4936_v13  ;;  %636 = vmatprep.subr.bf16.mxu0 %v4937_v15  ;;  %v5802_v13 = vrot.slane %v749_v4, 4  ;;  %v5807_v15 = vld [vmem:[%s5616_s19 + $0x48] sm:$0x11] }
  0x4c   : > { %1064 = vmatprep.subr.bf16.mxu1 %v4939_v16  ;;  %v5810_v16 = vld [vmem:[%s5616_s19 + $0x58] sm:$0x11] }
  0x4e   : > { %637 = vmatpush2.bf16.msra.mxu0 %v4941_v19  ;;  %v760_v19 = vshll.u32 %v5793_v9, 16 }
  0x4f   : > { %1065 = vmatpush2.bf16.msra.mxu1 %v4942_v20  ;;  %638 = vmatprep.subr.bf16.mxu0 %v4943_v21  ;;  %v766_v20 = vshll.u32 %v5807_v15, 16  ;;  %v771_v21 = vshrl.u32 %v5796_v52, 16 }
  0x50   : > { %1066 = vmatprep.subr.bf16.mxu1 %v4945_v22  ;;  %v4978_v22 = vld [vmem:[%s7261_s1 + $0x330] ss:$8 sps:$4 sm:$0xff]  }
  0x51   : > { %v768_v43 = vrot.slane %v766_v20, 5 }
  0x52   : > { %639 = vmatpush2.bf16.msra.mxu0 %v4947_v23  ;;  %v755_v23 = vsel %vm5669_vm2, %v5802_v13, %v754_v5  ;;  %v787_v5 = vrot.slane %v785_v61, 4  ;;  %v5018_v61 = vld [vmem:[%s7261_s1 + $0x3d4] ss:$8 sps:$4 sm:$0xff]  }
  0x53   : > { %1067 = vmatpush2.bf16.msra.mxu1 %v4948_v24  ;;  %1424 = vmatprep.subr.bf16.mxu0 %v4953_v25  ;;  %v759_v24 = vrot.slane %v757_v17, 4  ;;  %v774_v25 = vshll.u32 %v5796_v52, 16 }
  0x54   : > { %1794 = vmatprep.subr.bf16.mxu1 %v4956_v26  ;;  %v780_v26 = vshll.u32 %v5810_v16, 16 }
  0x55   : > { %641 = vmatmul.mubr.bf16.vlgmr.msra.gmra.mxu0 %v4342_v28  ;;  %v4986_v28 = vld [vmem:[%s7261_s1 + $0x324] ss:$8 sps:$4 sm:$0xff]  }
  0x56   : > { %1069 = vmatmul.mubr.bf16.vlgmr.msra.gmra.mxu1 %v4382_v27  ;;  %1425 = vmatpush1.bf16.msra.mxu0 %v4951_v29  ;;  %v4983_v27 = vld [vmem:[%s7261_s1 + $0x224] ss:$8 sps:$4 sm:$0xff]   ;;  %v4385_v29 = vcombine.high %v741_v48, %v755_v23  ;;  %v782_v46 = vrot.slane %v780_v26, 5  ;;  %v5001_v26 = vld [vmem:[%s7261_s1 + $0x2f4] ss:$8 sps:$4 sm:$0xff]  }
  0x57   : > { %1795 = vmatpush1.bf16.msra.mxu1 %v4954_v30  ;;  %1426 = vmatprep.subr.bf16.mxu0 %v4959_v31  ;;  %v762_v30 = vrot.slane %v760_v19, 5  ;;  %v4423_v31 = vrot.slane %v5637_v50, 9 }
  0x58   : > { %1796 = vmatprep.subr.bf16.mxu1 %v4962_v32  ;;  %650 = vmatprep.mubr.bf16.mxu0 %v4345_v44  ;;  %v4384_v32 = vcombine.low %v741_v48, %v755_v23  ;;  %v4989_v44 = vld [vmem:[%s7261_s1 + $0x214] ss:$8 sps:$4 sm:$0xff]   ;;  %v4996_v23 = vld [vmem:[%s7261_s1 + $0x300] ss:$8 sps:$4 sm:$0xff]  }
  0x59   : > { %1078 = vmatprep.mubr.bf16.mxu1 %v4385_v29  ;;  %v5004_v29 = vld [vmem:[%s7261_s1 + $0x3f4] ss:$8 sps:$4 sm:$0xff]  }
  0x5a   : > { %1427 = vmatpush1.bf16.msra.mxu0 %v4957_v33  ;;  %v773_v33 = vrot.slane %v771_v21, 4 }
  0x5b   : > { %1797 = vmatpush1.bf16.msra.mxu1 %v4960_v34  ;;  %1428 = vmatprep.subr.bf16.mxu0 %v4965_v35  ;;  %v776_v34 = vrot.slane %v774_v25, 5  ;;  %v796_v25 = vrot.slane %v794_v1, 5  ;;  %v5026_v1 = vld [vmem:[%s7261_s1 + $0x3c4] ss:$8 sps:$4 sm:$0xff]  }
  0x5c   : > { %1798 = vmatprep.subr.bf16.mxu1 %v4968_v36  ;;  %v4981_v36 = vld [vmem:[%s7261_s1 + $0x220] ss:$8 sps:$4 sm:$0xff]  }
  0x5d   : > { %651 = vmatmul.mubr.bf16.gmra.mxu0 %v4344_v56  ;;  %v777_v45 = vor.u32 %v776_v34, %v773_v33  ;;  %v5872_v56 = vsel %vm5838_vm5, %v4423_v31, %v1174_v2  ;;  %v799_v2 = vshrl.u32 %v5860_v54, 16  ;;  %v4999_v33 = vld [vmem:[%s7261_s1 + $0x2f0] ss:$8 sps:$4 sm:$0xff]  }
  0x5e   : > { %1429 = vmatpush1.bf16.msra.mxu0 %v4963_v38  ;;  %660 = vmatprep.mubr.bf16.mxu0 %v4347_v14  ;;  %v4984_v38 = vld [vmem:[%s7261_s1 + $0x320] ss:$8 sps:$4 sm:$0xff]   ;;  %v4998_v14 = vld [vmem:[%s7261_s1 + $0x304] ss:$8 sps:$4 sm:$0xff]   ;;  %v4431_v21 = vcombine.high %v5866_v55, %v5872_v56  ;;  %v5002_v34 = vld [vmem:[%s7261_s1 + $0x3f0] ss:$8 sps:$4 sm:$0xff]  }
  0x5f   : > { %1799 = vmatpush1.bf16.msra.mxu1 %v4966_v39  ;;  %1430 = vmatprep.subr.bf16.mxu0 %v4971_v49  ;;  %v763_v39 = vor.u32 %v762_v30, %v759_v24  ;;  %v5877_v58 = vrot.slane %v777_v45, 4  ;;  %v801_v19 = vrot.slane %v799_v2, 4  ;;  %v5021_v2 = vld [vmem:[%s7261_s1 + $0x2c0] ss:$8 sps:$4 sm:$0xff]  }
  0x60   : > { %1800 = vmatprep.subr.bf16.mxu1 %v4974_v57  ;;  %v4987_v57 = vld [vmem:[%s7261_s1 + $0x210] ss:$8 sps:$4 sm:$0xff]   ;;  %1079 = vmatmul.mubr.bf16.gmra.mxu1 %v4384_v32 }
  0x61   : > { %v5854_v49 = vrot.slane %v763_v39, 4  ;;  %v783_v4 = vsel %vm5669_vm2, %v5877_v58, %v782_v46  ;;  %v5007_v46 = vld [vmem:[%s7261_s1 + $0x2e0] ss:$8 sps:$4 sm:$0xff]  }
  0x62   : > { %1431 = vmatpush1.bf16.msra.mxu0 %v4969_v62  ;;  %v4348_v62 = vcombine.low %v5857_v53, %v5860_v54 }
  0x63   : > { %1801 = vmatpush1.bf16.msra.mxu1 %v4972_v63  ;;  %1432 = vmatprep.subr.bf16.mxu0 %v4977_v3  ;;  %v769_v63 = vsel %vm5669_vm2, %v5854_v49, %v768_v43  ;;  %v4990_v3 = vld [vmem:[%s7261_s1 + $0x310] ss:$8 sps:$4 sm:$0xff]   ;;  %v5012_v43 = vld [vmem:[%s7261_s1 + $0x3e4] ss:$8 sps:$4 sm:$0xff]  }
  0x64   : > { %1802 = vmatprep.subr.bf16.mxu1 %v4980_v6  ;;  %v802_v6 = vshll.u32 %v5860_v54, 16  ;;  %v4387_v17 = vcombine.high %v769_v63, %v783_v4  ;;  %v4386_v48 = vcombine.low %v769_v63, %v783_v4  ;;  %v5016_v63 = vld [vmem:[%s7261_s1 + $0x3d0] ss:$8 sps:$4 sm:$0xff]   ;;  %v5029_v4 = vld [vmem:[%s7261_s1 + $0x2b4] ss:$8 sps:$4 sm:$0xff]  }
  0x65   : > { %661 = vmatmul.mubr.bf16.gmra.mxu0 %v4346_v18  ;;  %v790_v18 = vrot.slane %v788_v0, 5  ;;  %v5023_v0 = vld [vmem:[%s7261_s1 + $0x2c4] ss:$8 sps:$4 sm:$0xff]  }
  0x66   : > { %1433 = vmatpush1.bf16.msra.mxu0 %v4975_v11  ;;  %v4995_v11 = vld [vmem:[%s7261_s1 + $0x204] ss:$8 sps:$4 sm:$0xff]   ;;  %670 = vmatprep.mubr.bf16.mxu0 %v4349_v51  ;;  %v804_v20 = vrot.slane %v802_v6, 5  ;;  %v5015_v51 = vld [vmem:[%s7261_s1 + $0x2d4] ss:$8 sps:$4 sm:$0xff]  }
  0x67   : > { %1803 = vmatpush1.bf16.msra.mxu1 %v4978_v22  ;;  %1434 = vmatprep.subr.bf16.mxu0 %v4983_v27  ;;  %v4993_v22 = vld [vmem:[%s7261_s1 + $0x200] ss:$8 sps:$4 sm:$0xff]   ;;  %v791_v24 = vor.u32 %v790_v18, %v787_v5  ;;  %v5032_v5 = vld [vmem:[%s7261_s1 + $0x3b4] ss:$8 sps:$4 sm:$0xff]   ;;  %v5027_v6 = vld [vmem:[%s7261_s1 + $0x2b0] ss:$8 sps:$4 sm:$0xff]  }
  0x68   : > { %1804 = vmatprep.subr.bf16.mxu1 %v4986_v28  ;;  %1088 = vmatprep.mubr.bf16.mxu1 %v4387_v17  ;;  %v805_v27 = vor.u32 %v804_v20, %v801_v19  ;;  %v810_v28 = vrot.slane %v808_v10, 5  ;;  %v5030_v10 = vld [vmem:[%s7261_s1 + $0x3b0] ss:$8 sps:$4 sm:$0xff]   ;;  %v5035_v17 = vld [vmem:[%s7261_s1 + $0x2a0] ss:$8 sps:$4 sm:$0xff]  }
  0x69   : > { %v5924_v30 = vrot.slane %v791_v24, 4  ;;  %1089 = vmatmul.mubr.bf16.gmra.mxu1 %v4386_v48  ;;  %v5038_v18 = vld [vmem:[%s7261_s1 + $0x3a0] ss:$8 sps:$4 sm:$0xff]   ;;  %v5043_v48 = vld [vmem:[%s7261_s1 + $0x294] ss:$8 sps:$4 sm:$0xff]   ;;  %v4424_v24 = vrot.slane %v5743_v37, 9 }
  0x6a   : > { %1435 = vmatpush1.bf16.msra.mxu0 %v4981_v36  ;;  %v5926_v32 = vrot.slane %v805_v27, 4  ;;  %v5046_v19 = vld [vmem:[%s7261_s1 + $0x394] ss:$8 sps:$4 sm:$0xff]   ;;  %v5041_v20 = vld [vmem:[%s7261_s1 + $0x290] ss:$8 sps:$4 sm:$0xff]   ;;  %v4425_v27 = vrot.slane %v5752_v40, 9 }
  0x6b   : > { %1805 = vmatpush1.bf16.msra.mxu1 %v4984_v38  ;;  %1436 = vmatprep.subr.bf16.mxu0 %v4989_v44  ;;  %v797_v36 = vsel %vm5669_vm2, %v5924_v30, %v796_v25  ;;  %v5009_v38 = vld [vmem:[%s7261_s1 + $0x2e4] ss:$8 sps:$4 sm:$0xff]   ;;  %v1178_v25 = vrot.slane %v5755_v41, 5  ;;  %v5057_v41 = vld [vmem:[%s7261_s1 + $0x474] ss:$8 sps:$4 sm:$0xff]  }
  0x6c   : > { %1806 = vmatprep.subr.bf16.mxu1 %v4992_v47  ;;  %v811_v39 = vsel %vm5669_vm2, %v5926_v32, %v810_v28  ;;  %v5010_v47 = vld [vmem:[%s7261_s1 + $0x3e0] ss:$8 sps:$4 sm:$0xff]   ;;  %v1182_v28 = vrot.slane %v5758_v42, 5  ;;  %v4486_v42 = vcombine.low %v5637_v50, %v5743_v37 }
  0x6d   : > { %671 = vmatmul.mubr.bf16.gmra.mxu0 %v4348_v62  ;;  %v4389_v44 = vcombine.high %v797_v36, %v811_v39  ;;  %v4388_v45 = vcombine.low %v797_v36, %v811_v39  ;;  %v5013_v62 = vld [vmem:[%s7261_s1 + $0x2d0] ss:$8 sps:$4 sm:$0xff]  }
  0x6e   : > { %1437 = vmatpush1.bf16.msra.mxu0 %v4987_v57  ;;  %1456 = vmatprep.mubr.bf16.mxu0 %v4431_v21  ;;  %v4487_v57 = vcombine.high %v5637_v50, %v5743_v37  ;;  %v5044_v21 = vld [vmem:[%s7261_s1 + $0x390] ss:$8 sps:$4 sm:$0xff]   ;;  %v1183_v39 = vsel %vm5838_vm5, %v4425_v27, %v1182_v28  ;;  %v5105_v50 = vld [vmem:[%s7261_s1 + $0x404] ss:$8 sps:$4 sm:$0xff]  }
  0x6f   : > { %1807 = vmatpush1.bf16.msra.mxu1 %v4990_v3  ;;  %1438 = vmatprep.subr.bf16.mxu0 %v4995_v11  ;;  %v5024_v3 = vld [vmem:[%s7261_s1 + $0x3c0] ss:$8 sps:$4 sm:$0xff]   ;;  %v5037_v11 = vld [vmem:[%s7261_s1 + $0x2a4] ss:$8 sps:$4 sm:$0xff]   ;;  %v5055_v36 = vld [vmem:[%s7261_s1 + $0x470] ss:$8 sps:$4 sm:$0xff]  }
  0x70   : > { %1808 = vmatprep.subr.bf16.mxu1 %v4998_v14  ;;  %1098 = vmatprep.mubr.bf16.mxu1 %v4389_v44  ;;  %v5040_v14 = vld [vmem:[%s7261_s1 + $0x3a4] ss:$8 sps:$4 sm:$0xff]  }
  0x71   : > { %1099 = vmatmul.mubr.bf16.gmra.mxu1 %v4388_v45  ;;  %v4489_v45 = vcombine.high %v5752_v40, %v5793_v9  ;;  %v5108_v37 = vld [vmem:[%s7261_s1 + $0x504] ss:$8 sps:$4 sm:$0xff]  }
  0x72   : > { %1439 = vmatpush1.bf16.msra.mxu0 %v4993_v22  ;;  %1826 = vmatprep.mubr.bf16.mxu1 %v4487_v57  ;;  %v5049_v22 = vld [vmem:[%s7261_s1 + $0x284] ss:$8 sps:$4 sm:$0xff]   ;;  %v5061_v57 = vld [vmem:[%s7261_s1 + $0x460] ss:$8 sps:$4 sm:$0xff]  }
  0x73   : > { %1809 = vmatpush1.bf16.msra.mxu1 %v4996_v23  ;;  %1440 = vmatprep.subr.bf16.mxu0 %v5001_v26  ;;  %v5052_v23 = vld [vmem:[%s7261_s1 + $0x384] ss:$8 sps:$4 sm:$0xff]   ;;  %v5047_v26 = vld [vmem:[%s7261_s1 + $0x280] ss:$8 sps:$4 sm:$0xff]  }
  0x74   : > { %1810 = vmatprep.subr.bf16.mxu1 %v5004_v29  ;;  %v5050_v29 = vld [vmem:[%s7261_s1 + $0x380] ss:$8 sps:$4 sm:$0xff]  }
  0x76   : > { %1441 = vmatpush2.bf16.msra.mxu0 %v4999_v33  ;;  %v5060_v33 = vld [vmem:[%s7261_s1 + $0x574] ss:$8 sps:$4 sm:$0xff]  }
  0x77   : > { %1811 = vmatpush2.bf16.msra.mxu1 %v5002_v34  ;;  %1442 = vmatprep.subr.bf16.mxu0 %v5009_v38  ;;  %v4430_v34 = vcombine.low %v5866_v55, %v5872_v56  ;;  %v1179_v38 = vsel %vm5838_vm5, %v4424_v24, %v1178_v25  ;;  %v5058_v55 = vld [vmem:[%s7261_s1 + $0x570] ss:$8 sps:$4 sm:$0xff]   ;;  %v5063_v56 = vld [vmem:[%s7261_s1 + $0x464] ss:$8 sps:$4 sm:$0xff]  }
  0x78   : > { %1812 = vmatprep.subr.bf16.mxu1 %v5012_v43  ;;  %v5066_v43 = vld [vmem:[%s7261_s1 + $0x564] ss:$8 sps:$4 sm:$0xff]   ;;  %v4433_v44 = vcombine.high %v1179_v38, %v1183_v39 }
  0x7a   : > { %1443 = vmatpush2.bf16.msra.mxu0 %v5007_v46  ;;  %v4426_v46 = vrot.slane %v5793_v9, 9 }
  0x7b   : > { %1813 = vmatpush2.bf16.msra.mxu1 %v5010_v47  ;;  %1444 = vmatprep.subr.bf16.mxu0 %v5015_v51  ;;  %v1186_v47 = vrot.slane %v5807_v15, 5  ;;  %v4427_v51 = vrot.slane %v5796_v52, 9  ;;  %v5069_v15 = vld [vmem:[%s7261_s1 + $0x454] ss:$8 sps:$4 sm:$0xff]  }
  0x7c   : > { %1814 = vmatprep.subr.bf16.mxu1 %v5018_v61  ;;  %v1190_v61 = vrot.slane %v5810_v16, 5  ;;  %v5067_v16 = vld [vmem:[%s7261_s1 + $0x450] ss:$8 sps:$4 sm:$0xff]  }
  0x7e   : > { %1445 = vmatpush2.bf16.msra.mxu0 %v5013_v62  ;;  %v5064_v62 = vld [vmem:[%s7261_s1 + $0x560] ss:$8 sps:$4 sm:$0xff]  }
  0x7f   : > { %1815 = vmatpush2.bf16.msra.mxu1 %v5016_v63  ;;  %1446 = vmatprep.subr.bf16.mxu0 %v5023_v0  ;;  %v5072_v63 = vld [vmem:[%s7261_s1 + $0x554] ss:$8 sps:$4 sm:$0xff]   ;;  %v4432_v0 = vcombine.low %v1179_v38, %v1183_v39  ;;  %v5094_v38 = vld [vmem:[%s7261_s1 + $0x524] ss:$8 sps:$4 sm:$0xff]   ;;  %v5089_v39 = vld [vmem:[%s7261_s1 + $0x420] ss:$8 sps:$4 sm:$0xff]  }
  0x80   : > { %1816 = vmatprep.subr.bf16.mxu1 %v5026_v1  ;;  %v4488_v1 = vcombine.low %v5752_v40, %v5793_v9  ;;  %v5160_v40 = vld [vmem:[%s7261_s1 + $0x770] ss:$8 sps:$4 sm:$0xff]  }
  0x82   : > { %1447 = vmatpush2.bf16.msra.mxu0 %v5021_v2  ;;  %v1187_v2 = vsel %vm5838_vm5, %v4426_v46, %v1186_v47 }
  0x83   : > { %1817 = vmatpush2.bf16.msra.mxu1 %v5024_v3  ;;  %1448 = vmatprep.subr.bf16.mxu0 %v5029_v4  ;;  %v1191_v3 = vsel %vm5838_vm5, %v4427_v51, %v1190_v61  ;;  %v5070_v4 = vld [vmem:[%s7261_s1 + $0x550] ss:$8 sps:$4 sm:$0xff]   ;;  %v5097_v61 = vld [vmem:[%s7261_s1 + $0x414] ss:$8 sps:$4 sm:$0xff]  }
  0x84   : > { %1818 = vmatprep.subr.bf16.mxu1 %v5032_v5  ;;  %v5077_v5 = vld [vmem:[%s7261_s1 + $0x444] ss:$8 sps:$4 sm:$0xff]   ;;  %v4434_v25 = vcombine.low %v1187_v2, %v1191_v3 }
  0x86   : > { %1449 = vmatpush2.bf16.msra.mxu0 %v5027_v6  ;;  %v5080_v6 = vld [vmem:[%s7261_s1 + $0x544] ss:$8 sps:$4 sm:$0xff]  }
  0x87   : > { %1819 = vmatpush2.bf16.msra.mxu1 %v5030_v10  ;;  %1450 = vmatprep.subr.bf16.mxu0 %v5037_v11  ;;  %v4491_v10 = vcombine.high %v5796_v52, %v5857_v53  ;;  %v5075_v11 = vld [vmem:[%s7261_s1 + $0x440] ss:$8 sps:$4 sm:$0xff]  }
  0x88   : > { %1820 = vmatprep.subr.bf16.mxu1 %v5040_v14  ;;  %v4435_v14 = vcombine.high %v1187_v2, %v1191_v3 }
  0x8a   : > { %1451 = vmatpush2.bf16.msra.mxu0 %v5035_v17  ;;  %v4428_v17 = vrot.slane %v5857_v53, 9 }
  0x8b   : > { %1821 = vmatpush2.bf16.msra.mxu1 %v5038_v18  ;;  %1452 = vmatprep.subr.bf16.mxu0 %v5043_v48  ;;  %v1194_v18 = vrot.slane %v5882_v59, 5  ;;  %v4429_v48 = vrot.slane %v5860_v54, 9  ;;  %v5083_v59 = vld [vmem:[%s7261_s1 + $0x434] ss:$8 sps:$4 sm:$0xff]  }
  0x8c   : > { %1822 = vmatprep.subr.bf16.mxu1 %v5046_v19  ;;  %v5078_v19 = vld [vmem:[%s7261_s1 + $0x540] ss:$8 sps:$4 sm:$0xff]  }
  0x8d   : > { %v1195_v28 = vsel %vm5838_vm5, %v4428_v17, %v1194_v18  ;;  %v5120_v18 = vld [vmem:[%s7261_s1 + $0x5e4] ss:$8 sps:$4 sm:$0xff]  }
  0x8e   : > { %1453 = vmatpush2.bf16.msra.mxu0 %v5041_v20  ;;  %v1198_v20 = vrot.slane %v5885_v60, 5  ;;  %v5081_v60 = vld [vmem:[%s7261_s1 + $0x430] ss:$8 sps:$4 sm:$0xff]  }
  0x8f   : > { %1823 = vmatpush2.bf16.msra.mxu1 %v5044_v21  ;;  %1454 = vmatprep.subr.bf16.mxu0 %v5049_v22  ;;  %v4471_v21 = vld [vmem:[%s5616_s19 + $0x18] sm:$0x11]  ;;  %v4473_v22 = vld [vmem:[%s5616_s19 + $0x28] sm:$0x11] }
  0x90   : > { %1824 = vmatprep.subr.bf16.mxu1 %v5052_v23  ;;  %v5086_v23 = vld [vmem:[%s7261_s1 + $0x534] ss:$8 sps:$4 sm:$0xff]   ;;  %v2386_v47 = vrot.slane %v4473_v22, 5 }
  0x92   : > { %1455 = vmatpush2.bf16.msra.mxu0 %v5047_v26  ;;  %v4490_v26 = vcombine.low %v5796_v52, %v5857_v53  ;;  %v6184_v3 = vsel %vm5838_vm5, %v4424_v24, %v2386_v47  ;;  %v5103_v24 = vld [vmem:[%s7261_s1 + $0x400] ss:$8 sps:$4 sm:$0xff]   ;;  %v5169_v53 = vld [vmem:[%s7261_s1 + $0x650] ss:$8 sps:$4 sm:$0xff]  }
  0x93   : > { %1825 = vmatpush2.bf16.msra.mxu1 %v5050_v29  ;;  %2251 = vmatprep.subr.bf16.mxu0 %v5057_v41  ;;  %v1199_v29 = vsel %vm5838_vm5, %v4429_v48, %v1198_v20  ;;  %v6134_v41 = vld [vmem:[%s5616_s19 + $0x80] sm:$0xff] }
  0x94   : > { %2636 = vmatprep.subr.bf16.mxu1 %v5060_v33  ;;  %v1925_v33 = vshll.u32 %v4471_v21, 16  ;;  %v5118_v20 = vld [vmem:[%s7261_s1 + $0x5e0] ss:$8 sps:$4 sm:$0xff]  }
  0x95   : > { %1457 = vmatmul.mubr.bf16.vlgmr.msra.gmra.mxu0 %v4430_v34  ;;  %v1939_v34 = vshll.u32 %v4473_v22, 16  ;;  %v5126_v22 = vld [vmem:[%s7261_s1 + $0x5d4] ss:$8 sps:$4 sm:$0xff]  }
  0x96   : > { %1827 = vmatmul.mubr.bf16.vlgmr.msra.gmra.mxu1 %v4486_v42  ;;  %2252 = vmatpush1.bf16.msra.mxu0 %v5055_v36  ;;  %v5084_v42 = vld [vmem:[%s7261_s1 + $0x530] ss:$8 sps:$4 sm:$0xff]   ;;  %v5091_v36 = vld [vmem:[%s7261_s1 + $0x424] ss:$8 sps:$4 sm:$0xff]  }
  0x97   : > { %2637 = vmatpush1.bf16.msra.mxu1 %v5058_v55  ;;  %2253 = vmatprep.subr.bf16.mxu0 %v5063_v56  ;;  %v4437_v55 = vcombine.high %v1195_v28, %v1199_v29  ;;  %v4493_v56 = vcombine.high %v5860_v54, %v6134_v41 }
  0x98   : > { %2638 = vmatprep.subr.bf16.mxu1 %v5066_v43  ;;  %1466 = vmatprep.mubr.bf16.mxu0 %v4433_v44  ;;  %v1927_v43 = vrot.slane %v1925_v33, 5  ;;  %v1941_v44 = vrot.slane %v1939_v34, 5  ;;  %v5138_v33 = vld [vmem:[%s7261_s1 + $0x5b4] ss:$8 sps:$4 sm:$0xff]   ;;  %v5133_v34 = vld [vmem:[%s7261_s1 + $0x4b0] ss:$8 sps:$4 sm:$0xff]  }
  0x99   : > { %1836 = vmatprep.mubr.bf16.mxu1 %v4489_v45  ;;  %v2382_v45 = vrot.slane %v4471_v21, 5  ;;  %v5123_v21 = vld [vmem:[%s7261_s1 + $0x4d4] ss:$8 sps:$4 sm:$0xff]  }
  0x9a   : > { %2254 = vmatpush1.bf16.msra.mxu0 %v5061_v57  ;;  %v5092_v57 = vld [vmem:[%s7261_s1 + $0x520] ss:$8 sps:$4 sm:$0xff]  }
  0x9b   : > { %2639 = vmatpush1.bf16.msra.mxu1 %v5064_v62  ;;  %2255 = vmatprep.subr.bf16.mxu0 %v5069_v15  ;;  %v5100_v62 = vld [vmem:[%s7261_s1 + $0x514] ss:$8 sps:$4 sm:$0xff]   ;;  %v4436_v15 = vcombine.low %v1195_v28, %v1199_v29  ;;  %v6178_v2 = vsel %vm5838_vm5, %v4423_v31, %v2382_v45  ;;  %v5130_v28 = vld [vmem:[%s7261_s1 + $0x5c0] ss:$8 sps:$4 sm:$0xff]  }
  0x9c   : > { %2640 = vmatprep.subr.bf16.mxu1 %v5072_v63  ;;  %v4492_v63 = vcombine.low %v5860_v54, %v6134_v41  ;;  %v4575_v31 = vcombine.high %v6178_v2, %v6184_v3  ;;  %v5135_v29 = vld [vmem:[%s7261_s1 + $0x4b4] ss:$8 sps:$4 sm:$0xff]   ;;  %v5184_v54 = vld [vmem:[%s7261_s1 + $0x730] ss:$8 sps:$4 sm:$0xff]  }
  0x9d   : > { %1467 = vmatmul.mubr.bf16.gmra.mxu0 %v4432_v0  ;;  %v5095_v0 = vld [vmem:[%s7261_s1 + $0x410] ss:$8 sps:$4 sm:$0xff]   ;;  %v5150_v45 = vld [vmem:[%s7261_s1 + $0x594] ss:$8 sps:$4 sm:$0xff]  }
  0x9e   : > { %1837 = vmatmul.mubr.bf16.gmra.mxu1 %v4488_v1  ;;  %2256 = vmatpush1.bf16.msra.mxu0 %v5067_v16  ;;  %v6167_v16 = vsel %vm5669_vm2, %v5676_v12, %v1927_v43  ;;  %v6172_v1 = vsel %vm5669_vm2, %v5790_v8, %v1941_v44  ;;  %v5098_v12 = vld [vmem:[%s7261_s1 + $0x510] ss:$8 sps:$4 sm:$0xff]   ;;  %v4477_v44 = vld [vmem:[%s5616_s19 + $0x48] sm:$0x11] }
  0x9f   : > { %2641 = vmatpush1.bf16.msra.mxu1 %v5070_v4  ;;  %2257 = vmatprep.subr.bf16.mxu0 %v5077_v5  ;;  %v4527_v8 = vcombine.high %v6167_v16, %v6172_v1  ;;  %v5106_v4 = vld [vmem:[%s7261_s1 + $0x500] ss:$8 sps:$4 sm:$0xff]   ;;  %v5111_v5 = vld [vmem:[%s7261_s1 + $0x4f4] ss:$8 sps:$4 sm:$0xff]  }
  0xa0   : > { %2642 = vmatprep.subr.bf16.mxu1 %v5080_v6  ;;  %1476 = vmatprep.mubr.bf16.mxu0 %v4435_v14  ;;  %v5114_v6 = vld [vmem:[%s7261_s1 + $0x5f4] ss:$8 sps:$4 sm:$0xff]   ;;  %v5117_v14 = vld [vmem:[%s7261_s1 + $0x4e4] ss:$8 sps:$4 sm:$0xff]  }
  0xa1   : > { %1846 = vmatprep.mubr.bf16.mxu1 %v4491_v10  ;;  %v5109_v10 = vld [vmem:[%s7261_s1 + $0x4f0] ss:$8 sps:$4 sm:$0xff]  }
  0xa2   : > { %2258 = vmatpush1.bf16.msra.mxu0 %v5075_v11  ;;  %v5112_v11 = vld [vmem:[%s7261_s1 + $0x5f0] ss:$8 sps:$4 sm:$0xff]  }
  0xa3   : > { %2643 = vmatpush1.bf16.msra.mxu1 %v5078_v19  ;;  %2259 = vmatprep.subr.bf16.mxu0 %v5083_v59  ;;  %v5115_v19 = vld [vmem:[%s7261_s1 + $0x4e0] ss:$8 sps:$4 sm:$0xff]   ;;  %v5121_v59 = vld [vmem:[%s7261_s1 + $0x4d0] ss:$8 sps:$4 sm:$0xff]  }
  0xa4   : > { %2644 = vmatprep.subr.bf16.mxu1 %v5086_v23  ;;  %v5124_v23 = vld [vmem:[%s7261_s1 + $0x5d0] ss:$8 sps:$4 sm:$0xff]  }
  0xa5   : > { %1477 = vmatmul.mubr.bf16.gmra.mxu0 %v4434_v25  ;;  %v5129_v25 = vld [vmem:[%s7261_s1 + $0x4c4] ss:$8 sps:$4 sm:$0xff]   ;;  %v4475_v43 = vld [vmem:[%s5616_s19 + $0x38] sm:$0x11] }
  0xa6   : > { %1847 = vmatmul.mubr.bf16.gmra.mxu1 %v4490_v26  ;;  %2260 = vmatpush1.bf16.msra.mxu0 %v5081_v60  ;;  %v5132_v60 = vld [vmem:[%s7261_s1 + $0x5c4] ss:$8 sps:$4 sm:$0xff]   ;;  %v5127_v26 = vld [vmem:[%s7261_s1 + $0x4c0] ss:$8 sps:$4 sm:$0xff]   ;;  %v1953_v47 = vshll.u32 %v4475_v43, 16 }
  0xa7   : > { %2645 = vmatpush1.bf16.msra.mxu1 %v5084_v42  ;;  %2261 = vmatprep.subr.bf16.mxu0 %v5091_v36  ;;  %v5136_v42 = vld [vmem:[%s7261_s1 + $0x5b0] ss:$8 sps:$4 sm:$0xff]   ;;  %v5141_v36 = vld [vmem:[%s7261_s1 + $0x4a4] ss:$8 sps:$4 sm:$0xff]  }
  0xa8   : > { %2646 = vmatprep.subr.bf16.mxu1 %v5094_v38  ;;  %1486 = vmatprep.mubr.bf16.mxu0 %v4437_v55  ;;  %v5144_v38 = vld [vmem:[%s7261_s1 + $0x5a4] ss:$8 sps:$4 sm:$0xff]   ;;  %v5142_v55 = vld [vmem:[%s7261_s1 + $0x5a0] ss:$8 sps:$4 sm:$0xff]  }
  0xa9   : > { %1856 = vmatprep.mubr.bf16.mxu1 %v4493_v56  ;;  %v5147_v56 = vld [vmem:[%s7261_s1 + $0x494] ss:$8 sps:$4 sm:$0xff]  }
  0xaa   : > { %2262 = vmatpush1.bf16.msra.mxu0 %v5089_v39  ;;  %v5139_v39 = vld [vmem:[%s7261_s1 + $0x4a0] ss:$8 sps:$4 sm:$0xff]  }
  0xab   : > { %2647 = vmatpush1.bf16.msra.mxu1 %v5092_v57  ;;  %2263 = vmatprep.subr.bf16.mxu0 %v5097_v61  ;;  %v1967_v57 = vshll.u32 %v4477_v44, 16  ;;  %v5145_v61 = vld [vmem:[%s7261_s1 + $0x490] ss:$8 sps:$4 sm:$0xff]  }
  0xac   : > { %2648 = vmatprep.subr.bf16.mxu1 %v5100_v62  ;;  %v5148_v62 = vld [vmem:[%s7261_s1 + $0x590] ss:$8 sps:$4 sm:$0xff]  }
  0xad   : > { %1487 = vmatmul.mubr.bf16.gmra.mxu0 %v4436_v15  ;;  %v5153_v15 = vld [vmem:[%s7261_s1 + $0x484] ss:$8 sps:$4 sm:$0xff]  }
  0xae   : > { %1857 = vmatmul.mubr.bf16.gmra.mxu1 %v4492_v63  ;;  %2264 = vmatpush1.bf16.msra.mxu0 %v5095_v0  ;;  %v5156_v63 = vld [vmem:[%s7261_s1 + $0x584] ss:$8 sps:$4 sm:$0xff]   ;;  %v5151_v0 = vld [vmem:[%s7261_s1 + $0x480] ss:$8 sps:$4 sm:$0xff]  }
  0xaf   : > { %2649 = vmatpush1.bf16.msra.mxu1 %v5098_v12  ;;  %2265 = vmatprep.subr.bf16.mxu0 %v5105_v50  ;;  %v5154_v12 = vld [vmem:[%s7261_s1 + $0x580] ss:$8 sps:$4 sm:$0xff]   ;;  %v6304_v50 = vld [vmem:[%s5616_s19 + $0x58] sm:$0x11] }
  0xb0   : > { %2650 = vmatprep.subr.bf16.mxu1 %v5108_v37  ;;  %2283 = vmatprep.mubr.bf16.mxu0 %v4527_v8  ;;  %v6307_v37 = vld [vmem:[%s5616_s19 + $0x68] sm:$0x11]  ;;  %v2014_v8 = vshrl.u32 %v6134_v41, 16 }
  0xb1   : > { %2668 = vmatprep.mubr.bf16.mxu1 %v4575_v31  ;;  %v1955_v31 = vrot.slane %v1953_v47, 5 }
  0xb2   : > { %2266 = vmatpush1.bf16.msra.mxu0 %v5103_v24  ;;  %v1969_v24 = vrot.slane %v1967_v57, 5 }
  0xb3   : > { %2651 = vmatpush1.bf16.msra.mxu1 %v5106_v4  ;;  %2267 = vmatprep.subr.bf16.mxu0 %v5111_v5  ;;  %v2390_v4 = vrot.slane %v4475_v43, 5  ;;  %v2394_v5 = vrot.slane %v4477_v44, 5  ;;  %v6390_v43 = vld [vmem:[%s5616_s19 + $0x30] sm:$0xff] }
  0xb4   : > { %2652 = vmatprep.subr.bf16.mxu1 %v5114_v6  ;;  %v5159_v6 = vld [vmem:[%s7261_s1 + $0x674] ss:$8 sps:$4 sm:$0xff]   ;;  %v3142_v52 = vshrl.u32 %v6390_v43, 16 }
  0xb5   : > { %v5171_v44 = vld [vmem:[%s7261_s1 + $0x654] ss:$8 sps:$4 sm:$0xff]  }
  0xb6   : > { %2268 = vmatpush2.bf16.msra.mxu0 %v5109_v10  ;;  %v5162_v10 = vld [vmem:[%s7261_s1 + $0x774] ss:$8 sps:$4 sm:$0xff]  }
  0xb7   : > { %2653 = vmatpush2.bf16.msra.mxu1 %v5112_v11  ;;  %2269 = vmatprep.subr.bf16.mxu0 %v5117_v14  ;;  %v2017_v11 = vshll.u32 %v6134_v41, 16  ;;  %v1981_v14 = vshll.u32 %v6304_v50, 16 }
  0xb8   : > { %2654 = vmatprep.subr.bf16.mxu1 %v5120_v18  ;;  %v1995_v18 = vshll.u32 %v6307_v37, 16 }
  0xba   : > { %2270 = vmatpush2.bf16.msra.mxu0 %v5115_v19  ;;  %v6320_v19 = vld [vmem:[%s5616_s19 + $0x20] sm:$0xff] }
  0xbb   : > { %2655 = vmatpush2.bf16.msra.mxu1 %v5118_v20  ;;  %2271 = vmatprep.subr.bf16.mxu0 %v5123_v21  ;;  %v6323_v20 = vld [vmem:[%s5616_s19 + $0x28] sm:$0x11]  ;;  %v4526_v21 = vcombine.low %v6167_v16, %v6172_v1  ;;  %v6345_v16 = vsel %vm5838_vm5, %v4425_v27, %v2390_v4  ;;  %v6351_v1 = vsel %vm5838_vm5, %v4426_v46, %v2394_v5 }
  0xbc   : > { %2656 = vmatprep.subr.bf16.mxu1 %v5126_v22  ;;  %v4574_v22 = vcombine.low %v6178_v2, %v6184_v3  ;;  %v2019_v2 = vrot.slane %v2017_v11, 5  ;;  %v5165_v27 = vld [vmem:[%s7261_s1 + $0x664] ss:$8 sps:$4 sm:$0xff]   ;;  %v1983_v3 = vrot.slane %v1981_v14, 5  ;;  %v4576_v47 = vcombine.low %v6345_v16, %v6351_v1  ;;  %v5175_v4 = vld [vmem:[%s7261_s1 + $0x640] ss:$8 sps:$4 sm:$0xff]  }
  0xbd   : > { %v5168_v46 = vld [vmem:[%s7261_s1 + $0x764] ss:$8 sps:$4 sm:$0xff]   ;;  %v5178_v5 = vld [vmem:[%s7261_s1 + $0x740] ss:$8 sps:$4 sm:$0xff]  }
  0xbe   : > { %2272 = vmatpush2.bf16.msra.mxu0 %v5121_v59  ;;  %v4710_v59 = vrot.slane %v6320_v19, 9  ;;  %v6403_v57 = vsel %vm5669_vm2, %v5877_v58, %v1983_v3 }
  0xbf   : > { %2657 = vmatpush2.bf16.msra.mxu1 %v5124_v23  ;;  %2273 = vmatprep.subr.bf16.mxu0 %v5129_v25  ;;  %v3594_v23 = vrot.slane %v6323_v20, 5  ;;  %v6334_v25 = vsel %vm5669_vm2, %v5802_v13, %v1955_v31  ;;  %v5157_v13 = vld [vmem:[%s7261_s1 + $0x670] ss:$8 sps:$4 sm:$0xff]  }
  0xc0   : > { %2658 = vmatprep.subr.bf16.mxu1 %v5132_v60  ;;  %v6339_v60 = vsel %vm5669_vm2, %v5854_v49, %v1969_v24  ;;  %v2016_v49 = vrot.slane %v2014_v8, 4  ;;  %v4573_v24 = vrot.slane %v6134_v41, 9  ;;  %v3144_v41 = vrot.slane %v3142_v52, 4  ;;  %v6531_v52 = vld [vmem:[%s5616_s19 + $0x50] sm:$0xff] }
  0xc1   : > { %v6361_v9 = vsel %vm5838_vm5, %v4710_v59, %v3594_v23 }
  0xc2   : > { %2274 = vmatpush2.bf16.msra.mxu0 %v5127_v26  ;;  %v1997_v26 = vrot.slane %v1995_v18, 5  ;;  %v4617_v18 = vld [vmem:[%s5616_s19 + $0x38] sm:$0x11] }
  0xc3   : > { %2659 = vmatpush2.bf16.msra.mxu1 %v5130_v28  ;;  %2275 = vmatprep.subr.bf16.mxu0 %v5135_v29  ;;  %v5163_v28 = vld [vmem:[%s7261_s1 + $0x660] ss:$8 sps:$4 sm:$0xff]   ;;  %v4529_v29 = vcombine.high %v6334_v25, %v6339_v60  ;;  %v3151_v3 = vshll.u32 %v4617_v18, 16 }
  0xc4   : > { %2660 = vmatprep.subr.bf16.mxu1 %v5138_v33  ;;  %v4577_v33 = vcombine.high %v6345_v16, %v6351_v1 }
  0xc6   : > { %2276 = vmatpush2.bf16.msra.mxu0 %v5133_v34  ;;  %v2398_v34 = vrot.slane %v6304_v50, 5  ;;  %v5180_v50 = vld [vmem:[%s7261_s1 + $0x744] ss:$8 sps:$4 sm:$0xff]  }
  0xc7   : > { %2661 = vmatpush2.bf16.msra.mxu1 %v5136_v42  ;;  %2277 = vmatprep.subr.bf16.mxu0 %v5141_v36  ;;  %v2402_v42 = vrot.slane %v6307_v37, 5  ;;  %v5166_v36 = vld [vmem:[%s7261_s1 + $0x760] ss:$8 sps:$4 sm:$0xff]  }
  0xc8   : > { %2662 = vmatprep.subr.bf16.mxu1 %v5144_v38  ;;  %v6382_v38 = vld [vmem:[%s5616_s19 + $0x78] sm:$0x11] }
  0xc9   : > { %v2009_v58 = vshll.u32 %v6382_v38, 16  ;;  %v2406_v11 = vrot.slane %v6382_v38, 5 }
  0xca   : > { %2278 = vmatpush2.bf16.msra.mxu0 %v5139_v39  ;;  %v6385_v39 = vld [vmem:[%s5616_s19 + $0x88] sm:$0x11] }
  0xcb   : > { %2663 = vmatpush2.bf16.msra.mxu1 %v5142_v55  ;;  %2279 = vmatprep.subr.bf16.mxu0 %v5147_v56  ;;  %v4528_v55 = vcombine.low %v6334_v25, %v6339_v60  ;;  %v2020_v56 = vor.u32 %v2019_v2, %v2016_v49  ;;  %v2410_v14 = vrot.slane %v6385_v39, 5  ;;  %v5183_v25 = vld [vmem:[%s7261_s1 + $0x634] ss:$8 sps:$4 sm:$0xff]   ;;  %v3137_v49 = vshll.u32 %v6323_v20, 16  ;;  %v5181_v2 = vld [vmem:[%s7261_s1 + $0x630] ss:$8 sps:$4 sm:$0xff]  }
  0xcc   : > { %2664 = vmatprep.subr.bf16.mxu1 %v5150_v45  ;;  %v5174_v45 = vld [vmem:[%s7261_s1 + $0x754] ss:$8 sps:$4 sm:$0xff]   ;;  %v5192_v20 = vld [vmem:[%s7261_s1 + $0x724] ss:$8 sps:$4 sm:$0xff]  }
  0xcd   : > { %v2021_v31 = vrot.slane %v2020_v56, 4  ;;  %v5186_v60 = vld [vmem:[%s7261_s1 + $0x734] ss:$8 sps:$4 sm:$0xff]  }
  0xce   : > { %2280 = vmatpush2.bf16.msra.mxu0 %v5145_v61  ;;  %v6408_v61 = vsel %vm5669_vm2, %v5924_v30, %v1997_v26  ;;  %v3128_v30 = vshrl.u32 %v6320_v19, 16  ;;  %v4711_v26 = vrot.slane %v6390_v43, 9 }
  0xcf   : > { %2665 = vmatpush2.bf16.msra.mxu1 %v5148_v62  ;;  %2281 = vmatprep.subr.bf16.mxu0 %v5153_v15  ;;  %v6414_v62 = vsel %vm5838_vm5, %v4427_v51, %v2398_v34  ;;  %v6420_v15 = vsel %vm5838_vm5, %v4428_v17, %v2402_v42  ;;  %v5172_v51 = vld [vmem:[%s7261_s1 + $0x750] ss:$8 sps:$4 sm:$0xff]   ;;  %v5177_v17 = vld [vmem:[%s7261_s1 + $0x644] ss:$8 sps:$4 sm:$0xff]   ;;  %v4531_v37 = vcombine.high %v6403_v57, %v6408_v61  ;;  %v3139_v42 = vrot.slane %v3137_v49, 5 }
  0xd0   : > { %2666 = vmatprep.subr.bf16.mxu1 %v5156_v63  ;;  %v2023_v63 = vshll.u32 %v6385_v39, 16  ;;  %v4579_v8 = vcombine.high %v6414_v62, %v6420_v15  ;;  %v4530_v23 = vcombine.low %v6403_v57, %v6408_v61  ;;  %v4578_v16 = vcombine.low %v6414_v62, %v6420_v15  ;;  %v5198_v57 = vld [vmem:[%s7261_s1 + $0x714] ss:$8 sps:$4 sm:$0xff]   ;;  %v5193_v62 = vld [vmem:[%s7261_s1 + $0x610] ss:$8 sps:$4 sm:$0xff]  }
  0xd1   : > { %v5196_v15 = vld [vmem:[%s7261_s1 + $0x710] ss:$8 sps:$4 sm:$0xff]  }
  0xd2   : > { %2282 = vmatpush2.bf16.msra.mxu0 %v5151_v0  ;;  %v3131_v0 = vshll.u32 %v6320_v19, 16  ;;  %v5220_v49 = vld [vmem:[%s7261_s1 + $0x7d0] ss:$8 sps:$4 sm:$0xff]  }
  0xd3   : > { %2667 = vmatpush2.bf16.msra.mxu1 %v5154_v12  ;;  %3006 = vmatprep.subr.bf16.mxu0 %v5159_v6  ;;  %v3145_v12 = vshll.u32 %v6390_v43, 16  ;;  %v2011_v6 = vrot.slane %v2009_v58, 5  ;;  %v6520_v58 = vld [vmem:[%s5616_s19 + $0x40] sm:$0xff] }
  0xd4   : > { %3463 = vmatprep.subr.bf16.mxu1 %v5162_v10  ;;  %v2025_v10 = vrot.slane %v2023_v63, 5 }
  0xd5   : > { %2284 = vmatmul.mubr.bf16.vlgmr.msra.gmra.mxu0 %v4526_v21  ;;  %v3130_v21 = vrot.slane %v3128_v30, 4  ;;  %v3147_v59 = vrot.slane %v3145_v12, 5  ;;  %v6467_v1 = vsel %vm5669_vm2, %v5926_v32, %v2011_v6  ;;  %v6534_v12 = vld [vmem:[%s5616_s19 + $0x48] sm:$0x11] }
  0xd6   : > { %2669 = vmatmul.mubr.bf16.vlgmr.msra.gmra.mxu1 %v4574_v22  ;;  %3007 = vmatpush1.bf16.msra.mxu0 %v5157_v13  ;;  %v3133_v22 = vrot.slane %v3131_v0, 5  ;;  %v2026_v13 = vsel %vm5669_vm2, %v2021_v31, %v2025_v10  ;;  %v5199_v10 = vld [vmem:[%s7261_s1 + $0x600] ss:$8 sps:$4 sm:$0xff]  }
  0xd7   : > { %3464 = vmatpush1.bf16.msra.mxu1 %v5160_v40  ;;  %3008 = vmatprep.subr.bf16.mxu0 %v5165_v27  ;;  %v2407_v40 = vsel %vm5838_vm5, %v4429_v48, %v2406_v11  ;;  %v2411_v27 = vsel %vm5838_vm5, %v4573_v24, %v2410_v14  ;;  %v3148_v32 = vor.u32 %v3147_v59, %v3144_v41  ;;  %v5189_v48 = vld [vmem:[%s7261_s1 + $0x624] ss:$8 sps:$4 sm:$0xff]   ;;  %v5202_v11 = vld [vmem:[%s7261_s1 + $0x700] ss:$8 sps:$4 sm:$0xff]   ;;  %v5205_v41 = vld [vmem:[%s7261_s1 + $0x6f0] ss:$8 sps:$4 sm:$0xff]  }
  0xd8   : > { %3465 = vmatprep.subr.bf16.mxu1 %v5168_v46  ;;  %2293 = vmatprep.mubr.bf16.mxu0 %v4529_v29  ;;  %v3134_v46 = vor.u32 %v3133_v22, %v3130_v21  ;;  %v5187_v29 = vld [vmem:[%s7261_s1 + $0x620] ss:$8 sps:$4 sm:$0xff]   ;;  %v4581_v34 = vcombine.high %v2407_v40, %v2411_v27  ;;  %v4532_v61 = vcombine.low %v6467_v1, %v2026_v13  ;;  %v5210_v21 = vld [vmem:[%s7261_s1 + $0x7f4] ss:$8 sps:$4 sm:$0xff]   ;;  %v5208_v59 = vld [vmem:[%s7261_s1 + $0x7f0] ss:$8 sps:$4 sm:$0xff]  }
  0xd9   : > { %2678 = vmatprep.mubr.bf16.mxu1 %v4577_v33  ;;  %v4533_v33 = vcombine.high %v6467_v1, %v2026_v13  ;;  %v3149_v39 = vrot.slane %v3148_v32, 4  ;;  %v4580_v63 = vcombine.low %v2407_v40, %v2411_v27  ;;  %v4631_v24 = vcombine.high %v6320_v19, %v6390_v43  ;;  %v5219_v1 = vld [vmem:[%s7261_s1 + $0x6d4] ss:$8 sps:$4 sm:$0xff]   ;;  %v5217_v40 = vld [vmem:[%s7261_s1 + $0x6d0] ss:$8 sps:$4 sm:$0xff]  }
  0xda   : > { %3009 = vmatpush1.bf16.msra.mxu0 %v5163_v28  ;;  %v3598_v28 = vrot.slane %v4617_v18, 5  ;;  %v3135_v38 = vrot.slane %v3134_v46, 4  ;;  %v5207_v18 = vld [vmem:[%s7261_s1 + $0x6f4] ss:$8 sps:$4 sm:$0xff]   ;;  %v5228_v27 = vld [vmem:[%s7261_s1 + $0x7c4] ss:$8 sps:$4 sm:$0xff]  }
  0xdb   : > { %3466 = vmatpush1.bf16.msra.mxu1 %v5166_v36  ;;  %3010 = vmatprep.subr.bf16.mxu0 %v5171_v44  ;;  %v5190_v36 = vld [vmem:[%s7261_s1 + $0x720] ss:$8 sps:$4 sm:$0xff]   ;;  %v5195_v44 = vld [vmem:[%s7261_s1 + $0x614] ss:$8 sps:$4 sm:$0xff]  }
  0xdc   : > { %3467 = vmatprep.subr.bf16.mxu1 %v5174_v45  ;;  %v6500_v56 = vsel %vm5838_vm5, %v4711_v26, %v3598_v28  ;;  %v6524_v30 = vsel %vm5669_vm2, %v3135_v38, %v3139_v42  ;;  %v5222_v13 = vld [vmem:[%s7261_s1 + $0x7d4] ss:$8 sps:$4 sm:$0xff]   ;;  %v5223_v46 = vld [vmem:[%s7261_s1 + $0x6c0] ss:$8 sps:$4 sm:$0xff]   ;;  %v3170_v26 = vshrl.u32 %v6531_v52, 16  ;;  %v3173_v28 = vshll.u32 %v6531_v52, 16 }
  0xdd   : > { %2294 = vmatmul.mubr.bf16.gmra.mxu0 %v4528_v55  ;;  %v3153_v55 = vrot.slane %v3151_v3, 5  ;;  %v4718_v45 = vcombine.low %v6361_v9, %v6500_v56  ;;  %v5226_v32 = vld [vmem:[%s7261_s1 + $0x7c0] ss:$8 sps:$4 sm:$0xff]   ;;  %v5231_v3 = vld [vmem:[%s7261_s1 + $0x6b4] ss:$8 sps:$4 sm:$0xff]  }
  0xde   : > { %2679 = vmatmul.mubr.bf16.gmra.mxu1 %v4576_v47  ;;  %3011 = vmatpush1.bf16.msra.mxu0 %v5169_v53  ;;  %v4719_v47 = vcombine.high %v6361_v9, %v6500_v56  ;;  %v4712_v53 = vrot.slane %v6520_v58, 9  ;;  %v5240_v42 = vld [vmem:[%s7261_s1 + $0x7a4] ss:$8 sps:$4 sm:$0xff]  }
  0xdf   : > { %3468 = vmatpush1.bf16.msra.mxu1 %v5172_v51  ;;  %3012 = vmatprep.subr.bf16.mxu0 %v5177_v17  ;;  %v6528_v0 = vsel %vm5669_vm2, %v3149_v39, %v3153_v55  ;;  %v6538_v51 = vld [vmem:[%s5616_s19 + $0x58] sm:$0x11]  ;;  %v3602_v17 = vrot.slane %v6534_v12, 5  ;;  %v3172_v39 = vrot.slane %v3170_v26, 4  ;;  %v3175_v55 = vrot.slane %v3173_v28, 5 }
  0xe0   : > { %3469 = vmatprep.subr.bf16.mxu1 %v5180_v50  ;;  %2303 = vmatprep.mubr.bf16.mxu0 %v4531_v37  ;;  %v4713_v50 = vrot.slane %v6531_v52, 9  ;;  %v5201_v37 = vld [vmem:[%s7261_s1 + $0x604] ss:$8 sps:$4 sm:$0xff]   ;;  %v3606_v31 = vrot.slane %v6538_v51, 5 }
  0xe1   : > { %2688 = vmatprep.mubr.bf16.mxu1 %v4579_v8  ;;  %v5204_v8 = vld [vmem:[%s7261_s1 + $0x704] ss:$8 sps:$4 sm:$0xff]  }
  0xe2   : > { %3013 = vmatpush1.bf16.msra.mxu0 %v5175_v4  ;;  %v4671_v4 = vcombine.high %v6524_v30, %v6528_v0  ;;  %v6559_v6 = vsel %vm5838_vm5, %v4713_v50, %v3606_v31  ;;  %v3179_v50 = vshll.u32 %v6538_v51, 16  ;;  %v5249_v51 = vld [vmem:[%s7261_s1 + $0x684] ss:$8 sps:$4 sm:$0xff]  }
  0xe3   : > { %3470 = vmatpush1.bf16.msra.mxu1 %v5178_v5  ;;  %3014 = vmatprep.subr.bf16.mxu0 %v5183_v25  ;;  %v6555_v5 = vsel %vm5838_vm5, %v4712_v53, %v3602_v17  ;;  %v5216_v25 = vld [vmem:[%s7261_s1 + $0x7e4] ss:$8 sps:$4 sm:$0xff]   ;;  %v3165_v17 = vshll.u32 %v6534_v12, 16  ;;  %v5244_v12 = vld [vmem:[%s7261_s1 + $0x790] ss:$8 sps:$4 sm:$0xff]  }
  0xe4   : > { %3471 = vmatprep.subr.bf16.mxu1 %v5186_v60  ;;  %v4721_v14 = vcombine.high %v6555_v5, %v6559_v6  ;;  %v4720_v22 = vcombine.low %v6555_v5, %v6559_v6  ;;  %v5211_v60 = vld [vmem:[%s7261_s1 + $0x6e0] ss:$8 sps:$4 sm:$0xff]  }
  0xe5   : > { %2304 = vmatmul.mubr.bf16.gmra.mxu0 %v4530_v23  ;;  %v5213_v23 = vld [vmem:[%s7261_s1 + $0x6e4] ss:$8 sps:$4 sm:$0xff]  }
  0xe6   : > { %2689 = vmatmul.mubr.bf16.gmra.mxu1 %v4578_v16  ;;  %3015 = vmatpush1.bf16.msra.mxu0 %v5181_v2  ;;  %v5214_v16 = vld [vmem:[%s7261_s1 + $0x7e0] ss:$8 sps:$4 sm:$0xff]   ;;  %v5225_v2 = vld [vmem:[%s7261_s1 + $0x6c4] ss:$8 sps:$4 sm:$0xff]  }
  0xe7   : > { %3472 = vmatpush1.bf16.msra.mxu1 %v5184_v54  ;;  %3016 = vmatprep.subr.bf16.mxu0 %v5189_v48  ;;  %v5234_v54 = vld [vmem:[%s7261_s1 + $0x7b4] ss:$8 sps:$4 sm:$0xff]   ;;  %v3156_v48 = vshrl.u32 %v6520_v58, 16 }
  0xe8   : > { %3473 = vmatprep.subr.bf16.mxu1 %v5192_v20  ;;  %2313 = vmatprep.mubr.bf16.mxu0 %v4533_v33  ;;  %v3159_v20 = vshll.u32 %v6520_v58, 16  ;;  %v5232_v33 = vld [vmem:[%s7261_s1 + $0x7b0] ss:$8 sps:$4 sm:$0xff]  }
  0xe9   : > { %2698 = vmatprep.mubr.bf16.mxu1 %v4581_v34  ;;  %v5237_v34 = vld [vmem:[%s7261_s1 + $0x6a4] ss:$8 sps:$4 sm:$0xff]  }
  0xea   : > { %3017 = vmatpush1.bf16.msra.mxu0 %v5187_v29  ;;  %v5229_v29 = vld [vmem:[%s7261_s1 + $0x6b0] ss:$8 sps:$4 sm:$0xff]   ;;  %v3161_v38 = vrot.slane %v3159_v20, 5 }
  0xeb   : > { %3474 = vmatpush1.bf16.msra.mxu1 %v5190_v36  ;;  %3018 = vmatprep.subr.bf16.mxu0 %v5195_v44  ;;  %v3158_v36 = vrot.slane %v3156_v48, 4  ;;  %v6642_v44 = vld [vmem:[%s5616_s19 + $0x60] sm:$0xff] }
  0xec   : > { %3475 = vmatprep.subr.bf16.mxu1 %v5198_v57  ;;  %v6645_v57 = vld [vmem:[%s5616_s19 + $0x70] sm:$0xff]  ;;  %v3187_v31 = vshll.u32 %v6642_v44, 16 }
  0xed   : > { %2314 = vmatmul.mubr.bf16.gmra.mxu0 %v4532_v61  ;;  %v5235_v61 = vld [vmem:[%s7261_s1 + $0x6a0] ss:$8 sps:$4 sm:$0xff]   ;;  %v3162_v53 = vor.u32 %v3161_v38, %v3158_v36 }
  0xee   : > { %2699 = vmatmul.mubr.bf16.gmra.mxu1 %v4580_v63  ;;  %3019 = vmatpush1.bf16.msra.mxu0 %v5193_v62  ;;  %v5238_v62 = vld [vmem:[%s7261_s1 + $0x7a0] ss:$8 sps:$4 sm:$0xff]   ;;  %v5246_v63 = vld [vmem:[%s7261_s1 + $0x794] ss:$8 sps:$4 sm:$0xff]  }
  0xef   : > { %3476 = vmatpush1.bf16.msra.mxu1 %v5196_v15  ;;  %3020 = vmatprep.subr.bf16.mxu0 %v5201_v37  ;;  %v5243_v15 = vld [vmem:[%s7261_s1 + $0x694] ss:$8 sps:$4 sm:$0xff]   ;;  %v3184_v37 = vshrl.u32 %v6642_v44, 16 }
  0xf0   : > { %3477 = vmatprep.subr.bf16.mxu1 %v5204_v8  ;;  %3038 = vmatprep.mubr.bf16.mxu0 %v4631_v24  ;;  %v3176_v8 = vor.u32 %v3175_v55, %v3172_v39  ;;  %v3198_v24 = vshrl.u32 %v6645_v57, 16 }
  0xf1   : > { %3495 = vmatprep.mubr.bf16.mxu1 %v4671_v4  ;;  %v3201_v4 = vshll.u32 %v6645_v57, 16 }
  0xf2   : > { %3021 = vmatpush1.bf16.msra.mxu0 %v5199_v10  ;;  %v5241_v10 = vld [vmem:[%s7261_s1 + $0x690] ss:$8 sps:$4 sm:$0xff]  }
  0xf3   : > { %3478 = vmatpush1.bf16.msra.mxu1 %v5202_v11  ;;  %3022 = vmatprep.subr.bf16.mxu0 %v5207_v18  ;;  %v5252_v11 = vld [vmem:[%s7261_s1 + $0x784] ss:$8 sps:$4 sm:$0xff]   ;;  %v3163_v18 = vrot.slane %v3162_v53, 4 }
  0xf4   : > { %3479 = vmatprep.subr.bf16.mxu1 %v5210_v21  ;;  %v3167_v21 = vrot.slane %v3165_v17, 5 }
  0xf6   : > { %3023 = vmatpush2.bf16.msra.mxu0 %v5205_v41  ;;  %v3181_v41 = vrot.slane %v3179_v50, 5 }
  0xf7   : > { %3480 = vmatpush2.bf16.msra.mxu1 %v5208_v59  ;;  %3024 = vmatprep.subr.bf16.mxu0 %v5213_v23  ;;  %v3186_v59 = vrot.slane %v3184_v37, 4  ;;  %v3177_v23 = vrot.slane %v3176_v8, 4 }
  0xf8   : > { %3481 = vmatprep.subr.bf16.mxu1 %v5216_v25  ;;  %v6678_v25 = vld [vmem:[%s5616_s19 + $0x68] sm:$0x11] }
  0xf9   : > { %v3193_v48 = vshll.u32 %v6678_v25, 16  ;;  %v6709_v20 = vsel %vm5669_vm2, %v3177_v23, %v3181_v41 }
  0xfa   : > { %3025 = vmatpush2.bf16.msra.mxu0 %v5211_v60  ;;  %v3189_v60 = vrot.slane %v3187_v31, 5  ;;  %v5258_v31 = vld [vmem:[%s7261_s1 + $0x860] ss:$8 sps:$4 sm:$0xff]  }
  0xfb   : > { %3482 = vmatpush2.bf16.msra.mxu1 %v5214_v16  ;;  %3026 = vmatprep.subr.bf16.mxu0 %v5219_v1  ;;  %v3200_v16 = vrot.slane %v3198_v24, 4  ;;  %v3203_v1 = vrot.slane %v3201_v4, 5  ;;  %v3195_v36 = vrot.slane %v3193_v48, 5  ;;  %v6735_v24 = vld [vmem:[%s5616_s19 + $0x98] sm:$0x11] }
  0xfc   : > { %3483 = vmatprep.subr.bf16.mxu1 %v5222_v13  ;;  %v5247_v13 = vld [vmem:[%s7261_s1 + $0x680] ss:$8 sps:$4 sm:$0xff]   ;;  %v3190_v26 = vor.u32 %v3189_v60, %v3186_v59 }
  0xfd   : > { %v3204_v28 = vor.u32 %v3203_v1, %v3200_v16  ;;  %v3235_v16 = vshll.u32 %v6735_v24, 16 }
  0xfe   : > { %3027 = vmatpush2.bf16.msra.mxu0 %v5217_v40  ;;  %v6684_v40 = vld [vmem:[%s5616_s19 + $0x78] sm:$0x11]  ;;  %v3191_v39 = vrot.slane %v3190_v26, 4 }
  0xff   : > { %3484 = vmatpush2.bf16.msra.mxu1 %v5220_v49  ;;  %3028 = vmatprep.subr.bf16.mxu0 %v5225_v2  ;;  %v5250_v49 = vld [vmem:[%s7261_s1 + $0x780] ss:$8 sps:$4 sm:$0xff]   ;;  %v3205_v55 = vrot.slane %v3204_v28, 4 }
 0x100   : > { %3485 = vmatprep.subr.bf16.mxu1 %v5228_v27  ;;  %v6690_v2 = vld [vmem:[%s5616_s19 + $0x80] sm:$0xff]  ;;  %v6693_v27 = vld [vmem:[%s5616_s19 + $0x90] sm:$0xff] }
 0x102   : > { %3029 = vmatpush2.bf16.msra.mxu0 %v5223_v46  ;;  %v4670_v46 = vcombine.low %v6524_v30, %v6528_v0  ;;  %v3207_v30 = vshll.u32 %v6684_v40, 16  ;;  %v3226_v0 = vshrl.u32 %v6693_v27, 16 }
 0x103   : > { %3486 = vmatpush2.bf16.msra.mxu1 %v5226_v32  ;;  %3030 = vmatprep.subr.bf16.mxu0 %v5231_v3  ;;  %v4630_v32 = vcombine.low %v6320_v19, %v6390_v43  ;;  %v5257_v3 = vld [vmem:[%s7261_s1 + $0x874] ss:$8 sps:$4 sm:$0xff]   ;;  %v3212_v19 = vshrl.u32 %v6690_v2, 16  ;;  %v3215_v43 = vshll.u32 %v6690_v2, 16 }
 0x104   : > { %3487 = vmatprep.subr.bf16.mxu1 %v5234_v54  ;;  %v6704_v54 = vsel %vm5669_vm2, %v3163_v18, %v3167_v21  ;;  %v3228_v50 = vrot.slane %v3226_v0, 4  ;;  %v3196_v21 = vsel %vm5669_vm2, %v3191_v39, %v3195_v36  ;;  %v5273_v0 = vld [vmem:[%s7261_s1 + $0x834] ss:$8 sps:$4 sm:$0xff]   ;;  %v5271_v39 = vld [vmem:[%s7261_s1 + $0x830] ss:$8 sps:$4 sm:$0xff]  }
 0x105   : > { %v4673_v38 = vcombine.high %v6704_v54, %v6709_v20  ;;  %v3214_v53 = vrot.slane %v3212_v19, 4  ;;  %v3217_v17 = vrot.slane %v3215_v43, 5  ;;  %v4672_v18 = vcombine.low %v6704_v54, %v6709_v20  ;;  %v5266_v43 = vld [vmem:[%s7261_s1 + $0x840] ss:$8 sps:$4 sm:$0xff]  }
 0x106   : > { %3031 = vmatpush2.bf16.msra.mxu0 %v5229_v29  ;;  %v3229_v29 = vshll.u32 %v6693_v27, 16  ;;  %v4635_v54 = vcombine.high %v6642_v44, %v6645_v57 }
 0x107   : > { %3488 = vmatpush2.bf16.msra.mxu1 %v5232_v33  ;;  %3032 = vmatprep.subr.bf16.mxu0 %v5237_v34  ;;  %v5255_v33 = vld [vmem:[%s7261_s1 + $0x870] ss:$8 sps:$4 sm:$0xff]   ;;  %v5260_v34 = vld [vmem:[%s7261_s1 + $0x864] ss:$8 sps:$4 sm:$0xff]  }
 0x108   : > { %3489 = vmatprep.subr.bf16.mxu1 %v5240_v42  ;;  %v4633_v42 = vcombine.high %v6520_v58, %v6531_v52  ;;  %v3231_v37 = vrot.slane %v3229_v29, 5 }
 0x10a   : > { %3033 = vmatpush2.bf16.msra.mxu0 %v5235_v61  ;;  %v3209_v61 = vrot.slane %v3207_v30, 5  ;;  %v3232_v60 = vor.u32 %v3231_v37, %v3228_v50  ;;  %v3237_v30 = vrot.slane %v3235_v16, 5  ;;  %v4715_v50 = vrot.slane %v6645_v57, 9 }
 0x10b   : > { %3490 = vmatpush2.bf16.msra.mxu1 %v5238_v62  ;;  %3034 = vmatprep.subr.bf16.mxu0 %v5243_v15  ;;  %v3614_v37 = vrot.slane %v6684_v40, 5 }
 0x10c   : > { %3491 = vmatprep.subr.bf16.mxu1 %v5246_v63  ;;  %v6727_v63 = vld [vmem:[%s5616_s19 + $0x88] sm:$0x11]  ;;  %v3233_v28 = vrot.slane %v3232_v60, 4  ;;  %s5309_s19 = scalar_lea.vmem %s4201_s28, 128 }
 0x10d   : > { %v3221_v41 = vshll.u32 %v6727_v63, 16  ;;  %p5310_p12 = scmp.ne.s32.totalorder %s4201_s28, %s5309_s19  ;;  %p5317_p2 = scmp.lt.s32.totalorder %s5315_s14, %s5309_s19 }
 0x10e   : > { %3035 = vmatpush2.bf16.msra.mxu0 %v5241_v10  ;;  %v3238_v36 = vsel %vm5669_vm2, %v3233_v28, %v3237_v30  ;;  %v5290_v30 = vld [vmem:[%s7261_s1 + $0x8e4] ss:$8 sps:$4 sm:$0xff]  }
 0x10f   : > { %3492 = vmatpush2.bf16.msra.mxu1 %v5244_v12  ;;  %3036 = vmatprep.subr.bf16.mxu0 %v5249_v51  ;;  %v4632_v12 = vcombine.low %v6520_v58, %v6531_v52  ;;  %v5265_v51 = vld [vmem:[%s7261_s1 + $0x854] ss:$8 sps:$4 sm:$0xff]   ;;  %v3210_v58 = vsel %vm5669_vm2, %v3205_v55, %v3209_v61  ;;  %v3218_v52 = vor.u32 %v3217_v17, %v3214_v53  ;;  %v3223_v26 = vrot.slane %v3221_v41, 5  ;;  %v5276_v55 = vld [vmem:[%s7261_s1 + $0x824] ss:$8 sps:$4 sm:$0xff]   ;;  %p5311_p13 = pnand %p5310_p12, %p5464_p4  ;;  %p5318_p3 = por %p5317_p2, %p5316_p1 }
 0x110   : > { %3493 = vmatprep.subr.bf16.mxu1 %v5252_v11  ;;  %v4675_v48 = vcombine.high %v3196_v21, %v3210_v58  ;;  %v4714_v53 = vrot.slane %v6642_v44, 9  ;;  %v3610_v17 = vrot.slane %v6678_v25, 5 }
 0x111   : > { %v3219_v20 = vrot.slane %v3218_v52, 4  ;;  %p5312_p0 = pneg %p5311_p13 }
 0x112   : > { %3037 = vmatpush2.bf16.msra.mxu0 %v5247_v13  ;;  %v5263_v13 = vld [vmem:[%s7261_s1 + $0x850] ss:$8 sps:$4 sm:$0xff]  }
 0x113   : > { %3494 = vmatpush2.bf16.msra.mxu1 %v5250_v49  ;;  %3848 = vmatprep.subr.bf16.mxu0 %v5257_v3  ;;  %p5319_p5 = pnand %p5318_p3, %p5312_p0 }
 0x114   : > { %4763 = vmatprep.subr.bf16.mxu1 %v5257_v3 }
 0x115   : > { %v642_v62 = vpop.f32.mrf.mxu0  ;;  %3039 = vmatmul.mubr.bf16.vlgmr.msra.gmra.mxu0 %v4630_v32  ;;  %v5268_v32 = vld [vmem:[%s7261_s1 + $0x844] ss:$8 sps:$4 sm:$0xff]  }
 0x116   : > { %v1070_v15 = vpop.f32.mrf.mxu1  ;;  %3496 = vmatmul.mubr.bf16.vlgmr.msra.gmra.mxu1 %v4670_v46  ;;  %3849 = vmatpush1.bf16.msra.mxu0 %v5255_v33 }
 0x117   : > { %v6729_v8 = vadd.f32 %v1070_v15, %v642_v62  ;;  %4779 = vmatpush1.bf16.msra.mxu1 %v5255_v33  ;;  %v644_v4 = vpop.f32.mrf.mxu0  ;;  %3850 = vmatprep.subr.bf16.mxu0 %v5260_v34  ;;  %v4634_v33 = vcombine.low %v6642_v44, %v6645_v57  ;;  %v4637_v62 = vcombine.high %v6690_v2, %v6693_v27 }
 0x118   : > { %v1072_v10 = vpop.f32.mrf.mxu1  ;;  %4764 = vmatprep.subr.bf16.mxu1 %v5260_v34  ;;  %3048 = vmatprep.mubr.bf16.mxu0 %v4633_v42  ;;  %v4674_v34 = vcombine.low %v3196_v21, %v3210_v58  ;;  %v3224_v42 = vsel %vm5669_vm2, %v3219_v20, %v3223_v26  ;;  %v4636_v44 = vcombine.low %v6690_v2, %v6693_v27  ;;  %v5279_v21 = vld [vmem:[%s7261_s1 + $0x810] ss:$8 sps:$4 sm:$0xff]  }
 0x119   : > { %v6742_v11 = vadd.f32 %v1072_v10, %v644_v4  ;;  %3505 = vmatprep.mubr.bf16.mxu1 %v4673_v38  ;;  %v646_v59 = vpop.f32.mrf.mxu0  ;;  %v4677_v15 = vcombine.high %v3224_v42, %v3238_v36  ;;  %v5281_v4 = vld [vmem:[%s7261_s1 + $0x814] ss:$8 sps:$4 sm:$0xff]   ;;  %v4676_v25 = vcombine.low %v3224_v42, %v3238_v36  ;;  %v5285_v26 = vld [vmem:[%s7261_s1 + $0x8f0] ss:$8 sps:$4 sm:$0xff]  }
 0x11a   : > { %v1074_v23 = vpop.f32.mrf.mxu1  ;;  %3851 = vmatpush1.bf16.msra.mxu0 %v5258_v31 }
 0x11b   : > { %v6752_v1 = vadd.f32 %v1074_v23, %v646_v59  ;;  %4780 = vmatpush1.bf16.msra.mxu1 %v5258_v31  ;;  %v648_v49 = vpop.f32.mrf.mxu0  ;;  %3852 = vmatprep.subr.bf16.mxu0 %v5265_v51  ;;  %v5274_v31 = vld [vmem:[%s7261_s1 + $0x820] ss:$8 sps:$4 sm:$0xff]   ;;  %v5284_v59 = vld [vmem:[%s7261_s1 + $0x804] ss:$8 sps:$4 sm:$0xff]  }
 0x11c   : > { %v1076_v46 = vpop.f32.mrf.mxu1  ;;  %4765 = vmatprep.subr.bf16.mxu1 %v5265_v51  ;;  %v6800_v51 = vsel %vm5838_vm5, %v4714_v53, %v3610_v17 }
 0x11d   : > { %v6760_v3 = vadd.f32 %v1076_v46, %v648_v49  ;;  %3049 = vmatmul.mubr.bf16.gmra.mxu0 %v4632_v12  ;;  %v652_v19 = vpop.f32.mrf.mxu0  ;;  %v5287_v46 = vld [vmem:[%s7261_s1 + $0x8f4] ss:$8 sps:$4 sm:$0xff]  }
 0x11e   : > { %3506 = vmatmul.mubr.bf16.gmra.mxu1 %v4672_v18  ;;  %3853 = vmatpush1.bf16.msra.mxu0 %v5263_v13  ;;  %v6804_v18 = vsel %vm5838_vm5, %v4715_v50, %v3614_v37  ;;  %v5294_v50 = vld [vmem:[%s7261_s1 + $0x8c0] ss:$8 sps:$4 sm:$0xff]  }
 0x11f   : > { %4781 = vmatpush1.bf16.msra.mxu1 %v5263_v13  ;;  %3854 = vmatprep.subr.bf16.mxu0 %v5268_v32  ;;  %v654_v29 = vpop.f32.mrf.mxu0  ;;  %v4723_v60 = vcombine.high %v6800_v51, %v6804_v18  ;;  %v5282_v13 = vld [vmem:[%s7261_s1 + $0x800] ss:$8 sps:$4 sm:$0xff]  }
 0x120   : > { %4766 = vmatprep.subr.bf16.mxu1 %v5268_v32  ;;  %3058 = vmatprep.mubr.bf16.mxu0 %v4635_v54  ;;  %v1080_v57 = vpop.f32.mrf.mxu1 }
 0x121   : > { %3515 = vmatprep.mubr.bf16.mxu1 %v4675_v48  ;;  %v656_v38 = vpop.f32.mrf.mxu0  ;;  %v6796_v40 = vadd.f32 %v1080_v57, %v652_v19  ;;  %v5300_v57 = vld [vmem:[%s7261_s1 + $0x8a0] ss:$8 sps:$4 sm:$0xff]  }
 0x122   : > { %3855 = vmatpush1.bf16.msra.mxu0 %v5266_v43  ;;  %v1082_v41 = vpop.f32.mrf.mxu1 }
 0x123   : > { %4782 = vmatpush1.bf16.msra.mxu1 %v5266_v43  ;;  %3856 = vmatprep.subr.bf16.mxu0 %v5273_v0  ;;  %v658_v61 = vpop.f32.mrf.mxu0  ;;  %v6812_v23 = vadd.f32 %v1082_v41, %v654_v29  ;;  %v5288_v29 = vld [vmem:[%s7261_s1 + $0x8e0] ss:$8 sps:$4 sm:$0xff]   ;;  %v4716_v41 = vrot.slane %v6690_v2, 9 }
 0x124   : > { %4767 = vmatprep.subr.bf16.mxu1 %v5273_v0  ;;  %v1084_v58 = vpop.f32.mrf.mxu1 }
 0x125   : > { %3059 = vmatmul.mubr.bf16.gmra.mxu0 %v4634_v33  ;;  %v662_v7 = vpop.f32.mrf.mxu0  ;;  %v6816_v16 = vadd.f32 %v1084_v58, %v656_v38  ;;  %v4717_v58 = vrot.slane %v6693_v27, 9 }
 0x126   : > { %3516 = vmatmul.mubr.bf16.gmra.mxu1 %v4674_v34  ;;  %3857 = vmatpush1.bf16.msra.mxu0 %v5271_v39  ;;  %v1086_v49 = vpop.f32.mrf.mxu1  ;;  %v5293_v34 = vld [vmem:[%s7261_s1 + $0x8d4] ss:$8 sps:$4 sm:$0xff]  }
 0x127   : > { %4783 = vmatpush1.bf16.msra.mxu1 %v5271_v39  ;;  %3858 = vmatprep.subr.bf16.mxu0 %v5276_v55  ;;  %v664_v10 = vpop.f32.mrf.mxu0  ;;  %v6824_v32 = vadd.f32 %v1086_v49, %v658_v61 }
 0x128   : > { %4768 = vmatprep.subr.bf16.mxu1 %v5276_v55  ;;  %3068 = vmatprep.mubr.bf16.mxu0 %v4637_v62  ;;  %v5291_v55 = vld [vmem:[%s7261_s1 + $0x8d0] ss:$8 sps:$4 sm:$0xff]   ;;  %v5296_v62 = vld [vmem:[%s7261_s1 + $0x8c4] ss:$8 sps:$4 sm:$0xff]  }
 0x129   : > { %3525 = vmatprep.mubr.bf16.mxu1 %v4677_v15  ;;  %v666_v12 = vpop.f32.mrf.mxu0  ;;  %v1090_v54 = vpop.f32.mrf.mxu1 }
 0x12a   : > { %3859 = vmatpush1.bf16.msra.mxu0 %v5274_v31  ;;  %v6829_v20 = vadd.f32 %v1090_v54, %v662_v7 }
 0x12b   : > { %4784 = vmatpush1.bf16.msra.mxu1 %v5274_v31  ;;  %3860 = vmatprep.subr.bf16.mxu0 %v5281_v4  ;;  %v668_v52 = vpop.f32.mrf.mxu0  ;;  %v1092_v28 = vpop.f32.mrf.mxu1  ;;  %v5299_v31 = vld [vmem:[%s7261_s1 + $0x8b4] ss:$8 sps:$4 sm:$0xff]  }
 0x12c   : > { %4769 = vmatprep.subr.bf16.mxu1 %v5281_v4  ;;  %v6837_v19 = vadd.f32 %v1092_v28, %v664_v10  ;;  %v5297_v10 = vld [vmem:[%s7261_s1 + $0x8b0] ss:$8 sps:$4 sm:$0xff]  }
 0x12d   : > { %3069 = vmatmul.mubr.bf16.gmra.mxu0 %v4636_v44  ;;  %v672_v48 = vpop.f32.mrf.mxu0  ;;  %v1094_v43 = vpop.f32.mrf.mxu1  ;;  %v5302_v44 = vld [vmem:[%s7261_s1 + $0x8a4] ss:$8 sps:$4 sm:$0xff]  }
 0x12e   : > { %3526 = vmatmul.mubr.bf16.gmra.mxu1 %v4676_v25  ;;  %3861 = vmatpush1.bf16.msra.mxu0 %v5279_v21  ;;  %v6839_v0 = vadd.f32 %v1094_v43, %v666_v12  ;;  %v5305_v25 = vld [vmem:[%s7261_s1 + $0x894] ss:$8 sps:$4 sm:$0xff]   ;;  %v5303_v12 = vld [vmem:[%s7261_s1 + $0x890] ss:$8 sps:$4 sm:$0xff]  }
 0x12f   : > { %4785 = vmatpush1.bf16.msra.mxu1 %v5279_v21  ;;  %3862 = vmatprep.subr.bf16.mxu0 %v5284_v59  ;;  %v1096_v33 = vpop.f32.mrf.mxu1  ;;  %v5308_v21 = vld [vmem:[%s7261_s1 + $0x884] ss:$8 sps:$4 sm:$0xff]  }
 0x130   : > { %4770 = vmatprep.subr.bf16.mxu1 %v5284_v59  ;;  %3880 = vmatprep.mubr.bf16.mxu0 %v4719_v47  ;;  %v674_v47 = vpop.f32.mrf.mxu0  ;;  %v6847_v42 = vadd.f32 %v1096_v33, %v668_v52  ;;  %v3618_v59 = vrot.slane %v6727_v63, 5  ;;  %v3622_v52 = vrot.slane %v6735_v24, 5  ;;  %v4722_v63 = vcombine.low %v6800_v51, %v6804_v18 }
 0x131   : > { %3900 = vmatprep.mubr.bf16.mxu1 %v4723_v60  ;;  %v1100_v36 = vpop.f32.mrf.mxu1  ;;  %v5306_v60 = vld [vmem:[%s7261_s1 + $0x880] ss:$8 sps:$4 sm:$0xff]  }
 0x132   : > { %3863 = vmatpush1.bf16.msra.mxu0 %v5282_v13  ;;  %v676_v38 = vpop.f32.mrf.mxu0  ;;  %v6849_v39 = vadd.f32 %v1100_v36, %v672_v48  ;;  %v3623_v2 = vsel %vm5838_vm5, %v4717_v58, %v3622_v52 }
 0x133   : > { %4786 = vmatpush1.bf16.msra.mxu1 %v5282_v13  ;;  %3864 = vmatprep.subr.bf16.mxu0 %v5287_v46  ;;  %v1102_v61 = vpop.f32.mrf.mxu1  ;;  %v3619_v13 = vsel %vm5838_vm5, %v4716_v41, %v3618_v59 }
 0x134   : > { %4771 = vmatprep.subr.bf16.mxu1 %v5287_v46  ;;  %v6857_v15 = vadd.f32 %v1102_v61, %v674_v47  ;;  %v678_v53 = vpop.f32.mrf.mxu0  ;;  %v4725_v27 = vcombine.high %v3619_v13, %v3623_v2  ;;  %v4724_v28 = vcombine.low %v3619_v13, %v3623_v2 }
 0x135   : > { %v1104_v7 = vpop.f32.mrf.mxu1 }
 0x136   : > { %3865 = vmatpush2.bf16.msra.mxu0 %v5285_v26  ;;  %v6859_v17 = vadd.f32 %v1104_v7, %v676_v38 }
 0x137   : > { %4787 = vmatpush2.bf16.msra.mxu1 %v5285_v26  ;;  %3866 = vmatprep.subr.bf16.mxu0 %v5290_v30  ;;  %v1106_v37 = vpop.f32.mrf.mxu1 }
 0x138   : > { %4772 = vmatprep.subr.bf16.mxu1 %v5290_v30  ;;  %v6867_v4 = vadd.f32 %v1106_v37, %v678_v53 }
 0x13a   : > { %3867 = vmatpush2.bf16.msra.mxu0 %v5288_v29 }
 0x13b   : > { %4788 = vmatpush2.bf16.msra.mxu1 %v5288_v29  ;;  %3868 = vmatprep.subr.bf16.mxu0 %v5293_v34 }
 0x13c   : > { %4773 = vmatprep.subr.bf16.mxu1 %v5293_v34 }
 0x13e   : > { %3869 = vmatpush2.bf16.msra.mxu0 %v5291_v55 }
 0x13f   : > { %4789 = vmatpush2.bf16.msra.mxu1 %v5291_v55  ;;  %3870 = vmatprep.subr.bf16.mxu0 %v5296_v62 }
 0x140   : > { %4774 = vmatprep.subr.bf16.mxu1 %v5296_v62 }
 0x142   : > { %3871 = vmatpush2.bf16.msra.mxu0 %v5294_v50 }
 0x143   : > { %4790 = vmatpush2.bf16.msra.mxu1 %v5294_v50  ;;  %3872 = vmatprep.subr.bf16.mxu0 %v5299_v31 }
 0x144   : > { %4775 = vmatprep.subr.bf16.mxu1 %v5299_v31 }
 0x146   : > { %3873 = vmatpush2.bf16.msra.mxu0 %v5297_v10 }
 0x147   : > { %4791 = vmatpush2.bf16.msra.mxu1 %v5297_v10  ;;  %3874 = vmatprep.subr.bf16.mxu0 %v5302_v44 }
 0x148   : > { %4776 = vmatprep.subr.bf16.mxu1 %v5302_v44 }
 0x14a   : > { %3875 = vmatpush2.bf16.msra.mxu0 %v5300_v57 }
 0x14b   : > { %4792 = vmatpush2.bf16.msra.mxu1 %v5300_v57  ;;  %3876 = vmatprep.subr.bf16.mxu0 %v5305_v25 }
 0x14c   : > { %4777 = vmatprep.subr.bf16.mxu1 %v5305_v25 }
 0x14e   : > { %3877 = vmatpush2.bf16.msra.mxu0 %v5303_v12 }
 0x14f   : > { %4793 = vmatpush2.bf16.msra.mxu1 %v5303_v12  ;;  %3878 = vmatprep.subr.bf16.mxu0 %v5308_v21 }
 0x150   : > { %4778 = vmatprep.subr.bf16.mxu1 %v5308_v21 }
 0x152   : > { %3879 = vmatpush2.bf16.msra.mxu0 %v5306_v60 }
 0x153   : > { %4794 = vmatpush2.bf16.msra.mxu1 %v5306_v60 }
 0x155   : > { %v1458_v24 = vpop.f32.mrf.mxu0  ;;  %3881 = vmatmul.mubr.bf16.vlgmr.msra.gmra.mxu0 %v4718_v45 }
 0x156   : > { %v1828_v49 = vpop.f32.mrf.mxu1  ;;  %3901 = vmatmul.mubr.bf16.vlgmr.msra.gmra.mxu1 %v4722_v63  ;;  %v1513_v46 = vadd.f32 %v1458_v24, %v6729_v8  ;;  %3890 = vmatprep.mubr.bf16.mxu0 %v4721_v14 }
 0x157   : > { %3910 = vmatprep.mubr.bf16.mxu1 %v4725_v27  ;;  %v1460_v35 = vpop.f32.mrf.mxu0 }
 0x158   : > { %v1830_v54 = vpop.f32.mrf.mxu1  ;;  %v6907_v51 = vadd.f32 %v1828_v49, %v1513_v46  ;;  %v1514_v18 = vadd.f32 %v1460_v35, %v6742_v11 }
 0x159   : > { %v1462_v48 = vpop.f32.mrf.mxu0 }
 0x15a   : > { %v1832_v26 = vpop.f32.mrf.mxu1  ;;  %v6910_v30 = vadd.f32 %v1830_v54, %v1514_v18  ;;  %v1515_v9 = vadd.f32 %v1462_v48, %v6752_v1 }
 0x15b   : > { %v1464_v56 = vpop.f32.mrf.mxu0 }
 0x15c   : > { %v1834_v45 = vpop.f32.mrf.mxu1  ;;  %v1885_v8 = vadd.f32 %v1832_v26, %v1515_v9  ;;  %v1516_v43 = vadd.f32 %v1464_v56, %v6760_v3 }
 0x15d   : > { %v1468_v14 = vpop.f32.mrf.mxu0  ;;  %3891 = vmatmul.mubr.bf16.gmra.mxu0 %v4720_v22 }
 0x15e   : > { %3911 = vmatmul.mubr.bf16.gmra.mxu1 %v4724_v28  ;;  %v1838_v47 = vpop.f32.mrf.mxu1  ;;  %v1886_v11 = vadd.f32 %v1834_v45, %v1516_v43  ;;  %v1517_v29 = vadd.f32 %v1468_v14, %v6796_v40 }
 0x15f   : > { %v1470_v33 = vpop.f32.mrf.mxu0 }
 0x160   : > { %v1840_v34 = vpop.f32.mrf.mxu1  ;;  %v1518_v36 = vadd.f32 %v1470_v33, %v6812_v23  ;;  %v6919_v1 = vadd.f32 %v1838_v47, %v1517_v29 }
 0x161   : > { %v1472_v38 = vpop.f32.mrf.mxu0 }
 0x162   : > { %v1842_v55 = vpop.f32.mrf.mxu1  ;;  %v1519_v3 = vadd.f32 %v1472_v38, %v6816_v16  ;;  %v6922_v61 = vadd.f32 %v1840_v34, %v1518_v36  ;;  %v5387_v38 = vmov 0  }
 0x163   : > { %v1474_v62 = vpop.f32.mrf.mxu0  ;;  %4852 = vset.pattern.permute.xlu0 %v5387_v38 }
 0x164   : > { %v1844_v5 = vpop.f32.mrf.mxu1  ;;  %v1520_v6 = vadd.f32 %v1474_v62, %v6824_v32  ;;  %v6925_v22 = vadd.f32 %v1842_v55, %v1519_v3 }
 0x165   : > { %v1478_v7 = vpop.f32.mrf.mxu0 }
 0x166   : > { %v1848_v40 = vpop.f32.mrf.mxu1  ;;  %v1521_v53 = vadd.f32 %v1478_v7, %v6829_v20  ;;  %v6928_v50 = vadd.f32 %v1844_v5, %v1520_v6 }
 0x167   : > { %v1480_v23 = vpop.f32.mrf.mxu0 }
 0x168   : > { %v1850_v37 = vpop.f32.mrf.mxu1  ;;  %v1522_v31 = vadd.f32 %v1480_v23, %v6837_v19  ;;  %v6931_v10 = vadd.f32 %v1848_v40, %v1521_v53 }
 0x169   : > { %v1482_v16 = vpop.f32.mrf.mxu0 }
 0x16a   : > { %v1852_v44 = vpop.f32.mrf.mxu1  ;;  %v1523_v57 = vadd.f32 %v1482_v16, %v6839_v0  ;;  %v6934_v25 = vadd.f32 %v1850_v37, %v1522_v31 }
 0x16b   : > { %v1484_v32 = vpop.f32.mrf.mxu0 }
 0x16c   : > { %v1854_v12 = vpop.f32.mrf.mxu1  ;;  %v1524_v21 = vadd.f32 %v1484_v32, %v6847_v42  ;;  %v6937_v41 = vadd.f32 %v1852_v44, %v1523_v57 }
 0x16d   : > { %v1488_v20 = vpop.f32.mrf.mxu0 }
 0x16e   : > { %v1858_v59 = vpop.f32.mrf.mxu1  ;;  %v1525_v58 = vadd.f32 %v1488_v20, %v6849_v39  ;;  %v6940_v52 = vadd.f32 %v1854_v12, %v1524_v21 }
 0x16f   : > { %v1490_v19 = vpop.f32.mrf.mxu0 }
 0x170   : > { %v1860_v60 = vpop.f32.mrf.mxu1  ;;  %v1526_v13 = vadd.f32 %v1490_v19, %v6857_v15  ;;  %v6943_v2 = vadd.f32 %v1858_v59, %v1525_v58 }
 0x171   : > { %v1492_v0 = vpop.f32.mrf.mxu0 }
 0x172   : > { %v1862_v63 = vpop.f32.mrf.mxu1  ;;  %v1527_v27 = vadd.f32 %v1492_v0, %v6859_v17  ;;  %v6946_v24 = vadd.f32 %v1860_v60, %v1526_v13 }
 0x173   : > { %v1494_v42 = vpop.f32.mrf.mxu0 }
 0x174   : > { %v1864_v49 = vpop.f32.mrf.mxu1  ;;  %v1528_v46 = vadd.f32 %v1494_v42, %v6867_v4  ;;  %v6949_v35 = vadd.f32 %v1862_v63, %v1527_v27 }
 0x176   : > { %v6951_v39 = vadd.f32 %v1864_v49, %v1528_v46 }
 0x195   : > { %v2285_v54 = vpop.f32.mrf.mxu0 }
 0x196   : > { %v6959_v17 = vpop.f32.mrf.mxu1 }
 0x197   : > { %v6953_v18 = vpop.f32.mrf.mxu0 }
 0x198   : > { %v6961_v9 = vpop.f32.mrf.mxu1 }
 0x199   : > { %v2289_v15 = vpop.f32.mrf.mxu0 }
 0x19a   : > { %v6955_v48 = vadd.f32 %v2289_v15, %v1885_v8  ;;  %v6963_v56 = vpop.f32.mrf.mxu1 }
 0x19b   : > { %v2291_v26 = vpop.f32.mrf.mxu0 }
 0x19c   : > { %v6957_v28 = vadd.f32 %v2291_v26, %v1886_v11  ;;  %v6965_v4 = vpop.f32.mrf.mxu1 }
 0x19d   : > { %v2295_v45 = vpop.f32.mrf.mxu0 }
 0x19e   : > { %v6967_v43 = vpop.f32.mrf.mxu1 }
 0x19f   : > { %v2297_v14 = vpop.f32.mrf.mxu0 }
 0x1a0   : > { %v6969_v47 = vpop.f32.mrf.mxu1 }
 0x1a1   : > { %v6971_v29 = vpop.f32.mrf.mxu0 }
 0x1a2   : > { %v6973_v8 = vpop.f32.mrf.mxu1 }
 0x1a3   : > { %v6975_v11 = vpop.f32.mrf.mxu0 }
 0x1a4   : > { %v6977_v33 = vpop.f32.mrf.mxu1 }
 0x1a5   : > { %v2305_v34 = vpop.f32.mrf.mxu0 }
 0x1a6   : > { %v6979_v36 = vpop.f32.mrf.mxu1 }
 0x1a7   : > { %v2307_v55 = vpop.f32.mrf.mxu0 }
 0x1a8   : > { %v6981_v3 = vpop.f32.mrf.mxu1 }
 0x1a9   : > { %v6983_v62 = vpop.f32.mrf.mxu0 }
 0x1aa   : > { %v6985_v5 = vpop.f32.mrf.mxu1 }
 0x1ab   : > { %v6987_v6 = vpop.f32.mrf.mxu0 }
 0x1ac   : > { %v6989_v7 = vpop.f32.mrf.mxu1 }
 0x1ad   : > { %v6991_v40 = vpop.f32.mrf.mxu0 }
 0x1ae   : > { %v6993_v53 = vpop.f32.mrf.mxu1 }
 0x1af   : > { %v6995_v23 = vpop.f32.mrf.mxu0 }
 0x1b0   : > { %v6997_v37 = vpop.f32.mrf.mxu1 }
 0x1b1   : > { %v6999_v31 = vpop.f32.mrf.mxu0 }
 0x1b2   : > { %v7001_v16 = vpop.f32.mrf.mxu1 }
 0x1b3   : > { %v7003_v44 = vpop.f32.mrf.mxu0 }
 0x1b4   : > { %v7005_v57 = vpop.f32.mrf.mxu1 }
 0x1b5   : > { %7276 = vst [vmem:[#allocation6_spill] sm:$0xff] %v7005_v57 }
 0x1d5   : > { %v7007_v32 = vpop.f32.mrf.mxu0 }
 0x1d6   : > { %v7009_v12 = vpop.f32.mrf.mxu1 }
 0x1d7   : > { %7277 = vst [vmem:[#allocation7_spill] sm:$0xff] %v7009_v12  ;;  %v7011_v21 = vpop.f32.mrf.mxu0 }
 0x1d8   : > { %v7013_v20 = vpop.f32.mrf.mxu1 }
 0x1d9   : > { %7278 = vst [vmem:[#allocation8_spill] sm:$0xff] %v7013_v20  ;;  %v7015_v59 = vpop.f32.mrf.mxu0  ;;  %v7267_v20 = vlaneseq }
 0x1da   : > { %v7017_v58 = vpop.f32.mrf.mxu1 }
 0x1db   : > { %7279 = vst [vmem:[#allocation9_spill] sm:$0xff] %v7017_v58  ;;  %v7019_v19 = vpop.f32.mrf.mxu0 }
 0x1dc   : > { %v7021_v60 = vpop.f32.mrf.mxu1 }
 0x1dd   : > { %7280 = vst [vmem:[#allocation10_spill] sm:$0xff] %v7021_v60  ;;  %v7023_v13 = vpop.f32.mrf.mxu0 }
 0x1de   : > { %v7025_v0 = vpop.f32.mrf.mxu1 }
 0x1df   : > { %7281 = vst [vmem:[#allocation11_spill] sm:$0xff] %v7025_v0  ;;  %v7027_v63 = vpop.f32.mrf.mxu0 }
 0x1e0   : > { %7282 = vst [vmem:[#allocation12_spill] sm:$0xff] %v7027_v63  ;;  %v7029_v27 = vpop.f32.mrf.mxu1 }
 0x1e1   : > { %7283 = vst [vmem:[#allocation13_spill] sm:$0xff] %v7029_v27  ;;  %v7031_v42 = vpop.f32.mrf.mxu0  ;;  %v7048_v27 = vshrl.u32 %v7267_v20, 7  ;;  %v4013_v20 = vld [vmem:[%s7263_s3] sm:$0x3] }
 0x1e2   : > { %7284 = vst [vmem:[#allocation14_spill] sm:$0xff] %v7031_v42  ;;  %v7033_v49 = vpop.f32.mrf.mxu1 }
 0x1e3   : > { %7285 = vst [vmem:[#allocation15_spill] sm:$0xff] %v7033_v49  ;;  %v7035_v46 = vpop.f32.mrf.mxu0  ;;  %7292 = vst [vmem:[#allocation22_spill] sm:$0xff] %v7048_v27 }
 0x1e4   : > { %7286 = vst [vmem:[#allocation16_spill] sm:$0xff] %v7035_v46  ;;  %v7037_v15 = vpop.f32.mrf.mxu1  ;;  %v3989_v46 = vsub.s32 0, %v7048_v27 }
 0x1e5   : > { %7287 = vst [vmem:[#allocation17_spill] sm:$0xff] %v7037_v15  ;;  %v3060_v26 = vpop.f32.mrf.mxu0  ;;  %v2340_v15 = vadd.f32 %v2285_v54, %v6907_v51  ;;  %v2344_v51 = vadd.f32 %v2295_v45, %v6919_v1  ;;  %v2345_v54 = vadd.f32 %v2297_v14, %v6922_v61  ;;  %v2348_v1 = vadd.f32 %v2305_v34, %v6931_v10 }
 0x1e6   : > { %v7039_v38 = vpop.f32.mrf.mxu1  ;;  %v2727_v45 = vadd.f32 %v6963_v56, %v6955_v48  ;;  %v2349_v14 = vadd.f32 %v2307_v55, %v6934_v25  ;;  %v2350_v48 = vadd.f32 %v6983_v62, %v6937_v41  ;;  %v2352_v25 = vadd.f32 %v6991_v40, %v6943_v2  ;;  %v7297_v40 = vld [vmem:[#allocation6_spill] sm:$0xff] }
 0x1e7   : > { %7288 = vst [vmem:[#allocation18_spill] sm:$0xff] %v7039_v38  ;;  %v3062_v60 = vpop.f32.mrf.mxu0  ;;  %v3993_v38 = vsub.s32 1, %v7048_v27  ;;  %v4057_v27 = vld [vmem:[%s7264_s4] sm:$0x3]  ;;  %v2729_v10 = vadd.f32 %v6967_v43, %v2344_v51  ;;  %v2353_v56 = vadd.f32 %v6995_v23, %v6946_v24  ;;  %v2354_v43 = vadd.f32 %v6999_v31, %v6949_v35 }
 0x1e8   : > { %v7041_v58 = vpop.f32.mrf.mxu1  ;;  %v2735_v62 = vadd.f32 %v6985_v5, %v2350_v48  ;;  %v7298_v31 = vld [vmem:[#allocation12_spill] sm:$0xff] }
 0x1e9   : > { %7289 = vst [vmem:[#allocation19_spill] sm:$0xff] %v7041_v58  ;;  %v7043_v0 = vpop.f32.mrf.mxu0  ;;  %v2341_v58 = vadd.f32 %v6953_v18, %v6910_v30  ;;  %v2725_v30 = vadd.f32 %v6959_v17, %v2340_v15  ;;  %v7083_v61 = vrot.slane %v4013_v20, %v3993_v38  ;;  %v2347_v17 = vadd.f32 %v6975_v11, %v6928_v50 }
 0x1ea   : > { %7290 = vst [vmem:[#allocation20_spill] sm:$0xff] %v7043_v0  ;;  %v7045_v12 = vpop.f32.mrf.mxu1  ;;  %v2351_v50 = vadd.f32 %v6987_v6, %v6940_v52  ;;  %v2734_v52 = vadd.f32 %v6981_v3, %v2349_v14  ;;  %v3099_v55 = vadd.f32 %v7023_v13, %v2729_v10  ;;  %v2738_v3 = vadd.f32 %v6997_v37, %v2353_v56  ;;  %v7304_v37 = vld [vmem:[#allocation10_spill] sm:$0xff]  ;;  %v7309_v10 = vld [vmem:[#allocation13_spill] sm:$0xff] }
 0x1eb   : > { %7291 = vst [vmem:[#allocation21_spill] sm:$0xff] %v7045_v12  ;;  %v7050_v42 = vpop.f32.mrf.mxu0  ;;  %v3985_v12 = vld [vmem:[%s7262_s2] sm:$0x3]  ;;  %v2726_v57 = vadd.f32 %v6961_v9, %v2341_v58  ;;  %v2730_v9 = vadd.f32 %v6969_v47, %v2345_v54  ;;  %v2355_v47 = vadd.f32 %v7003_v44, %v6951_v39  ;;  %v2732_v41 = vadd.f32 %v6977_v33, %v2347_v17  ;;  %v7301_v58 = vld [vmem:[#allocation14_spill] sm:$0xff] }
 0x1ec   : > { %7293 = vst [vmem:[#allocation23_spill] sm:$0xff] %v7050_v42  ;;  %v7052_v49 = vpop.f32.mrf.mxu1  ;;  %v7073_v18 = vrot.slane %v3985_v12, %v3989_v46  ;;  %v7077_v63 = vrot.slane %v3985_v12, %v3993_v38  ;;  %v3095_v11 = vadd.f32 %v7007_v32, %v2725_v30  ;;  %v2736_v39 = vadd.f32 %v6989_v7, %v2351_v50  ;;  %v7299_v32 = vld [vmem:[#allocation7_spill] sm:$0xff]  ;;  %v7302_v5 = vld [vmem:[#allocation16_spill] sm:$0xff] }
 0x1ed   : > { %7294 = vst [vmem:[#allocation24_spill] sm:$0xff] %v7052_v49  ;;  %v3070_v42 = vpop.f32.mrf.mxu0  ;;  %v7075_v49 = vrot.slane %v4013_v20, %v3989_v46  ;;  %v3096_v2 = vadd.f32 %v7011_v21, %v2726_v57  ;;  %v2737_v33 = vadd.f32 %v6993_v53, %v2352_v25  ;;  %v2739_v6 = vadd.f32 %v7001_v16, %v2354_v43  ;;  %v7300_v20 = vld [vmem:[#allocation8_spill] sm:$0xff]  ;;  %v7303_v53 = vld [vmem:[#allocation9_spill] sm:$0xff]  ;;  %v7305_v16 = vld [vmem:[#allocation11_spill] sm:$0xff] }
 0x1ee   : > { %v7065_v0 = vpop.f32.mrf.mxu1  ;;  %7296 = vst [vmem:[#allocation26_spill] sm:$0xff] %v7077_v63  ;;  %v7092_v63 = vrot.slane %v4057_v27, %v3989_v46  ;;  %v2740_v23 = vadd.f32 %v7297_v40, %v2355_v47  ;;  %v3100_v44 = vadd.f32 %v7298_v31, %v2730_v9  ;;  %v3104_v57 = vadd.f32 %v3062_v60, %v2734_v52  ;;  %v7312_v43 = vld [vmem:[#allocation17_spill] sm:$0xff] }
 0x1ef   : > { %7295 = vst [vmem:[#allocation25_spill] sm:$0xff] %v7065_v0  ;;  %v2346_v0 = vadd.f32 %v6971_v29, %v6925_v22  ;;  %v3072_v15 = vpop.f32.mrf.mxu0  ;;  %v2728_v22 = vadd.f32 %v6965_v4, %v6957_v28  ;;  %v7098_v29 = vrot.slane %v4057_v27, %v3993_v38  ;;  %v2733_v4 = vadd.f32 %v6979_v36, %v2348_v1  ;;  %v7306_v38 = vld [vmem:[#allocation18_spill] sm:$0xff] }
 0x1f0   : > { %v7090_v12 = vpop.f32.mrf.mxu1  ;;  %v3552_v21 = vadd.f32 %v7299_v32, %v3095_v11  ;;  %v3102_v13 = vadd.f32 %v7302_v5, %v2732_v41  ;;  %v3108_v17 = vadd.f32 %v3072_v15, %v2738_v3  ;;  %v3557_v9 = vadd.f32 %v7309_v10, %v3100_v44  ;;  %v7310_v48 = vld [vmem:[#allocation19_spill] sm:$0xff] }
 0x1f1   : > { %v2731_v28 = vadd.f32 %v6973_v8, %v2346_v0  ;;  %v3074_v34 = vpop.f32.mrf.mxu0  ;;  %v3097_v8 = vadd.f32 %v7015_v59, %v2727_v45  ;;  %v3098_v36 = vadd.f32 %v7019_v19, %v2728_v22  ;;  %v3103_v35 = vadd.f32 %v3060_v26, %v2733_v4  ;;  %v7307_v54 = vld [vmem:[#allocation20_spill] sm:$0xff] }
 0x1f2   : > { %v3531_v24 = vpop.f32.mrf.mxu1  ;;  %v3553_v59 = vadd.f32 %v7300_v20, %v3096_v2  ;;  %v3556_v26 = vadd.f32 %v7305_v16, %v3099_v55  ;;  %v3105_v60 = vadd.f32 %v7307_v54, %v2735_v62  ;;  %v3107_v45 = vadd.f32 %v3070_v42, %v2737_v33  ;;  %v7313_v55 = vld [vmem:[#allocation21_spill] sm:$0xff] }
 0x1f3   : > { %v3101_v19 = vadd.f32 %v7301_v58, %v2731_v28  ;;  %v3076_v7 = vpop.f32.mrf.mxu0  ;;  %v3554_v27 = vadd.f32 %v7303_v53, %v3097_v8  ;;  %v3555_v46 = vadd.f32 %v7304_v37, %v3098_v36  ;;  %v3560_v51 = vadd.f32 %v7306_v38, %v3103_v35  ;;  %v7308_v30 = vld [vmem:[#allocation23_spill] sm:$0xff] }
 0x1f4   : > { %v3533_v0 = vpop.f32.mrf.mxu1  ;;  %v3106_v1 = vadd.f32 %v7308_v30, %v2736_v39  ;;  %v3561_v50 = vadd.f32 %v7310_v48, %v3104_v57  ;;  %v7311_v28 = vld [vmem:[#allocation15_spill] sm:$0xff]  ;;  %v7142_v47 = vadd.f32 %v7312_v43, %v3102_v13  ;;  %v3109_v41 = vadd.f32 %v3074_v34, %v2739_v6  ;;  %v7314_v62 = vld [vmem:[#allocation24_spill] sm:$0xff] }
 0x1f5   : > { %v3558_v4 = vadd.f32 %v7311_v28, %v3101_v19  ;;  %v3110_v52 = vadd.f32 %v3076_v7, %v2740_v23  ;;  %v3562_v35 = vadd.f32 %v7313_v55, %v3105_v60  ;;  %v3565_v40 = vadd.f32 %v7090_v12, %v3108_v17  ;;  %v7316_v6 = vld [vmem:[#allocation26_spill] sm:$0xff] }
 0x1f6   : > { %v3563_v39 = vadd.f32 %v7314_v62, %v3106_v1  ;;  %v7315_v33 = vld [vmem:[#allocation25_spill] sm:$0xff] }
 0x1f7   : > { %v3564_v3 = vadd.f32 %v7315_v33, %v3107_v45  ;;  %v3567_v20 = vadd.f32 %v3533_v0, %v3110_v52 }
 0x215   : > { %v3882_v14 = vpop.f32.mrf.mxu0 }
 0x216   : > { %v3902_v22 = vpop.f32.mrf.mxu1  ;;  %v3937_v25 = vadd.f32 %v3882_v14, %v3552_v21  ;;  %v3566_v21 = vadd.f32 %v3531_v24, %v3109_v41 }
 0x217   : > { %v3945_v56 = vadd.f32 %v3902_v22, %v3560_v51  ;;  %v3884_v11 = vpop.f32.mrf.mxu0 }
 0x218   : > { %v3904_v2 = vpop.f32.mrf.mxu1  ;;  %v3997_v42 = vmul.f32 %v7073_v18, %v3937_v25  ;;  %v3938_v8 = vadd.f32 %v3884_v11, %v3553_v59 }
 0x219   : > { %v4005_v15 = vmul.f32 %v7073_v18, %v3945_v56  ;;  %v3946_v36 = vadd.f32 %v3904_v2, %v3561_v50  ;;  %v3886_v31 = vpop.f32.mrf.mxu0 }
 0x21a   : > { %v3906_v44 = vpop.f32.mrf.mxu1  ;;  %v3998_v23 = vmul.f32 %v7316_v6, %v3938_v8  ;;  %v3939_v32 = vadd.f32 %v3886_v31, %v3554_v27  ;;  %v4025_v5 = vadd.f32 %v7075_v49, %v3997_v42 }
 0x21b   : > { %v7151_v34 = vadd.f32 %v7075_v49, %v4005_v15  ;;  %v4006_v57 = vmul.f32 %v7316_v6, %v3946_v36  ;;  %v3947_v59 = vadd.f32 %v3906_v44, %v3562_v35  ;;  %v3888_v58 = vpop.f32.mrf.mxu0 }
 0x21c   : > { %v3908_v19 = vpop.f32.mrf.mxu1  ;;  %v3999_v7 = vmul.f32 %v7073_v18, %v3939_v32  ;;  %v3940_v53 = vadd.f32 %v3888_v58, %v3555_v46  ;;  %v4026_v24 = vadd.f32 %v7083_v61, %v3998_v23  ;;  %v4041_v0 = vmax.f32 %v4025_v5, 0.0 }
 0x21d   : > { %v4049_v13 = vmax.f32 %v7151_v34, 0.0  ;;  %v7158_v12 = vadd.f32 %v7083_v61, %v4006_v57  ;;  %v4007_v37 = vmul.f32 %v7073_v18, %v3947_v59  ;;  %v3948_v16 = vadd.f32 %v3908_v19, %v3563_v39  ;;  %v3892_v38 = vpop.f32.mrf.mxu0 }
 0x21e   : > { %v3912_v27 = vpop.f32.mrf.mxu1  ;;  %v4027_v54 = vadd.f32 %v7075_v49, %v3999_v7  ;;  %v4000_v60 = vmul.f32 %v7316_v6, %v3940_v53  ;;  %v3941_v30 = vadd.f32 %v3892_v38, %v3556_v26  ;;  %v4042_v14 = vmax.f32 %v4026_v24, 0.0 }
 0x21f   : > { %v4050_v51 = vmax.f32 %v7158_v12, 0.0  ;;  %v4008_v1 = vmul.f32 %v7316_v6, %v3948_v16  ;;  %v3949_v45 = vadd.f32 %v3912_v27, %v3564_v3  ;;  %v3894_v17 = vpop.f32.mrf.mxu0  ;;  %v4069_v22 = vmul.f32 %v7092_v63, %v4041_v0 }
 0x220   : > { %v3914_v46 = vpop.f32.mrf.mxu1  ;;  %v4043_v10 = vmax.f32 %v4027_v54, 0.0  ;;  %v4028_v48 = vadd.f32 %v7083_v61, %v4000_v60  ;;  %v4001_v50 = vmul.f32 %v7073_v18, %v3941_v30  ;;  %v3942_v25 = vadd.f32 %v3894_v17, %v3557_v9 }
 0x221   : > { %v4009_v56 = vmul.f32 %v7073_v18, %v3949_v45  ;;  %v3950_v28 = vadd.f32 %v3914_v46, %v3565_v40  ;;  %v3896_v43 = vpop.f32.mrf.mxu0  ;;  %v4070_v26 = vmul.f32 %v7098_v29, %v4042_v14  ;;  %v4035_v52 = vadd.f32 %v7075_v49, %v4007_v37 }
 0x222   : > { %v3916_v41 = vpop.f32.mrf.mxu1  ;;  %v4044_v11 = vmax.f32 %v4028_v48, 0.0  ;;  %v4029_v2 = vadd.f32 %v7075_v49, %v4001_v50  ;;  %v4002_v42 = vmul.f32 %v7316_v6, %v3942_v25  ;;  %v3943_v15 = vadd.f32 %v3896_v43, %v3558_v4  ;;  %v4758_v50 = vld [vmem:[%s7265_s5] ss:$0 sm:$0xff] }
 0x223   : > { %v4037_v8 = vadd.f32 %v7075_v49, %v4009_v56  ;;  %v4010_v36 = vmul.f32 %v7316_v6, %v3950_v28  ;;  %v3951_v9 = vadd.f32 %v3916_v41, %v3566_v21  ;;  %v3898_v55 = vpop.f32.mrf.mxu0  ;;  %v4085_v62 = vadd.f32 %v4070_v26, %v4069_v22 }
 0x224   : > { %v3918_v35 = vpop.f32.mrf.mxu1  ;;  %v4045_v39 = vmax.f32 %v4029_v2, 0.0  ;;  %v4030_v33 = vadd.f32 %v7083_v61, %v4002_v42  ;;  %v4003_v3 = vmul.f32 %v7073_v18, %v3943_v15  ;;  %v3944_v40 = vadd.f32 %v3898_v55, %v7142_v47 }
 0x225   : > { %v4053_v31 = vmax.f32 %v4037_v8, 0.0  ;;  %v4038_v44 = vadd.f32 %v7083_v61, %v4010_v36  ;;  %v4011_v4 = vmul.f32 %v7073_v18, %v3951_v9  ;;  %v3952_v34 = vadd.f32 %v3918_v35, %v3567_v20  ;;  %4086 = vadd.xlane.f32.xlu0 %v4085_v62 }
 0x226   : > { %v4046_v23 = vmax.f32 %v4030_v33, 0.0  ;;  %v4031_v57 = vadd.f32 %v7075_v49, %v4003_v3  ;;  %v4004_v32 = vmul.f32 %v7316_v6, %v3944_v40  ;;  %v4036_v21 = vadd.f32 %v7083_v61, %v4008_v1 }
 0x227   : > { %v4054_v59 = vmax.f32 %v4038_v44, 0.0  ;;  %v4039_v58 = vadd.f32 %v7075_v49, %v4011_v4  ;;  %v4012_v19 = vmul.f32 %v7316_v6, %v3952_v34  ;;  %v4051_v47 = vmax.f32 %v4035_v52, 0.0 }
 0x228   : > { %v4047_v5 = vmax.f32 %v4031_v57, 0.0  ;;  %v4032_v12 = vadd.f32 %v7083_v61, %v4004_v32  ;;  %v4052_v7 = vmax.f32 %v4036_v21, 0.0  ;;  %v4077_v18 = vmul.f32 %v7092_v63, %v4049_v13 }
 0x229   : > { %v4055_v20 = vmax.f32 %v4039_v58, 0.0  ;;  %v4040_v53 = vadd.f32 %v7083_v61, %v4012_v19  ;;  %v4079_v37 = vmul.f32 %v7092_v63, %v4051_v47  ;;  %v4078_v16 = vmul.f32 %v7098_v29, %v4050_v51 }
 0x22a   : > { %v4048_v38 = vmax.f32 %v4032_v12, 0.0  ;;  %v4080_v27 = vmul.f32 %v7098_v29, %v4052_v7  ;;  %v4071_v49 = vmul.f32 %v7092_v63, %v4043_v10  ;;  %v4072_v6 = vmul.f32 %v7098_v29, %v4044_v11  ;;  %v7318_v11 = vld [vmem:[#allocation22_spill] sm:$0xff] }
 0x22b   : > { %v4056_v24 = vmax.f32 %v4040_v53, 0.0  ;;  %v4097_v0 = vadd.f32 %v4078_v16, %v4077_v18  ;;  %v4073_v54 = vmul.f32 %v7092_v63, %v4045_v39  ;;  %v4074_v13 = vmul.f32 %v7098_v29, %v4046_v23 }
 0x22c   : > { %v4100_v60 = vadd.f32 %v4080_v27, %v4079_v37  ;;  %v4088_v30 = vadd.f32 %v4072_v6, %v4071_v49  ;;  %v4081_v61 = vmul.f32 %v7092_v63, %v4053_v31  ;;  %v4082_v1 = vmul.f32 %v7098_v29, %v4054_v59 }
 0x22d   : > { %4098 = vadd.xlane.f32.xlu0 %v4097_v0  ;;  %v4091_v51 = vadd.f32 %v4074_v13, %v4073_v54  ;;  %v4075_v45 = vmul.f32 %v7092_v63, %v4047_v5  ;;  %v4076_v17 = vmul.f32 %v7098_v29, %v4048_v38  ;;  %v4083_v14 = vmul.f32 %v7092_v63, %v4055_v20 }
 0x22e   : > { %4101 = vadd.xlane.f32.xlu1 %v4100_v60  ;;  %v4103_v46 = vadd.f32 %v4082_v1, %v4081_v61  ;;  %v4084_v22 = vmul.f32 %v7098_v29, %v4056_v24  ;;  %v7317_v29 = vlaneseq }
 0x22f   : > { %v4094_v10 = vadd.f32 %v4076_v17, %v4075_v45 }
 0x230   : > { %v4106_v48 = vadd.f32 %v4084_v22, %v4083_v14  ;;  %v4136_v41 = vand.u32 127, %v7317_v29 }
 0x231   : > { %4089 = vadd.xlane.f32.xlu0 %v4088_v30 }
 0x232   : > { %4092 = vadd.xlane.f32.xlu1 %v4091_v51  ;;  %v4139_v2 = vsub.s32 %v4136_v41, %v7318_v11 }
 0x235   : > { %4104 = vadd.xlane.f32.xlu0 %v4103_v46 }
 0x236   : > { %4095 = vadd.xlane.f32.xlu1 %v4094_v10 }
 0x23a   : > { %4107 = vadd.xlane.f32.xlu1 %v4106_v48 }
 0x24b   : > { %4116 = vperm.xlu0 %4852, %v4758_v50  }
 0x2ae   : > { %v4087_v25 = vpop.xlane.xlu0 %4086 }
 0x2b6   : > { %v4099_v56 = vpop.xlane.xlu0 %4098 }
 0x2b7   : > { %v4102_v28 = vpop.xlane.xlu1 %4101 }
 0x2ba   : > { %v4090_v63 = vpop.xlane.xlu0 %4089 }
 0x2bb   : > { %v4093_v43 = vpop.xlane.xlu1 %4092 }
 0x2be   : > { %v4105_v26 = vpop.xlane.xlu0 %4104 }
 0x2bf   : > { %v4096_v52 = vpop.xlane.xlu1 %4095 }
 0x2c3   : > { %v4108_v3 = vpop.xlane.xlu1 %4107 }
 0x2c6   : > { %v4117_v42 = vpop.permute.xlu0 %4116 }
 0x2c7   : > { %v4119_v15 = vadd.f32 %v4117_v42, %v4087_v25  ;;  %v4120_v8 = vadd.f32 %v4117_v42, %v4090_v63  ;;  %v4121_v36 = vadd.f32 %v4117_v42, %v4093_v43  ;;  %v4122_v9 = vadd.f32 %v4117_v42, %v4096_v52 }
 0x2c8   : > { %v4123_v55 = vadd.f32 %v4117_v42, %v4099_v56  ;;  %v4124_v35 = vadd.f32 %v4117_v42, %v4102_v28  ;;  %v4125_v40 = vadd.f32 %v4117_v42, %v4105_v26  ;;  %v4126_v44 = vadd.f32 %v4117_v42, %v4108_v3 }
 0x2c9   : > { %v4140_v62 = vrot.slane %v4119_v15, %v4139_v2  ;;  %v4144_v39 = vrot.slane %v4120_v8, %v4139_v2  ;;  %v4148_v33 = vrot.slane %v4121_v36, %v4139_v2  ;;  %v4152_v31 = vrot.slane %v4122_v9, %v4139_v2 }
 0x2ca   : > { %v4156_v34 = vrot.slane %v4123_v55, %v4139_v2  ;;  %v4160_v57 = vrot.slane %v4124_v35, %v4139_v2  ;;  %v4164_v21 = vrot.slane %v4125_v40, %v4139_v2  ;;  %v4168_v58 = vrot.slane %v4126_v44, %v4139_v2 }
 0x2cb   : > { %v4170_v4 = vsel %vm4169_vm6, %v4144_v39, %v4140_v62 }
 0x2cc   : > { %v4172_v23 = vsel %vm4171_vm7, %v4148_v33, %v4170_v4 }
 0x2cd   : > { %v4174_v32 = vsel %vm4173_vm8, %v4152_v31, %v4172_v23 }
 0x2ce   : > { %v4176_v59 = vsel %vm4175_vm9, %v4156_v34, %v4174_v32 }
 0x2cf   : > { %v4178_v19 = vsel %vm4177_vm10, %v4160_v57, %v4176_v59 }
 0x2d0   : > { %v4180_v47 = vsel %vm4179_vm11, %v4164_v21, %v4178_v19 }
 0x2d1   : > { %v4182_v5 = vsel %vm4181_vm12, %v4168_v58, %v4180_v47 }
 0x2d2   : > { %4185 = vst.msk [vmem:[%s328_s27] sm:$0xff] %vm4184_vm13, %v4182_v5 }
 0x2d3   : > { %5322 = shalt.err (!%p5319_p5)
}
 0x2d4   : > { %s5323_s15 = scalar_lea.hbm %s7218_s11, 128  ;;  %s5327_s17 = scalar_lea.hbm %s7266_s6, 256 }
 0x2d5   : > { %p5324_p6 = scmp.ne.s32.totalorder %s7218_s11, %s5323_s15  ;;  %p5328_p10 = scmp.lt.s32.totalorder %s7218_s11, %s7266_s6 }
 0x2d6   : > { %p5329_p11 = scmp.lt.s32.totalorder %s5327_s17, %s5323_s15 }
 0x2d7   : > { %p5325_p7 = pnand %p5324_p6, %p5464_p4 }
 0x2d8   : > { %p5330_p12 = por %p5329_p11, %p5328_p10 }
 0x2d9   : > { %p5326_p9 = pneg %p5325_p7 }
 0x2db   : > { %p5331_p13 = pnand %p5330_p12, %p5326_p9 }
 0x2dd   : > { %5334 = shalt.err (!%p5331_p13)
}
 0x2de   : > { %4796 = dma.vmem_to_hbm [thread:$0]  (%p5464_p4), %s4201_s28, 128, %s7218_s11, %s4187_s24  }
 0x2df PF: > { %p4802_p0 = scmp.ge.s32.totalorder %s5385_s26, 2  ;;  %s4212_s30 = sand.u32 1, %s5365_s21  }
 0x2e0   : > { %s4213_s8 = scalar_lea.sflag [#allocation4], %s4212_s30 }
 0x2e1   : > { %p4799_p1 = pnand %p4802_p0, %p5471_p8 }
 0x2e3   : > { %p4800_p2 = pneg %p4799_p1 }
 0x2e5   : > { %5360 = dma.done.wait (%p4800_p2), %s4213_s8, 128  }
 0x2e6   : > { %5362 = vsyncadd (%p4800_p2), %s4213_s8, 4294967168  ;;  %s19_s26 = sadd.s32 1, %s5385_s26   ;;  %s7319_s21 = smov %s5369_s22 }
 0x2e7   : > { %p16_p3 = scmp.ge.s32.totalorder %s19_s26, 4   ;;  %s7320_s22 = smov %s5373_s23 }
 0x2e8   : > { %s7321_s23 = smov %s5477_s10  ;;  %s7322_s24 = smov %s5381_s25 }
 0x2e9   : > { %s7323_s25 = smov %s7325_s29  ;;  %18 = sbr.rel (!%p16_p3) target bundleno = 4 (0x4), region = 96 }
 0x2ee   :  { %4218 = vsyncpa [#allocation4], 1 }
 0x2ef   :  { %4220 = vsyncpa [#allocation4 + $0x1], 1 }

// kernel: eam_forward.6
= control target key start
LH: loop header
LB: loop body
LE: loop exit
PB: predicated region body
PF: predicated region fallthrough
CT: control target
= control target key end

     0   :  { %s7871_s21 = smov 0   ;;  %s7873_s22 = smov 0   ;;  %s10837_s0 = inlined_call_operand.vmem [shape: bf16[2,10,10,64], index: 0, kind: input, shape index: {}]   ;;  %s10838_s1 = inlined_call_operand.vmem [shape: bf16[576,256], index: 1, kind: input, shape index: {}]   ;;  %s10839_s2 = inlined_call_operand.vmem [shape: bf16[2,10,10,256], index: 2, kind: input, shape index: {}]   ;;  %s10840_s3 = inlined_call_operand.vmem [shape: bf16[2304,256], index: 3, kind: input, shape index: {}]   ;;  %s10841_s4 = inlined_call_operand.vmem [shape: f32[1,256], index: 4, kind: input, shape index: {}]   ;;  %s10842_s5 = inlined_call_operand.vmem [shape: f32[1,256], index: 5, kind: input, shape index: {}]   ;;  %s10843_s6 = inlined_call_operand.vmem [shape: bf16[2,64,256], index: 6, kind: output, shape index: {}]  }
   0x1   :  { %s7875_s23 = smov 0  }
   0x2 LB: > { %s25_s24 = sadd.s32 1, %s7829_s22  ;;  %p6554_p0 = scmp.ge.s32.totalorder %s7833_s23, 1  ;;  %s7833_s23 = sphi %s7875_s23, %s16_s23   ;;  %s7829_s22 = sphi %s7873_s22, %s10952_s22   ;;  %s7825_s21 = sphi %s7871_s21, %s10951_s21  }
   0x3   : > { %p26_p1 = scmp.ge.s32.totalorder %s25_s24, 2  ;;  %p278_p2 = scmp.lt.s32.totalorder %s7833_s23, 3 }
   0x5   : > { %s10954_s24 = smov (%p26_p1, %s25_s24), 0  ;;  %p279_p3 = pnand %p6554_p0, %p278_p2 }
   0x7   : > { %282 = sbr.rel (%p279_p3) target bundleno = 669 (0x29d), region = 44 }
   0xc   : > { %v7229_v0 = vld [vmem:[%s10838_s1 + $0x34] ss:$8 sps:$4 sm:$0xff]   ;;  %p335_p4 = scmp.lt.s32.totalorder %s7825_s21, 1  ;;  %v7835_v2 = vmov 0   ;;  %v7233_v3 = vld [vmem:[%s10838_s1 + $0x30] ss:$8 sps:$4 sm:$0xff]  }
   0xd   : > { %v7231_v1 = vld [vmem:[%s10838_s1 + $0x74] ss:$8 sps:$4 sm:$0xff]   ;;  %507 = vmatprep.mubr.bf16.mxu0 %v7835_v2  ;;  %803 = vmatprep.mubr.bf16.mxu1 %v7835_v2  ;;  %v7234_v4 = vld [vmem:[%s10838_s1 + $0x70] ss:$8 sps:$4 sm:$0xff]   ;;  %v7235_v5 = vld [vmem:[%s10838_s1 + $0x24] ss:$8 sps:$4 sm:$0xff]  }
   0xe   : > { %483 = vmatprep.subr.bf16.mxu0 %v7229_v0  ;;  %s10956_s21 = smov (!%p335_p4, %s7825_s21), 1  ;;  %7194 = vmatprep.subr.bf16.mxu1 %v7231_v1  ;;  %v7237_v6 = vld [vmem:[%s10838_s1 + $0x64] ss:$8 sps:$4 sm:$0xff]   ;;  %v7239_v7 = vld [vmem:[%s10838_s1 + $0x20] ss:$8 sps:$4 sm:$0xff]   ;;  %vm462_vm0 = vcmask 523264  }
   0xf   : > { %484 = vmatpush1.bf16.msra.mxu0 %v7233_v3  ;;  %7198 = vmatpush1.bf16.msra.mxu1 %v7234_v4  ;;  %v7917_v8 = vld [vmem:[%s10838_s1 + $0x60] ss:$8 sps:$4 sm:$0xff]   ;;  %s7202_s17 = smul.u32 80, %s10956_s21  ;;  %v7241_v9 = vld [vmem:[%s10838_s1 + $0x14] ss:$8 sps:$4 sm:$0xff]   ;;  %vm880_vm4 = vcmask 1042432  }
  0x10   : > { %485 = vmatprep.subr.bf16.mxu0 %v7235_v5  ;;  %7195 = vmatprep.subr.bf16.mxu1 %v7237_v6  ;;  %v7926_v10 = vld [vmem:[%s10838_s1 + $0x54] ss:$8 sps:$4 sm:$0xff]   ;;  %v7245_v11 = vld [vmem:[%s10838_s1 + $0x10] ss:$8 sps:$4 sm:$0xff]   ;;  %v7247_v13 = vld [vmem:[%s10838_s1 + $0x4] ss:$8 sps:$4 sm:$0xff]  }
  0x11   : > { %v7934_v12 = vld [vmem:[%s10838_s1 + $0x50] ss:$8 sps:$4 sm:$0xff]   ;;  %v7944_v14 = vld [vmem:[%s10838_s1 + $0x44] ss:$8 sps:$4 sm:$0xff]   ;;  %s7949_s12 = scalar_lea.vmem %s10837_s0, %s7202_s17  ;;  %v7251_v15 = vld [vmem:[%s10838_s1] ss:$8 sps:$4 sm:$0xff]  }
  0x12   : > { %v7957_v16 = vld [vmem:[%s10838_s1 + $0x40] ss:$8 sps:$4 sm:$0xff]   ;;  %v7971_v20 = vld [vmem:[%s7949_s12 + $0x24] sm:$0x1]  ;;  %vm564_vm1 = vsmask.f32 3328 }
  0x13   : > { %486 = vmatpush1.bf16.msra.mxu0 %v7239_v7  ;;  %7199 = vmatpush1.bf16.msra.mxu1 %v7917_v8  ;;  %v7960_v17 = vld [vmem:[%s7949_s12] sm:$0xf]  ;;  %v7964_v18 = vld [vmem:[%s7949_s12 + $0x8] sm:$0xf]  ;;  %v7977_v22 = vld [vmem:[%s7949_s12 + $0x2c] sm:$0x1] }
  0x14   : > { %487 = vmatprep.subr.bf16.mxu0 %v7241_v9  ;;  %7196 = vmatprep.subr.bf16.mxu1 %v7926_v10  ;;  %v7967_v19 = vld [vmem:[%s7949_s12 + $0x20] sm:$0xf]  ;;  %v7974_v21 = vld [vmem:[%s7949_s12 + $0x28] sm:$0xf]  ;;  %vm565_vm2 = vsmask.f32 7440  ;;  %v6559_v25 = vcombine.low %v7960_v17, %v7964_v18 }
  0x15   : > { %v624_v23 = vshrl.u32 %v7967_v19, 16  ;;  %v627_v24 = vshll.u32 %v7967_v19, 16  ;;  %v633_v26 = vshll.u32 %v7971_v20, 16  ;;  %v638_v27 = vshrl.u32 %v7974_v21, 16  ;;  %v7256_v32 = vld [vmem:[%s10838_s1 + $0xf4] ss:$8 sps:$4 sm:$0xff]   ;;  %vm7994_vm3 = vmor %vm564_vm1, %vm565_vm2 }
  0x16   : > { %v641_v28 = vshll.u32 %v7974_v21, 16  ;;  %v647_v31 = vshll.u32 %v7977_v22, 16  ;;  %v7999_v40 = vld [vmem:[%s7949_s12 + $0x10] sm:$0xf]  ;;  %v8006_v43 = vld [vmem:[%s7949_s12 + $0x18] sm:$0xf] }
  0x17   : > { %488 = vmatpush1.bf16.msra.mxu0 %v7245_v11  ;;  %7200 = vmatpush1.bf16.msra.mxu1 %v7934_v12  ;;  %v626_v29 = vrot.slane %v624_v23, 4  ;;  %v629_v30 = vrot.slane %v627_v24, 5  ;;  %v640_v33 = vrot.slane %v638_v27, 4  ;;  %v635_v36 = vrot.slane %v633_v26, 5  ;;  %v8002_v41 = vld [vmem:[%s7949_s12 + $0x30] sm:$0xf] }
  0x18   : > { %489 = vmatprep.subr.bf16.mxu0 %v7247_v13  ;;  %7197 = vmatprep.subr.bf16.mxu1 %v7944_v14  ;;  %v643_v34 = vrot.slane %v641_v28, 5  ;;  %v649_v39 = vrot.slane %v647_v31, 5  ;;  %v8009_v44 = vld [vmem:[%s7949_s12 + $0x34] sm:$0x1]  ;;  %v8012_v46 = vld [vmem:[%s7949_s12 + $0x38] sm:$0xf]  ;;  %v6560_v60 = vcombine.low %v7999_v40, %v8006_v43 }
  0x19   : > { %v630_v35 = vor.u32 %v629_v30, %v626_v29  ;;  %v8015_v47 = vld [vmem:[%s7949_s12 + $0x3c] sm:$0x1]  ;;  %v652_v48 = vshrl.u32 %v8002_v41, 16  ;;  %v655_v50 = vshll.u32 %v8002_v41, 16  ;;  %v661_v51 = vshll.u32 %v8009_v44, 16  ;;  %s7203_s18 = smul.u32 160, %s10956_s21 }
  0x1a   : > { %v644_v38 = vor.u32 %v643_v34, %v640_v33  ;;  %v666_v52 = vshrl.u32 %v8012_v46, 16  ;;  %v7254_v54 = vld [vmem:[%s10838_s1 + $0xf0] ss:$8 sps:$4 sm:$0xff]   ;;  %v669_v56 = vshll.u32 %v8012_v46, 16  ;;  %v675_v57 = vshll.u32 %v8015_v47, 16  ;;  %s7185_s7 = sshll.u32 %s10956_s21, 6 }
  0x1b   : > { %490 = vmatpush1.bf16.msra.mxu0 %v7251_v15  ;;  %7201 = vmatpush1.bf16.msra.mxu1 %v7957_v16  ;;  %v631_v42 = vrot.slane %v630_v35, 4  ;;  %v654_v55 = vrot.slane %v652_v48, 4  ;;  %v7259_v59 = vld [vmem:[%s10838_s1 + $0xe4] ss:$8 sps:$4 sm:$0xff]   ;;  %v657_v61 = vrot.slane %v655_v50, 5  ;;  %v568_v0 = vshrl.u32 %v7960_v17, 16  ;;  %s8684_s29 = scalar_lea.vmem %s10839_s2, %s7203_s18  ;;  %s10780_s9 = scalar_lea.vmem %s10843_s6, %s7185_s7 }
  0x1c   : > { %759 = vmatprep.subr.bf16.mxu0 %v7231_v1  ;;  %1213 = vmatprep.subr.bf16.mxu1 %v7256_v32  ;;  %v645_v45 = vrot.slane %v644_v38, 4  ;;  %v668_v62 = vrot.slane %v666_v52, 4  ;;  %v671_v63 = vrot.slane %v669_v56, 5  ;;  %v571_v1 = vshll.u32 %v7960_v17, 16  ;;  %v7257_v7 = vld [vmem:[%s10838_s1 + $0xe0] ss:$8 sps:$4 sm:$0xff]  }
  0x1d   : > { %v636_v49 = vsel %vm7994_vm3, %v631_v42, %v635_v36  ;;  %v658_v3 = vor.u32 %v657_v61, %v654_v55  ;;  %v582_v5 = vshrl.u32 %v7964_v18, 16  ;;  %v677_v9 = vrot.slane %v675_v57, 5  ;;  %v7263_v11 = vld [vmem:[%s10838_s1 + $0xd4] ss:$8 sps:$4 sm:$0xff]   ;;  %v7261_v28 = vld [vmem:[%s10838_s1 + $0xd0] ss:$8 sps:$4 sm:$0xff]  }
  0x1e   : > { %6571 = vmatmul.mubr.msk.bf16.vlgmr.msra.gmra.mxu0 %vm462_vm0, %v6559_v25  ;;  %v650_v53 = vsel %vm7994_vm3, %v645_v45, %v649_v39  ;;  %v570_v15 = vrot.slane %v568_v0, 4  ;;  %v573_v23 = vrot.slane %v571_v1, 5  ;;  %v7266_v29 = vld [vmem:[%s10838_s1 + $0xc4] ss:$8 sps:$4 sm:$0xff]   ;;  %v7279_v30 = vld [vmem:[%s10838_s1 + $0xb4] ss:$8 sps:$4 sm:$0xff]   ;;  %v6562_v56 = vcombine.low %v8002_v41, %v8012_v46 }
  0x1f   : > { %760 = vmatpush1.bf16.msra.mxu0 %v7234_v4  ;;  %517 = vmatprep.mubr.bf16.mxu0 %v7835_v2  ;;  %v6577_v58 = vcombine.low %v636_v49, %v650_v53  ;;  %v663_v4 = vrot.slane %v661_v51, 5  ;;  %v584_v25 = vrot.slane %v582_v5, 4  ;;  %v8070_v31 = vld [vmem:[%s7949_s12 + $0x4] sm:$0x1]  ;;  %v7264_v32 = vld [vmem:[%s10838_s1 + $0xc0] ss:$8 sps:$4 sm:$0xff]  }
  0x20   : > { %761 = vmatprep.subr.bf16.mxu0 %v7237_v6  ;;  %v585_v6 = vshll.u32 %v7964_v18, 16  ;;  %v8077_v33 = vld [vmem:[%s7949_s12 + $0xc] sm:$0x1]  ;;  %v574_v34 = vor.u32 %v573_v23, %v570_v15  ;;  %v8081_v36 = vld [vmem:[%s7949_s12 + $0x8] sm:$0xf]  ;;  %v599_v39 = vshll.u32 %v7999_v40, 16 }
  0x21   : > { %6589 = vmatmul.mubr.msk.bf16.vlgmr.msra.gmra.mxu1 %vm462_vm0, %v6577_v58  ;;  %v8084_v38 = vld [vmem:[%s7949_s12 + $0x10] sm:$0xf]  ;;  %v7271_v42 = vld [vmem:[%s10838_s1 + $0x174] ss:$8 sps:$4 sm:$0xff]   ;;  %v577_v45 = vshll.u32 %v8070_v31, 16  ;;  %v610_v48 = vshrl.u32 %v8006_v43, 16 }
  0x22   : > { %1214 = vmatpush1.bf16.msra.mxu1 %v7254_v54  ;;  %813 = vmatprep.mubr.bf16.mxu1 %v7835_v2  ;;  %v587_v26 = vrot.slane %v585_v6, 5  ;;  %v613_v49 = vshll.u32 %v8006_v43, 16  ;;  %v591_v50 = vshll.u32 %v8077_v33, 16  ;;  %v6631_v51 = vcombine.low %v8081_v36, %v8084_v38  ;;  %v7269_v54 = vld [vmem:[%s10838_s1 + $0x170] ss:$8 sps:$4 sm:$0xff]  }
  0x23   : > { %762 = vmatpush1.bf16.msra.mxu0 %v7917_v8  ;;  %v672_v8 = vor.u32 %v671_v63, %v668_v62  ;;  %1215 = vmatprep.subr.bf16.mxu1 %v7259_v59  ;;  %v575_v52 = vrot.slane %v574_v34, 4  ;;  %v7276_v55 = vld [vmem:[%s10838_s1 + $0x164] ss:$8 sps:$4 sm:$0xff]   ;;  %v579_v57 = vrot.slane %v577_v45, 5  ;;  %v601_v59 = vrot.slane %v599_v39, 5 }
  0x24   : > { %763 = vmatprep.subr.bf16.mxu0 %v7926_v10  ;;  %v659_v10 = vrot.slane %v658_v3, 4  ;;  %v588_v35 = vor.u32 %v587_v26, %v584_v25  ;;  %v593_v61 = vrot.slane %v591_v50, 5  ;;  %v8111_v62 = vld [vmem:[%s7949_s12 + $0x14] sm:$0x1]  ;;  %v612_v63 = vrot.slane %v610_v48, 4 }
  0x25   : > { %v673_v13 = vrot.slane %v672_v8, 4  ;;  %v615_v0 = vrot.slane %v613_v49, 5  ;;  %v8115_v1 = vld [vmem:[%s7949_s12 + $0x20] sm:$0xf]  ;;  %v8118_v3 = vld [vmem:[%s7949_s12 + $0x1c] sm:$0x1]  ;;  %v580_v8 = vsel %vm7994_vm3, %v575_v52, %v579_v57 }
  0x26   : > { %6572 = vmatmul.mubr.msk.bf16.gmra.mxu0 %vm462_vm0, %v6560_v60  ;;  %v664_v24 = vsel %vm7994_vm3, %v659_v10, %v663_v4  ;;  %1216 = vmatpush1.bf16.msra.mxu1 %v7257_v7  ;;  %v589_v53 = vrot.slane %v588_v35, 4  ;;  %v8108_v60 = vld [vmem:[%s7949_s12 + $0x18] sm:$0xf]  ;;  %v7274_v4 = vld [vmem:[%s10838_s1 + $0x160] ss:$8 sps:$4 sm:$0xff]   ;;  %v605_v7 = vshll.u32 %v8111_v62, 16 }
  0x27   : > { %527 = vmatprep.mubr.bf16.mxu0 %v7835_v2  ;;  %764 = vmatpush1.bf16.msra.mxu0 %v7934_v12  ;;  %v678_v27 = vsel %vm7994_vm3, %v673_v13, %v677_v9  ;;  %v7283_v5 = vld [vmem:[%s10838_s1 + $0x154] ss:$8 sps:$4 sm:$0xff]   ;;  %v616_v10 = vor.u32 %v615_v0, %v612_v63  ;;  %v6632_v13 = vcombine.low %v8108_v60, %v8115_v1  ;;  %v7281_v15 = vld [vmem:[%s10838_s1 + $0x150] ss:$8 sps:$4 sm:$0xff]   ;;  %vm881_vm5 = vcmask 1046532  }
  0x28   : > { %765 = vmatprep.subr.bf16.mxu0 %v7944_v14  ;;  %v6578_v12 = vcombine.low %v664_v24, %v678_v27  ;;  %1217 = vmatprep.subr.bf16.mxu1 %v7263_v11  ;;  %v6561_v14 = vcombine.low %v7967_v19, %v7974_v21  ;;  %v594_v9 = vsel %vm7994_vm3, %v589_v53, %v593_v61  ;;  %v619_v11 = vshll.u32 %v8118_v3, 16  ;;  %v7277_v24 = vld [vmem:[%s10838_s1 + $0xb0] ss:$8 sps:$4 sm:$0xff]   ;;  %v7293_v27 = vld [vmem:[%s10838_s1 + $0x144] ss:$8 sps:$4 sm:$0xff]   ;;  %vm8168_vm6 = vmor %vm880_vm4, %vm881_vm5 }
  0x29   : > { %v6575_v23 = vcombine.low %v580_v8, %v594_v9  ;;  %v607_v26 = vrot.slane %v605_v7, 5  ;;  %v6595_v34 = vrot.slane %v7967_v19, 9  ;;  %v901_v35 = vrot.slane %v7971_v20, 5  ;;  %v7302_v19 = vld [vmem:[%s10838_s1 + $0x1f4] ss:$8 sps:$4 sm:$0xff]  }
  0x2a   : > { %6590 = vmatmul.mubr.msk.bf16.gmra.mxu1 %vm462_vm0, %v6578_v12  ;;  %v8150_v12 = vld [vmem:[%s7949_s12 + $0x30] sm:$0xf]  ;;  %v905_v39 = vrot.slane %v7977_v22, 5  ;;  %v10855_v45 = vmov 0  ;;  %v7284_v20 = vld [vmem:[%s10838_s1 + $0xa0] ss:$8 sps:$4 sm:$0xff]  }
  0x2b   : > { %766 = vmatpush1.bf16.msra.mxu0 %v7957_v16  ;;  %1218 = vmatpush1.bf16.msra.mxu1 %v7261_v28  ;;  %v596_v16 = vshrl.u32 %v7999_v40, 16  ;;  %v8147_v28 = vld [vmem:[%s7949_s12 + $0x28] sm:$0xf]  ;;  %v10856_v45 = vsel %vm8168_vm6, 4294967295, %v10855_v45  ;;  %v8183_v22 = vsel %vm8168_vm6, %v6595_v34, %v901_v35  ;;  %v7289_v50 = vld [vmem:[%s10838_s1 + $0x94] ss:$8 sps:$4 sm:$0xff]  }
  0x2c   : > { %995 = vmatprep.subr.bf16.mxu0 %v7279_v30  ;;  %1237 = vmatprep.mubr.bf16.mxu1 %v7835_v2  ;;  %v7286_v30 = vld [vmem:[%s10838_s1 + $0xa4] ss:$8 sps:$4 sm:$0xff]   ;;  %10857 = vst [vmem:[#allocation3_spill] sm:$0xff] %v10856_v45  ;;  %v6633_v49 = vcombine.low %v8147_v28, %v8150_v12  ;;  %v6597_v52 = vrot.slane %v8002_v41, 9  ;;  %v909_v53 = vrot.slane %v8009_v44, 5  ;;  %v6592_v57 = vrot.slane %v7964_v18, 9 }
  0x2d   : > { %1219 = vmatprep.subr.bf16.mxu1 %v7266_v29  ;;  %v598_v58 = vrot.slane %v596_v16, 4  ;;  %v617_v29 = vrot.slane %v616_v10, 4  ;;  %v6596_v16 = vrot.slane %v7974_v21, 9  ;;  %v7287_v41 = vld [vmem:[%s10838_s1 + $0x90] ss:$8 sps:$4 sm:$0xff]   ;;  %v885_v44 = vrot.slane %v8070_v31, 5 }
  0x2e   : > { %6573 = vmatmul.mubr.msk.bf16.gmra.mxu0 %vm462_vm0, %v6561_v14  ;;  %v621_v14 = vrot.slane %v619_v11, 5  ;;  %v1327_v18 = vshrl.u32 %v8081_v36, 16  ;;  %v7296_v31 = vld [vmem:[%s10838_s1 + $0x84] ss:$8 sps:$4 sm:$0xff]   ;;  %v1330_v61 = vshll.u32 %v8081_v36, 16  ;;  %v1355_v7 = vshrl.u32 %v8108_v60, 16 }
  0x2f   : > { %537 = vmatprep.mubr.bf16.mxu0 %v7835_v2  ;;  %1220 = vmatpush1.bf16.msra.mxu1 %v7264_v32  ;;  %v602_v6 = vor.u32 %v601_v59, %v598_v58  ;;  %v7291_v32 = vld [vmem:[%s10838_s1 + $0x140] ss:$8 sps:$4 sm:$0xff]   ;;  %v8187_v48 = vsel %vm8168_vm6, %v6596_v16, %v905_v39  ;;  %v889_v59 = vrot.slane %v8077_v33, 5  ;;  %v8231_v0 = vld [vmem:[%s7949_s12 + $0xc] sm:$0x1]  ;;  %v1358_v8 = vshll.u32 %v8108_v60, 16 }
  0x30   : > { %1751 = vmatprep.subr.bf16.mxu1 %v7271_v42  ;;  %v622_v21 = vsel %vm7994_vm3, %v617_v29, %v621_v14  ;;  %v8228_v63 = vld [vmem:[%s7949_s12 + $0x40] sm:$0xf]  ;;  %v6593_v29 = vrot.slane %v7999_v40, 9  ;;  %v893_v14 = vrot.slane %v8111_v62, 5  ;;  %v7297_v34 = vld [vmem:[%s10838_s1 + $0x130] ss:$8 sps:$4 sm:$0xff]  }
  0x31   : > { %v603_v25 = vrot.slane %v602_v6, 4  ;;  %v8237_v6 = vld [vmem:[%s7949_s12 + $0x14] sm:$0x1]  ;;  %v7294_v9 = vld [vmem:[%s10838_s1 + $0x80] ss:$8 sps:$4 sm:$0xff]   ;;  %v890_v11 = vsel %vm8168_vm6, %v6592_v57, %v889_v59  ;;  %v6594_v35 = vrot.slane %v8006_v43, 9 }
  0x32   : > { %6643 = vmatmul.mubr.msk.bf16.vlgmr.msra.gmra.mxu1 %vm462_vm0, %v6631_v51  ;;  %v6601_v51 = vcombine.low %v8183_v22, %v8187_v48  ;;  %v897_v16 = vrot.slane %v8118_v3, 5  ;;  %v7305_v39 = vld [vmem:[%s10838_s1 + $0x124] ss:$8 sps:$4 sm:$0xff]   ;;  %v1383_v62 = vshrl.u32 %v8147_v28, 16  ;;  %v1400_v43 = vshll.u32 %v8150_v12, 16 }
  0x33   : > { %1752 = vmatpush1.bf16.msra.mxu1 %v7269_v54  ;;  %1247 = vmatprep.mubr.bf16.mxu1 %v7835_v2  ;;  %v608_v42 = vsel %vm7994_vm3, %v603_v25, %v607_v26  ;;  %v6598_v54 = vrot.slane %v8012_v46, 9  ;;  %v8209_v46 = vsel %vm8168_vm6, %v6597_v52, %v909_v53  ;;  %v1641_v25 = vrot.slane %v8231_v0, 5  ;;  %v8274_v40 = vld [vmem:[%s7949_s12 + $0x24] sm:$0x1] }
  0x34   : > { %1753 = vmatprep.subr.bf16.mxu1 %v7276_v55  ;;  %v913_v55 = vrot.slane %v8015_v47, 5  ;;  %v6576_v58 = vcombine.low %v608_v42, %v622_v21  ;;  %v8218_v47 = vld [vmem:[%s7949_s12 + $0x38] sm:$0xf]  ;;  %v6664_v26 = vrot.slane %v8084_v38, 9  ;;  %v8271_v42 = vld [vmem:[%s7949_s12 + $0x1c] sm:$0x1]  ;;  %v898_v52 = vsel %vm8168_vm6, %v6594_v35, %v897_v16 }
  0x35   : > { %v6665_v53 = vrot.slane %v8108_v60, 9  ;;  %v1653_v57 = vrot.slane %v8274_v40, 5  ;;  %v8345_v16 = vld [vmem:[%s7949_s12 + $0x3c] sm:$0x1]  ;;  %v1378_v48 = vshll.u32 %v8274_v40, 16 }
  0x36   : > { %6574 = vmatmul.mubr.msk.bf16.gmra.mxu0 %vm462_vm0, %v6562_v56  ;;  %v6591_v56 = vrot.slane %v7960_v17, 9  ;;  %v8213_v17 = vsel %vm8168_vm6, %v6598_v54, %v913_v55  ;;  %v1649_v54 = vrot.slane %v8271_v42, 5  ;;  %v6666_v55 = vrot.slane %v8115_v1, 9 }
  0x37   : > { %783 = vmatprep.mubr.bf16.mxu0 %v7835_v2  ;;  %1754 = vmatpush1.bf16.msra.mxu1 %v7274_v4  ;;  %v6602_v33 = vcombine.low %v8209_v46, %v8213_v17  ;;  %v1341_v4 = vshrl.u32 %v8084_v38, 16 }
  0x38   : > { %1755 = vmatprep.subr.bf16.mxu1 %v7283_v5  ;;  %v1344_v5 = vshll.u32 %v8084_v38, 16  ;;  %v886_v10 = vsel %vm8168_vm6, %v6591_v56, %v885_v44  ;;  %v7300_v56 = vld [vmem:[%s10838_s1 + $0x1f0] ss:$8 sps:$4 sm:$0xff]   ;;  %v1654_v35 = vsel %vm8168_vm6, %v6666_v55, %v1653_v57  ;;  %v1336_v55 = vshll.u32 %v8231_v0, 16 }
  0x39   : > { %v1350_v38 = vshll.u32 %v8237_v6, 16  ;;  %v7312_v0 = vld [vmem:[%s10838_s1 + $0x1d0] ss:$8 sps:$4 sm:$0xff]  }
  0x3a   : > { %6644 = vmatmul.mubr.msk.bf16.gmra.mxu1 %vm462_vm0, %v6632_v13  ;;  %v1369_v13 = vshrl.u32 %v8115_v1, 16 }
  0x3b   : > { %1257 = vmatprep.mubr.bf16.mxu1 %v7835_v2  ;;  %1756 = vmatpush1.bf16.msra.mxu1 %v7281_v15  ;;  %v6634_v15 = vcombine.low %v8218_v47, %v8228_v63 }
  0x3c   : > { %1757 = vmatprep.subr.bf16.mxu1 %v7293_v27  ;;  %v1645_v27 = vrot.slane %v8237_v6, 5  ;;  %v1665_v6 = vrot.slane %v8345_v16, 5 }
  0x3e   : > { %6587 = vmatmul.mubr.msk.bf16.vlgmr.msra.gmra.mxu0 %vm462_vm0, %v6575_v23  ;;  %v7299_v23 = vld [vmem:[%s10838_s1 + $0x134] ss:$8 sps:$4 sm:$0xff]   ;;  %v1646_v21 = vsel %vm8168_vm6, %v6664_v26, %v1645_v27  ;;  %v8327_v26 = vld [vmem:[%s7949_s12 + $0x18] sm:$0xf] }
  0x3f   : > { %996 = vmatpush1.bf16.msra.mxu0 %v7277_v24  ;;  %793 = vmatprep.mubr.bf16.mxu0 %v7835_v2  ;;  %v6663_v24 = vrot.slane %v8081_v36, 9  ;;  %v7306_v36 = vld [vmem:[%s10838_s1 + $0x1e0] ss:$8 sps:$4 sm:$0xff]  }
  0x40   : > { %997 = vmatprep.subr.bf16.mxu0 %v7286_v30  ;;  %1758 = vmatpush1.bf16.msra.mxu1 %v7291_v32  ;;  %v1372_v30 = vshll.u32 %v8115_v1, 16  ;;  %v6599_v32 = vcombine.low %v886_v10, %v890_v11  ;;  %v8316_v10 = vld [vmem:[%s7949_s12 + $0x34] sm:$0x1]  ;;  %v6667_v11 = vrot.slane %v8147_v28, 9 }
  0x41   : > { %2274 = vmatprep.subr.bf16.mxu1 %v7302_v19  ;;  %v1386_v19 = vshll.u32 %v8147_v28, 16  ;;  %v1642_v3 = vsel %vm8168_vm6, %v6663_v24, %v1641_v25  ;;  %v1329_v24 = vrot.slane %v1327_v18, 4  ;;  %v1332_v25 = vrot.slane %v1330_v61, 5  ;;  %v7317_v61 = vld [vmem:[%s10838_s1 + $0x104] ss:$8 sps:$4 sm:$0xff]  }
  0x42   : > { %6645 = vmatmul.mubr.msk.bf16.gmra.mxu1 %vm462_vm0, %v6633_v49  ;;  %v894_v49 = vsel %vm8168_vm6, %v6593_v29, %v893_v14  ;;  %v6671_v59 = vcombine.low %v1642_v3, %v1646_v21  ;;  %v6668_v29 = vrot.slane %v8150_v12, 9  ;;  %v1661_v18 = vrot.slane %v8316_v10, 5 }
  0x43   : > { %998 = vmatpush1.bf16.msra.mxu0 %v7284_v20  ;;  %1267 = vmatprep.mubr.bf16.mxu1 %v7835_v2  ;;  %v1397_v20 = vshrl.u32 %v8150_v12, 16  ;;  %v1343_v3 = vrot.slane %v1341_v4, 4  ;;  %v1346_v21 = vrot.slane %v1344_v5, 5  ;;  %v6669_v5 = vrot.slane %v8218_v47, 9  ;;  %v6690_v4 = vld [vmem:[%s7949_s12 + $0x1c] sm:$0x1] }
  0x44   : > { %999 = vmatprep.subr.bf16.mxu0 %v7289_v50  ;;  %v7303_v50 = vld [vmem:[%s10838_s1 + $0x120] ss:$8 sps:$4 sm:$0xff]  }
  0x45   : > { %v8411_v1 = vsel %vm8168_vm6, %v6669_v5, %v1665_v6 }
  0x46   : > { %6588 = vmatmul.mubr.msk.bf16.gmra.mxu0 %vm462_vm0, %v6576_v58  ;;  %v8303_v58 = vld [vmem:[%s7949_s12 + $0x2c] sm:$0x1] }
  0x47   : > { %1000 = vmatpush1.bf16.msra.mxu0 %v7287_v41  ;;  %1019 = vmatprep.mubr.bf16.mxu0 %v7835_v2  ;;  %v8306_v41 = vld [vmem:[%s7949_s12 + $0x10] sm:$0xf]  ;;  %v1657_v27 = vrot.slane %v8303_v58, 5 }
  0x48   : > { %1001 = vmatprep.subr.bf16.mxu0 %v7296_v31  ;;  %v7308_v31 = vld [vmem:[%s10838_s1 + $0x1e4] ss:$8 sps:$4 sm:$0xff]   ;;  %v2083_v14 = vshrl.u32 %v8306_v41, 16 }
  0x4a   : > { %6646 = vmatmul.mubr.msk.bf16.gmra.mxu1 %vm462_vm0, %v6634_v15  ;;  %v6600_v15 = vcombine.low %v894_v49, %v898_v52  ;;  %v2097_v49 = vshrl.u32 %v8327_v26, 16  ;;  %v7315_v52 = vld [vmem:[%s10838_s1 + $0x100] ss:$8 sps:$4 sm:$0xff]  }
  0x4b   : > { %1002 = vmatpush1.bf16.msra.mxu0 %v7294_v9  ;;  %1775 = vmatprep.mubr.bf16.mxu1 %v7835_v2  ;;  %v7311_v9 = vld [vmem:[%s10838_s1 + $0x114] ss:$8 sps:$4 sm:$0xff]  }
  0x4c   : > { %1518 = vmatprep.subr.bf16.mxu0 %v7299_v23  ;;  %v7309_v23 = vld [vmem:[%s10838_s1 + $0x110] ss:$8 sps:$4 sm:$0xff]  }
  0x4e   : > { %6611 = vmatmul.mubr.msk.bf16.vlgmr.msra.gmra.mxu0 %vm462_vm0, %v6599_v32  ;;  %v2086_v32 = vshll.u32 %v8306_v41, 16 }
  0x4f   : > { %1519 = vmatpush1.bf16.msra.mxu0 %v7297_v34  ;;  %1029 = vmatprep.mubr.bf16.mxu0 %v7835_v2  ;;  %v1650_v34 = vsel %vm8168_vm6, %v6665_v53, %v1649_v54  ;;  %v8362_v53 = vld [vmem:[%s7949_s12 + $0x44] sm:$0x1]  ;;  %v1333_v54 = vor.u32 %v1332_v25, %v1329_v24  ;;  %v6688_v24 = vld [vmem:[%s7949_s12 + $0x14] sm:$0x1] }
  0x50   : > { %1520 = vmatprep.subr.bf16.mxu0 %v7305_v39  ;;  %v7314_v39 = vld [vmem:[%s10838_s1 + $0x1d4] ss:$8 sps:$4 sm:$0xff]   ;;  %v2088_v57 = vrot.slane %v2086_v32, 5  ;;  %v1669_v25 = vrot.slane %v8362_v53, 5 }
  0x51   : > { %v8386_v32 = vrot.slane %v1333_v54, 4 }
  0x52   : > { %6683 = vmatmul.mubr.msk.bf16.vlgmr.msra.gmra.mxu1 %vm462_vm0, %v6671_v59  ;;  %v6672_v59 = vcombine.low %v1650_v34, %v1654_v35  ;;  %v8388_v34 = vrot.slane %v1336_v55, 5  ;;  %v8390_v35 = vrot.slane %v1350_v38, 5  ;;  %v2106_v55 = vshll.u32 %v6690_v4, 16 }
  0x53   : > { %1521 = vmatpush1.bf16.msra.mxu0 %v7303_v50  ;;  %v2100_v50 = vshll.u32 %v8327_v26, 16  ;;  %2275 = vmatpush1.bf16.msra.mxu1 %v7300_v56  ;;  %v2085_v56 = vrot.slane %v2083_v14, 4  ;;  %v1662_v14 = vsel %vm8168_vm6, %v6668_v29, %v1661_v18  ;;  %v1360_v29 = vrot.slane %v1358_v8, 5  ;;  %v7318_v8 = vld [vmem:[%s10838_s1 + $0x1c0] ss:$8 sps:$4 sm:$0xff]  }
  0x54   : > { %1522 = vmatprep.subr.bf16.mxu0 %v7311_v9  ;;  %1785 = vmatprep.mubr.bf16.mxu1 %v7835_v2  ;;  %v8372_v9 = vsel %vm8168_vm6, %v6667_v11, %v1657_v27  ;;  %v1347_v11 = vor.u32 %v1346_v21, %v1343_v3  ;;  %v2099_v27 = vrot.slane %v2097_v49, 4  ;;  %v2092_v3 = vshll.u32 %v6688_v24, 16 }
  0x55   : > { %2276 = vmatprep.subr.bf16.mxu1 %v7308_v31  ;;  %v6670_v31 = vrot.slane %v8228_v63, 9  ;;  %v2089_v44 = vor.u32 %v2088_v57, %v2085_v56  ;;  %v1371_v18 = vrot.slane %v1369_v13, 4  ;;  %v1374_v21 = vrot.slane %v1372_v30, 5 }
  0x56   : > { %6612 = vmatmul.mubr.msk.bf16.gmra.mxu0 %vm462_vm0, %v6600_v15  ;;  %v7326_v15 = vld [vmem:[%s10838_s1 + $0x1b4] ss:$8 sps:$4 sm:$0xff]   ;;  %v2397_v49 = vrot.slane %v6688_v24, 5  ;;  %v6673_v60 = vcombine.low %v8372_v9, %v1662_v14  ;;  %v1364_v13 = vshll.u32 %v8271_v42, 16  ;;  %v2401_v30 = vrot.slane %v6690_v4, 5 }
  0x57   : > { %1039 = vmatprep.mubr.bf16.mxu0 %v7835_v2  ;;  %1523 = vmatpush1.bf16.msra.mxu0 %v7309_v23  ;;  %v2102_v23 = vrot.slane %v2100_v50, 5  ;;  %v1348_v50 = vrot.slane %v1347_v11, 4  ;;  %v2090_v38 = vrot.slane %v2089_v44, 4  ;;  %v2094_v5 = vrot.slane %v2092_v3, 5  ;;  %v8438_v4 = vld [vmem:[%s7949_s12 + $0x28] sm:$0xf] }
  0x58   : > { %1524 = vmatprep.subr.bf16.mxu0 %v7317_v61  ;;  %2277 = vmatpush1.bf16.msra.mxu1 %v7306_v36  ;;  %v7320_v61 = vld [vmem:[%s10838_s1 + $0x1c4] ss:$8 sps:$4 sm:$0xff]   ;;  %v1357_v36 = vrot.slane %v1355_v7, 4  ;;  %v6736_v7 = vrot.slane %v8327_v26, 9  ;;  %v8431_v42 = vsel %vm8168_vm6, %v6670_v31, %v1669_v25  ;;  %v1375_v22 = vor.u32 %v1374_v21, %v1371_v18 }
  0x59   : > { %2278 = vmatprep.subr.bf16.mxu1 %v7314_v39  ;;  %v6735_v39 = vrot.slane %v8306_v41, 9  ;;  %v2103_v54 = vor.u32 %v2102_v23, %v2099_v27  ;;  %v1353_v9 = vsel %vm7994_vm3, %v1348_v50, %v8390_v35  ;;  %v2108_v6 = vrot.slane %v2106_v55, 5 }
  0x5a   : > { %6684 = vmatmul.mubr.msk.bf16.gmra.mxu1 %vm462_vm0, %v6672_v59  ;;  %v1361_v56 = vor.u32 %v1360_v29, %v1357_v36  ;;  %v8442_v44 = vsel %vm8168_vm6, %v6736_v7, %v2401_v30  ;;  %v1339_v59 = vsel %vm7994_vm3, %v8386_v32, %v8388_v34  ;;  %v8451_v40 = vrot.slane %v1364_v13, 5 }
  0x5b   : > { %1525 = vmatpush1.bf16.msra.mxu0 %v7315_v52  ;;  %1795 = vmatprep.mubr.bf16.mxu1 %v7835_v2  ;;  %v7323_v52 = vld [vmem:[%s10840_s3 + $0x74] ss:$8 sps:$4 sm:$0xff]   ;;  %v8426_v57 = vsel %vm8168_vm6, %v6735_v39, %v2397_v49  ;;  %v2095_v25 = vsel %vm7994_vm3, %v2090_v38, %v2094_v5  ;;  %v2125_v27 = vshrl.u32 %v8438_v4, 16  ;;  %v2128_v23 = vshll.u32 %v8438_v4, 16  ;;  %v7324_v5 = vld [vmem:[%s10838_s1 + $0x1b0] ss:$8 sps:$4 sm:$0xff]  }
  0x5c   : > { %1969 = vmatprep.subr.bf16.mxu0 %v7326_v15  ;;  %2279 = vmatpush1.bf16.msra.mxu1 %v7312_v0  ;;  %v2104_v0 = vrot.slane %v2103_v54, 4  ;;  %v6743_v24 = vcombine.low %v8426_v57, %v8442_v44  ;;  %v1362_v11 = vrot.slane %v1361_v56, 4  ;;  %v1376_v14 = vrot.slane %v1375_v22, 4  ;;  %v8496_v54 = vld [vmem:[%s7949_s12 + $0x38] sm:$0xf] }
  0x5d   : > { %2280 = vmatprep.subr.bf16.mxu1 %v7320_v61  ;;  %v1380_v32 = vrot.slane %v1378_v48, 5  ;;  %v1385_v34 = vrot.slane %v1383_v62, 4  ;;  %v1388_v35 = vrot.slane %v1386_v19, 5  ;;  %v1392_v3 = vshll.u32 %v8303_v58, 16  ;;  %v6694_v58 = vld [vmem:[%s7949_s12 + $0x2c] sm:$0x1] }
  0x5e   : > { %6613 = vmatmul.mubr.msk.bf16.gmra.mxu0 %vm462_vm0, %v6601_v51  ;;  %v8435_v51 = vld [vmem:[%s7949_s12 + $0x20] sm:$0xf]  ;;  %v2109_v61 = vsel %vm7994_vm3, %v2104_v0, %v2108_v6  ;;  %v1399_v36 = vrot.slane %v1397_v20, 4  ;;  %v1402_v29 = vrot.slane %v1400_v43, 5  ;;  %v1425_v18 = vshrl.u32 %v8228_v63, 16 }
  0x5f   : > { %1049 = vmatprep.mubr.bf16.mxu0 %v7835_v2  ;;  %v2111_v31 = vshrl.u32 %v8435_v51, 16  ;;  %v2114_v15 = vshll.u32 %v8435_v51, 16  ;;  %v1428_v62 = vshll.u32 %v8228_v63, 16  ;;  %v6674_v20 = vcombine.low %v8411_v1, %v8431_v42  ;;  %v6692_v43 = vld [vmem:[%s7949_s12 + $0x24] sm:$0x1] }
  0x60   : > { %2281 = vmatpush1.bf16.msra.mxu1 %v7318_v8  ;;  %v6647_v12 = vcombine.low %v1339_v59, %v1353_v9  ;;  %v2127_v21 = vrot.slane %v2125_v27, 4  ;;  %v2130_v39 = vrot.slane %v2128_v23, 5  ;;  %v8485_v49 = vcombine.low %v2095_v25, %v2109_v61  ;;  %v7335_v6 = vld [vmem:[%s10838_s1 + $0x1a4] ss:$8 sps:$4 sm:$0xff]   ;;  %v7333_v27 = vld [vmem:[%s10838_s1 + $0x1a0] ss:$8 sps:$4 sm:$0xff]  }
  0x61   : > { %2868 = vmatprep.subr.bf16.mxu1 %v7323_v52  ;;  %v2113_v28 = vrot.slane %v2111_v31, 4  ;;  %v2116_v19 = vrot.slane %v2114_v15, 5  ;;  %v1367_v50 = vsel %vm7994_vm3, %v1362_v11, %v8451_v40  ;;  %v1381_v46 = vsel %vm7994_vm3, %v1376_v14, %v1380_v32  ;;  %v7402_v57 = vld [vmem:[%s10840_s3 + $0x270] ss:$8 sps:$4 sm:$0xff]   ;;  %v7413_v44 = vld [vmem:[%s10840_s3 + $0x154] ss:$8 sps:$4 sm:$0xff]  }
  0x62   : > { %6685 = vmatmul.mubr.msk.bf16.gmra.mxu1 %vm462_vm0, %v6673_v60  ;;  %v1389_v17 = vor.u32 %v1388_v35, %v1385_v34  ;;  %v8498_v55 = vrot.slane %v1392_v3, 5  ;;  %v1403_v7 = vor.u32 %v1402_v29, %v1399_v36  ;;  %v1406_v60 = vshll.u32 %v8316_v10, 16  ;;  %v6698_v3 = vld [vmem:[%s7949_s12 + $0x3c] sm:$0x1] }
  0x63   : > { %1805 = vmatprep.mubr.bf16.mxu1 %v7835_v2  ;;  %v10858_v1 = vshrl.u32 %v8218_v47, 16  ;;  %v2117_v13 = vor.u32 %v2116_v19, %v2113_v28  ;;  %v2120_v30 = vshll.u32 %v6692_v43, 16  ;;  %v2134_v52 = vshll.u32 %v6694_v58, 16  ;;  %v7321_v28 = vld [vmem:[%s10840_s3 + $0x70] ss:$8 sps:$4 sm:$0xff]  }
  0x64   : > { %v6737_v38 = vrot.slane %v8435_v51, 9  ;;  %v2131_v56 = vor.u32 %v2130_v39, %v2127_v21  ;;  %v2405_v48 = vrot.slane %v6692_v43, 5  ;;  %v2153_v10 = vshrl.u32 %v8496_v54, 16 }
  0x65   : > { %v8503_v8 = vrot.slane %v10858_v1, 4  ;;  %v2156_v59 = vshll.u32 %v8496_v54, 16  ;;  %v6738_v9 = vrot.slane %v8438_v4, 9  ;;  %v2409_v0 = vrot.slane %v6694_v58, 5  ;;  %v7344_v58 = vld [vmem:[%s10838_s1 + $0x194] ss:$8 sps:$4 sm:$0xff]  }
  0x66   : > { %6614 = vmatmul.mubr.msk.bf16.gmra.mxu0 %vm462_vm0, %v6602_v33  ;;  %v8493_v33 = vld [vmem:[%s7949_s12 + $0x30] sm:$0xf]  ;;  %v8518_v40 = vrot.slane %v1389_v17, 4  ;;  %v8520_v31 = vrot.slane %v1406_v60, 5  ;;  %v10859_v15 = vshll.u32 %v8218_v47, 16  ;;  %v1420_v11 = vshll.u32 %v8345_v16, 16 }
  0x67   : > { %1542 = vmatprep.mubr.bf16.mxu0 %v7835_v2  ;;  %v2139_v42 = vshrl.u32 %v8493_v33, 16  ;;  %v2142_v22 = vshll.u32 %v8493_v33, 16  ;;  %v8531_v23 = vrot.slane %v1403_v7, 4  ;;  %v2118_v14 = vrot.slane %v2117_v13, 4  ;;  %v6696_v47 = vld [vmem:[%s7949_s12 + $0x34] sm:$0x1] }
  0x68   : > { %v8524_v25 = vrot.slane %v10859_v15, 5  ;;  %v2122_v32 = vrot.slane %v2120_v30, 5  ;;  %v2136_v34 = vrot.slane %v2134_v52, 5  ;;  %v6648_v35 = vcombine.low %v1367_v50, %v1381_v46  ;;  %v7329_v17 = vld [vmem:[%s10840_s3 + $0x64] ss:$8 sps:$4 sm:$0xff]  }
  0x69   : > { %v2132_v61 = vrot.slane %v2131_v56, 4  ;;  %v8536_v36 = vrot.slane %v2139_v42, 4  ;;  %v8540_v29 = vsel %vm8168_vm6, %v6737_v38, %v2405_v48  ;;  %v2144_v19 = vrot.slane %v2142_v22, 5  ;;  %v8581_v13 = vld [vmem:[%s7949_s12 + $0x48] sm:$0xf] }
  0x6a   : > { %6686 = vmatmul.mubr.msk.bf16.gmra.mxu1 %vm462_vm0, %v6674_v20  ;;  %v2155_v20 = vrot.slane %v2153_v10, 4  ;;  %v8548_v43 = vsel %vm8168_vm6, %v6738_v9, %v2409_v0  ;;  %v1417_v21 = vor.u32 %v8524_v25, %v8503_v8  ;;  %v8557_v39 = vrot.slane %v1425_v18, 4  ;;  %v7327_v38 = vld [vmem:[%s10840_s3 + $0x60] ss:$8 sps:$4 sm:$0xff]   ;;  %v7353_v56 = vld [vmem:[%s10838_s1 + $0x184] ss:$8 sps:$4 sm:$0xff]  }
  0x6b   : > { %2298 = vmatprep.mubr.bf16.mxu1 %v7835_v2  ;;  %v8561_v50 = vrot.slane %v1428_v62, 5  ;;  %v1434_v46 = vshll.u32 %v8362_v53, 16  ;;  %v1395_v7 = vsel %vm7994_vm3, %v8518_v40, %v8498_v55  ;;  %v1409_v18 = vsel %vm7994_vm3, %v8531_v23, %v8520_v31  ;;  %v8576_v62 = vld [vmem:[%s7949_s12 + $0x40] sm:$0xf]  ;;  %v6700_v15 = vld [vmem:[%s7949_s12 + $0x44] sm:$0x1] }
  0x6c   : > { %v2148_v60 = vshll.u32 %v6696_v47, 16  ;;  %v2162_v63 = vshll.u32 %v6698_v3, 16  ;;  %v2123_v1 = vsel %vm7994_vm3, %v2118_v14, %v2122_v32  ;;  %v6744_v30 = vcombine.low %v8540_v29, %v8548_v43  ;;  %v7363_v32 = vld [vmem:[%s10838_s1 + $0x234] ss:$8 sps:$4 sm:$0xff]   ;;  %v7336_v8 = vld [vmem:[%s10840_s3 + $0x40] ss:$8 sps:$4 sm:$0xff]  }
  0x6d   : > { %v6739_v52 = vrot.slane %v8493_v33, 9  ;;  %v2413_v55 = vrot.slane %v6696_v47, 5  ;;  %v2137_v42 = vsel %vm7994_vm3, %v2132_v61, %v2136_v34  ;;  %v2145_v22 = vor.u32 %v2144_v19, %v8536_v36  ;;  %v6702_v47 = vld [vmem:[%s7949_s12 + $0x4c] sm:$0x1] }
  0x6e   : > { %6659 = vmatmul.mubr.msk.bf16.vlgmr.msra.gmra.mxu0 %vm462_vm0, %v6647_v12  ;;  %v2158_v12 = vrot.slane %v2156_v59, 5  ;;  %v6740_v10 = vrot.slane %v8496_v54, 9  ;;  %v7332_v59 = vld [vmem:[%s10840_s3 + $0x54] ss:$8 sps:$4 sm:$0xff]   ;;  %v2167_v9 = vshrl.u32 %v8576_v62, 16  ;;  %v6741_v40 = vrot.slane %v8576_v62, 9 }
  0x6f   : > { %1970 = vmatpush1.bf16.msra.mxu0 %v7324_v5  ;;  %1552 = vmatprep.mubr.bf16.mxu0 %v7835_v2  ;;  %v7342_v5 = vld [vmem:[%s10838_s1 + $0x190] ss:$8 sps:$4 sm:$0xff]   ;;  %v8607_v0 = vsel %vm8168_vm6, %v6739_v52, %v2413_v55  ;;  %v1431_v31 = vor.u32 %v8561_v50, %v8557_v39  ;;  %v2181_v23 = vshrl.u32 %v8581_v13, 16  ;;  %v2184_v14 = vshll.u32 %v8581_v13, 16  ;;  %v7338_v55 = vld [vmem:[%s10840_s3 + $0x44] ss:$8 sps:$4 sm:$0xff]  }
  0x70   : > { %1971 = vmatprep.subr.bf16.mxu0 %v7335_v6  ;;  %v2159_v48 = vor.u32 %v2158_v12, %v2155_v20  ;;  %v2417_v6 = vrot.slane %v6698_v3, 5  ;;  %v6720_v34 = vcombine.low %v2123_v1, %v2137_v42  ;;  %v2150_v61 = vrot.slane %v2148_v60, 5 }
  0x71   : > { %v2421_v36 = vrot.slane %v6700_v15, 5  ;;  %v2425_v20 = vrot.slane %v6702_v47, 5  ;;  %v2146_v12 = vrot.slane %v2145_v22, 4  ;;  %v2169_v39 = vrot.slane %v2167_v9, 4 }
  0x72   : > { %6731 = vmatmul.mubr.msk.bf16.vlgmr.msra.gmra.mxu1 %vm462_vm0, %v8485_v49  ;;  %v7351_v49 = vld [vmem:[%s10838_s1 + $0x180] ss:$8 sps:$4 sm:$0xff]   ;;  %v8627_v3 = vsel %vm8168_vm6, %v6740_v10, %v2417_v6  ;;  %v2186_v1 = vrot.slane %v2184_v14, 5  ;;  %v1422_v42 = vrot.slane %v1420_v11, 5  ;;  %v1432_v22 = vrot.slane %v1431_v31, 4 }
  0x73   : > { %1972 = vmatpush1.bf16.msra.mxu0 %v7333_v27  ;;  %2869 = vmatpush1.bf16.msra.mxu1 %v7321_v28  ;;  %v2170_v27 = vshll.u32 %v8576_v62, 16  ;;  %v2164_v28 = vrot.slane %v2162_v63, 5  ;;  %v6745_v19 = vcombine.low %v8607_v0, %v8627_v3  ;;  %v8635_v50 = vsel %vm8168_vm6, %v6741_v40, %v2421_v36  ;;  %v7350_v14 = vld [vmem:[%s10840_s3 + $0x14] ss:$8 sps:$4 sm:$0xff]  }
  0x74   : > { %1973 = vmatprep.subr.bf16.mxu0 %v7344_v58  ;;  %2308 = vmatprep.mubr.bf16.mxu1 %v7835_v2  ;;  %v2160_v58 = vrot.slane %v2159_v48, 4  ;;  %v2183_v63 = vrot.slane %v2181_v23, 4  ;;  %v1436_v48 = vrot.slane %v1434_v46, 5  ;;  %v2190_v11 = vshll.u32 %v6702_v47, 16  ;;  %v7345_v23 = vld [vmem:[%s10840_s3 + $0x20] ss:$8 sps:$4 sm:$0xff]  }
  0x75   : > { %2870 = vmatprep.subr.bf16.mxu1 %v7329_v17  ;;  %v7330_v17 = vld [vmem:[%s10840_s3 + $0x50] ss:$8 sps:$4 sm:$0xff]   ;;  %v2172_v60 = vrot.slane %v2170_v27, 5  ;;  %v7441_v0 = vld [vmem:[%s10840_s3 + $0x114] ss:$8 sps:$4 sm:$0xff]  }
  0x76   : > { %6660 = vmatmul.mubr.msk.bf16.gmra.mxu0 %vm462_vm0, %v6648_v35  ;;  %v6742_v35 = vrot.slane %v8581_v13, 9  ;;  %v2165_v16 = vsel %vm7994_vm3, %v2160_v58, %v2164_v28  ;;  %v2187_v25 = vor.u32 %v2186_v1, %v2183_v63  ;;  %v1437_v10 = vsel %vm7994_vm3, %v1432_v22, %v1436_v48  ;;  %v8703_v47 = vld [vmem:[%s8684_s29 + $0x10] sm:$0xff]  ;;  %v7366_v1 = vld [vmem:[%s10840_s3 + $0xe4] ss:$8 sps:$4 sm:$0xff]  }
  0x77   : > { %1562 = vmatprep.mubr.bf16.mxu0 %v7835_v2  ;;  %1974 = vmatpush1.bf16.msra.mxu0 %v7342_v5  ;;  %v6649_v5 = vcombine.low %v1395_v7, %v1409_v18  ;;  %v2151_v7 = vsel %vm7994_vm3, %v2146_v12, %v2150_v61  ;;  %v2176_v18 = vshll.u32 %v6700_v15, 16  ;;  %v2173_v53 = vor.u32 %v2172_v60, %v2169_v39  ;;  %v7347_v15 = vld [vmem:[%s10840_s3 + $0x24] ss:$8 sps:$4 sm:$0xff]   ;;  %v7348_v28 = vld [vmem:[%s10840_s3 + $0x10] ss:$8 sps:$4 sm:$0xff]  }
  0x78   : > { %1975 = vmatprep.subr.bf16.mxu0 %v7353_v56  ;;  %2871 = vmatpush1.bf16.msra.mxu1 %v7327_v38  ;;  %v8642_v52 = vsel %vm8168_vm6, %v6742_v35, %v2425_v20  ;;  %v1418_v56 = vrot.slane %v1417_v21, 4  ;;  %v7341_v21 = vld [vmem:[%s10840_s3 + $0x34] ss:$8 sps:$4 sm:$0xff]   ;;  %v6721_v9 = vcombine.low %v2151_v7, %v2165_v16  ;;  %v2188_v31 = vrot.slane %v2187_v25, 4  ;;  %v8700_v61 = vld [vmem:[%s8684_s29] sm:$0xff] }
  0x79   : > { %2872 = vmatprep.subr.bf16.mxu1 %v7332_v59  ;;  %v6746_v38 = vcombine.low %v8635_v50, %v8642_v52  ;;  %v7339_v59 = vld [vmem:[%s10840_s3 + $0x30] ss:$8 sps:$4 sm:$0xff]   ;;  %v2174_v6 = vrot.slane %v2173_v53, 4  ;;  %v2178_v40 = vrot.slane %v2176_v18, 5  ;;  %v6760_v35 = vcombine.high %v8700_v61, %v8703_v47  ;;  %v7356_v20 = vld [vmem:[%s10840_s3 + $0x4] ss:$8 sps:$4 sm:$0xff]  }
  0x7a   : > { %6732 = vmatmul.mubr.msk.bf16.gmra.mxu1 %vm462_vm0, %v6720_v34  ;;  %v1423_v46 = vsel %vm7994_vm3, %v1418_v56, %v1422_v42  ;;  %v6703_v12 = vcombine.low %v8306_v41, %v8327_v26  ;;  %v7361_v58 = vld [vmem:[%s10838_s1 + $0x230] ss:$8 sps:$4 sm:$0xff]   ;;  %v7373_v39 = vld [vmem:[%s10838_s1 + $0x224] ss:$8 sps:$4 sm:$0xff]   ;;  %v7359_v41 = vld [vmem:[%s10840_s3 + $0xf4] ss:$8 sps:$4 sm:$0xff]   ;;  %v6705_v18 = vcombine.low %v8493_v33, %v8496_v54  ;;  %v6706_v53 = vcombine.low %v8576_v62, %v8581_v13 }
  0x7b   : > { %1976 = vmatpush1.bf16.msra.mxu0 %v7351_v49  ;;  %2318 = vmatprep.mubr.bf16.mxu1 %v7835_v2  ;;  %v2192_v49 = vrot.slane %v2190_v11, 5  ;;  %v6650_v27 = vcombine.low %v1423_v46, %v1437_v10  ;;  %v7371_v26 = vld [vmem:[%s10838_s1 + $0x220] ss:$8 sps:$4 sm:$0xff]   ;;  %v7383_v60 = vld [vmem:[%s10838_s1 + $0x214] ss:$8 sps:$4 sm:$0xff]  }
  0x7c   : > { %2507 = vmatprep.subr.bf16.mxu0 %v7363_v32  ;;  %2873 = vmatpush1.bf16.msra.mxu1 %v7330_v17  ;;  %v2179_v32 = vsel %vm7994_vm3, %v2174_v6, %v2178_v40  ;;  %v7354_v17 = vld [vmem:[%s10840_s3] ss:$8 sps:$4 sm:$0xff]   ;;  %v7357_v63 = vld [vmem:[%s10840_s3 + $0xf0] ss:$8 sps:$4 sm:$0xff]   ;;  %v7393_v56 = vld [vmem:[%s10838_s1 + $0x204] ss:$8 sps:$4 sm:$0xff]  }
  0x7d   : > { %2874 = vmatprep.subr.bf16.mxu1 %v7338_v55  ;;  %v2193_v34 = vsel %vm7994_vm3, %v2188_v31, %v2192_v49  ;;  %v6704_v55 = vcombine.low %v8435_v51, %v8438_v4  ;;  %v7364_v42 = vld [vmem:[%s10840_s3 + $0xe0] ss:$8 sps:$4 sm:$0xff]   ;;  %v7369_v51 = vld [vmem:[%s10840_s3 + $0xd4] ss:$8 sps:$4 sm:$0xff]   ;;  %v7367_v48 = vld [vmem:[%s10840_s3 + $0xd0] ss:$8 sps:$4 sm:$0xff]  }
  0x7e   : > { %6661 = vmatmul.mubr.msk.bf16.gmra.mxu0 %vm462_vm0, %v6649_v5  ;;  %v6722_v36 = vcombine.low %v2179_v32, %v2193_v34  ;;  %v7381_v5 = vld [vmem:[%s10838_s1 + $0x210] ss:$8 sps:$4 sm:$0xff]   ;;  %v7391_v4 = vld [vmem:[%s10838_s1 + $0x200] ss:$8 sps:$4 sm:$0xff]   ;;  %v7401_v22 = vld [vmem:[%s10840_s3 + $0x174] ss:$8 sps:$4 sm:$0xff]  }
  0x7f   : > { %1572 = vmatprep.mubr.bf16.mxu0 %v7835_v2  ;;  %v7376_v7 = vld [vmem:[%s10840_s3 + $0xc4] ss:$8 sps:$4 sm:$0xff]   ;;  %v7379_v16 = vld [vmem:[%s10840_s3 + $0xb4] ss:$8 sps:$4 sm:$0xff]   ;;  %v7377_v33 = vld [vmem:[%s10840_s3 + $0xb0] ss:$8 sps:$4 sm:$0xff]  }
  0x80   : > { %2875 = vmatpush1.bf16.msra.mxu1 %v7336_v8  ;;  %v7374_v8 = vld [vmem:[%s10840_s3 + $0xc0] ss:$8 sps:$4 sm:$0xff]   ;;  %v7386_v54 = vld [vmem:[%s10840_s3 + $0xa4] ss:$8 sps:$4 sm:$0xff]   ;;  %v7389_v11 = vld [vmem:[%s10840_s3 + $0x94] ss:$8 sps:$4 sm:$0xff]  }
  0x81   : > { %2876 = vmatprep.subr.bf16.mxu1 %v7341_v21  ;;  %v7384_v25 = vld [vmem:[%s10840_s3 + $0xa0] ss:$8 sps:$4 sm:$0xff]   ;;  %v7387_v62 = vld [vmem:[%s10840_s3 + $0x90] ss:$8 sps:$4 sm:$0xff]   ;;  %v7396_v13 = vld [vmem:[%s10840_s3 + $0x84] ss:$8 sps:$4 sm:$0xff]  }
  0x82   : > { %6733 = vmatmul.mubr.msk.bf16.gmra.mxu1 %vm462_vm0, %v6721_v9  ;;  %v7394_v21 = vld [vmem:[%s10840_s3 + $0x80] ss:$8 sps:$4 sm:$0xff]   ;;  %v7399_v46 = vld [vmem:[%s10840_s3 + $0x170] ss:$8 sps:$4 sm:$0xff]   ;;  %v7407_v10 = vld [vmem:[%s10840_s3 + $0x164] ss:$8 sps:$4 sm:$0xff]  }
  0x83   : > { %2328 = vmatprep.mubr.bf16.mxu1 %v7835_v2  ;;  %v7405_v9 = vld [vmem:[%s10840_s3 + $0x160] ss:$8 sps:$4 sm:$0xff]   ;;  %v8826_v40 = vld [vmem:[%s8684_s29 + $0x30] sm:$0xff]  ;;  %v2990_v31 = vshrl.u32 %v8700_v61, 16  ;;  %v2993_v49 = vshll.u32 %v8700_v61, 16 }
  0x84   : > { %2877 = vmatpush1.bf16.msra.mxu1 %v7339_v59  ;;  %v7404_v59 = vld [vmem:[%s10840_s3 + $0x274] ss:$8 sps:$4 sm:$0xff]   ;;  %v8819_v6 = vld [vmem:[%s8684_s29 + $0x20] sm:$0xff]  ;;  %v7411_v34 = vld [vmem:[%s10840_s3 + $0x150] ss:$8 sps:$4 sm:$0xff]  }
  0x85   : > { %2878 = vmatprep.subr.bf16.mxu1 %v7347_v15  ;;  %v3004_v15 = vshrl.u32 %v8703_v47, 16  ;;  %v7408_v32 = vld [vmem:[%s10840_s3 + $0x260] ss:$8 sps:$4 sm:$0xff]   ;;  %v7455_v50 = vld [vmem:[%s10840_s3 + $0x1f4] ss:$8 sps:$4 sm:$0xff]  }
  0x86   : > { %6662 = vmatmul.mubr.msk.bf16.gmra.mxu0 %vm462_vm0, %v6650_v27  ;;  %v3007_v27 = vshll.u32 %v8703_v47, 16  ;;  %v7442_v52 = vld [vmem:[%s10840_s3 + $0x210] ss:$8 sps:$4 sm:$0xff]  }
  0x87   : > { %1993 = vmatprep.mubr.bf16.mxu0 %v7835_v2 }
  0x88   : > { %2879 = vmatpush1.bf16.msra.mxu1 %v7345_v23  ;;  %v6759_v23 = vcombine.low %v8700_v61, %v8703_v47 }
  0x89   : > { %2880 = vmatprep.subr.bf16.mxu1 %v7350_v14  ;;  %v7410_v14 = vld [vmem:[%s10840_s3 + $0x264] ss:$8 sps:$4 sm:$0xff]  }
  0x8a   : > { %6734 = vmatmul.mubr.msk.bf16.gmra.mxu1 %vm462_vm0, %v6722_v36  ;;  %v2992_v36 = vrot.slane %v2990_v31, 4  ;;  %v7444_v31 = vld [vmem:[%s10840_s3 + $0x214] ss:$8 sps:$4 sm:$0xff]  }
  0x8b   : > { %2900 = vmatprep.mubr.bf16.mxu1 %v6760_v35  ;;  %v3006_v35 = vrot.slane %v3004_v15, 4 }
  0x8c   : > { %2881 = vmatpush1.bf16.msra.mxu1 %v7348_v28  ;;  %v2995_v28 = vrot.slane %v2993_v49, 5 }
  0x8d   : > { %2882 = vmatprep.subr.bf16.mxu1 %v7356_v20  ;;  %v3009_v20 = vrot.slane %v3007_v27, 5  ;;  %v7447_v27 = vld [vmem:[%s10840_s3 + $0x100] ss:$8 sps:$4 sm:$0xff]  }
  0x8e   : > { %6715 = vmatmul.mubr.msk.bf16.vlgmr.msra.gmra.mxu0 %vm462_vm0, %v6703_v12  ;;  %v7416_v12 = vld [vmem:[%s10840_s3 + $0x254] ss:$8 sps:$4 sm:$0xff]  }
  0x8f   : > { %2508 = vmatpush1.bf16.msra.mxu0 %v7361_v58  ;;  %2003 = vmatprep.mubr.bf16.mxu0 %v7835_v2  ;;  %v7421_v58 = vld [vmem:[%s10840_s3 + $0x144] ss:$8 sps:$4 sm:$0xff]  }
  0x90   : > { %2509 = vmatprep.subr.bf16.mxu0 %v7373_v39  ;;  %2883 = vmatpush1.bf16.msra.mxu1 %v7354_v17  ;;  %v7419_v39 = vld [vmem:[%s10840_s3 + $0x140] ss:$8 sps:$4 sm:$0xff]  }
  0x91   : > { %2884 = vmatprep.subr.bf16.mxu1 %v7359_v41  ;;  %v8862_v17 = vld [vmem:[%s8684_s29 + $0x8] sm:$0x11]  ;;  %v8865_v41 = vld [vmem:[%s8684_s29 + $0x18] sm:$0x11] }
  0x92   : > { %v2999_v29 = vshll.u32 %v8862_v17, 16  ;;  %v3013_v43 = vshll.u32 %v8865_v41, 16 }
  0x93   : > { %2510 = vmatpush1.bf16.msra.mxu0 %v7371_v26  ;;  %v8872_v26 = vld [vmem:[%s8684_s29 + $0x40] sm:$0xff] }
  0x94   : > { %2511 = vmatprep.subr.bf16.mxu0 %v7383_v60  ;;  %2885 = vmatpush2.bf16.msra.mxu1 %v7357_v63  ;;  %v8875_v60 = vld [vmem:[%s8684_s29 + $0x50] sm:$0xff]  ;;  %v2996_v63 = vor.u32 %v2995_v28, %v2992_v36 }
  0x95   : > { %2886 = vmatprep.subr.bf16.mxu1 %v7366_v1  ;;  %v3010_v1 = vor.u32 %v3009_v20, %v3006_v35  ;;  %v7467_v36 = vld [vmem:[%s10840_s3 + $0x1d4] ss:$8 sps:$4 sm:$0xff]   ;;  %v7456_v28 = vld [vmem:[%s10840_s3 + $0x2f0] ss:$8 sps:$4 sm:$0xff]   ;;  %v7464_v35 = vld [vmem:[%s10840_s3 + $0x2e4] ss:$8 sps:$4 sm:$0xff]  }
  0x96   : > { %6716 = vmatmul.mubr.msk.bf16.gmra.mxu0 %vm462_vm0, %v6704_v55  ;;  %v6761_v55 = vcombine.low %v8819_v6, %v8826_v40  ;;  %v7465_v20 = vld [vmem:[%s10840_s3 + $0x1d0] ss:$8 sps:$4 sm:$0xff]  }
  0x97   : > { %2013 = vmatprep.mubr.bf16.mxu0 %v7835_v2  ;;  %2512 = vmatpush1.bf16.msra.mxu0 %v7381_v5  ;;  %v7427_v5 = vld [vmem:[%s10840_s3 + $0x134] ss:$8 sps:$4 sm:$0xff]  }
  0x98   : > { %2513 = vmatprep.subr.bf16.mxu0 %v7393_v56  ;;  %2887 = vmatpush2.bf16.msra.mxu1 %v7364_v42  ;;  %v6764_v56 = vcombine.high %v8872_v26, %v8875_v60  ;;  %v7424_v42 = vld [vmem:[%s10840_s3 + $0x244] ss:$8 sps:$4 sm:$0xff]  }
  0x99   : > { %2888 = vmatprep.subr.bf16.mxu1 %v7369_v51  ;;  %v7425_v51 = vld [vmem:[%s10840_s3 + $0x130] ss:$8 sps:$4 sm:$0xff]  }
  0x9b   : > { %2514 = vmatpush1.bf16.msra.mxu0 %v7391_v4  ;;  %v2997_v4 = vrot.slane %v2996_v63, 4  ;;  %v3032_v63 = vshrl.u32 %v8826_v40, 16 }
  0x9c   : > { %3325 = vmatprep.subr.bf16.mxu0 %v7401_v22  ;;  %2889 = vmatpush2.bf16.msra.mxu1 %v7367_v48  ;;  %v3011_v22 = vrot.slane %v3010_v1, 4  ;;  %v7435_v48 = vld [vmem:[%s10840_s3 + $0x124] ss:$8 sps:$4 sm:$0xff]   ;;  %v3035_v1 = vshll.u32 %v8826_v40, 16 }
  0x9d   : > { %2890 = vmatprep.subr.bf16.mxu1 %v7376_v7  ;;  %v3001_v7 = vrot.slane %v2999_v29, 5  ;;  %v7468_v29 = vld [vmem:[%s10840_s3 + $0x2d0] ss:$8 sps:$4 sm:$0xff]  }
  0x9e   : > { %6717 = vmatmul.mubr.msk.bf16.gmra.mxu0 %vm462_vm0, %v6705_v18  ;;  %v3015_v18 = vrot.slane %v3013_v43, 5  ;;  %v7476_v43 = vld [vmem:[%s10840_s3 + $0x2c4] ss:$8 sps:$4 sm:$0xff]  }
  0x9f   : > { %2023 = vmatprep.mubr.bf16.mxu0 %v7835_v2  ;;  %v8926_v3 = vsel %vm7994_vm3, %v2997_v4, %v3001_v7  ;;  %v7477_v4 = vld [vmem:[%s10840_s3 + $0x1b0] ss:$8 sps:$4 sm:$0xff]   ;;  %v7474_v7 = vld [vmem:[%s10840_s3 + $0x2c0] ss:$8 sps:$4 sm:$0xff]  }
  0xa0   : > { %2891 = vmatpush2.bf16.msra.mxu1 %v7374_v8  ;;  %v7422_v8 = vld [vmem:[%s10840_s3 + $0x240] ss:$8 sps:$4 sm:$0xff]  }
  0xa1   : > { %2892 = vmatprep.subr.bf16.mxu1 %v7379_v16  ;;  %v7430_v16 = vld [vmem:[%s10840_s3 + $0x234] ss:$8 sps:$4 sm:$0xff]  }
  0xa4   : > { %2893 = vmatpush2.bf16.msra.mxu1 %v7377_v33  ;;  %v8910_v33 = vld [vmem:[%s8684_s29 + $0x60] sm:$0xff] }
  0xa5   : > { %2894 = vmatprep.subr.bf16.mxu1 %v7386_v54  ;;  %v8913_v54 = vld [vmem:[%s8684_s29 + $0x70] sm:$0xff] }
  0xa6   : > { %6718 = vmatmul.mubr.msk.bf16.gmra.mxu0 %vm462_vm0, %v6706_v53  ;;  %v7433_v53 = vld [vmem:[%s10840_s3 + $0x120] ss:$8 sps:$4 sm:$0xff]  }
  0xa7   : > { %2531 = vmatprep.mubr.bf16.mxu0 %v7835_v2 }
  0xa8   : > { %2895 = vmatpush2.bf16.msra.mxu1 %v7384_v25  ;;  %v6763_v25 = vcombine.low %v8872_v26, %v8875_v60 }
  0xa9   : > { %2896 = vmatprep.subr.bf16.mxu1 %v7389_v11  ;;  %v6766_v11 = vcombine.high %v8910_v33, %v8913_v54 }
  0xac   : > { %2897 = vmatpush2.bf16.msra.mxu1 %v7387_v62  ;;  %v6839_v62 = vrot.slane %v8700_v61, 9  ;;  %v7449_v61 = vld [vmem:[%s10840_s3 + $0x104] ss:$8 sps:$4 sm:$0xff]  }
  0xad   : > { %2898 = vmatprep.subr.bf16.mxu1 %v7396_v13  ;;  %v7438_v13 = vld [vmem:[%s10840_s3 + $0x224] ss:$8 sps:$4 sm:$0xff]  }
  0xae   : > { %6755 = vmatmul.mubr.msk.bf16.vlgmr.msra.gmra.mxu0 %vm462_vm0, %v6743_v24  ;;  %v6762_v24 = vcombine.high %v8819_v6, %v8826_v40 }
  0xaf   : > { %3326 = vmatpush1.bf16.msra.mxu0 %v7399_v46  ;;  %2541 = vmatprep.mubr.bf16.mxu0 %v7835_v2  ;;  %v6840_v46 = vrot.slane %v8703_v47, 9  ;;  %v7436_v47 = vld [vmem:[%s10840_s3 + $0x220] ss:$8 sps:$4 sm:$0xff]  }
  0xb0   : > { %3327 = vmatprep.subr.bf16.mxu0 %v7407_v10  ;;  %2899 = vmatpush2.bf16.msra.mxu1 %v7394_v21  ;;  %v3456_v21 = vrot.slane %v8862_v17, 5  ;;  %v3460_v10 = vrot.slane %v8865_v41, 5  ;;  %v7470_v17 = vld [vmem:[%s10840_s3 + $0x2d4] ss:$8 sps:$4 sm:$0xff]   ;;  %v3021_v41 = vshll.u32 %v8819_v6, 16 }
  0xb1   : > { %3710 = vmatprep.subr.bf16.mxu1 %v7404_v59  ;;  %v7439_v59 = vld [vmem:[%s10840_s3 + $0x110] ss:$8 sps:$4 sm:$0xff]  }
  0xb2   : > { %v8964_v49 = vsel %vm8168_vm6, %v6839_v62, %v3456_v21  ;;  %v8968_v15 = vsel %vm8168_vm6, %v6840_v46, %v3460_v10  ;;  %v7483_v62 = vld [vmem:[%s10840_s3 + $0x1a0] ss:$8 sps:$4 sm:$0xff]   ;;  %v7491_v46 = vld [vmem:[%s10840_s3 + $0x194] ss:$8 sps:$4 sm:$0xff]  }
  0xb3   : > { %3328 = vmatpush1.bf16.msra.mxu0 %v7405_v9  ;;  %2901 = vmatmul.mubr.bf16.vlgmr.msra.gmra.mxu1 %v6759_v23  ;;  %v6765_v23 = vcombine.low %v8910_v33, %v8913_v54 }
  0xb4   : > { %3329 = vmatprep.subr.bf16.mxu0 %v7413_v44  ;;  %3711 = vmatpush1.bf16.msra.mxu1 %v7402_v57  ;;  %v7452_v57 = vld [vmem:[%s10840_s3 + $0x204] ss:$8 sps:$4 sm:$0xff]   ;;  %v7453_v44 = vld [vmem:[%s10840_s3 + $0x1f0] ss:$8 sps:$4 sm:$0xff]  }
  0xb5   : > { %2910 = vmatprep.mubr.bf16.mxu1 %v6762_v24  ;;  %3712 = vmatprep.subr.bf16.mxu1 %v7410_v14  ;;  %v7461_v24 = vld [vmem:[%s10840_s3 + $0x1e4] ss:$8 sps:$4 sm:$0xff]   ;;  %v7450_v14 = vld [vmem:[%s10840_s3 + $0x200] ss:$8 sps:$4 sm:$0xff]  }
  0xb6   : > { %6756 = vmatmul.mubr.msk.bf16.gmra.mxu0 %vm462_vm0, %v6744_v30  ;;  %v7414_v30 = vld [vmem:[%s10840_s3 + $0x250] ss:$8 sps:$4 sm:$0xff]  }
  0xb7   : > { %3330 = vmatpush1.bf16.msra.mxu0 %v7411_v34  ;;  %2551 = vmatprep.mubr.bf16.mxu0 %v7835_v2  ;;  %v7459_v34 = vld [vmem:[%s10840_s3 + $0x1e0] ss:$8 sps:$4 sm:$0xff]  }
  0xb8   : > { %3331 = vmatprep.subr.bf16.mxu0 %v7421_v58  ;;  %3713 = vmatpush1.bf16.msra.mxu1 %v7408_v32  ;;  %v7458_v32 = vld [vmem:[%s10840_s3 + $0x2f4] ss:$8 sps:$4 sm:$0xff]   ;;  %v7462_v58 = vld [vmem:[%s10840_s3 + $0x2e0] ss:$8 sps:$4 sm:$0xff]  }
  0xb9   : > { %3714 = vmatprep.subr.bf16.mxu1 %v7416_v12  ;;  %v7473_v12 = vld [vmem:[%s10840_s3 + $0x1c4] ss:$8 sps:$4 sm:$0xff]  }
  0xbb   : > { %3332 = vmatpush1.bf16.msra.mxu0 %v7419_v39  ;;  %2911 = vmatmul.mubr.bf16.gmra.mxu1 %v6761_v55  ;;  %v3018_v39 = vshrl.u32 %v8819_v6, 16  ;;  %v7471_v55 = vld [vmem:[%s10840_s3 + $0x1c0] ss:$8 sps:$4 sm:$0xff]  }
  0xbc   : > { %3333 = vmatprep.subr.bf16.mxu0 %v7427_v5  ;;  %3715 = vmatpush1.bf16.msra.mxu1 %v7414_v30  ;;  %v7479_v5 = vld [vmem:[%s10840_s3 + $0x1b4] ss:$8 sps:$4 sm:$0xff]  }
  0xbd   : > { %2920 = vmatprep.mubr.bf16.mxu1 %v6764_v56  ;;  %3716 = vmatprep.subr.bf16.mxu1 %v7424_v42  ;;  %v3020_v30 = vrot.slane %v3018_v39, 4  ;;  %v3023_v56 = vrot.slane %v3021_v41, 5  ;;  %v3034_v42 = vrot.slane %v3032_v63, 4  ;;  %v3077_v63 = vshll.u32 %v8910_v33, 16 }
  0xbe   : > { %6757 = vmatmul.mubr.msk.bf16.gmra.mxu0 %vm462_vm0, %v6745_v19  ;;  %v8930_v19 = vsel %vm7994_vm3, %v3011_v22, %v3015_v18  ;;  %v3046_v22 = vshrl.u32 %v8872_v26, 16  ;;  %v7485_v18 = vld [vmem:[%s10840_s3 + $0x1a4] ss:$8 sps:$4 sm:$0xff]  }
  0xbf   : > { %3334 = vmatpush1.bf16.msra.mxu0 %v7425_v51  ;;  %2561 = vmatprep.mubr.bf16.mxu0 %v7835_v2  ;;  %v7428_v2 = vld [vmem:[%s10840_s3 + $0x230] ss:$8 sps:$4 sm:$0xff]   ;;  %v6800_v9 = vcombine.high %v8926_v3, %v8930_v19  ;;  %v3037_v51 = vrot.slane %v3035_v1, 5  ;;  %v7495_v1 = vld [vmem:[%s10840_s3 + $0x180] ss:$8 sps:$4 sm:$0xff]  }
  0xc0   : > { %3335 = vmatprep.subr.bf16.mxu0 %v7435_v48  ;;  %3717 = vmatpush1.bf16.msra.mxu1 %v7422_v8  ;;  %v3049_v48 = vshll.u32 %v8872_v26, 16  ;;  %v9050_v8 = vld [vmem:[%s8684_s29 + $0x28] sm:$0x11] }
  0xc1   : > { %3718 = vmatprep.subr.bf16.mxu1 %v7430_v16  ;;  %v3038_v21 = vor.u32 %v3037_v51, %v3034_v42  ;;  %v3027_v10 = vshll.u32 %v9050_v8, 16 }
  0xc3   : > { %3336 = vmatpush1.bf16.msra.mxu0 %v7433_v53  ;;  %2921 = vmatmul.mubr.bf16.gmra.mxu1 %v6763_v25  ;;  %v9055_v53 = vld [vmem:[%s8684_s29 + $0x38] sm:$0x11]  ;;  %v3060_v25 = vshrl.u32 %v8875_v60, 16 }
  0xc4   : > { %3337 = vmatprep.subr.bf16.mxu0 %v7441_v0  ;;  %3719 = vmatpush1.bf16.msra.mxu1 %v7428_v2  ;;  %v3063_v0 = vshll.u32 %v8875_v60, 16  ;;  %v7482_v2 = vld [vmem:[%s10840_s3 + $0x2b4] ss:$8 sps:$4 sm:$0xff]  }
  0xc5   : > { %2930 = vmatprep.mubr.bf16.mxu1 %v6766_v11  ;;  %3720 = vmatprep.subr.bf16.mxu1 %v7438_v13  ;;  %v3024_v13 = vor.u32 %v3023_v56, %v3020_v30  ;;  %v7503_v56 = vld [vmem:[%s10840_s3 + $0x374] ss:$8 sps:$4 sm:$0xff]  }
  0xc6   : > { %6758 = vmatmul.mubr.msk.bf16.gmra.mxu0 %vm462_vm0, %v6746_v38  ;;  %v6848_v38 = vcombine.high %v8964_v49, %v8968_v15 }
  0xc7   : > { %3338 = vmatpush1.bf16.msra.mxu0 %v7439_v59  ;;  %3357 = vmatprep.mubr.bf16.mxu0 %v6800_v9  ;;  %v3041_v59 = vshll.u32 %v9055_v53, 16  ;;  %v7480_v9 = vld [vmem:[%s10840_s3 + $0x2b0] ss:$8 sps:$4 sm:$0xff]  }
  0xc8   : > { %3339 = vmatprep.subr.bf16.mxu0 %v7449_v61  ;;  %3721 = vmatpush1.bf16.msra.mxu1 %v7436_v47  ;;  %v3048_v47 = vrot.slane %v3046_v22, 4  ;;  %v7492_v22 = vld [vmem:[%s10840_s3 + $0x290] ss:$8 sps:$4 sm:$0xff]  }
  0xc9   : > { %3722 = vmatprep.subr.bf16.mxu1 %v7444_v31  ;;  %v3051_v31 = vrot.slane %v3049_v48, 5  ;;  %v6842_v48 = vrot.slane %v8826_v40, 9  ;;  %v3468_v40 = vrot.slane %v9055_v53, 5 }
  0xcb   : > { %3340 = vmatpush1.bf16.msra.mxu0 %v7447_v27  ;;  %2931 = vmatmul.mubr.bf16.gmra.mxu1 %v6765_v23  ;;  %v3062_v27 = vrot.slane %v3060_v25, 4  ;;  %v3065_v23 = vrot.slane %v3063_v0, 5 }
  0xcc   : > { %3341 = vmatprep.subr.bf16.mxu0 %v7455_v50  ;;  %3723 = vmatpush1.bf16.msra.mxu1 %v7442_v52  ;;  %v7488_v50 = vld [vmem:[%s10840_s3 + $0x2a4] ss:$8 sps:$4 sm:$0xff]   ;;  %v7489_v52 = vld [vmem:[%s10840_s3 + $0x190] ss:$8 sps:$4 sm:$0xff]  }
  0xcd   : > { %3742 = vmatprep.mubr.bf16.mxu1 %v6848_v38  ;;  %3724 = vmatprep.subr.bf16.mxu1 %v7452_v57  ;;  %v3025_v57 = vrot.slane %v3024_v13, 4  ;;  %v6799_v13 = vcombine.low %v8926_v3, %v8930_v19  ;;  %v7509_v19 = vld [vmem:[%s10840_s3 + $0x364] ss:$8 sps:$4 sm:$0xff]  }
  0xcf   : > { %3342 = vmatpush2.bf16.msra.mxu0 %v7453_v44  ;;  %v3039_v44 = vrot.slane %v3038_v21, 4  ;;  %v3464_v21 = vrot.slane %v9050_v8, 5 }
  0xd0   : > { %3343 = vmatprep.subr.bf16.mxu0 %v7461_v24  ;;  %3725 = vmatpush1.bf16.msra.mxu1 %v7450_v14  ;;  %v7497_v14 = vld [vmem:[%s10840_s3 + $0x184] ss:$8 sps:$4 sm:$0xff]  }
  0xd1   : > { %3726 = vmatprep.subr.bf16.mxu1 %v7458_v32  ;;  %v3029_v32 = vrot.slane %v3027_v10, 5  ;;  %v7501_v10 = vld [vmem:[%s10840_s3 + $0x370] ss:$8 sps:$4 sm:$0xff]  }
  0xd3   : > { %3344 = vmatpush2.bf16.msra.mxu0 %v7459_v34  ;;  %v3043_v34 = vrot.slane %v3041_v59, 5  ;;  %v9123_v42 = vsel %vm7994_vm3, %v3025_v57, %v3029_v32  ;;  %v7506_v57 = vld [vmem:[%s10840_s3 + $0x474] ss:$8 sps:$4 sm:$0xff]   ;;  %v9180_v32 = vsel %vm8168_vm6, %v6842_v48, %v3468_v40 }
  0xd4   : > { %3345 = vmatprep.subr.bf16.mxu0 %v7467_v36  ;;  %3727 = vmatpush2.bf16.msra.mxu1 %v7456_v28  ;;  %v3074_v36 = vshrl.u32 %v8910_v33, 16  ;;  %v7486_v28 = vld [vmem:[%s10840_s3 + $0x2a0] ss:$8 sps:$4 sm:$0xff]  }
  0xd5   : > { %3728 = vmatprep.subr.bf16.mxu1 %v7464_v35  ;;  %v9095_v35 = vld [vmem:[%s8684_s29 + $0x48] sm:$0x11] }
  0xd6   : > { %v3055_v51 = vshll.u32 %v9095_v35, 16  ;;  %v9135_v25 = vrot.slane %v3074_v36, 4 }
  0xd7   : > { %3346 = vmatpush2.bf16.msra.mxu0 %v7465_v20  ;;  %v9098_v20 = vld [vmem:[%s8684_s29 + $0x58] sm:$0x11] }
  0xd8   : > { %3347 = vmatprep.subr.bf16.mxu0 %v7473_v12  ;;  %3729 = vmatpush2.bf16.msra.mxu1 %v7462_v58  ;;  %v3052_v12 = vor.u32 %v3051_v31, %v3048_v47  ;;  %v3066_v58 = vor.u32 %v3065_v23, %v3062_v27  ;;  %v3057_v8 = vrot.slane %v3055_v51, 5  ;;  %v7498_v27 = vld [vmem:[%s10840_s3 + $0x280] ss:$8 sps:$4 sm:$0xff]   ;;  %v7513_v51 = vld [vmem:[%s10840_s3 + $0x350] ss:$8 sps:$4 sm:$0xff]   ;;  %v3476_v48 = vrot.slane %v9098_v20, 5 }
  0xd9   : > { %3730 = vmatprep.subr.bf16.mxu1 %v7470_v17  ;;  %v7494_v17 = vld [vmem:[%s10840_s3 + $0x294] ss:$8 sps:$4 sm:$0xff]   ;;  %v9164_v23 = vld [vmem:[%s8684_s29 + $0x68] sm:$0x11] }
  0xdb   : > { %3348 = vmatpush2.bf16.msra.mxu0 %v7471_v55  ;;  %v6841_v55 = vrot.slane %v8819_v6, 9  ;;  %v9127_v6 = vsel %vm7994_vm3, %v3039_v44, %v3043_v34  ;;  %v6843_v34 = vrot.slane %v8872_v26, 9  ;;  %v6844_v26 = vrot.slane %v8875_v60, 9 }
  0xdc   : > { %3349 = vmatprep.subr.bf16.mxu0 %v7479_v5  ;;  %3731 = vmatpush2.bf16.msra.mxu1 %v7468_v29  ;;  %v3088_v5 = vshrl.u32 %v8913_v54, 16  ;;  %v3091_v29 = vshll.u32 %v8913_v54, 16  ;;  %v6802_v59 = vcombine.high %v9123_v42, %v9127_v6 }
  0xdd   : > { %3732 = vmatprep.subr.bf16.mxu1 %v7476_v43 }
  0xde   : > { %v9052_v16 = vpop.f32.mrf.mxu0  ;;  %v3093_v47 = vrot.slane %v3091_v29, 5 }
  0xdf   : > { %3350 = vmatpush2.bf16.msra.mxu0 %v7477_v4  ;;  %v3069_v4 = vshll.u32 %v9098_v20, 16 }
  0xe0   : > { %v9062_v11 = vpop.f32.mrf.mxu0  ;;  %3351 = vmatprep.subr.bf16.mxu0 %v7485_v18  ;;  %3733 = vmatpush2.bf16.msra.mxu1 %v7474_v7  ;;  %v3053_v7 = vrot.slane %v3052_v12, 4  ;;  %v3067_v18 = vrot.slane %v3066_v58, 4  ;;  %v7504_v12 = vld [vmem:[%s10840_s3 + $0x470] ss:$8 sps:$4 sm:$0xff]  }
  0xe1   : > { %3734 = vmatprep.subr.bf16.mxu1 %v7482_v2  ;;  %v9085_v24 = vpop.f32.mrf.mxu1  ;;  %v7500_v2 = vld [vmem:[%s10840_s3 + $0x284] ss:$8 sps:$4 sm:$0xff]   ;;  %v3071_v53 = vrot.slane %v3069_v4, 5 }
  0xe2   : > { %v9075_v61 = vpop.f32.mrf.mxu0 }
  0xe3   : > { %3352 = vmatpush2.bf16.msra.mxu0 %v7483_v62  ;;  %v9100_v39 = vpop.f32.mrf.mxu1  ;;  %v9210_v60 = vsel %vm7994_vm3, %v3067_v18, %v3071_v53 }
  0xe4   : > { %v9083_v38 = vpop.f32.mrf.mxu0  ;;  %3353 = vmatprep.subr.bf16.mxu0 %v7491_v46  ;;  %3735 = vmatpush2.bf16.msra.mxu1 %v7480_v9  ;;  %v3079_v46 = vrot.slane %v3077_v63, 5  ;;  %v3090_v9 = vrot.slane %v3088_v5, 4  ;;  %v3083_v5 = vshll.u32 %v9164_v23, 16 }
  0xe5   : > { %3736 = vmatprep.subr.bf16.mxu1 %v7488_v50  ;;  %v9114_v43 = vpop.f32.mrf.mxu1  ;;  %v9167_v50 = vld [vmem:[%s8684_s29 + $0x78] sm:$0x11] }
  0xe6   : > { %v9105_v41 = vpop.f32.mrf.mxu0  ;;  %v3080_v36 = vor.u32 %v3079_v46, %v9135_v25  ;;  %v3094_v63 = vor.u32 %v3093_v47, %v3090_v9  ;;  %v3097_v29 = vshll.u32 %v9167_v50, 16  ;;  %v6801_v25 = vcombine.low %v9123_v42, %v9127_v6  ;;  %v7521_v42 = vld [vmem:[%s10840_s3 + $0x344] ss:$8 sps:$4 sm:$0xff]  }
  0xe7   : > { %3354 = vmatpush2.bf16.msra.mxu0 %v7489_v52  ;;  %v9137_v0 = vpop.f32.mrf.mxu1  ;;  %v3085_v6 = vrot.slane %v3083_v5, 5  ;;  %v9258_v47 = vsel %vm8168_vm6, %v6844_v26, %v3476_v48  ;;  %v3484_v5 = vrot.slane %v9167_v50, 5 }
  0xe8   : > { %v9116_v30 = vpop.f32.mrf.mxu0  ;;  %3355 = vmatprep.subr.bf16.mxu0 %v7497_v14  ;;  %3737 = vmatpush2.bf16.msra.mxu1 %v7486_v28  ;;  %10860 = vst [vmem:[#allocation4_spill] sm:$0xff] %v9137_v0  ;;  %v9176_v14 = vsel %vm8168_vm6, %v6841_v55, %v3464_v21  ;;  %v6847_v28 = vcombine.low %v8964_v49, %v8968_v15  ;;  %v7512_v49 = vld [vmem:[%s10840_s3 + $0x464] ss:$8 sps:$4 sm:$0xff]   ;;  %v7515_v15 = vld [vmem:[%s10840_s3 + $0x354] ss:$8 sps:$4 sm:$0xff]   ;;  %v3081_v21 = vrot.slane %v3080_v36, 4 }
  0xe9   : > { %3738 = vmatprep.subr.bf16.mxu1 %v7494_v17  ;;  %v7507_v17 = vld [vmem:[%s10840_s3 + $0x360] ss:$8 sps:$4 sm:$0xff]   ;;  %v6850_v4 = vcombine.high %v9176_v14, %v9180_v32  ;;  %v3099_v46 = vrot.slane %v3097_v29, 5  ;;  %v9308_v29 = vld [vmem:[%s8684_s29 + $0x18] sm:$0x11] }
  0xea   : > { %v9142_v62 = vpop.f32.mrf.mxu0  ;;  %v9153_v31 = vpop.f32.mrf.mxu1 }
  0xeb   : > { %3356 = vmatpush2.bf16.msra.mxu0 %v7495_v1 }
  0xec   : > { %v9155_v3 = vpop.f32.mrf.mxu0  ;;  %4080 = vmatprep.subr.bf16.mxu0 %v7503_v56  ;;  %3739 = vmatpush2.bf16.msra.mxu1 %v7492_v22  ;;  %v9169_v52 = vpop.f32.mrf.mxu1  ;;  %v3472_v22 = vrot.slane %v9095_v35, 5  ;;  %v9237_v35 = vld [vmem:[%s8684_s29 + $0x20] sm:$0xff] }
  0xed   : > { %3740 = vmatprep.subr.bf16.mxu1 %v7500_v2 }
  0xee   : > { %3358 = vmatmul.mubr.bf16.vlgmr.msra.gmra.mxu0 %v6799_v13  ;;  %v529_v44 = vpop.f32.mrf.mxu0  ;;  %v9196_v1 = vpop.f32.mrf.mxu1  ;;  %v9254_v9 = vsel %vm8168_vm6, %v6843_v34, %v3472_v22  ;;  %v7516_v34 = vld [vmem:[%s10840_s3 + $0x450] ss:$8 sps:$4 sm:$0xff]  }
  0xef   : > { %v9190_v58 = vadd.f32 %v9085_v24, %v529_v44  ;;  %4081 = vmatpush1.bf16.msra.mxu0 %v7501_v10  ;;  %3367 = vmatprep.mubr.bf16.mxu0 %v6802_v59  ;;  %v9206_v24 = vsel %vm7994_vm3, %v3053_v7, %v3057_v8  ;;  %v7510_v10 = vld [vmem:[%s10840_s3 + $0x460] ss:$8 sps:$4 sm:$0xff]   ;;  %v7518_v59 = vld [vmem:[%s10840_s3 + $0x454] ss:$8 sps:$4 sm:$0xff]   ;;  %v4219_v44 = vshll.u32 %v9237_v35, 16 }
  0xf0   : > { %v531_v55 = vpop.f32.mrf.mxu0  ;;  %4082 = vmatprep.subr.bf16.mxu0 %v7509_v19  ;;  %3741 = vmatpush2.bf16.msra.mxu1 %v7498_v27  ;;  %v9224_v7 = vpop.f32.mrf.mxu1  ;;  %v6804_v13 = vcombine.high %v9206_v24, %v9210_v60 }
  0xf1   : > { %v9215_v56 = vadd.f32 %v9100_v39, %v531_v55  ;;  %10861 = vst [vmem:[#allocation5_spill] sm:$0xff] %v9224_v7  ;;  %4537 = vmatprep.subr.bf16.mxu1 %v7506_v57  ;;  %v9229_v39 = vld [vmem:[%s8684_s29 + $0x10] sm:$0xff]  ;;  %v4216_v57 = vshrl.u32 %v9237_v35, 16 }
  0xf2   : > { %v533_v18 = vpop.f32.mrf.mxu0  ;;  %v9239_v20 = vpop.f32.mrf.mxu1  ;;  %v4202_v53 = vshrl.u32 %v9229_v39, 16  ;;  %v4205_v27 = vshll.u32 %v9229_v39, 16 }
  0xf3   : > { %v9232_v2 = vadd.f32 %v9114_v43, %v533_v18  ;;  %4083 = vmatpush1.bf16.msra.mxu0 %v7507_v17  ;;  %3743 = vmatmul.mubr.bf16.vlgmr.msra.gmra.mxu1 %v6847_v28  ;;  %v3095_v43 = vrot.slane %v3094_v63, 4  ;;  %v7519_v28 = vld [vmem:[%s10840_s3 + $0x340] ss:$8 sps:$4 sm:$0xff]   ;;  %v6846_v17 = vrot.slane %v8913_v54, 9  ;;  %v6849_v63 = vcombine.low %v9176_v14, %v9180_v32 }
  0xf4   : > { %v9241_v40 = vpop.f32.mrf.mxu0  ;;  %4084 = vmatprep.subr.bf16.mxu0 %v7515_v15  ;;  %4538 = vmatpush1.bf16.msra.mxu1 %v7504_v12  ;;  %v9260_v19 = vpop.f32.mrf.mxu1  ;;  %v6845_v12 = vrot.slane %v8910_v33, 9  ;;  %v7527_v33 = vld [vmem:[%s10840_s3 + $0x334] ss:$8 sps:$4 sm:$0xff]   ;;  %v9291_v54 = vsel %vm7994_vm3, %v3081_v21, %v3085_v6  ;;  %v7525_v15 = vld [vmem:[%s10840_s3 + $0x330] ss:$8 sps:$4 sm:$0xff]   ;;  %v4207_v22 = vrot.slane %v4205_v27, 5 }
  0xf5   : > { %3752 = vmatprep.mubr.bf16.mxu1 %v6850_v4  ;;  %4539 = vmatprep.subr.bf16.mxu1 %v7512_v49  ;;  %v6803_v49 = vcombine.low %v9206_v24, %v9210_v60  ;;  %v9295_v14 = vsel %vm7994_vm3, %v3095_v43, %v3099_v46  ;;  %v6852_v24 = vcombine.high %v9254_v9, %v9258_v47  ;;  %v3480_v60 = vrot.slane %v9164_v23, 5  ;;  %v9318_v23 = vld [vmem:[%s8684_s29 + $0x28] sm:$0x11] }
  0xf6   : > { %3368 = vmatmul.mubr.bf16.gmra.mxu0 %v6801_v25  ;;  %v539_v8 = vpop.f32.mrf.mxu0  ;;  %v9277_v26 = vpop.f32.mrf.mxu1  ;;  %v4218_v48 = vrot.slane %v4216_v57, 4  ;;  %v4221_v18 = vrot.slane %v4219_v44, 5  ;;  %v9336_v43 = vsel %vm8168_vm6, %v6846_v17, %v3484_v5  ;;  %v4225_v57 = vshll.u32 %v9318_v23, 16 }
  0xf7   : > { %v9270_v36 = vadd.f32 %v9153_v31, %v539_v8  ;;  %4085 = vmatpush1.bf16.msra.mxu0 %v7513_v51  ;;  %3377 = vmatprep.mubr.bf16.mxu0 %v6804_v13  ;;  %v7524_v31 = vld [vmem:[%s10840_s3 + $0x444] ss:$8 sps:$4 sm:$0xff]   ;;  %v6806_v13 = vcombine.high %v9291_v54, %v9295_v14  ;;  %v9332_v6 = vsel %vm8168_vm6, %v6845_v12, %v3480_v60 }
  0xf8   : > { %v541_v55 = vpop.f32.mrf.mxu0  ;;  %4086 = vmatprep.subr.bf16.mxu0 %v7521_v42  ;;  %4540 = vmatpush1.bf16.msra.mxu1 %v7510_v10  ;;  %v9310_v51 = vpop.f32.mrf.mxu1  ;;  %v7533_v42 = vld [vmem:[%s10840_s3 + $0x324] ss:$8 sps:$4 sm:$0xff]   ;;  %v7530_v10 = vld [vmem:[%s10840_s3 + $0x434] ss:$8 sps:$4 sm:$0xff]   ;;  %v4222_v27 = vor.u32 %v4221_v18, %v4218_v48  ;;  %v6851_v12 = vcombine.low %v9254_v9, %v9258_v47  ;;  %v6805_v9 = vcombine.low %v9291_v54, %v9295_v14  ;;  %v4227_v5 = vrot.slane %v4225_v57, 5 }
  0xf9   : > { %v9298_v32 = vadd.f32 %v9169_v52, %v541_v55  ;;  %4541 = vmatprep.subr.bf16.mxu1 %v7518_v59  ;;  %v4204_v52 = vrot.slane %v4202_v53, 4  ;;  %v4211_v53 = vshll.u32 %v9308_v29, 16  ;;  %v6854_v47 = vcombine.high %v9332_v6, %v9336_v43  ;;  %v7542_v18 = vld [vmem:[%s10840_s3 + $0x414] ss:$8 sps:$4 sm:$0xff]  }
  0xfa   : > { %v543_v4 = vpop.f32.mrf.mxu0  ;;  %v9320_v50 = vpop.f32.mrf.mxu1  ;;  %v4223_v60 = vrot.slane %v4222_v27, 4  ;;  %v6904_v54 = vcombine.high %v9229_v39, %v9237_v35  ;;  %v7551_v57 = vld [vmem:[%s10840_s3 + $0x3f4] ss:$8 sps:$4 sm:$0xff]  }
  0xfb   : > { %v9313_v25 = vadd.f32 %v9196_v1, %v543_v4  ;;  %4087 = vmatpush1.bf16.msra.mxu0 %v7519_v28  ;;  %3753 = vmatmul.mubr.bf16.gmra.mxu1 %v6849_v63  ;;  %v7522_v1 = vld [vmem:[%s10840_s3 + $0x440] ss:$8 sps:$4 sm:$0xff]   ;;  %v4208_v8 = vor.u32 %v4207_v22, %v4204_v52  ;;  %v7539_v63 = vld [vmem:[%s10840_s3 + $0x314] ss:$8 sps:$4 sm:$0xff]   ;;  %v7537_v4 = vld [vmem:[%s10840_s3 + $0x310] ss:$8 sps:$4 sm:$0xff]  }
  0xfc   : > { %v9322_v21 = vpop.f32.mrf.mxu0  ;;  %4088 = vmatprep.subr.bf16.mxu0 %v7527_v33  ;;  %4542 = vmatpush1.bf16.msra.mxu1 %v7516_v34  ;;  %v9338_v46 = vpop.f32.mrf.mxu1  ;;  %v7531_v34 = vld [vmem:[%s10840_s3 + $0x320] ss:$8 sps:$4 sm:$0xff]   ;;  %v7545_v22 = vld [vmem:[%s10840_s3 + $0x304] ss:$8 sps:$4 sm:$0xff]  }
  0xfd   : > { %10862 = vst [vmem:[#allocation6_spill] sm:$0xff] %v9322_v21  ;;  %3762 = vmatprep.mubr.bf16.mxu1 %v6852_v24  ;;  %4543 = vmatprep.subr.bf16.mxu1 %v7524_v31  ;;  %v7536_v31 = vld [vmem:[%s10840_s3 + $0x424] ss:$8 sps:$4 sm:$0xff]   ;;  %v4213_v24 = vrot.slane %v4211_v53, 5  ;;  %v6853_v53 = vcombine.low %v9332_v6, %v9336_v43 }
  0xfe   : > { %3378 = vmatmul.mubr.bf16.gmra.mxu0 %v6803_v49  ;;  %v785_v59 = vpop.f32.mrf.mxu0  ;;  %v9351_v28 = vpop.f32.mrf.mxu1  ;;  %v7548_v6 = vld [vmem:[%s10840_s3 + $0x404] ss:$8 sps:$4 sm:$0xff]  }
  0xff   : > { %v9346_v44 = vadd.f32 %v785_v59, %v9052_v16  ;;  %4089 = vmatpush1.bf16.msra.mxu0 %v7525_v15  ;;  %3387 = vmatprep.mubr.bf16.mxu0 %v6806_v13  ;;  %v7528_v16 = vld [vmem:[%s10840_s3 + $0x430] ss:$8 sps:$4 sm:$0xff]   ;;  %v4209_v15 = vrot.slane %v4208_v8, 4  ;;  %v7543_v59 = vld [vmem:[%s10840_s3 + $0x300] ss:$8 sps:$4 sm:$0xff]  }
 0x100   : > { %v787_v17 = vpop.f32.mrf.mxu0  ;;  %4090 = vmatprep.subr.bf16.mxu0 %v7533_v42  ;;  %4544 = vmatpush1.bf16.msra.mxu1 %v7522_v1  ;;  %v9371_v49 = vpop.f32.mrf.mxu1  ;;  %v9402_v1 = vsel %vm7994_vm3, %v4223_v60, %v4227_v5  ;;  %v7555_v60 = vld [vmem:[%s10840_s3 + $0x3e0] ss:$8 sps:$4 sm:$0xff]   ;;  %v7584_v21 = vld [vmem:[%s10840_s3 + $0x4a4] ss:$8 sps:$4 sm:$0xff]  }
 0x101   : > { %v9362_v55 = vadd.f32 %v787_v17, %v9062_v11  ;;  %4545 = vmatprep.subr.bf16.mxu1 %v7530_v10  ;;  %v9398_v42 = vsel %vm7994_vm3, %v4209_v15, %v4213_v24 }
 0x102   : > { %v789_v33 = vpop.f32.mrf.mxu0  ;;  %v9381_v14 = vpop.f32.mrf.mxu1 }
 0x103   : > { %v9374_v11 = vadd.f32 %v789_v33, %v9075_v61  ;;  %4091 = vmatpush1.bf16.msra.mxu0 %v7531_v34  ;;  %3763 = vmatmul.mubr.bf16.gmra.mxu1 %v6851_v12  ;;  %v7534_v61 = vld [vmem:[%s10840_s3 + $0x420] ss:$8 sps:$4 sm:$0xff]   ;;  %v6944_v12 = vcombine.high %v9398_v42, %v9402_v1  ;;  %v7554_v33 = vld [vmem:[%s10840_s3 + $0x4f4] ss:$8 sps:$4 sm:$0xff]  }
 0x104   : > { %v9383_v52 = vpop.f32.mrf.mxu0  ;;  %4092 = vmatprep.subr.bf16.mxu0 %v7539_v63  ;;  %4546 = vmatpush1.bf16.msra.mxu1 %v7528_v16  ;;  %v9391_v48 = vpop.f32.mrf.mxu1  ;;  %v7549_v16 = vld [vmem:[%s10840_s3 + $0x3f0] ss:$8 sps:$4 sm:$0xff]  }
 0x105   : > { %3772 = vmatprep.mubr.bf16.mxu1 %v6854_v47  ;;  %4547 = vmatprep.subr.bf16.mxu1 %v7536_v31 }
 0x106   : > { %3388 = vmatmul.mubr.bf16.gmra.mxu0 %v6805_v9  ;;  %v795_v13 = vpop.f32.mrf.mxu0  ;;  %v9410_v8 = vpop.f32.mrf.mxu1  ;;  %v7557_v9 = vld [vmem:[%s10840_s3 + $0x3e4] ss:$8 sps:$4 sm:$0xff]  }
 0x107   : > { %v9405_v10 = vadd.f32 %v795_v13, %v9105_v41  ;;  %4093 = vmatpush1.bf16.msra.mxu0 %v7537_v4  ;;  %4112 = vmatprep.mubr.bf16.mxu0 %v6904_v54  ;;  %v7540_v41 = vld [vmem:[%s10840_s3 + $0x410] ss:$8 sps:$4 sm:$0xff]   ;;  %v7563_v54 = vld [vmem:[%s10840_s3 + $0x3d4] ss:$8 sps:$4 sm:$0xff]   ;;  %v7560_v13 = vld [vmem:[%s10840_s3 + $0x4e4] ss:$8 sps:$4 sm:$0xff]  }
 0x108   : > { %v797_v27 = vpop.f32.mrf.mxu0  ;;  %4094 = vmatprep.subr.bf16.mxu0 %v7545_v22  ;;  %4548 = vmatpush1.bf16.msra.mxu1 %v7534_v61  ;;  %v9423_v17 = vpop.f32.mrf.mxu1  ;;  %v7552_v22 = vld [vmem:[%s10840_s3 + $0x4f0] ss:$8 sps:$4 sm:$0xff]  }
 0x109   : > { %v845_v34 = vadd.f32 %v797_v27, %v9116_v30  ;;  %10863 = vst [vmem:[#allocation7_spill] sm:$0xff] %v9423_v17  ;;  %4549 = vmatprep.subr.bf16.mxu1 %v7542_v18  ;;  %v7561_v27 = vld [vmem:[%s10840_s3 + $0x3d0] ss:$8 sps:$4 sm:$0xff]   ;;  %v9569_v17 = vld [vmem:[%s8684_s29 + $0x48] sm:$0x11] }
 0x10a   : > { %v799_v43 = vpop.f32.mrf.mxu0  ;;  %v9434_v30 = vpop.f32.mrf.mxu1  ;;  %10868 = vst [vmem:[#allocation12_spill] sm:$0xff] %v9569_v17 }
 0x10b   : > { %v9429_v63 = vadd.f32 %v799_v43, %v9142_v62  ;;  %4095 = vmatpush1.bf16.msra.mxu0 %v7543_v59  ;;  %3773 = vmatmul.mubr.bf16.gmra.mxu1 %v6853_v53  ;;  %v7546_v62 = vld [vmem:[%s10840_s3 + $0x400] ss:$8 sps:$4 sm:$0xff]  }
 0x10c   : > { %v9436_v31 = vpop.f32.mrf.mxu0  ;;  %4096 = vmatprep.subr.bf16.mxu0 %v7551_v57  ;;  %4550 = vmatpush1.bf16.msra.mxu1 %v7540_v41  ;;  %v9444_v47 = vpop.f32.mrf.mxu1  ;;  %v7569_v41 = vld [vmem:[%s10840_s3 + $0x3c4] ss:$8 sps:$4 sm:$0xff]  }
 0x10d   : > { %4569 = vmatprep.mubr.bf16.mxu1 %v6944_v12  ;;  %4551 = vmatprep.subr.bf16.mxu1 %v7548_v6  ;;  %v7566_v6 = vld [vmem:[%s10840_s3 + $0x4d4] ss:$8 sps:$4 sm:$0xff]  }
 0x10e   : > { %v1021_v15 = vpop.f32.mrf.mxu0  ;;  %v9453_v5 = vpop.f32.mrf.mxu1 }
 0x10f   : > { %v1076_v24 = vadd.f32 %v1021_v15, %v9346_v44  ;;  %4097 = vmatpush2.bf16.msra.mxu0 %v7549_v16  ;;  %v7564_v16 = vld [vmem:[%s10840_s3 + $0x4d0] ss:$8 sps:$4 sm:$0xff]   ;;  %v7575_v15 = vld [vmem:[%s10840_s3 + $0x3b4] ss:$8 sps:$4 sm:$0xff]  }
 0x110   : > { %v1023_v4 = vpop.f32.mrf.mxu0  ;;  %4098 = vmatprep.subr.bf16.mxu0 %v7557_v9  ;;  %4552 = vmatpush1.bf16.msra.mxu1 %v7546_v62  ;;  %v9465_v18 = vpop.f32.mrf.mxu1 }
 0x111   : > { %v1077_v44 = vadd.f32 %v1023_v4, %v9362_v55  ;;  %v9463_v61 = vadd.f32 %v9239_v20, %v1076_v24  ;;  %10864 = vst [vmem:[#allocation8_spill] sm:$0xff] %v9465_v18  ;;  %4553 = vmatprep.subr.bf16.mxu1 %v7554_v33  ;;  %v9508_v24 = vld [vmem:[%s8684_s29 + $0x30] sm:$0xff]  ;;  %v9511_v4 = vld [vmem:[%s8684_s29 + $0x40] sm:$0xff]  ;;  %v9561_v18 = vld [vmem:[%s8684_s29 + $0x38] sm:$0x11] }
 0x112   : > { %v1025_v59 = vpop.f32.mrf.mxu0  ;;  %v9477_v20 = vpop.f32.mrf.mxu1  ;;  %10865 = vst [vmem:[#allocation9_spill] sm:$0xff] %v9511_v4  ;;  %10866 = vst [vmem:[#allocation10_spill] sm:$0xff] %v9561_v18 }
 0x113   : > { %v1078_v53 = vadd.f32 %v1025_v59, %v9374_v11  ;;  %4099 = vmatpush2.bf16.msra.mxu0 %v7555_v60  ;;  %v9475_v55 = vadd.f32 %v9260_v19, %v1077_v44  ;;  %v7558_v11 = vld [vmem:[%s10840_s3 + $0x4e0] ss:$8 sps:$4 sm:$0xff]  }
 0x114   : > { %v9479_v57 = vpop.f32.mrf.mxu0  ;;  %4100 = vmatprep.subr.bf16.mxu0 %v7563_v54  ;;  %4554 = vmatpush2.bf16.msra.mxu1 %v7552_v22  ;;  %v9490_v19 = vpop.f32.mrf.mxu1  ;;  %v7572_v22 = vld [vmem:[%s10840_s3 + $0x4c4] ss:$8 sps:$4 sm:$0xff]  }
 0x115   : > { %v9488_v12 = vadd.f32 %v9277_v26, %v1078_v53  ;;  %4555 = vmatprep.subr.bf16.mxu1 %v7560_v13  ;;  %v7567_v26 = vld [vmem:[%s10840_s3 + $0x3c0] ss:$8 sps:$4 sm:$0xff]   ;;  %v4233_v53 = vshll.u32 %v9508_v24, 16 }
 0x116   : > { %v1031_v43 = vpop.f32.mrf.mxu0  ;;  %v9502_v62 = vpop.f32.mrf.mxu1  ;;  %v7570_v13 = vld [vmem:[%s10840_s3 + $0x4c0] ss:$8 sps:$4 sm:$0xff]  }
 0x117   : > { %v1080_v9 = vadd.f32 %v1031_v43, %v9405_v10  ;;  %4101 = vmatpush2.bf16.msra.mxu0 %v7561_v27  ;;  %v4244_v43 = vshrl.u32 %v9511_v4, 16 }
 0x118   : > { %v1033_v33 = vpop.f32.mrf.mxu0  ;;  %4102 = vmatprep.subr.bf16.mxu0 %v7569_v41  ;;  %4556 = vmatpush2.bf16.msra.mxu1 %v7558_v11  ;;  %v9516_v54 = vpop.f32.mrf.mxu1 }
 0x119   : > { %v1081_v60 = vadd.f32 %v1033_v33, %v845_v34  ;;  %v9514_v10 = vadd.f32 %v9320_v50, %v1080_v9  ;;  %4557 = vmatprep.subr.bf16.mxu1 %v7566_v6  ;;  %v7573_v50 = vld [vmem:[%s10840_s3 + $0x3b0] ss:$8 sps:$4 sm:$0xff]   ;;  %v4230_v34 = vshrl.u32 %v9508_v24, 16  ;;  %v7581_v6 = vld [vmem:[%s10840_s3 + $0x3a4] ss:$8 sps:$4 sm:$0xff]   ;;  %v4247_v9 = vshll.u32 %v9511_v4, 16 }
 0x11a   : > { %v1035_v44 = vpop.f32.mrf.mxu0  ;;  %v9533_v41 = vpop.f32.mrf.mxu1  ;;  %v4246_v45 = vrot.slane %v4244_v43, 4  ;;  %v7582_v43 = vld [vmem:[%s10840_s3 + $0x4a0] ss:$8 sps:$4 sm:$0xff]  }
 0x11b   : > { %v1082_v59 = vadd.f32 %v1035_v44, %v9429_v63  ;;  %4103 = vmatpush2.bf16.msra.mxu0 %v7567_v26  ;;  %v9531_v27 = vadd.f32 %v9338_v46, %v1081_v60  ;;  %v7578_v63 = vld [vmem:[%s10840_s3 + $0x4b4] ss:$8 sps:$4 sm:$0xff]   ;;  %v7579_v46 = vld [vmem:[%s10840_s3 + $0x3a0] ss:$8 sps:$4 sm:$0xff]   ;;  %v4249_v0 = vrot.slane %v4247_v9, 5  ;;  %v4253_v9 = vshll.u32 %v9569_v17, 16 }
 0x11c   : > { %v9535_v11 = vpop.f32.mrf.mxu0  ;;  %4104 = vmatprep.subr.bf16.mxu0 %v7575_v15  ;;  %4558 = vmatpush2.bf16.msra.mxu1 %v7564_v16  ;;  %v9551_v33 = vpop.f32.mrf.mxu1  ;;  %v7587_v60 = vld [vmem:[%s10840_s3 + $0x394] ss:$8 sps:$4 sm:$0xff]   ;;  %v7576_v16 = vld [vmem:[%s10840_s3 + $0x4b0] ss:$8 sps:$4 sm:$0xff]  }
 0x11d   : > { %v9549_v26 = vadd.f32 %v9351_v28, %v1082_v59  ;;  %4559 = vmatprep.subr.bf16.mxu1 %v7572_v22  ;;  %v4232_v28 = vrot.slane %v4230_v34, 4  ;;  %v4235_v59 = vrot.slane %v4233_v53, 5 }
 0x11e   : > { %v1041_v15 = vpop.f32.mrf.mxu0  ;;  %v9563_v7 = vpop.f32.mrf.mxu1 }
 0x11f   : > { %v1084_v44 = vadd.f32 %v1041_v15, %v9190_v58  ;;  %4105 = vmatpush2.bf16.msra.mxu0 %v7573_v50  ;;  %10867 = vst [vmem:[#allocation11_spill] sm:$0xff] %v9563_v7  ;;  %v9573_v50 = vld [vmem:[%s8684_s29 + $0x50] sm:$0xff]  ;;  %v4239_v15 = vshll.u32 %v9561_v18, 16  ;;  %v9582_v7 = vld [vmem:[%s8684_s29 + $0x60] sm:$0xff] }
 0x120   : > { %v1043_v22 = vpop.f32.mrf.mxu0  ;;  %4106 = vmatprep.subr.bf16.mxu0 %v7581_v6  ;;  %4560 = vmatpush2.bf16.msra.mxu1 %v7570_v13  ;;  %v9578_v53 = vpop.f32.mrf.mxu1  ;;  %v4261_v18 = vshll.u32 %v9573_v50, 16 }
 0x121   : > { %v1085_v58 = vadd.f32 %v1043_v22, %v9215_v56  ;;  %v9576_v34 = vadd.f32 %v9381_v14, %v1084_v44  ;;  %10870 = vst [vmem:[#allocation14_spill] sm:$0xff] %v9578_v53  ;;  %4561 = vmatprep.subr.bf16.mxu1 %v7578_v63  ;;  %v7585_v56 = vld [vmem:[%s10840_s3 + $0x390] ss:$8 sps:$4 sm:$0xff]   ;;  %v4236_v14 = vor.u32 %v4235_v59, %v4232_v28  ;;  %v4272_v28 = vshrl.u32 %v9582_v7, 16 }
 0x122   : > { %v1045_v6 = vpop.f32.mrf.mxu0  ;;  %v9595_v44 = vpop.f32.mrf.mxu1  ;;  %v4275_v59 = vshll.u32 %v9582_v7, 16 }
 0x123   : > { %10869 = vst [vmem:[#allocation13_spill] sm:$0xff] %v9576_v34  ;;  %v1086_v13 = vadd.f32 %v1045_v6, %v9232_v2  ;;  %4107 = vmatpush2.bf16.msra.mxu0 %v7579_v46  ;;  %v9593_v63 = vadd.f32 %v9391_v48, %v1085_v58  ;;  %10872 = vst [vmem:[#allocation16_spill] sm:$0xff] %v9595_v44  ;;  %v7593_v2 = vld [vmem:[%s10840_s3 + $0x384] ss:$8 sps:$4 sm:$0xff]   ;;  %v4250_v46 = vor.u32 %v4249_v0, %v4246_v45  ;;  %v7590_v48 = vld [vmem:[%s10840_s3 + $0x494] ss:$8 sps:$4 sm:$0xff]  }
 0x124   : > { %v9597_v22 = vpop.f32.mrf.mxu0  ;;  %4108 = vmatprep.subr.bf16.mxu0 %v7587_v60  ;;  %v4258_v6 = vshrl.u32 %v9573_v50, 16  ;;  %4562 = vmatpush2.bf16.msra.mxu1 %v7576_v16  ;;  %v9612_v58 = vpop.f32.mrf.mxu1  ;;  %v7591_v0 = vld [vmem:[%s10840_s3 + $0x380] ss:$8 sps:$4 sm:$0xff]   ;;  %v7588_v16 = vld [vmem:[%s10840_s3 + $0x490] ss:$8 sps:$4 sm:$0xff]  }
 0x125   : > { %10871 = vst [vmem:[#allocation15_spill] sm:$0xff] %v9593_v63  ;;  %v9610_v60 = vadd.f32 %v9410_v8, %v1086_v13  ;;  %10874 = vst [vmem:[#allocation18_spill] sm:$0xff] %v9612_v58  ;;  %4563 = vmatprep.subr.bf16.mxu1 %v7584_v21  ;;  %v7601_v8 = vld [vmem:[%s10840_s3 + $0x574] ss:$8 sps:$4 sm:$0xff]   ;;  %v9624_v13 = vrot.slane %v4236_v14, 4  ;;  %v4241_v21 = vrot.slane %v4239_v15, 5 }
 0x126   : > { %v1051_v45 = vpop.f32.mrf.mxu0  ;;  %v4255_v58 = vrot.slane %v4253_v9, 5  ;;  %v7596_v63 = vld [vmem:[%s10840_s3 + $0x484] ss:$8 sps:$4 sm:$0xff]   ;;  %v4251_v53 = vrot.slane %v4250_v46, 4  ;;  %v7599_v15 = vld [vmem:[%s10840_s3 + $0x570] ss:$8 sps:$4 sm:$0xff]  }
 0x127   : > { %10873 = vst [vmem:[#allocation17_spill] sm:$0xff] %v9610_v60  ;;  %v1088_v17 = vadd.f32 %v1051_v45, %v9270_v36  ;;  %4109 = vmatpush2.bf16.msra.mxu0 %v7585_v56  ;;  %10875 = vst [vmem:[#allocation19_spill] sm:$0xff] %v9624_v13  ;;  %v9626_v60 = vpop.f32.mrf.mxu1  ;;  %v9632_v36 = vld [vmem:[%s8684_s29 + $0x58] sm:$0x11]  ;;  %v4260_v56 = vrot.slane %v4258_v6, 4  ;;  %v4263_v45 = vrot.slane %v4261_v18, 5  ;;  %v6906_v6 = vcombine.high %v9508_v24, %v9511_v4 }
 0x128   : > { %10876 = vst [vmem:[#allocation20_spill] sm:$0xff] %v9626_v60  ;;  %v1053_v44 = vpop.f32.mrf.mxu0  ;;  %4110 = vmatprep.subr.bf16.mxu0 %v7593_v2  ;;  %10877 = vst [vmem:[#allocation21_spill] sm:$0xff] %v9632_v36  ;;  %4564 = vmatpush2.bf16.msra.mxu1 %v7582_v43  ;;  %v9639_v9 = vld [vmem:[%s8684_s29 + $0x68] sm:$0x11]  ;;  %v4274_v2 = vrot.slane %v4272_v28, 4  ;;  %v4277_v60 = vrot.slane %v4275_v59, 5  ;;  %v6903_v43 = vcombine.low %v9229_v39, %v9237_v35 }
 0x129   : > { %v1089_v14 = vadd.f32 %v1053_v44, %v9298_v32  ;;  %10878 = vst [vmem:[#allocation22_spill] sm:$0xff] %v9639_v9  ;;  %v9642_v34 = vadd.f32 %v9434_v30, %v1088_v17  ;;  %v9644_v46 = vpop.f32.mrf.mxu1  ;;  %4565 = vmatprep.subr.bf16.mxu1 %v7590_v48  ;;  %v7607_v32 = vld [vmem:[%s10840_s3 + $0x564] ss:$8 sps:$4 sm:$0xff]   ;;  %v9655_v28 = vld [vmem:[%s8684_s29 + $0x70] sm:$0xff] }
 0x12a   : > { %10880 = vst [vmem:[#allocation24_spill] sm:$0xff] %v9644_v46  ;;  %v1055_v18 = vpop.f32.mrf.mxu0  ;;  %v9658_v17 = vld [vmem:[%s8684_s29 + $0x80] sm:$0xff]  ;;  %v4281_v46 = vshll.u32 %v9639_v9, 16 }
 0x12b   : > { %10879 = vst [vmem:[#allocation23_spill] sm:$0xff] %v9642_v34  ;;  %v1090_v44 = vadd.f32 %v1055_v18, %v9313_v25  ;;  %4111 = vmatpush2.bf16.msra.mxu0 %v7591_v0  ;;  %v9661_v30 = vadd.f32 %v9444_v47, %v1089_v14  ;;  %v9663_v48 = vpop.f32.mrf.mxu1  ;;  %v9670_v25 = vsel %vm7994_vm3, %v9624_v13, %v4241_v21  ;;  %v4267_v18 = vshll.u32 %v9632_v36, 16  ;;  %v7594_v47 = vld [vmem:[%s10840_s3 + $0x480] ss:$8 sps:$4 sm:$0xff]  }
 0x12c   : > { %v9665_v59 = vpop.f32.mrf.mxu0  ;;  %4922 = vmatprep.subr.bf16.mxu0 %v7601_v8  ;;  %v4264_v0 = vor.u32 %v4263_v45, %v4260_v56  ;;  %v843_v34 = vadd.f32 %v9383_v52, %v9083_v38  ;;  %4566 = vmatpush2.bf16.msra.mxu1 %v7588_v16  ;;  %v9681_v8 = vsel %vm7994_vm3, %v4251_v53, %v4255_v58  ;;  %v7604_v38 = vld [vmem:[%s10840_s3 + $0x674] ss:$8 sps:$4 sm:$0xff]   ;;  %v4286_v16 = vshrl.u32 %v9655_v28, 16 }
 0x12d   : > { %v4278_v14 = vor.u32 %v4277_v60, %v4274_v2  ;;  %v9684_v21 = vadd.f32 %v9453_v5, %v1090_v44  ;;  %v9686_v56 = vpop.f32.mrf.mxu1  ;;  %4567 = vmatprep.subr.bf16.mxu1 %v7596_v63  ;;  %v4289_v45 = vshll.u32 %v9655_v28, 16  ;;  %v4300_v53 = vshrl.u32 %v9658_v17, 16  ;;  %v7605_v63 = vld [vmem:[%s10840_s3 + $0x560] ss:$8 sps:$4 sm:$0xff]  }
 0x12e   : > { %4113 = vmatmul.mubr.bf16.vlgmr.msra.gmra.mxu0 %v6903_v43  ;;  %v1544_v52 = vpop.f32.mrf.mxu0  ;;  %v4303_v60 = vshll.u32 %v9658_v17, 16  ;;  %v1079_v5 = vadd.f32 %v9479_v57, %v843_v34  ;;  %v6905_v2 = vcombine.low %v9508_v24, %v9511_v4  ;;  %v6943_v44 = vcombine.low %v9398_v42, %v9402_v1  ;;  %v7610_v42 = vld [vmem:[%s10840_s3 + $0x664] ss:$8 sps:$4 sm:$0xff]  }
 0x12f   : > { %v1599_v58 = vadd.f32 %v1544_v52, %v9463_v61  ;;  %4923 = vmatpush1.bf16.msra.mxu0 %v7599_v15  ;;  %4122 = vmatprep.mubr.bf16.mxu0 %v6906_v6  ;;  %v9702_v43 = vpop.f32.mrf.mxu1  ;;  %v7615_v61 = vld [vmem:[%s10840_s3 + $0x554] ss:$8 sps:$4 sm:$0xff]   ;;  %v6946_v57 = vcombine.high %v9670_v25, %v9681_v8  ;;  %v4265_v34 = vrot.slane %v4264_v0, 4  ;;  %v4269_v15 = vrot.slane %v4267_v18, 5  ;;  %v7602_v6 = vld [vmem:[%s10840_s3 + $0x670] ss:$8 sps:$4 sm:$0xff]  }
 0x130   : > { %10881 = vst [vmem:[#allocation25_spill] sm:$0xff] %v9702_v43  ;;  %v1546_v13 = vpop.f32.mrf.mxu0  ;;  %4924 = vmatprep.subr.bf16.mxu0 %v7607_v32  ;;  %4568 = vmatpush2.bf16.msra.mxu1 %v7594_v47  ;;  %v4279_v1 = vrot.slane %v4278_v14, 4  ;;  %v4283_v32 = vrot.slane %v4281_v46, 5  ;;  %v9724_v18 = vld [vmem:[%s8684_s29 + $0x78] sm:$0x11]  ;;  %v4288_v47 = vrot.slane %v4286_v16, 4  ;;  %v1297_v14 = vadd.f32 %v9310_v51, %v1079_v5 }
 0x131   : > { %v1600_v52 = vadd.f32 %v1546_v13, %v9475_v55  ;;  %v9719_v9 = vadd.f32 %v9477_v20, %v1599_v58  ;;  %v9721_v36 = vpop.f32.mrf.mxu1  ;;  %5292 = vmatprep.subr.bf16.mxu1 %v7604_v38  ;;  %v4291_v4 = vrot.slane %v4289_v45, 5  ;;  %v4302_v43 = vrot.slane %v4300_v53, 4  ;;  %v7613_v20 = vld [vmem:[%s10840_s3 + $0x550] ss:$8 sps:$4 sm:$0xff]   ;;  %v9734_v38 = vld [vmem:[%s8684_s29 + $0x88] sm:$0x11] }
 0x132   : > { %v1548_v0 = vpop.f32.mrf.mxu0  ;;  %v4305_v55 = vrot.slane %v4303_v60, 5  ;;  %v6908_v46 = vcombine.high %v9573_v50, %v9582_v7  ;;  %v7621_v51 = vld [vmem:[%s10840_s3 + $0x544] ss:$8 sps:$4 sm:$0xff]   ;;  %v847_v53 = vadd.f32 %v9436_v31, %v9155_v3  ;;  %v4295_v5 = vshll.u32 %v9724_v18, 16 }
 0x133   : > { %v1601_v13 = vadd.f32 %v1548_v0, %v9488_v12  ;;  %4925 = vmatpush1.bf16.msra.mxu0 %v7605_v63  ;;  %v9737_v58 = vadd.f32 %v9490_v19, %v1600_v52  ;;  %4570 = vmatmul.mubr.bf16.vlgmr.msra.gmra.mxu1 %v6943_v44  ;;  %v9739_v16 = vpop.f32.mrf.mxu1  ;;  %v9746_v12 = vsel %vm7994_vm3, %v4265_v34, %v4269_v15  ;;  %v7608_v19 = vld [vmem:[%s10840_s3 + $0x660] ss:$8 sps:$4 sm:$0xff]   ;;  %v7618_v44 = vld [vmem:[%s10840_s3 + $0x654] ss:$8 sps:$4 sm:$0xff]  }
 0x134   : > { %v1550_v45 = vpop.f32.mrf.mxu0  ;;  %4926 = vmatprep.subr.bf16.mxu0 %v7615_v61  ;;  %5293 = vmatpush1.bf16.msra.mxu1 %v7602_v6  ;;  %v9762_v3 = vsel %vm7994_vm3, %v4279_v1, %v4283_v32  ;;  %v4292_v31 = vor.u32 %v4291_v4, %v4288_v47  ;;  %v4306_v34 = vor.u32 %v4305_v55, %v4302_v43  ;;  %v4297_v47 = vrot.slane %v4295_v5, 5 }
 0x135   : > { %v1602_v60 = vadd.f32 %v1550_v45, %v1297_v14  ;;  %4579 = vmatprep.mubr.bf16.mxu1 %v6946_v57  ;;  %v9755_v63 = vadd.f32 %v9502_v62, %v1601_v13  ;;  %5294 = vmatprep.subr.bf16.mxu1 %v7610_v42  ;;  %v4309_v57 = vshll.u32 %v9734_v38, 16  ;;  %v1083_v15 = vadd.f32 %v9535_v11, %v847_v53  ;;  %v9773_v52 = vpop.f32.mrf.mxu1  ;;  %v7616_v11 = vld [vmem:[%s10840_s3 + $0x650] ss:$8 sps:$4 sm:$0xff]  }
 0x136   : > { %4123 = vmatmul.mubr.bf16.gmra.mxu0 %v6905_v2  ;;  %v1554_v61 = vpop.f32.mrf.mxu0  ;;  %v7619_v2 = vld [vmem:[%s10840_s3 + $0x540] ss:$8 sps:$4 sm:$0xff]   ;;  %v6945_v4 = vcombine.low %v9670_v25, %v9681_v8  ;;  %v6948_v1 = vcombine.high %v9746_v12, %v9762_v3  ;;  %v7624_v8 = vld [vmem:[%s10840_s3 + $0x644] ss:$8 sps:$4 sm:$0xff]   ;;  %v4293_v0 = vrot.slane %v4292_v31, 4  ;;  %v4307_v55 = vrot.slane %v4306_v34, 4 }
 0x137   : > { %v1603_v62 = vadd.f32 %v1554_v61, %v9514_v10  ;;  %4927 = vmatpush1.bf16.msra.mxu0 %v7613_v20  ;;  %4132 = vmatprep.mubr.bf16.mxu0 %v6908_v46  ;;  %v9771_v6 = vadd.f32 %v9516_v54, %v1602_v60  ;;  %v7629_v10 = vld [vmem:[%s10840_s3 + $0x534] ss:$8 sps:$4 sm:$0xff]   ;;  %v6907_v54 = vcombine.low %v9573_v50, %v9582_v7  ;;  %v4311_v13 = vrot.slane %v4309_v57, 5  ;;  %v9804_v45 = vpop.f32.mrf.mxu1  ;;  %v10883_v31 = vld [vmem:[#allocation11_spill] sm:$0xff] }
 0x138   : > { %v1556_v43 = vpop.f32.mrf.mxu0  ;;  %4928 = vmatprep.subr.bf16.mxu0 %v7621_v51  ;;  %5295 = vmatpush1.bf16.msra.mxu1 %v7608_v19  ;;  %v1301_v14 = vadd.f32 %v9371_v49, %v1083_v15  ;;  %v6910_v20 = vcombine.high %v9655_v28, %v9658_v17  ;;  %v6983_v49 = vrot.slane %v9229_v39, 9  ;;  %v4668_v53 = vrot.slane %v9308_v29, 5  ;;  %v7632_v39 = vld [vmem:[%s10840_s3 + $0x634] ss:$8 sps:$4 sm:$0xff]  }
 0x139   : > { %v1604_v42 = vadd.f32 %v1556_v43, %v9531_v27  ;;  %v9789_v25 = vadd.f32 %v9533_v41, %v1603_v62  ;;  %5296 = vmatprep.subr.bf16.mxu1 %v7618_v44  ;;  %v7627_v41 = vld [vmem:[%s10840_s3 + $0x530] ss:$8 sps:$4 sm:$0xff]   ;;  %v6984_v19 = vrot.slane %v9237_v35, 9  ;;  %v4672_v60 = vrot.slane %v9318_v23, 5  ;;  %v7622_v44 = vld [vmem:[%s10840_s3 + $0x640] ss:$8 sps:$4 sm:$0xff]  }
 0x13a   : > { %v1558_v32 = vpop.f32.mrf.mxu0  ;;  %v9830_v23 = vsel %vm7994_vm3, %v4307_v55, %v4311_v13  ;;  %v10884_v15 = vld [vmem:[#allocation13_spill] sm:$0xff]  ;;  %v7638_v13 = vld [vmem:[%s10840_s3 + $0x624] ss:$8 sps:$4 sm:$0xff]  }
 0x13b   : > { %v1605_v27 = vadd.f32 %v1558_v32, %v9549_v26  ;;  %4929 = vmatpush1.bf16.msra.mxu0 %v7619_v2  ;;  %v9802_v46 = vadd.f32 %v9551_v33, %v1604_v42  ;;  %4580 = vmatmul.mubr.bf16.gmra.mxu1 %v6945_v4  ;;  %v7635_v26 = vld [vmem:[%s10840_s3 + $0x524] ss:$8 sps:$4 sm:$0xff]   ;;  %v7633_v2 = vld [vmem:[%s10840_s3 + $0x520] ss:$8 sps:$4 sm:$0xff]   ;;  %v10885_v4 = vld [vmem:[#allocation14_spill] sm:$0xff] }
 0x13c   : > { %v1560_v51 = vpop.f32.mrf.mxu0  ;;  %4930 = vmatprep.subr.bf16.mxu0 %v7629_v10  ;;  %v10882_v33 = vld [vmem:[#allocation4_spill] sm:$0xff]  ;;  %5297 = vmatpush1.bf16.msra.mxu1 %v7616_v11  ;;  %v9840_v10 = vpop.f32.mrf.mxu1  ;;  %v6947_v11 = vcombine.low %v9746_v12, %v9762_v3  ;;  %v7630_v12 = vld [vmem:[%s10840_s3 + $0x630] ss:$8 sps:$4 sm:$0xff]   ;;  %v10887_v3 = vld [vmem:[#allocation15_spill] sm:$0xff] }
 0x13d   : > { %v851_v5 = vadd.f32 %v10882_v33, %v9241_v40  ;;  %v1606_v61 = vadd.f32 %v1560_v51, %v1301_v14  ;;  %4589 = vmatprep.mubr.bf16.mxu1 %v6948_v1  ;;  %v9819_v34 = vadd.f32 %v10883_v31, %v1605_v27  ;;  %5298 = vmatprep.subr.bf16.mxu1 %v7624_v8  ;;  %v10892_v31 = vld [vmem:[#allocation6_spill] sm:$0xff] }
 0x13e   : > { %4133 = vmatmul.mubr.bf16.gmra.mxu0 %v6907_v54  ;;  %v1564_v29 = vpop.f32.mrf.mxu0  ;;  %v9826_v40 = vsel %vm7994_vm3, %v4293_v0, %v4297_v47  ;;  %v9849_v1 = vsel %vm8168_vm6, %v6983_v49, %v4668_v53  ;;  %v9855_v8 = vsel %vm8168_vm6, %v6984_v19, %v4672_v60  ;;  %v10888_v47 = vld [vmem:[#allocation16_spill] sm:$0xff]  ;;  %v6909_v14 = vcombine.low %v9655_v28, %v9658_v17  ;;  %v7641_v53 = vld [vmem:[%s10840_s3 + $0x510] ss:$8 sps:$4 sm:$0xff]  }
 0x13f   : > { %v1087_v57 = vadd.f32 %v9597_v22, %v851_v5  ;;  %v1607_v62 = vadd.f32 %v1564_v29, %v10884_v15  ;;  %4931 = vmatpush1.bf16.msra.mxu0 %v7627_v41  ;;  %4142 = vmatprep.mubr.bf16.mxu0 %v6910_v20  ;;  %v9838_v43 = vadd.f32 %v10885_v4, %v1606_v61  ;;  %v7643_v22 = vld [vmem:[%s10840_s3 + $0x514] ss:$8 sps:$4 sm:$0xff]   ;;  %v9871_v41 = vpop.f32.mrf.mxu1  ;;  %v7649_v61 = vld [vmem:[%s10840_s3 + $0x504] ss:$8 sps:$4 sm:$0xff]  }
 0x140   : > { %v1566_v42 = vpop.f32.mrf.mxu0  ;;  %4932 = vmatprep.subr.bf16.mxu0 %v7635_v26  ;;  %5299 = vmatpush1.bf16.msra.mxu1 %v7622_v44  ;;  %v6950_v0 = vcombine.high %v9826_v40, %v9830_v23  ;;  %v10889_v20 = vld [vmem:[#allocation17_spill] sm:$0xff]  ;;  %v10890_v26 = vld [vmem:[#allocation7_spill] sm:$0xff]  ;;  %v10891_v60 = vld [vmem:[#allocation18_spill] sm:$0xff]  ;;  %v6992_v5 = vcombine.high %v9849_v1, %v9855_v8 }
 0x141   : > { %v1608_v32 = vadd.f32 %v1566_v42, %v10887_v3  ;;  %v9864_v55 = vadd.f32 %v10888_v47, %v1607_v62  ;;  %5300 = vmatprep.subr.bf16.mxu1 %v7632_v39  ;;  %v1305_v49 = vadd.f32 %v10890_v26, %v1087_v57  ;;  %v10893_v39 = vld [vmem:[#allocation5_spill] sm:$0xff]  ;;  %v7636_v57 = vld [vmem:[%s10840_s3 + $0x620] ss:$8 sps:$4 sm:$0xff]   ;;  %v9897_v42 = vpop.f32.mrf.mxu1 }
 0x142   : > { %v1568_v27 = vpop.f32.mrf.mxu0  ;;  %v855_v29 = vadd.f32 %v10893_v39, %v10892_v31  ;;  %v10894_v62 = vld [vmem:[#allocation20_spill] sm:$0xff]  ;;  %v7646_v4 = vld [vmem:[%s10840_s3 + $0x614] ss:$8 sps:$4 sm:$0xff]   ;;  %v9920_v26 = vld [vmem:[%s8684_s29 + $0x20] sm:$0xff] }
 0x143   : > { %v1609_v51 = vadd.f32 %v1568_v27, %v10889_v20  ;;  %4933 = vmatpush1.bf16.msra.mxu0 %v7633_v2  ;;  %v9879_v33 = vadd.f32 %v10891_v60, %v1608_v32  ;;  %4590 = vmatmul.mubr.bf16.gmra.mxu1 %v6947_v11  ;;  %v7647_v32 = vld [vmem:[%s10840_s3 + $0x500] ss:$8 sps:$4 sm:$0xff]   ;;  %v7661_v31 = vld [vmem:[%s10840_s3 + $0x5e4] ss:$8 sps:$4 sm:$0xff]  }
 0x144   : > { %v1570_v44 = vpop.f32.mrf.mxu0  ;;  %4934 = vmatprep.subr.bf16.mxu0 %v7643_v22  ;;  %5301 = vmatpush1.bf16.msra.mxu1 %v7630_v12  ;;  %v1091_v22 = vadd.f32 %v9665_v59, %v855_v29  ;;  %v10895_v12 = vld [vmem:[#allocation23_spill] sm:$0xff]  ;;  %v7655_v59 = vld [vmem:[%s10840_s3 + $0x5f4] ss:$8 sps:$4 sm:$0xff]  }
 0x145   : > { %v1610_v15 = vadd.f32 %v1570_v44, %v1305_v49  ;;  %4599 = vmatprep.mubr.bf16.mxu1 %v6950_v0  ;;  %v9892_v2 = vadd.f32 %v10894_v62, %v1609_v51  ;;  %5302 = vmatprep.subr.bf16.mxu1 %v7638_v13  ;;  %v10896_v0 = vld [vmem:[#allocation24_spill] sm:$0xff]  ;;  %v6949_v13 = vcombine.low %v9826_v40, %v9830_v23  ;;  %v10898_v29 = vld [vmem:[#allocation25_spill] sm:$0xff] }
 0x146   : > { %4143 = vmatmul.mubr.bf16.gmra.mxu0 %v6909_v14  ;;  %v1574_v11 = vpop.f32.mrf.mxu0  ;;  %v7644_v14 = vld [vmem:[%s10840_s3 + $0x610] ss:$8 sps:$4 sm:$0xff]   ;;  %v7048_v40 = vcombine.high %v9920_v26, %v9508_v24  ;;  %v7652_v23 = vld [vmem:[%s10840_s3 + $0x604] ss:$8 sps:$4 sm:$0xff]  }
 0x147   : > { %v1611_v3 = vadd.f32 %v1574_v11, %v10895_v12  ;;  %4935 = vmatpush1.bf16.msra.mxu0 %v7641_v53  ;;  %v9905_v47 = vadd.f32 %v10896_v0, %v1610_v15  ;;  %4954 = vmatprep.mubr.bf16.mxu0 %v6992_v5  ;;  %v9927_v53 = vpop.f32.mrf.mxu1  ;;  %v7659_v11 = vld [vmem:[%s10840_s3 + $0x5e0] ss:$8 sps:$4 sm:$0xff]  }
 0x148   : > { %v1576_v27 = vpop.f32.mrf.mxu0  ;;  %4936 = vmatprep.subr.bf16.mxu0 %v7649_v61  ;;  %5303 = vmatpush1.bf16.msra.mxu1 %v7636_v57 }
 0x149   : > { %v1612_v20 = vadd.f32 %v1576_v27, %v9661_v30  ;;  %v9917_v51 = vadd.f32 %v9663_v48, %v1611_v3  ;;  %5304 = vmatprep.subr.bf16.mxu1 %v7646_v4  ;;  %v10897_v30 = vld [vmem:[#allocation8_spill] sm:$0xff]  ;;  %v7653_v48 = vld [vmem:[%s10840_s3 + $0x5f0] ss:$8 sps:$4 sm:$0xff]   ;;  %v9949_v62 = vpop.f32.mrf.mxu1  ;;  %v7667_v3 = vld [vmem:[%s10840_s3 + $0x5d4] ss:$8 sps:$4 sm:$0xff]  }
 0x14a   : > { %v1578_v49 = vpop.f32.mrf.mxu0  ;;  %v1309_v5 = vadd.f32 %v10897_v30, %v1091_v22 }
 0x14b   : > { %v1613_v60 = vadd.f32 %v1578_v49, %v9684_v21  ;;  %4937 = vmatpush1.bf16.msra.mxu0 %v7647_v32  ;;  %v9935_v44 = vadd.f32 %v9686_v56, %v1612_v20  ;;  %4600 = vmatmul.mubr.bf16.gmra.mxu1 %v6949_v13  ;;  %v7650_v21 = vld [vmem:[%s10840_s3 + $0x600] ss:$8 sps:$4 sm:$0xff]   ;;  %v7658_v56 = vld [vmem:[%s10840_s3 + $0x6f4] ss:$8 sps:$4 sm:$0xff]   ;;  %v7656_v32 = vld [vmem:[%s10840_s3 + $0x6f0] ss:$8 sps:$4 sm:$0xff]   ;;  %v2320_v27 = vpop.f32.mrf.mxu1 }
 0x14c   : > { %v1580_v61 = vpop.f32.mrf.mxu0  ;;  %4938 = vmatprep.subr.bf16.mxu0 %v7655_v59  ;;  %5305 = vmatpush1.bf16.msra.mxu1 %v7644_v14  ;;  %v7665_v14 = vld [vmem:[%s10840_s3 + $0x5d0] ss:$8 sps:$4 sm:$0xff]  }
 0x14d   : > { %v1614_v39 = vadd.f32 %v1580_v61, %v1309_v5  ;;  %v9944_v57 = vadd.f32 %v10898_v29, %v1613_v60  ;;  %5324 = vmatprep.mubr.bf16.mxu1 %v7048_v40  ;;  %5306 = vmatprep.subr.bf16.mxu1 %v7652_v23  ;;  %v7662_v40 = vld [vmem:[%s10840_s3 + $0x6e0] ss:$8 sps:$4 sm:$0xff]   ;;  %v2322_v60 = vpop.f32.mrf.mxu1  ;;  %v7668_v61 = vld [vmem:[%s10840_s3 + $0x6d0] ss:$8 sps:$4 sm:$0xff]  }
 0x14e   : > { %v1995_v15 = vpop.f32.mrf.mxu0  ;;  %v7671_v5 = vld [vmem:[%s10840_s3 + $0x5c0] ss:$8 sps:$4 sm:$0xff]  }
 0x14f   : > { %v2050_v4 = vadd.f32 %v1995_v15, %v9719_v9  ;;  %4939 = vmatpush2.bf16.msra.mxu0 %v7653_v48  ;;  %v9956_v22 = vadd.f32 %v9721_v36, %v1614_v39  ;;  %v7664_v36 = vld [vmem:[%s10840_s3 + $0x6e4] ss:$8 sps:$4 sm:$0xff]   ;;  %v2324_v39 = vpop.f32.mrf.mxu1 }
 0x150   : > { %v1997_v12 = vpop.f32.mrf.mxu0  ;;  %4940 = vmatprep.subr.bf16.mxu0 %v7661_v31  ;;  %5307 = vmatpush1.bf16.msra.mxu1 %v7650_v21 }
 0x151   : > { %v2051_v9 = vadd.f32 %v1997_v12, %v9737_v58  ;;  %v9966_v0 = vadd.f32 %v9739_v16, %v2050_v4  ;;  %5308 = vmatprep.subr.bf16.mxu1 %v7658_v56  ;;  %v7673_v16 = vld [vmem:[%s10840_s3 + $0x5c4] ss:$8 sps:$4 sm:$0xff]   ;;  %v7677_v56 = vld [vmem:[%s10840_s3 + $0x5b0] ss:$8 sps:$4 sm:$0xff]   ;;  %v7674_v4 = vld [vmem:[%s10840_s3 + $0x6c0] ss:$8 sps:$4 sm:$0xff]  }
 0x152   : > { %v1999_v13 = vpop.f32.mrf.mxu0 }
 0x153   : > { %v2052_v59 = vadd.f32 %v1999_v13, %v9755_v63  ;;  %4941 = vmatpush2.bf16.msra.mxu0 %v7659_v11  ;;  %v9976_v20 = vadd.f32 %v9773_v52, %v2051_v9  ;;  %v7670_v52 = vld [vmem:[%s10840_s3 + $0x6d4] ss:$8 sps:$4 sm:$0xff]   ;;  %v7683_v9 = vld [vmem:[%s10840_s3 + $0x5a0] ss:$8 sps:$4 sm:$0xff]   ;;  %v7680_v13 = vld [vmem:[%s10840_s3 + $0x6b0] ss:$8 sps:$4 sm:$0xff]  }
 0x154   : > { %v2001_v58 = vpop.f32.mrf.mxu0  ;;  %4942 = vmatprep.subr.bf16.mxu0 %v7667_v3  ;;  %5309 = vmatpush2.bf16.msra.mxu1 %v7656_v32  ;;  %v2326_v3 = vpop.f32.mrf.mxu1 }
 0x155   : > { %v2053_v63 = vadd.f32 %v2001_v58, %v9771_v6  ;;  %v9986_v23 = vadd.f32 %v9804_v45, %v2052_v59  ;;  %5310 = vmatprep.subr.bf16.mxu1 %v7664_v36  ;;  %v7679_v45 = vld [vmem:[%s10840_s3 + $0x5b4] ss:$8 sps:$4 sm:$0xff]  }
 0x156   : > { %v2005_v49 = vpop.f32.mrf.mxu0  ;;  %v2330_v58 = vpop.f32.mrf.mxu1 }
 0x157   : > { %v2054_v30 = vadd.f32 %v2005_v49, %v9789_v25  ;;  %4943 = vmatpush2.bf16.msra.mxu0 %v7665_v14  ;;  %v9996_v48 = vadd.f32 %v9840_v10, %v2053_v63  ;;  %v7676_v10 = vld [vmem:[%s10840_s3 + $0x6c4] ss:$8 sps:$4 sm:$0xff]  }
 0x158   : > { %v2007_v6 = vpop.f32.mrf.mxu0  ;;  %4944 = vmatprep.subr.bf16.mxu0 %v7673_v16  ;;  %5311 = vmatpush2.bf16.msra.mxu1 %v7662_v40  ;;  %v6985_v16 = vrot.slane %v9508_v24, 9  ;;  %v10899_v40 = vld [vmem:[#allocation10_spill] sm:$0xff] }
 0x159   : > { %v2055_v25 = vadd.f32 %v2007_v6, %v9802_v46  ;;  %v10006_v31 = vadd.f32 %v9871_v41, %v2054_v30  ;;  %5312 = vmatprep.subr.bf16.mxu1 %v7670_v52  ;;  %v7685_v41 = vld [vmem:[%s10840_s3 + $0x5a4] ss:$8 sps:$4 sm:$0xff]   ;;  %v4676_v63 = vrot.slane %v10899_v40, 5  ;;  %v10903_v40 = vld [vmem:[#allocation22_spill] sm:$0xff] }
 0x15a   : > { %v2009_v21 = vpop.f32.mrf.mxu0  ;;  %v10901_v30 = vld [vmem:[#allocation12_spill] sm:$0xff] }
 0x15b   : > { %v2056_v29 = vadd.f32 %v2009_v21, %v9819_v34  ;;  %4945 = vmatpush2.bf16.msra.mxu0 %v7671_v5  ;;  %v10016_v15 = vadd.f32 %v9897_v42, %v2055_v25  ;;  %v7682_v42 = vld [vmem:[%s10840_s3 + $0x6b4] ss:$8 sps:$4 sm:$0xff]   ;;  %v4680_v5 = vrot.slane %v10901_v30, 5  ;;  %v2332_v21 = vpop.f32.mrf.mxu1 }
 0x15c   : > { %v2011_v46 = vpop.f32.mrf.mxu0  ;;  %4946 = vmatprep.subr.bf16.mxu0 %v7679_v45  ;;  %5313 = vmatpush2.bf16.msra.mxu1 %v7668_v61  ;;  %v7697_v61 = vld [vmem:[%s10840_s3 + $0x584] ss:$8 sps:$4 sm:$0xff]  }
 0x15d   : > { %v2057_v34 = vadd.f32 %v2011_v46, %v9838_v43  ;;  %v10026_v11 = vadd.f32 %v9927_v53, %v2056_v29  ;;  %5314 = vmatprep.subr.bf16.mxu1 %v7676_v10  ;;  %v7691_v53 = vld [vmem:[%s10840_s3 + $0x594] ss:$8 sps:$4 sm:$0xff]   ;;  %v7695_v46 = vld [vmem:[%s10840_s3 + $0x580] ss:$8 sps:$4 sm:$0xff]  }
 0x15e   : > { %v2015_v12 = vpop.f32.mrf.mxu0 }
 0x15f   : > { %v2058_v32 = vadd.f32 %v2015_v12, %v9864_v55  ;;  %4947 = vmatpush2.bf16.msra.mxu0 %v7677_v56  ;;  %v10036_v36 = vadd.f32 %v9949_v62, %v2057_v34  ;;  %v7688_v62 = vld [vmem:[%s10840_s3 + $0x6a4] ss:$8 sps:$4 sm:$0xff]   ;;  %v7692_v34 = vld [vmem:[%s10840_s3 + $0x690] ss:$8 sps:$4 sm:$0xff]  }
 0x160   : > { %v2017_v43 = vpop.f32.mrf.mxu0  ;;  %4948 = vmatprep.subr.bf16.mxu0 %v7685_v41  ;;  %5315 = vmatpush2.bf16.msra.mxu1 %v7674_v4  ;;  %v7705_v4 = vld [vmem:[%s10840_s3 + $0x774] ss:$8 sps:$4 sm:$0xff]  }
 0x161   : > { %v2059_v55 = vadd.f32 %v2017_v43, %v9879_v33  ;;  %v10045_v59 = vadd.f32 %v2320_v27, %v2058_v32  ;;  %5316 = vmatprep.subr.bf16.mxu1 %v7682_v42  ;;  %v7689_v33 = vld [vmem:[%s10840_s3 + $0x590] ss:$8 sps:$4 sm:$0xff]   ;;  %v2334_v32 = vpop.f32.mrf.mxu1  ;;  %v6991_v43 = vcombine.low %v9849_v1, %v9855_v8  ;;  %v7711_v8 = vld [vmem:[%s10840_s3 + $0x764] ss:$8 sps:$4 sm:$0xff]  }
 0x162   : > { %v2019_v14 = vpop.f32.mrf.mxu0  ;;  %v10900_v27 = vld [vmem:[#allocation9_spill] sm:$0xff] }
 0x163   : > { %v2060_v52 = vadd.f32 %v2019_v14, %v9892_v2  ;;  %4949 = vmatpush2.bf16.msra.mxu0 %v7683_v9  ;;  %v6986_v49 = vrot.slane %v10900_v27, 9  ;;  %v10058_v6 = vadd.f32 %v2322_v60, %v2059_v55  ;;  %v7686_v2 = vld [vmem:[%s10840_s3 + $0x6a0] ss:$8 sps:$4 sm:$0xff]   ;;  %v7694_v60 = vld [vmem:[%s10840_s3 + $0x694] ss:$8 sps:$4 sm:$0xff]  }
 0x164   : > { %v2021_v45 = vpop.f32.mrf.mxu0  ;;  %4950 = vmatprep.subr.bf16.mxu0 %v7691_v53  ;;  %5317 = vmatpush2.bf16.msra.mxu1 %v7680_v13  ;;  %v6987_v13 = vrot.slane %v9573_v50, 9  ;;  %v10902_v55 = vld [vmem:[#allocation21_spill] sm:$0xff] }
 0x165   : > { %v2061_v25 = vadd.f32 %v2021_v45, %v9905_v47  ;;  %v10067_v10 = vadd.f32 %v2324_v39, %v2060_v52  ;;  %5318 = vmatprep.subr.bf16.mxu1 %v7688_v62  ;;  %v10080_v47 = vsel %vm8168_vm6, %v6985_v16, %v4676_v63  ;;  %v10086_v39 = vsel %vm8168_vm6, %v6986_v49, %v4680_v5  ;;  %v7703_v14 = vld [vmem:[%s10840_s3 + $0x770] ss:$8 sps:$4 sm:$0xff]   ;;  %v2336_v5 = vpop.f32.mrf.mxu1 }
 0x166   : > { %v2025_v29 = vpop.f32.mrf.mxu0  ;;  %v6994_v53 = vcombine.high %v10080_v47, %v10086_v39  ;;  %v4684_v62 = vrot.slane %v10902_v55, 5  ;;  %v4688_v63 = vrot.slane %v10903_v40, 5  ;;  %v7047_v45 = vcombine.low %v9920_v26, %v9508_v24  ;;  %v7712_v40 = vld [vmem:[%s10840_s3 + $0x860] ss:$8 sps:$4 sm:$0xff]   ;;  %v7759_v24 = vld [vmem:[%s10840_s3 + $0x7f4] ss:$8 sps:$4 sm:$0xff]  }
 0x167   : > { %v2062_v56 = vadd.f32 %v2025_v29, %v9917_v51  ;;  %4951 = vmatpush2.bf16.msra.mxu0 %v7689_v33  ;;  %v10088_v41 = vadd.f32 %v2326_v3, %v2061_v25  ;;  %v7700_v3 = vld [vmem:[%s10840_s3 + $0x684] ss:$8 sps:$4 sm:$0xff]  }
 0x168   : > { %v2027_v51 = vpop.f32.mrf.mxu0  ;;  %4952 = vmatprep.subr.bf16.mxu0 %v7697_v61  ;;  %5319 = vmatpush2.bf16.msra.mxu1 %v7686_v2  ;;  %v7708_v61 = vld [vmem:[%s10840_s3 + $0x874] ss:$8 sps:$4 sm:$0xff]   ;;  %v10134_v25 = vsel %vm8168_vm6, %v6987_v13, %v4684_v62  ;;  %v6990_v62 = vrot.slane %v9658_v17, 9 }
 0x169   : > { %v2063_v42 = vadd.f32 %v2027_v51, %v9935_v44  ;;  %v10097_v12 = vadd.f32 %v2330_v58, %v2062_v56  ;;  %5320 = vmatprep.subr.bf16.mxu1 %v7694_v60  ;;  %v6988_v58 = vrot.slane %v9582_v7, 9  ;;  %v5417_v51 = vshll.u32 %v9920_v26, 16 }
 0x16a   : > { %v2029_v9 = vpop.f32.mrf.mxu0 }
 0x16b   : > { %v2064_v44 = vadd.f32 %v2029_v9, %v9944_v57  ;;  %4953 = vmatpush2.bf16.msra.mxu0 %v7695_v46  ;;  %v10114_v52 = vadd.f32 %v2332_v21, %v2063_v42  ;;  %v7698_v57 = vld [vmem:[%s10840_s3 + $0x680] ss:$8 sps:$4 sm:$0xff]   ;;  %v10144_v60 = vsel %vm8168_vm6, %v6988_v58, %v4688_v63  ;;  %v5414_v46 = vshrl.u32 %v9920_v26, 16 }
 0x16c   : > { %v2031_v1 = vpop.f32.mrf.mxu0  ;;  %5749 = vmatprep.subr.bf16.mxu0 %v7705_v4  ;;  %5321 = vmatpush2.bf16.msra.mxu1 %v7692_v34  ;;  %v7709_v21 = vld [vmem:[%s10840_s3 + $0x760] ss:$8 sps:$4 sm:$0xff]   ;;  %v7706_v4 = vld [vmem:[%s10840_s3 + $0x870] ss:$8 sps:$4 sm:$0xff]   ;;  %v7050_v42 = vcombine.high %v10900_v27, %v9573_v50  ;;  %v6993_v9 = vcombine.low %v10080_v47, %v10086_v39  ;;  %v6989_v26 = vrot.slane %v9655_v28, 9  ;;  %v6996_v55 = vcombine.high %v10134_v25, %v10144_v60 }
 0x16d   : > { %v2065_v33 = vadd.f32 %v2031_v1, %v9956_v22  ;;  %v10123_v30 = vadd.f32 %v2334_v32, %v2064_v44  ;;  %5322 = vmatprep.subr.bf16.mxu1 %v7700_v3  ;;  %v7714_v32 = vld [vmem:[%s10840_s3 + $0x864] ss:$8 sps:$4 sm:$0xff]   ;;  %v4696_v47 = vrot.slane %v9734_v38, 5  ;;  %v10185_v1 = vld [vmem:[%s8684_s29 + $0x38] sm:$0x11] }
 0x16e   : > { %4955 = vmatmul.mubr.bf16.vlgmr.msra.gmra.mxu0 %v6991_v43  ;;  %v2533_v2 = vpop.f32.mrf.mxu0  ;;  %v4692_v43 = vrot.slane %v9724_v18, 5  ;;  %v7725_v18 = vld [vmem:[%s10840_s3 + $0x744] ss:$8 sps:$4 sm:$0xff]  }
 0x16f   : > { %v2588_v22 = vadd.f32 %v2533_v2, %v9966_v0  ;;  %5750 = vmatpush1.bf16.msra.mxu0 %v7703_v14  ;;  %4964 = vmatprep.mubr.bf16.mxu0 %v6994_v53  ;;  %v10146_v29 = vadd.f32 %v2336_v5, %v2065_v33  ;;  %v7717_v0 = vld [vmem:[%s10840_s3 + $0x754] ss:$8 sps:$4 sm:$0xff]   ;;  %v5419_v14 = vrot.slane %v5417_v51, 5  ;;  %v10182_v38 = vld [vmem:[%s8684_s29 + $0x28] sm:$0x11] }
 0x170   : > { %v2535_v56 = vpop.f32.mrf.mxu0  ;;  %5751 = vmatprep.subr.bf16.mxu0 %v7711_v8  ;;  %5323 = vmatpush2.bf16.msra.mxu1 %v7698_v57  ;;  %v7720_v33 = vld [vmem:[%s10840_s3 + $0x854] ss:$8 sps:$4 sm:$0xff]  }
 0x171   : > { %v2589_v34 = vadd.f32 %v2535_v56, %v9976_v20  ;;  %6134 = vmatprep.subr.bf16.mxu1 %v7708_v61  ;;  %v7715_v20 = vld [vmem:[%s10840_s3 + $0x750] ss:$8 sps:$4 sm:$0xff]   ;;  %v10201_v61 = vsel %vm8168_vm6, %v6989_v26, %v4692_v43 }
 0x172   : > { %v2537_v3 = vpop.f32.mrf.mxu0 }
 0x173   : > { %v2590_v53 = vadd.f32 %v2537_v3, %v9986_v23  ;;  %5752 = vmatpush1.bf16.msra.mxu0 %v7709_v21  ;;  %v2902_v39 = vpop.f32.mrf.mxu1  ;;  %5325 = vmatmul.mubr.bf16.vlgmr.msra.gmra.mxu1 %v7047_v45  ;;  %v5416_v23 = vrot.slane %v5414_v46, 4  ;;  %v10193_v45 = vld [vmem:[%s8684_s29 + $0x40] sm:$0xff]  ;;  %v10211_v21 = vsel %vm8168_vm6, %v6990_v62, %v4696_v47  ;;  %v7052_v3 = vcombine.high %v9582_v7, %v9655_v28 }
 0x174   : > { %v2539_v44 = vpop.f32.mrf.mxu0  ;;  %5753 = vmatprep.subr.bf16.mxu0 %v7717_v0  ;;  %6135 = vmatpush1.bf16.msra.mxu1 %v7706_v4  ;;  %v10187_v8 = vadd.f32 %v2902_v39, %v2588_v22  ;;  %v7723_v22 = vld [vmem:[%s10840_s3 + $0x740] ss:$8 sps:$4 sm:$0xff]   ;;  %v5423_v4 = vshll.u32 %v10182_v38, 16  ;;  %v6995_v47 = vcombine.low %v10134_v25, %v10144_v60  ;;  %v7739_v25 = vld [vmem:[%s10840_s3 + $0x724] ss:$8 sps:$4 sm:$0xff]  }
 0x175   : > { %v2591_v63 = vadd.f32 %v2539_v44, %v9996_v48  ;;  %5334 = vmatprep.mubr.bf16.mxu1 %v7050_v42  ;;  %v2904_v57 = vpop.f32.mrf.mxu1  ;;  %6136 = vmatprep.subr.bf16.mxu1 %v7714_v32  ;;  %v7049_v48 = vcombine.low %v10193_v45, %v9573_v50  ;;  %v5420_v51 = vor.u32 %v5419_v14, %v5416_v23  ;;  %v5437_v42 = vshll.u32 %v10185_v1, 16  ;;  %v7718_v32 = vld [vmem:[%s10840_s3 + $0x850] ss:$8 sps:$4 sm:$0xff]  }
 0x176   : > { %4965 = vmatmul.mubr.bf16.gmra.mxu0 %v6993_v9  ;;  %v2543_v5 = vpop.f32.mrf.mxu0  ;;  %v10213_v56 = vadd.f32 %v2904_v57, %v2589_v34  ;;  %v5425_v60 = vrot.slane %v5423_v4, 5 }
 0x177   : > { %v2592_v2 = vadd.f32 %v2543_v5, %v10006_v31  ;;  %5754 = vmatpush1.bf16.msra.mxu0 %v7715_v20  ;;  %4974 = vmatprep.mubr.bf16.mxu0 %v6996_v55  ;;  %v2906_v0 = vpop.f32.mrf.mxu1  ;;  %v7731_v31 = vld [vmem:[%s10840_s3 + $0x734] ss:$8 sps:$4 sm:$0xff]   ;;  %v7728_v20 = vld [vmem:[%s10840_s3 + $0x844] ss:$8 sps:$4 sm:$0xff]   ;;  %v5439_v14 = vrot.slane %v5437_v42, 5 }
 0x178   : > { %v2545_v46 = vpop.f32.mrf.mxu0  ;;  %5755 = vmatprep.subr.bf16.mxu0 %v7725_v18  ;;  %6137 = vmatpush1.bf16.msra.mxu1 %v7712_v40  ;;  %v10226_v9 = vadd.f32 %v2906_v0, %v2590_v53  ;;  %v6998_v53 = vcombine.high %v10201_v61, %v10211_v21  ;;  %v7734_v5 = vld [vmem:[%s10840_s3 + $0x834] ss:$8 sps:$4 sm:$0xff]  }
 0x179   : > { %v2593_v34 = vadd.f32 %v2545_v46, %v10016_v15  ;;  %v2908_v43 = vpop.f32.mrf.mxu1  ;;  %6138 = vmatprep.subr.bf16.mxu1 %v7720_v33  ;;  %v7729_v15 = vld [vmem:[%s10840_s3 + $0x730] ss:$8 sps:$4 sm:$0xff]   ;;  %v7745_v42 = vld [vmem:[%s10840_s3 + $0x714] ss:$8 sps:$4 sm:$0xff]  }
 0x17a   : > { %v2547_v55 = vpop.f32.mrf.mxu0  ;;  %v10239_v44 = vadd.f32 %v2908_v43, %v2591_v63  ;;  %v7726_v63 = vld [vmem:[%s10840_s3 + $0x840] ss:$8 sps:$4 sm:$0xff]   ;;  %v7732_v43 = vld [vmem:[%s10840_s3 + $0x830] ss:$8 sps:$4 sm:$0xff]  }
 0x17b   : > { %v2594_v39 = vadd.f32 %v2547_v55, %v10026_v11  ;;  %5756 = vmatpush1.bf16.msra.mxu0 %v7723_v22  ;;  %5335 = vmatmul.mubr.bf16.gmra.mxu1 %v7049_v48  ;;  %v2912_v18 = vpop.f32.mrf.mxu1  ;;  %v5421_v11 = vrot.slane %v5420_v51, 4  ;;  %v10254_v22 = vld [vmem:[%s8684_s29 + $0x90] sm:$0xff] }
 0x17c   : > { %v2549_v23 = vpop.f32.mrf.mxu0  ;;  %5757 = vmatprep.subr.bf16.mxu0 %v7731_v31  ;;  %6139 = vmatpush1.bf16.msra.mxu1 %v7718_v32  ;;  %v10244_v40 = vadd.f32 %v2912_v18, %v2592_v2  ;;  %v10263_v31 = vld [vmem:[%s8684_s29 + $0x60] sm:$0xff]  ;;  %v7054_v55 = vcombine.high %v9658_v17, %v10254_v22  ;;  %v5880_v18 = vrot.slane %v10182_v38, 5 }
 0x17d   : > { %v2595_v57 = vadd.f32 %v2549_v23, %v10036_v36  ;;  %5344 = vmatprep.mubr.bf16.mxu1 %v7052_v3  ;;  %6140 = vmatprep.subr.bf16.mxu1 %v7728_v20  ;;  %v2914_v33 = vpop.f32.mrf.mxu1  ;;  %v7737_v36 = vld [vmem:[%s10840_s3 + $0x720] ss:$8 sps:$4 sm:$0xff]   ;;  %v7051_v51 = vcombine.low %v10263_v31, %v9655_v28  ;;  %v5884_v23 = vrot.slane %v10185_v1, 5  ;;  %v7753_v38 = vld [vmem:[%s10840_s3 + $0x704] ss:$8 sps:$4 sm:$0xff]  }
 0x17e   : > { %4975 = vmatmul.mubr.bf16.gmra.mxu0 %v6995_v47  ;;  %v2553_v48 = vpop.f32.mrf.mxu0  ;;  %v10256_v2 = vadd.f32 %v2914_v33, %v2593_v34  ;;  %v10904_v32 = vld [vmem:[#allocation19_spill] sm:$0xff] }
 0x17f   : > { %v2596_v0 = vadd.f32 %v2553_v48, %v10045_v59  ;;  %5758 = vmatpush1.bf16.msra.mxu0 %v7729_v15  ;;  %4984 = vmatprep.mubr.bf16.mxu0 %v6998_v53  ;;  %v2916_v46 = vpop.f32.mrf.mxu1  ;;  %v10272_v59 = vsel %vm7994_vm3, %v5421_v11, %v5425_v60  ;;  %v10277_v34 = vsel %vm7994_vm3, %v10904_v32, %v5439_v14  ;;  %v7742_v15 = vld [vmem:[%s10840_s3 + $0x824] ss:$8 sps:$4 sm:$0xff]   ;;  %v7743_v11 = vld [vmem:[%s10840_s3 + $0x710] ss:$8 sps:$4 sm:$0xff]  }
 0x180   : > { %v2555_v4 = vpop.f32.mrf.mxu0  ;;  %5759 = vmatprep.subr.bf16.mxu0 %v7739_v25  ;;  %6141 = vmatpush1.bf16.msra.mxu1 %v7726_v63  ;;  %v10279_v3 = vadd.f32 %v2916_v46, %v2594_v39  ;;  %v6997_v39 = vcombine.low %v10201_v61, %v10211_v21  ;;  %v7088_v60 = vcombine.high %v10272_v59, %v10277_v34  ;;  %v7756_v32 = vld [vmem:[%s10840_s3 + $0x804] ss:$8 sps:$4 sm:$0xff]  }
 0x181   : > { %v2597_v20 = vadd.f32 %v2555_v4, %v10058_v6  ;;  %6142 = vmatprep.subr.bf16.mxu1 %v7734_v5  ;;  %v2918_v47 = vpop.f32.mrf.mxu1  ;;  %v10318_v5 = vsel %vm8168_vm6, %v6984_v19, %v5880_v18  ;;  %v7053_v19 = vcombine.low %v9658_v17, %v10254_v22 }
 0x182   : > { %v2557_v53 = vpop.f32.mrf.mxu0  ;;  %v10294_v25 = vadd.f32 %v2918_v47, %v2595_v57  ;;  %v7748_v57 = vld [vmem:[%s10840_s3 + $0x814] ss:$8 sps:$4 sm:$0xff]   ;;  %v7757_v47 = vld [vmem:[%s10840_s3 + $0x7f0] ss:$8 sps:$4 sm:$0xff]  }
 0x183   : > { %v2598_v6 = vadd.f32 %v2557_v53, %v10067_v10  ;;  %5760 = vmatpush1.bf16.msra.mxu0 %v7737_v36  ;;  %5345 = vmatmul.mubr.bf16.gmra.mxu1 %v7051_v51  ;;  %v2922_v14 = vpop.f32.mrf.mxu1  ;;  %v7740_v10 = vld [vmem:[%s10840_s3 + $0x820] ss:$8 sps:$4 sm:$0xff]   ;;  %v7765_v53 = vld [vmem:[%s10840_s3 + $0x7e4] ss:$8 sps:$4 sm:$0xff]  }
 0x184   : > { %v2559_v63 = vpop.f32.mrf.mxu0  ;;  %5761 = vmatprep.subr.bf16.mxu0 %v7745_v42  ;;  %6143 = vmatpush1.bf16.msra.mxu1 %v7732_v43  ;;  %v10305_v1 = vadd.f32 %v2922_v14, %v2596_v0  ;;  %v7751_v36 = vld [vmem:[%s10840_s3 + $0x700] ss:$8 sps:$4 sm:$0xff]  }
 0x185   : > { %v2599_v61 = vadd.f32 %v2559_v63, %v10088_v41  ;;  %5354 = vmatprep.mubr.bf16.mxu1 %v7054_v55  ;;  %6144 = vmatprep.subr.bf16.mxu1 %v7742_v15  ;;  %v2924_v21 = vpop.f32.mrf.mxu1  ;;  %v10324_v41 = vsel %vm8168_vm6, %v6985_v16, %v5884_v23 }
 0x186   : > { %4985 = vmatmul.mubr.bf16.gmra.mxu0 %v6997_v39  ;;  %v2563_v33 = vpop.f32.mrf.mxu0  ;;  %v10326_v48 = vadd.f32 %v2924_v21, %v2597_v20  ;;  %v7136_v4 = vcombine.high %v10318_v5, %v10324_v41 }
 0x187   : > { %v2600_v0 = vadd.f32 %v2563_v33, %v10097_v12  ;;  %5762 = vmatpush1.bf16.msra.mxu0 %v7743_v11  ;;  %5781 = vmatprep.mubr.bf16.mxu0 %v7088_v60  ;;  %v2926_v35 = vpop.f32.mrf.mxu1  ;;  %v7746_v12 = vld [vmem:[%s10840_s3 + $0x810] ss:$8 sps:$4 sm:$0xff]   ;;  %v7763_v60 = vld [vmem:[%s10840_s3 + $0x7e0] ss:$8 sps:$4 sm:$0xff]   ;;  %v7777_v33 = vld [vmem:[%s10840_s3 + $0x7c4] ss:$8 sps:$4 sm:$0xff]  }
 0x188   : > { %v2565_v46 = vpop.f32.mrf.mxu0  ;;  %5763 = vmatprep.subr.bf16.mxu0 %v7753_v38  ;;  %6145 = vmatpush1.bf16.msra.mxu1 %v7740_v10  ;;  %v10337_v16 = vadd.f32 %v2926_v35, %v2598_v6  ;;  %v7762_v6 = vld [vmem:[%s10840_s3 + $0x8f4] ss:$8 sps:$4 sm:$0xff]   ;;  %v7760_v38 = vld [vmem:[%s10840_s3 + $0x8f0] ss:$8 sps:$4 sm:$0xff]   ;;  %v5442_v35 = vshrl.u32 %v10193_v45, 16 }
 0x189   : > { %v2601_v51 = vadd.f32 %v2565_v46, %v10114_v52  ;;  %6146 = vmatprep.subr.bf16.mxu1 %v7748_v57  ;;  %v2928_v42 = vpop.f32.mrf.mxu1  ;;  %v7769_v57 = vld [vmem:[%s10840_s3 + $0x7d0] ss:$8 sps:$4 sm:$0xff]  }
 0x18a   : > { %v2567_v43 = vpop.f32.mrf.mxu0  ;;  %v10348_v20 = vadd.f32 %v2928_v42, %v2599_v61  ;;  %v7768_v61 = vld [vmem:[%s10840_s3 + $0x8e4] ss:$8 sps:$4 sm:$0xff]   ;;  %v7808_v46 = vld [vmem:[%s8684_s29 + $0x50] sm:$0xff] }
 0x18b   : > { %v2602_v55 = vadd.f32 %v2567_v43, %v10123_v30  ;;  %5764 = vmatpush1.bf16.msra.mxu0 %v7751_v36  ;;  %5355 = vmatmul.mubr.bf16.gmra.mxu1 %v7053_v19  ;;  %v2932_v52 = vpop.f32.mrf.mxu1  ;;  %v7754_v30 = vld [vmem:[%s10840_s3 + $0x800] ss:$8 sps:$4 sm:$0xff]   ;;  %v7774_v36 = vld [vmem:[%s10840_s3 + $0x8d4] ss:$8 sps:$4 sm:$0xff]   ;;  %v5445_v19 = vshll.u32 %v10193_v45, 16 }
 0x18c   : > { %v2569_v15 = vpop.f32.mrf.mxu0  ;;  %5765 = vmatprep.subr.bf16.mxu0 %v7759_v24  ;;  %6147 = vmatpush1.bf16.msra.mxu1 %v7746_v12  ;;  %v10357_v39 = vadd.f32 %v2932_v52, %v2600_v0  ;;  %v7766_v0 = vld [vmem:[%s10840_s3 + $0x8e0] ss:$8 sps:$4 sm:$0xff]   ;;  %v5456_v24 = vshrl.u32 %v7808_v46, 16  ;;  %v5459_v12 = vshll.u32 %v7808_v46, 16  ;;  %v7772_v45 = vld [vmem:[%s10840_s3 + $0x8d0] ss:$8 sps:$4 sm:$0xff]  }
 0x18d   : > { %v2603_v18 = vadd.f32 %v2569_v15, %v10146_v29  ;;  %6166 = vmatprep.mubr.bf16.mxu1 %v7136_v4  ;;  %6148 = vmatprep.subr.bf16.mxu1 %v7756_v32  ;;  %v2934_v23 = vpop.f32.mrf.mxu1  ;;  %v7771_v29 = vld [vmem:[%s10840_s3 + $0x7d4] ss:$8 sps:$4 sm:$0xff]   ;;  %v7780_v42 = vld [vmem:[%s10840_s3 + $0x8c4] ss:$8 sps:$4 sm:$0xff]   ;;  %v5444_v32 = vrot.slane %v5442_v35, 4  ;;  %v5447_v43 = vrot.slane %v5445_v19, 5 }
 0x18e   : > { %v10366_v11 = vadd.f32 %v2934_v23, %v2601_v51  ;;  %v7775_v51 = vld [vmem:[%s10840_s3 + $0x7c0] ss:$8 sps:$4 sm:$0xff]   ;;  %v7783_v4 = vld [vmem:[%s10840_s3 + $0x7b4] ss:$8 sps:$4 sm:$0xff]   ;;  %v7781_v52 = vld [vmem:[%s10840_s3 + $0x7b0] ss:$8 sps:$4 sm:$0xff]  }
 0x18f   : > { %5766 = vmatpush2.bf16.msra.mxu0 %v7757_v47  ;;  %v2936_v14 = vpop.f32.mrf.mxu1  ;;  %v5461_v47 = vrot.slane %v5459_v12, 5  ;;  %v10415_v15 = vld [vmem:[%s8684_s29 + $0x48] sm:$0x11]  ;;  %v7786_v23 = vld [vmem:[%s10840_s3 + $0x8b4] ss:$8 sps:$4 sm:$0xff]  }
 0x190   : > { %5767 = vmatprep.subr.bf16.mxu0 %v7765_v53  ;;  %6149 = vmatpush1.bf16.msra.mxu1 %v7754_v30  ;;  %v10374_v63 = vadd.f32 %v2936_v14, %v2602_v55  ;;  %v5458_v55 = vrot.slane %v5456_v24, 4  ;;  %v10418_v53 = vld [vmem:[%s8684_s29 + $0x58] sm:$0x11]  ;;  %v7789_v30 = vld [vmem:[%s10840_s3 + $0x7a4] ss:$8 sps:$4 sm:$0xff]  }
 0x191   : > { %6150 = vmatprep.subr.bf16.mxu1 %v7762_v6  ;;  %v2938_v10 = vpop.f32.mrf.mxu1  ;;  %v5448_v6 = vor.u32 %v5447_v43, %v5444_v32  ;;  %v7784_v35 = vld [vmem:[%s10840_s3 + $0x8b0] ss:$8 sps:$4 sm:$0xff]   ;;  %v7792_v19 = vld [vmem:[%s10840_s3 + $0x8a4] ss:$8 sps:$4 sm:$0xff]  }
 0x192   : > { %v10382_v21 = vadd.f32 %v2938_v10, %v2603_v18  ;;  %v7778_v18 = vld [vmem:[%s10840_s3 + $0x8c0] ss:$8 sps:$4 sm:$0xff]   ;;  %v5462_v14 = vor.u32 %v5461_v47, %v5458_v55  ;;  %v5470_v10 = vshrl.u32 %v10263_v31, 16  ;;  %v7801_v55 = vld [vmem:[%s10840_s3 + $0x784] ss:$8 sps:$4 sm:$0xff]  }
 0x193   : > { %5768 = vmatpush2.bf16.msra.mxu0 %v7763_v60  ;;  %v5451_v60 = vshll.u32 %v10415_v15, 16  ;;  %v5449_v46 = vrot.slane %v5448_v6, 4  ;;  %v10456_v47 = vld [vmem:[%s8684_s29 + $0x78] sm:$0x11]  ;;  %v7799_v6 = vld [vmem:[%s10840_s3 + $0x780] ss:$8 sps:$4 sm:$0xff]  }
 0x194   : > { %5769 = vmatprep.subr.bf16.mxu0 %v7771_v29  ;;  %6151 = vmatpush2.bf16.msra.mxu1 %v7760_v38  ;;  %v5465_v29 = vshll.u32 %v10418_v53, 16  ;;  %v7787_v38 = vld [vmem:[%s10840_s3 + $0x7a0] ss:$8 sps:$4 sm:$0xff]   ;;  %v5463_v12 = vrot.slane %v5462_v14, 4 }
 0x195   : > { %6152 = vmatprep.subr.bf16.mxu1 %v7768_v61  ;;  %v5473_v61 = vshll.u32 %v10263_v31, 16  ;;  %v7793_v31 = vld [vmem:[%s10840_s3 + $0x790] ss:$8 sps:$4 sm:$0xff]   ;;  %v5453_v24 = vrot.slane %v5451_v60, 5 }
 0x197   : > { %5770 = vmatpush2.bf16.msra.mxu0 %v7769_v57  ;;  %v7809_v57 = vld [vmem:[%s8684_s29 + $0x70] sm:$0xff] }
 0x198   : > { %5771 = vmatprep.subr.bf16.mxu0 %v7777_v33  ;;  %6153 = vmatpush2.bf16.msra.mxu1 %v7766_v0  ;;  %v5484_v33 = vshrl.u32 %v7809_v57, 16  ;;  %v5487_v0 = vshll.u32 %v7809_v57, 16 }
 0x199   : > { %6154 = vmatprep.subr.bf16.mxu1 %v7774_v36  ;;  %v7795_v36 = vld [vmem:[%s10840_s3 + $0x794] ss:$8 sps:$4 sm:$0xff]  }
 0x19a   : > { %v5486_v32 = vrot.slane %v5484_v33, 4  ;;  %v5489_v43 = vrot.slane %v5487_v0, 5  ;;  %v5512_v33 = vshrl.u32 %v10254_v22, 16  ;;  %v5515_v0 = vshll.u32 %v10254_v22, 16 }
 0x19b   : > { %5772 = vmatpush2.bf16.msra.mxu0 %v7775_v51  ;;  %v5467_v51 = vrot.slane %v5465_v29, 5 }
 0x19c   : > { %5773 = vmatprep.subr.bf16.mxu0 %v7783_v4  ;;  %6155 = vmatpush2.bf16.msra.mxu1 %v7772_v45  ;;  %v10450_v4 = vld [vmem:[%s8684_s29 + $0x68] sm:$0x11]  ;;  %v5472_v45 = vrot.slane %v5470_v10, 4  ;;  %v5490_v29 = vor.u32 %v5489_v43, %v5486_v32  ;;  %v7810_v10 = vld [vmem:[%s8684_s29 + $0x80] sm:$0xff] }
 0x19d   : > { %6156 = vmatprep.subr.bf16.mxu1 %v7780_v42  ;;  %v5475_v42 = vrot.slane %v5473_v61, 5  ;;  %v10474_v60 = vsel %vm7994_vm3, %v5463_v12, %v5467_v51  ;;  %v5498_v61 = vshrl.u32 %v7810_v10, 16  ;;  %v5501_v57 = vshll.u32 %v7810_v10, 16 }
 0x19f   : > { %5774 = vmatpush2.bf16.msra.mxu0 %v7781_v52  ;;  %v7790_v52 = vld [vmem:[%s10840_s3 + $0x8a0] ss:$8 sps:$4 sm:$0xff]   ;;  %v5476_v14 = vor.u32 %v5475_v42, %v5472_v45  ;;  %v5491_v45 = vrot.slane %v5490_v29, 4  ;;  %v5500_v32 = vrot.slane %v5498_v61, 4  ;;  %v5503_v43 = vrot.slane %v5501_v57, 5 }
 0x1a0   : > { %5775 = vmatprep.subr.bf16.mxu0 %v7789_v30  ;;  %6157 = vmatpush2.bf16.msra.mxu1 %v7778_v18  ;;  %v7798_v30 = vld [vmem:[%s10840_s3 + $0x894] ss:$8 sps:$4 sm:$0xff]   ;;  %v10466_v18 = vsel %vm7994_vm3, %v5449_v46, %v5453_v24  ;;  %v5892_v46 = vrot.slane %v10418_v53, 5  ;;  %v5896_v57 = vrot.slane %v10450_v4, 5 }
 0x1a1   : > { %6158 = vmatprep.subr.bf16.mxu1 %v7786_v23  ;;  %v5479_v23 = vshll.u32 %v10450_v4, 16  ;;  %v7090_v12 = vcombine.high %v10466_v18, %v10474_v60  ;;  %v5477_v51 = vrot.slane %v5476_v14, 4  ;;  %v5504_v10 = vor.u32 %v5503_v43, %v5500_v32 }
 0x1a3   : > { %5776 = vmatpush2.bf16.msra.mxu0 %v7787_v38  ;;  %v5493_v38 = vshll.u32 %v10456_v47, 16  ;;  %v5481_v24 = vrot.slane %v5479_v23, 5  ;;  %v5893_v23 = vsel %vm8168_vm6, %v6987_v13, %v5892_v46 }
 0x1a4   : > { %5777 = vmatprep.subr.bf16.mxu0 %v7795_v36  ;;  %6159 = vmatpush2.bf16.msra.mxu1 %v7784_v35  ;;  %v7796_v36 = vld [vmem:[%s10840_s3 + $0x890] ss:$8 sps:$4 sm:$0xff]   ;;  %v7804_v35 = vld [vmem:[%s10840_s3 + $0x884] ss:$8 sps:$4 sm:$0xff]  }
 0x1a5   : > { %6160 = vmatprep.subr.bf16.mxu1 %v7792_v19  ;;  %v7087_v19 = vcombine.low %v10272_v59, %v10277_v34  ;;  %v5495_v42 = vrot.slane %v5493_v38, 5  ;;  %v7802_v59 = vld [vmem:[%s10840_s3 + $0x880] ss:$8 sps:$4 sm:$0xff]   ;;  %v5482_v29 = vsel %vm7994_vm3, %v5477_v51, %v5481_v24 }
 0x1a6   : > { %v10496_v34 = vld [vmem:[%s8684_s29 + $0x88] sm:$0x11] }
 0x1a7   : > { %5778 = vmatpush2.bf16.msra.mxu0 %v7793_v31  ;;  %v5888_v31 = vrot.slane %v10415_v15, 5  ;;  %v10499_v15 = vld [vmem:[%s8684_s29 + $0x98] sm:$0x11]  ;;  %v5496_v27 = vsel %vm7994_vm3, %v5491_v45, %v5495_v42 }
 0x1a8   : > { %5779 = vmatprep.subr.bf16.mxu0 %v7801_v55  ;;  %6161 = vmatpush2.bf16.msra.mxu1 %v7790_v52  ;;  %v5514_v55 = vrot.slane %v5512_v33, 4  ;;  %v5517_v52 = vrot.slane %v5515_v0, 5  ;;  %v5521_v61 = vshll.u32 %v10499_v15, 16  ;;  %v5900_v33 = vrot.slane %v10456_v47, 5 }
 0x1a9   : > { %6162 = vmatprep.subr.bf16.mxu1 %v7798_v30  ;;  %v5889_v30 = vsel %vm8168_vm6, %v6986_v49, %v5888_v31  ;;  %v5507_v49 = vshll.u32 %v10496_v34, 16  ;;  %v5505_v31 = vrot.slane %v5504_v10, 4 }
 0x1aa   : > { %v5518_v50 = vor.u32 %v5517_v52, %v5514_v55  ;;  %v5901_v4 = vsel %vm8168_vm6, %v6989_v26, %v5900_v33  ;;  %v7137_v42 = vcombine.low %v5889_v30, %v5893_v23 }
 0x1ab   : > { %5780 = vmatpush2.bf16.msra.mxu0 %v7799_v6  ;;  %v7135_v6 = vcombine.low %v10318_v5, %v10324_v41  ;;  %v7138_v5 = vcombine.high %v5889_v30, %v5893_v23  ;;  %v5509_v46 = vrot.slane %v5507_v49, 5  ;;  %v5908_v30 = vrot.slane %v10499_v15, 5 }
 0x1ac   : > { %6163 = vmatpush2.bf16.msra.mxu1 %v7796_v36  ;;  %v7092_v36 = vcombine.high %v5482_v29, %v5496_v27  ;;  %v5519_v24 = vrot.slane %v5518_v50, 4 }
 0x1ad   : > { %6164 = vmatprep.subr.bf16.mxu1 %v7804_v35  ;;  %v5510_v43 = vsel %vm7994_vm3, %v5505_v31, %v5509_v46 }
 0x1ae   : > { %v3359_v53 = vpop.f32.mrf.mxu0  ;;  %5782 = vmatmul.mubr.bf16.vlgmr.msra.gmra.mxu0 %v7087_v19 }
 0x1af   : > { %v3414_v14 = vadd.f32 %v3359_v53, %v10187_v8  ;;  %5791 = vmatprep.mubr.bf16.mxu0 %v7090_v12  ;;  %v7089_v8 = vcombine.low %v10466_v18, %v10474_v60  ;;  %v5523_v12 = vrot.slane %v5521_v61, 5  ;;  %v7134_v53 = vrot.slane %v10254_v22, 9 }
 0x1b0   : > { %v3361_v38 = vpop.f32.mrf.mxu0  ;;  %6165 = vmatpush2.bf16.msra.mxu1 %v7802_v59  ;;  %v7091_v59 = vcombine.low %v5482_v29, %v5496_v27 }
 0x1b1   : > { %v3415_v13 = vadd.f32 %v3361_v38, %v10213_v56  ;;  %v5524_v7 = vsel %vm7994_vm3, %v5519_v24, %v5523_v12 }
 0x1b2   : > { %v3363_v41 = vpop.f32.mrf.mxu0  ;;  %v7094_v37 = vcombine.high %v5510_v43, %v5524_v7 }
 0x1b3   : > { %v3416_v0 = vadd.f32 %v3363_v41, %v10226_v9  ;;  %v3744_v35 = vpop.f32.mrf.mxu1  ;;  %6167 = vmatmul.mubr.bf16.vlgmr.msra.gmra.mxu1 %v7135_v6  ;;  %v5897_v9 = vsel %vm8168_vm6, %v6988_v58, %v5896_v57 }
 0x1b4   : > { %v3365_v19 = vpop.f32.mrf.mxu0  ;;  %v10524_v56 = vadd.f32 %v3744_v35, %v3414_v14  ;;  %6176 = vmatprep.mubr.bf16.mxu1 %v7138_v5  ;;  %v7140_v55 = vcombine.high %v5897_v9, %v5901_v4  ;;  %v7139_v50 = vcombine.low %v5897_v9, %v5901_v4 }
 0x1b5   : > { %v3417_v51 = vadd.f32 %v3365_v19, %v10239_v44  ;;  %v3746_v18 = vpop.f32.mrf.mxu1 }
 0x1b6   : > { %v3369_v60 = vpop.f32.mrf.mxu0  ;;  %5792 = vmatmul.mubr.bf16.gmra.mxu0 %v7089_v8  ;;  %v10535_v47 = vadd.f32 %v3746_v18, %v3415_v13  ;;  %v7093_v8 = vcombine.low %v5510_v43, %v5524_v7 }
 0x1b7   : > { %v3418_v45 = vadd.f32 %v3369_v60, %v10244_v40  ;;  %5801 = vmatprep.mubr.bf16.mxu0 %v7092_v36  ;;  %v3748_v44 = vpop.f32.mrf.mxu1  ;;  %v5904_v40 = vrot.slane %v10496_v34, 5 }
 0x1b8   : > { %v3371_v32 = vpop.f32.mrf.mxu0  ;;  %v10542_v58 = vadd.f32 %v3748_v44, %v3416_v0 }
 0x1b9   : > { %v3419_v28 = vadd.f32 %v3371_v32, %v10256_v2  ;;  %v3750_v26 = vpop.f32.mrf.mxu1  ;;  %v5905_v22 = vsel %vm8168_vm6, %v6990_v62, %v5904_v40 }
 0x1ba   : > { %v3373_v52 = vpop.f32.mrf.mxu0  ;;  %v10548_v23 = vadd.f32 %v3750_v26, %v3417_v51 }
 0x1bb   : > { %v3420_v6 = vadd.f32 %v3373_v52, %v10279_v3  ;;  %6177 = vmatmul.mubr.bf16.gmra.mxu1 %v7137_v42  ;;  %v3754_v14 = vpop.f32.mrf.mxu1  ;;  %v5909_v3 = vsel %vm8168_vm6, %v7134_v53, %v5908_v30 }
 0x1bc   : > { %v3375_v38 = vpop.f32.mrf.mxu0  ;;  %v10551_v10 = vadd.f32 %v3754_v14, %v3418_v45  ;;  %6186 = vmatprep.mubr.bf16.mxu1 %v7140_v55  ;;  %v7142_v5 = vcombine.high %v5905_v22, %v5909_v3  ;;  %v7141_v46 = vcombine.low %v5905_v22, %v5909_v3 }
 0x1bd   : > { %v3421_v2 = vadd.f32 %v3375_v38, %v10294_v25  ;;  %v3756_v29 = vpop.f32.mrf.mxu1 }
 0x1be   : > { %v3379_v27 = vpop.f32.mrf.mxu0  ;;  %5802 = vmatmul.mubr.bf16.gmra.mxu0 %v7091_v59  ;;  %v10560_v34 = vadd.f32 %v3756_v29, %v3419_v28 }
 0x1bf   : > { %v3422_v15 = vadd.f32 %v3379_v27, %v10305_v1  ;;  %5811 = vmatprep.mubr.bf16.mxu0 %v7094_v37  ;;  %v3758_v49 = vpop.f32.mrf.mxu1 }
 0x1c0   : > { %v3381_v25 = vpop.f32.mrf.mxu0  ;;  %v10563_v61 = vadd.f32 %v3758_v49, %v3420_v6 }
 0x1c1   : > { %v3423_v13 = vadd.f32 %v3381_v25, %v10326_v48  ;;  %v3760_v17 = vpop.f32.mrf.mxu1 }
 0x1c2   : > { %v3383_v41 = vpop.f32.mrf.mxu0  ;;  %v10566_v62 = vadd.f32 %v3760_v17, %v3421_v2 }
 0x1c3   : > { %v3424_v54 = vadd.f32 %v3383_v41, %v10337_v16  ;;  %6187 = vmatmul.mubr.bf16.gmra.mxu1 %v7139_v50  ;;  %v3764_v57 = vpop.f32.mrf.mxu1 }
 0x1c4   : > { %v3385_v33 = vpop.f32.mrf.mxu0  ;;  %v10569_v1 = vadd.f32 %v3764_v57, %v3422_v15  ;;  %6196 = vmatprep.mubr.bf16.mxu1 %v7142_v5 }
 0x1c5   : > { %v3425_v0 = vadd.f32 %v3385_v33, %v10348_v20  ;;  %v3766_v36 = vpop.f32.mrf.mxu1 }
 0x1c6   : > { %v3389_v35 = vpop.f32.mrf.mxu0  ;;  %5812 = vmatmul.mubr.bf16.gmra.mxu0 %v7093_v8  ;;  %v10572_v48 = vadd.f32 %v3766_v36, %v3423_v13 }
 0x1c7   : > { %v3426_v19 = vadd.f32 %v3389_v35, %v10357_v39  ;;  %v3768_v31 = vpop.f32.mrf.mxu1 }
 0x1c8   : > { %v3391_v24 = vpop.f32.mrf.mxu0  ;;  %v10575_v12 = vadd.f32 %v3768_v31, %v3424_v54 }
 0x1c9   : > { %v3427_v16 = vadd.f32 %v3391_v24, %v10366_v11  ;;  %v3770_v51 = vpop.f32.mrf.mxu1 }
 0x1ca   : > { %v3393_v18 = vpop.f32.mrf.mxu0  ;;  %v10578_v60 = vadd.f32 %v3770_v51, %v3425_v0 }
 0x1cb   : > { %v3428_v20 = vadd.f32 %v3393_v18, %v10374_v63  ;;  %6197 = vmatmul.mubr.bf16.gmra.mxu1 %v7141_v46  ;;  %v3774_v9 = vpop.f32.mrf.mxu1 }
 0x1cc   : > { %v3395_v4 = vpop.f32.mrf.mxu0  ;;  %v10581_v45 = vadd.f32 %v3774_v9, %v3426_v19 }
 0x1cd   : > { %v3429_v39 = vadd.f32 %v3395_v4, %v10382_v21  ;;  %v3776_v44 = vpop.f32.mrf.mxu1 }
 0x1ce   : > { %v10584_v42 = vadd.f32 %v3776_v44, %v3427_v16 }
 0x1cf   : > { %v3778_v32 = vpop.f32.mrf.mxu1 }
 0x1d0   : > { %v10586_v43 = vadd.f32 %v3778_v32, %v3428_v20 }
 0x1d1   : > { %v3780_v11 = vpop.f32.mrf.mxu1 }
 0x1d2   : > { %10905 = vst [vmem:[#allocation4_spill] sm:$0xff] %v10586_v43  ;;  %v10588_v7 = vadd.f32 %v3780_v11, %v3429_v39 }
 0x1d4   : > { %10906 = vst [vmem:[#allocation11_spill] sm:$0xff] %v10588_v7 }
 0x1ee   : > { %v4114_v28 = vpop.f32.mrf.mxu0 }
 0x1f0   : > { %v4116_v55 = vpop.f32.mrf.mxu0 }
 0x1f2   : > { %v4118_v63 = vpop.f32.mrf.mxu0 }
 0x1f3   : > { %v4571_v26 = vpop.f32.mrf.mxu1 }
 0x1f4   : > { %v10592_v59 = vpop.f32.mrf.mxu0 }
 0x1f5   : > { %v10590_v52 = vpop.f32.mrf.mxu1 }
 0x1f6   : > { %v10596_v21 = vpop.f32.mrf.mxu0 }
 0x1f7   : > { %v10594_v40 = vpop.f32.mrf.mxu1 }
 0x1f8   : > { %v10600_v30 = vpop.f32.mrf.mxu0 }
 0x1f9   : > { %v10598_v53 = vpop.f32.mrf.mxu1 }
 0x1fa   : > { %v10604_v37 = vpop.f32.mrf.mxu0 }
 0x1fb   : > { %v10602_v6 = vpop.f32.mrf.mxu1 }
 0x1fc   : > { %v10608_v38 = vpop.f32.mrf.mxu0 }
 0x1fd   : > { %v10606_v14 = vpop.f32.mrf.mxu1 }
 0x1fe   : > { %v10612_v29 = vpop.f32.mrf.mxu0 }
 0x1ff   : > { %v10610_v2 = vpop.f32.mrf.mxu1 }
 0x200   : > { %v10616_v22 = vpop.f32.mrf.mxu0 }
 0x201   : > { %v10614_v27 = vpop.f32.mrf.mxu1 }
 0x202   : > { %v10620_v15 = vpop.f32.mrf.mxu0 }
 0x203   : > { %v10618_v3 = vpop.f32.mrf.mxu1 }
 0x204   : > { %v10624_v50 = vpop.f32.mrf.mxu0 }
 0x205   : > { %v10622_v49 = vpop.f32.mrf.mxu1 }
 0x206   : > { %v10628_v13 = vpop.f32.mrf.mxu0 }
 0x207   : > { %v10626_v25 = vpop.f32.mrf.mxu1 }
 0x208   : > { %v10632_v17 = vpop.f32.mrf.mxu0 }
 0x209   : > { %v10630_v5 = vpop.f32.mrf.mxu1 }
 0x20a   : > { %10907 = vst [vmem:[#allocation13_spill] sm:$0xff] %v10630_v5  ;;  %v10636_v8 = vpop.f32.mrf.mxu0 }
 0x20b   : > { %v10634_v41 = vpop.f32.mrf.mxu1  ;;  %10909 = vst [vmem:[#allocation3_spill] sm:$0xff] %v10636_v8 }
 0x20c   : > { %10908 = vst [vmem:[#allocation14_spill] sm:$0xff] %v10634_v41  ;;  %v10640_v57 = vpop.f32.mrf.mxu0 }
 0x20d   : > { %v10638_v54 = vpop.f32.mrf.mxu1  ;;  %10911 = vst [vmem:[#allocation16_spill] sm:$0xff] %v10640_v57 }
 0x20e   : > { %10910 = vst [vmem:[#allocation15_spill] sm:$0xff] %v10638_v54 }
 0x20f   : > { %v10642_v33 = vpop.f32.mrf.mxu1 }
 0x210   : > { %10912 = vst [vmem:[#allocation17_spill] sm:$0xff] %v10642_v33 }
 0x211   : > { %v10644_v36 = vpop.f32.mrf.mxu1 }
 0x212   : > { %10913 = vst [vmem:[#allocation7_spill] sm:$0xff] %v10644_v36 }
 0x22e   : > { %v4956_v0 = vpop.f32.mrf.mxu0 }
 0x230   : > { %v4958_v35 = vpop.f32.mrf.mxu0 }
 0x232   : > { %v4960_v31 = vpop.f32.mrf.mxu0 }
 0x233   : > { %v5326_v19 = vpop.f32.mrf.mxu1 }
 0x234   : > { %v4962_v24 = vpop.f32.mrf.mxu0 }
 0x235   : > { %v5328_v46 = vpop.f32.mrf.mxu1 }
 0x236   : > { %v10648_v51 = vpop.f32.mrf.mxu0 }
 0x237   : > { %v10646_v16 = vpop.f32.mrf.mxu1 }
 0x238   : > { %v10652_v20 = vpop.f32.mrf.mxu0 }
 0x239   : > { %v10650_v18 = vpop.f32.mrf.mxu1 }
 0x23a   : > { %v10656_v4 = vpop.f32.mrf.mxu0 }
 0x23b   : > { %v10654_v9 = vpop.f32.mrf.mxu1 }
 0x23c   : > { %v10660_v44 = vpop.f32.mrf.mxu0 }
 0x23d   : > { %v10658_v39 = vpop.f32.mrf.mxu1  ;;  %10915 = vst [vmem:[#allocation6_spill] sm:$0xff] %v10660_v44 }
 0x23e   : > { %10914 = vst [vmem:[#allocation18_spill] sm:$0xff] %v10658_v39  ;;  %v10664_v11 = vpop.f32.mrf.mxu0 }
 0x23f   : > { %v10662_v32 = vpop.f32.mrf.mxu1  ;;  %10917 = vst [vmem:[#allocation20_spill] sm:$0xff] %v10664_v11 }
 0x240   : > { %10916 = vst [vmem:[#allocation5_spill] sm:$0xff] %v10662_v32  ;;  %v10668_v33 = vpop.f32.mrf.mxu0  ;;  %v6273_v32 = vlaneseq }
 0x241   : > { %v10666_v36 = vpop.f32.mrf.mxu1  ;;  %10919 = vst [vmem:[#allocation24_spill] sm:$0xff] %v10668_v33 }
 0x242   : > { %10918 = vst [vmem:[#allocation23_spill] sm:$0xff] %v10666_v36  ;;  %v10672_v57 = vpop.f32.mrf.mxu0  ;;  %v4169_v36 = vadd.f32 %v4114_v28, %v10524_v56  ;;  %v6271_v56 = vld [vmem:[%s10841_s4] sm:$0x3] }
 0x243   : > { %v10670_v54 = vpop.f32.mrf.mxu1  ;;  %10921 = vst [vmem:[#allocation25_spill] sm:$0xff] %v10672_v57  ;;  %v4170_v57 = vadd.f32 %v4116_v55, %v10535_v47  ;;  %v4173_v47 = vadd.f32 %v10596_v21, %v10551_v10  ;;  %v4175_v21 = vadd.f32 %v10604_v37, %v10563_v61 }
 0x244   : > { %10920 = vst [vmem:[#allocation8_spill] sm:$0xff] %v10670_v54  ;;  %v10676_v8 = vpop.f32.mrf.mxu0  ;;  %v6274_v54 = vshrl.u32 %v6273_v32, 7 }
 0x245   : > { %v10674_v7 = vpop.f32.mrf.mxu1  ;;  %10923 = vst [vmem:[#allocation9_spill] sm:$0xff] %v10676_v8  ;;  %v4171_v8 = vadd.f32 %v4118_v63, %v10542_v58 }
 0x246   : > { %10922 = vst [vmem:[#allocation10_spill] sm:$0xff] %v10674_v7  ;;  %v10680_v39 = vpop.f32.mrf.mxu0  ;;  %v4626_v7 = vadd.f32 %v4571_v26, %v4169_v36  ;;  %v6299_v26 = vld [vmem:[%s10842_s5] sm:$0x3] }
 0x247   : > { %v10678_v43 = vpop.f32.mrf.mxu1  ;;  %10925 = vst [vmem:[#allocation21_spill] sm:$0xff] %v10680_v39  ;;  %v6275_v39 = vsub.s32 0, %v6274_v54  ;;  %v4628_v58 = vadd.f32 %v10594_v40, %v4171_v8 }
 0x248   : > { %10924 = vst [vmem:[#allocation12_spill] sm:$0xff] %v10678_v43  ;;  %v10684_v11 = vpop.f32.mrf.mxu0  ;;  %v5011_v5 = vadd.f32 %v4956_v0, %v4626_v7  ;;  %v4176_v0 = vadd.f32 %v10608_v38, %v10566_v62 }
 0x249   : > { %v10682_v44 = vpop.f32.mrf.mxu1  ;;  %10927 = vst [vmem:[#allocation19_spill] sm:$0xff] %v10684_v11  ;;  %v4172_v11 = vadd.f32 %v10592_v59, %v10548_v23  ;;  %v4174_v23 = vadd.f32 %v10600_v30, %v10560_v34  ;;  %v6279_v59 = vsub.s32 1, %v6274_v54  ;;  %v5013_v8 = vadd.f32 %v4960_v31, %v4628_v58 }
 0x24a   : > { %10926 = vst [vmem:[#allocation22_spill] sm:$0xff] %v10682_v44  ;;  %v10690_v41 = vpop.f32.mrf.mxu0  ;;  %v4627_v44 = vadd.f32 %v10590_v52, %v4170_v57  ;;  %v10713_v52 = vrot.slane %v6271_v56, %v6275_v39  ;;  %v5381_v40 = vadd.f32 %v5326_v19, %v5011_v5  ;;  %v4630_v57 = vadd.f32 %v10602_v6, %v4173_v47  ;;  %v10929_v47 = vld [vmem:[#allocation14_spill] sm:$0xff] }
 0x24b   : > { %v10687_v33 = vpop.f32.mrf.mxu1  ;;  %v4629_v10 = vadd.f32 %v10598_v53, %v4172_v11  ;;  %v4177_v34 = vadd.f32 %v10612_v29, %v10569_v1  ;;  %v10723_v30 = vrot.slane %v6299_v26, %v6275_v39  ;;  %v4178_v54 = vadd.f32 %v10616_v22, %v10572_v48 }
 0x24c   : > { %v10703_v28 = vpop.f32.mrf.mxu0  ;;  %v5012_v55 = vadd.f32 %v4958_v35, %v4627_v44  ;;  %v4631_v61 = vadd.f32 %v10606_v14, %v4174_v23  ;;  %v4179_v6 = vadd.f32 %v10620_v15, %v10575_v12  ;;  %v10732_v62 = vrot.slane %v6271_v56, %v6279_v59 }
 0x24d   : > { %v10693_v43 = vpop.f32.mrf.mxu1  ;;  %v5014_v35 = vadd.f32 %v4962_v24, %v4629_v10  ;;  %v10734_v38 = vrot.slane %v6299_v26, %v6279_v59  ;;  %v4632_v29 = vadd.f32 %v10610_v2, %v4175_v21  ;;  %v5383_v5 = vadd.f32 %v10646_v16, %v5013_v8  ;;  %v10933_v10 = vld [vmem:[#allocation11_spill] sm:$0xff]  ;;  %v10934_v21 = vld [vmem:[#allocation16_spill] sm:$0xff]  ;;  %v10935_v8 = vld [vmem:[#allocation18_spill] sm:$0xff] }
 0x24e   : > { %v5382_v53 = vadd.f32 %v5328_v46, %v5012_v55  ;;  %v5015_v48 = vadd.f32 %v10648_v51, %v4630_v57  ;;  %v4633_v19 = vadd.f32 %v10614_v27, %v4176_v0  ;;  %v4634_v14 = vadd.f32 %v10618_v3, %v4177_v34  ;;  %v10931_v55 = vld [vmem:[#allocation3_spill] sm:$0xff]  ;;  %v10936_v0 = vld [vmem:[#allocation5_spill] sm:$0xff] }
 0x24f   : > { %v10711_v7 = vpop.f32.mrf.mxu1  ;;  %v4180_v12 = vadd.f32 %v10624_v50, %v10578_v60  ;;  %v4181_v15 = vadd.f32 %v10628_v13, %v10581_v45  ;;  %v4635_v24 = vadd.f32 %v10622_v49, %v4178_v54  ;;  %v5384_v2 = vadd.f32 %v10650_v18, %v5014_v35  ;;  %v10928_v18 = vld [vmem:[#allocation13_spill] sm:$0xff] }
 0x250   : > { %v4636_v51 = vadd.f32 %v10626_v25, %v4179_v6  ;;  %v4182_v27 = vadd.f32 %v10632_v17, %v10584_v42  ;;  %v5016_v3 = vadd.f32 %v10652_v20, %v4631_v61  ;;  %v5017_v60 = vadd.f32 %v10656_v4, %v4632_v29  ;;  %v10930_v25 = vld [vmem:[#allocation4_spill] sm:$0xff]  ;;  %v10932_v17 = vld [vmem:[#allocation6_spill] sm:$0xff] }
 0x251   : > { %v10730_v37 = vpop.f32.mrf.mxu1  ;;  %v5385_v45 = vadd.f32 %v10654_v9, %v5015_v48  ;;  %v4637_v56 = vadd.f32 %v10928_v18, %v4180_v12  ;;  %v4638_v58 = vadd.f32 %v10929_v47, %v4181_v15  ;;  %v4183_v42 = vadd.f32 %v10931_v55, %v10930_v25  ;;  %v10944_v55 = vld [vmem:[#allocation10_spill] sm:$0xff] }
 0x252   : > { %v5018_v20 = vadd.f32 %v10932_v17, %v4633_v19  ;;  %v5386_v57 = vadd.f32 %v10935_v8, %v5016_v3  ;;  %v5387_v34 = vadd.f32 %v10936_v0, %v5017_v60  ;;  %v10941_v3 = vld [vmem:[#allocation17_spill] sm:$0xff]  ;;  %v10947_v8 = vld [vmem:[#allocation12_spill] sm:$0xff]  ;;  %v10948_v0 = vld [vmem:[#allocation19_spill] sm:$0xff] }
 0x253   : > { %v4640_v60 = vadd.f32 %v10941_v3, %v4183_v42  ;;  %v10945_v17 = vld [vmem:[#allocation9_spill] sm:$0xff] }
 0x26e   : > { %v5783_v63 = vpop.f32.mrf.mxu0 }
 0x26f   : > { %v5838_v44 = vadd.f32 %v5783_v63, %v5381_v40  ;;  %v4184_v40 = vadd.f32 %v10934_v21, %v10933_v10 }
 0x270   : > { %v5785_v36 = vpop.f32.mrf.mxu0 }
 0x271   : > { %v5839_v22 = vadd.f32 %v5785_v36, %v5382_v53  ;;  %v10937_v36 = vld [vmem:[#allocation20_spill] sm:$0xff] }
 0x272   : > { %v5787_v1 = vpop.f32.mrf.mxu0  ;;  %v5019_v54 = vadd.f32 %v10937_v36, %v4634_v14 }
 0x273   : > { %v6168_v31 = vpop.f32.mrf.mxu1  ;;  %v5840_v39 = vadd.f32 %v5787_v1, %v5383_v5  ;;  %v10939_v5 = vld [vmem:[#allocation23_spill] sm:$0xff] }
 0x274   : > { %v5789_v46 = vpop.f32.mrf.mxu0  ;;  %v6223_v16 = vadd.f32 %v6168_v31, %v5838_v44  ;;  %v10938_v44 = vld [vmem:[#allocation24_spill] sm:$0xff]  ;;  %v5388_v48 = vadd.f32 %v10939_v5, %v5018_v20  ;;  %v5022_v20 = vadd.f32 %v10945_v17, %v4637_v56 }
 0x275   : > { %v6170_v50 = vpop.f32.mrf.mxu1  ;;  %v5841_v11 = vadd.f32 %v5789_v46, %v5384_v2  ;;  %v5020_v61 = vadd.f32 %v10938_v44, %v4635_v24  ;;  %v10940_v24 = vld [vmem:[#allocation15_spill] sm:$0xff] }
 0x276   : > { %v5793_v32 = vpop.f32.mrf.mxu0  ;;  %v6283_v13 = vmul.f32 %v10713_v52, %v6223_v16  ;;  %v6224_v49 = vadd.f32 %v6170_v50, %v5839_v22  ;;  %v10942_v50 = vld [vmem:[#allocation8_spill] sm:$0xff] }
 0x277   : > { %v6172_v26 = vpop.f32.mrf.mxu1  ;;  %v5842_v59 = vadd.f32 %v5793_v32, %v5385_v45  ;;  %v5389_v32 = vadd.f32 %v10942_v50, %v5019_v54  ;;  %v10943_v45 = vld [vmem:[#allocation25_spill] sm:$0xff]  ;;  %v5390_v42 = vadd.f32 %v10944_v55, %v5020_v61 }
 0x278   : > { %v5795_v4 = vpop.f32.mrf.mxu0  ;;  %v6311_v23 = vadd.f32 %v10723_v30, %v6283_v13  ;;  %v6284_v9 = vmul.f32 %v10732_v62, %v6224_v49  ;;  %v6225_v63 = vadd.f32 %v6172_v26, %v5840_v39  ;;  %v4639_v39 = vadd.f32 %v10940_v24, %v4182_v27  ;;  %v10946_v26 = vld [vmem:[#allocation21_spill] sm:$0xff] }
 0x279   : > { %v6174_v53 = vpop.f32.mrf.mxu1  ;;  %v5843_v12 = vadd.f32 %v5795_v4, %v5386_v57  ;;  %v5021_v13 = vadd.f32 %v10943_v45, %v4636_v51  ;;  %v5023_v51 = vadd.f32 %v10946_v26, %v4638_v58 }
 0x27a   : > { %v5797_v35 = vpop.f32.mrf.mxu0  ;;  %v6312_v6 = vadd.f32 %v10734_v38, %v6284_v9  ;;  %v6285_v1 = vmul.f32 %v10713_v52, %v6225_v63  ;;  %v6226_v29 = vadd.f32 %v6174_v53, %v5841_v11  ;;  %v6327_v22 = vmax.f32 %v6311_v23, 0.0 }
 0x27b   : > { %v6178_v19 = vpop.f32.mrf.mxu1  ;;  %v5844_v15 = vadd.f32 %v5797_v35, %v5387_v34  ;;  %v5391_v57 = vadd.f32 %v10947_v8, %v5021_v13  ;;  %v5024_v34 = vadd.f32 %v10948_v0, %v4639_v39 }
 0x27c   : > { %v5799_v31 = vpop.f32.mrf.mxu0  ;;  %v6328_v46 = vmax.f32 %v6312_v6, 0.0  ;;  %v6313_v14 = vadd.f32 %v10723_v30, %v6285_v1  ;;  %v6286_v2 = vmul.f32 %v10732_v62, %v6226_v29  ;;  %v6227_v16 = vadd.f32 %v6178_v19, %v5842_v59  ;;  %v10949_v6 = vld [vmem:[#allocation7_spill] sm:$0xff]  ;;  %v10950_v29 = vld [vmem:[#allocation22_spill] sm:$0xff] }
 0x27d   : > { %v6180_v49 = vpop.f32.mrf.mxu1  ;;  %v5845_v27 = vadd.f32 %v5799_v31, %v5388_v48  ;;  %v4641_v1 = vadd.f32 %v10949_v6, %v4184_v40  ;;  %v5392_v5 = vadd.f32 %v10950_v29, %v5022_v20  ;;  %v5025_v48 = vadd.f32 %v10690_v41, %v4640_v60 }
 0x27e   : > { %v5803_v11 = vpop.f32.mrf.mxu0  ;;  %v7186_v18 = vpack.c.bf16 %v6328_v46, %v6327_v22  ;;  %v6314_v47 = vadd.f32 %v10734_v38, %v6286_v2  ;;  %v6287_v25 = vmul.f32 %v10713_v52, %v6227_v16  ;;  %v6228_v4 = vadd.f32 %v6180_v49, %v5843_v12 }
 0x27f   : > { %v6182_v23 = vpop.f32.mrf.mxu1  ;;  %v6329_v63 = vmax.f32 %v6313_v14, 0.0  ;;  %v5846_v21 = vadd.f32 %v5803_v11, %v5389_v32  ;;  %v5393_v2 = vadd.f32 %v10687_v33, %v5023_v51  ;;  %v5026_v16 = vadd.f32 %v10703_v28, %v4641_v1 }
 0x280   : > { %v5805_v9 = vpop.f32.mrf.mxu0  ;;  %6391 = vst [vmem:[%s10780_s9] sm:$0xff] %v7186_v18  ;;  %v6330_v59 = vmax.f32 %v6314_v47, 0.0  ;;  %v6229_v10 = vadd.f32 %v6182_v23, %v5844_v15  ;;  %v6315_v36 = vadd.f32 %v10723_v30, %v6287_v25  ;;  %v6288_v54 = vmul.f32 %v10732_v62, %v6228_v4 }
 0x281   : > { %v6184_v56 = vpop.f32.mrf.mxu1  ;;  %v5847_v61 = vadd.f32 %v5805_v9, %v5390_v42  ;;  %v5394_v41 = vadd.f32 %v10693_v43, %v5024_v34  ;;  %v5395_v43 = vadd.f32 %v10711_v7, %v5025_v48  ;;  %v5396_v4 = vadd.f32 %v10730_v37, %v5026_v16 }
 0x282   : > { %v5807_v53 = vpop.f32.mrf.mxu0  ;;  %v7187_v58 = vpack.c.bf16 %v6330_v59, %v6329_v63  ;;  %v6289_v35 = vmul.f32 %v10713_v52, %v6229_v10  ;;  %v6230_v44 = vadd.f32 %v6184_v56, %v5845_v27  ;;  %v6316_v22 = vadd.f32 %v10734_v38, %v6288_v54 }
 0x283   : > { %v6188_v19 = vpop.f32.mrf.mxu1  ;;  %v5848_v14 = vadd.f32 %v5807_v53, %v5391_v57  ;;  %v6331_v40 = vmax.f32 %v6315_v36, 0.0 }
 0x284   : > { %v5809_v12 = vpop.f32.mrf.mxu0  ;;  %6392 = vst [vmem:[%s10780_s9 + $0x8] sm:$0xff] %v7187_v58  ;;  %v6317_v15 = vadd.f32 %v10723_v30, %v6289_v35  ;;  %v6290_v31 = vmul.f32 %v10732_v62, %v6230_v44  ;;  %v6231_v46 = vadd.f32 %v6188_v19, %v5846_v21  ;;  %v6332_v24 = vmax.f32 %v6316_v22, 0.0 }
 0x285   : > { %v6190_v39 = vpop.f32.mrf.mxu1  ;;  %v5849_v11 = vadd.f32 %v5809_v12, %v5392_v5 }
 0x286   : > { %v5813_v3 = vpop.f32.mrf.mxu0  ;;  %v6318_v60 = vadd.f32 %v10734_v38, %v6290_v31  ;;  %v6291_v50 = vmul.f32 %v10713_v52, %v6231_v46  ;;  %v6232_v32 = vadd.f32 %v6190_v39, %v5847_v61  ;;  %v7188_v45 = vpack.c.bf16 %v6332_v24, %v6331_v40 }
 0x287   : > { %v6333_v13 = vmax.f32 %v6317_v15, 0.0  ;;  %v6192_v49 = vpop.f32.mrf.mxu1  ;;  %v5850_v18 = vadd.f32 %v5813_v3, %v5393_v2 }
 0x288   : > { %v5815_v33 = vpop.f32.mrf.mxu0  ;;  %v6334_v47 = vmax.f32 %v6318_v60, 0.0  ;;  %v6319_v28 = vadd.f32 %v10723_v30, %v6291_v50  ;;  %v6292_v25 = vmul.f32 %v10732_v62, %v6232_v32  ;;  %v6233_v27 = vadd.f32 %v6192_v49, %v5848_v14  ;;  %6393 = vst [vmem:[%s10780_s9 + $0x10] sm:$0xff] %v7188_v45 }
 0x289   : > { %v6194_v55 = vpop.f32.mrf.mxu1  ;;  %v5851_v51 = vadd.f32 %v5815_v33, %v5394_v41 }
 0x28a   : > { %v5817_v42 = vpop.f32.mrf.mxu0  ;;  %v7189_v17 = vpack.c.bf16 %v6334_v47, %v6333_v13  ;;  %v6320_v20 = vadd.f32 %v10734_v38, %v6292_v25  ;;  %v6293_v26 = vmul.f32 %v10713_v52, %v6233_v27  ;;  %v6234_v23 = vadd.f32 %v6194_v55, %v5849_v11 }
 0x28b   : > { %v6198_v9 = vpop.f32.mrf.mxu1  ;;  %v6335_v59 = vmax.f32 %v6319_v28, 0.0  ;;  %v5852_v7 = vadd.f32 %v5817_v42, %v5395_v43 }
 0x28c   : > { %v5819_v63 = vpop.f32.mrf.mxu0  ;;  %6394 = vst [vmem:[%s10780_s9 + $0x18] sm:$0xff] %v7189_v17  ;;  %v6336_v10 = vmax.f32 %v6320_v20, 0.0  ;;  %v6235_v21 = vadd.f32 %v6198_v9, %v5850_v18  ;;  %v6321_v8 = vadd.f32 %v10723_v30, %v6293_v26  ;;  %v6294_v57 = vmul.f32 %v10732_v62, %v6234_v23 }
 0x28d   : > { %v6200_v0 = vpop.f32.mrf.mxu1  ;;  %v5853_v56 = vadd.f32 %v5819_v63, %v5396_v4 }
 0x28e   : > { %v7190_v34 = vpack.c.bf16 %v6336_v10, %v6335_v59  ;;  %v6295_v36 = vmul.f32 %v10713_v52, %v6235_v21  ;;  %v6236_v54 = vadd.f32 %v6200_v0, %v5851_v51  ;;  %v6322_v37 = vadd.f32 %v10734_v38, %v6294_v57 }
 0x28f   : > { %v6202_v53 = vpop.f32.mrf.mxu1  ;;  %v6337_v61 = vmax.f32 %v6321_v8, 0.0 }
 0x290   : > { %6395 = vst [vmem:[%s10780_s9 + $0x20] sm:$0xff] %v7190_v34  ;;  %v6323_v58 = vadd.f32 %v10723_v30, %v6295_v36  ;;  %v6296_v35 = vmul.f32 %v10732_v62, %v6236_v54  ;;  %v6237_v44 = vadd.f32 %v6202_v53, %v5852_v7  ;;  %v6338_v6 = vmax.f32 %v6322_v37, 0.0 }
 0x291   : > { %v6204_v1 = vpop.f32.mrf.mxu1 }
 0x292   : > { %v6324_v29 = vadd.f32 %v10734_v38, %v6296_v35  ;;  %v6297_v5 = vmul.f32 %v10713_v52, %v6237_v44  ;;  %v6238_v48 = vadd.f32 %v6204_v1, %v5853_v56  ;;  %v7191_v22 = vpack.c.bf16 %v6338_v6, %v6337_v61 }
 0x293   : > { %v6339_v19 = vmax.f32 %v6323_v58, 0.0 }
 0x294   : > { %v6340_v12 = vmax.f32 %v6324_v29, 0.0  ;;  %v6325_v15 = vadd.f32 %v10723_v30, %v6297_v5  ;;  %v6298_v31 = vmul.f32 %v10732_v62, %v6238_v48  ;;  %6396 = vst [vmem:[%s10780_s9 + $0x28] sm:$0xff] %v7191_v22 }
 0x296   : > { %v7192_v46 = vpack.c.bf16 %v6340_v12, %v6339_v19  ;;  %v6326_v14 = vadd.f32 %v10734_v38, %v6298_v31  ;;  %v6341_v2 = vmax.f32 %v6325_v15, 0.0 }
 0x298   : > { %6397 = vst [vmem:[%s10780_s9 + $0x30] sm:$0xff] %v7192_v46  ;;  %v6342_v16 = vmax.f32 %v6326_v14, 0.0 }
 0x29a   : > { %v7193_v40 = vpack.c.bf16 %v6342_v16, %v6341_v2 }
 0x29c   : > { %6398 = vst [vmem:[%s10780_s9 + $0x38] sm:$0xff] %v7193_v40 }
 0x29d PF: > { %s16_s23 = sadd.s32 1, %s7833_s23   ;;  %s10951_s21 = smov %s7829_s22 }
 0x29e   : > { %p13_p5 = scmp.ge.s32.totalorder %s16_s23, 4   ;;  %s10952_s22 = smov %s10954_s24 }
 0x2a0   :  { %15 = sbr.rel (!%p13_p5) target bundleno = 2 (0x2), region = 93 }

</bundles_post_ra>
